<compile_context>
chip_gen: v5e
topology: v5e:2x2
jax: 0.10.0
libtpu: 0.0.40
codegen_flags: <defaults>
</compile_context>

<pallas_src>
import functools

import jax
import jax.numpy as jnp
from jax.experimental import pallas as pl
from jax.experimental.pallas import tpu as pltpu

ACT_DTYPE = jnp.bfloat16   # MXU operand / inter-layer activation dtype


def _round_up(x, m):
    return ((x + m - 1) // m) * m


# ---------------------------------------------------------------------------
# Pallas kernel: single-K-step batched matmul, fused f32 bias + activation
# ---------------------------------------------------------------------------
def _mm_bias_act_kernel(a_ref, w_ref, b_ref, o_ref, *, activation):
    r = jnp.dot(a_ref[...], w_ref[...], preferred_element_type=jnp.float32)
    r = r + b_ref[...]                      # f32 epilogue (v5e-safe)
    if activation == "relu":
        r = jnp.maximum(r, 0.0)
    elif activation == "tanh":
        r = jnp.tanh(r)
    o_ref[...] = r.astype(o_ref.dtype)


def fused_matmul(a, w, b, activation, cout):
    """act(a @ w + b), batched over a leading phase axis P.

    a: (P, M, K)   activations (cast to bf16 here)
    w: (P, Kp, Np) pre-padded bf16 weights (Kp, Np multiples of 128)
    b: (1, Np)     pre-padded f32 bias
    returns (P, M, cout) bf16.
    """
    P, M, K = a.shape
    _, Kp, Np = w.shape

    TM = min(256, _round_up(M, 16))   # bf16 vreg packs (16,128): keep sublanes dense
    Mp = _round_up(M, TM)
    TN = 128                          # lane-dense stores; >=2 N-blocks when Np>=256

    a_p = jnp.pad(a.astype(ACT_DTYPE), ((0, 0), (0, Mp - M), (0, Kp - K)))

    grid = (P, Mp // TM, Np // TN)
    kernel = functools.partial(_mm_bias_act_kernel, activation=activation)

    out = pl.pallas_call(
        kernel,
        out_shape=jax.ShapeDtypeStruct((P, Mp, Np), ACT_DTYPE),
        grid=grid,
        in_specs=[
            pl.BlockSpec((None, TM, Kp), lambda p, i, j: (p, i, 0)),
            pl.BlockSpec((None, Kp, TN), lambda p, i, j: (p, 0, j)),
            pl.BlockSpec((1, TN), lambda p, i, j: (0, j)),
        ],
        out_specs=pl.BlockSpec((None, TM, TN), lambda p, i, j: (p, i, j)),
        compiler_params=pltpu.CompilerParams(
            dimension_semantics=("parallel", "parallel", "parallel")),
    )(a_p, w, b)

    return out[:, :M, :cout]


# ---------------------------------------------------------------------------
# BatchNorm (training-mode batch stats) -> per-channel affine
# ---------------------------------------------------------------------------
def bn_scale_shift(x, gamma, beta, eps=1e-5):
    """PyTorch training-mode BatchNorm2d stats on NHWC -> (scale, shift) f32."""
    xf = x.astype(jnp.float32)
    mean = jnp.mean(xf, axis=(0, 1, 2))
    var = jnp.var(xf, axis=(0, 1, 2))          # biased variance (torch training fwd)
    scale = gamma * jax.lax.rsqrt(var + eps)
    shift = beta - mean * scale
    return scale, shift


def _apply_bn(x, bn):
    if bn is None:
        return x
    scale, shift = bn
    return (x.astype(jnp.float32) * scale + shift).astype(ACT_DTYPE)


# ---------------------------------------------------------------------------
# Conv / ConvTranspose built on the fused Pallas matmul
# ---------------------------------------------------------------------------
def conv2d(x, prep, cout, *, stride=1, padding=1, k=3, activation="none", bn=None):
    """x: NHWC bf16, prep = (w:(1,Kp,Np) bf16, b:(1,Np) f32)."""
    w, b = prep
    N, H, W, Cin = x.shape
    x = _apply_bn(x, bn)                                   # BN affine pre-pad (exact)
    xp = jnp.pad(x, ((0, 0), (padding, padding), (padding, padding), (0, 0)))
    Ho = (H + 2 * padding - k) // stride + 1
    Wo = (W + 2 * padding - k) // stride + 1

    taps = []
    for ky in range(k):
        for kx in range(k):
            taps.append(xp[:, ky:ky + stride * (Ho - 1) + 1:stride,
                           kx:kx + stride * (Wo - 1) + 1:stride, :])
    a = jnp.concatenate(taps, axis=-1).reshape(1, N * Ho * Wo, k * k * Cin)

    out = fused_matmul(a, w, b, activation, cout)
    return out[0].reshape(N, Ho, Wo, cout)


def conv_transpose2d(x, prep, cout, *, activation="relu", bn=None):
    """ConvTranspose2d(k=4, s=2, p=1) via sub-pixel phase decomposition.

    All 4 output phases are computed in ONE pallas_call (leading phase grid
    axis); results are interleaved into the 2x-upsampled output."""
    w, b = prep
    N, H, W, Cin = x.shape
    x = _apply_bn(x, bn)
    xp = jnp.pad(x, ((0, 0), (1, 1), (1, 1), (0, 0)))

    a_phases = []
    for py in range(2):
        for px in range(2):
            taps = []
            for di in range(2):
                for dj in range(2):
                    taps.append(xp[:, py + di:py + di + H, px + dj:px + dj + W, :])
            a_phases.append(jnp.concatenate(taps, axis=-1).reshape(N * H * W, 4 * Cin))
    a = jnp.stack(a_phases, axis=0)                        # (4, M, 4*Cin)

    out = fused_matmul(a, w, b, activation, cout)          # (4, M, cout)
    out = out.reshape(2, 2, N, H, W, cout)                 # [py, px, n, y, x, c]
    out = jnp.transpose(out, (2, 3, 0, 4, 1, 5)).reshape(N, 2 * H, 2 * W, cout)
    return out


# ---------------------------------------------------------------------------
# Parameter init (raw PyTorch layout) + one-time kernel-layout preparation
# ---------------------------------------------------------------------------
def _init_conv(key, cout, cin, k):
    bound = 1.0 / jnp.sqrt(cin * k * k)
    kw, kb = jax.random.split(key)
    w = jax.random.uniform(kw, (cout, cin, k, k), jnp.float32, -bound, bound)
    b = jax.random.uniform(kb, (cout,), jnp.float32, -bound, bound)
    return w, b


def _init_convT(key, cin, cout, k):
    bound = 1.0 / jnp.sqrt(cin * k * k)
    kw, kb = jax.random.split(key)
    w = jax.random.uniform(kw, (cin, cout, k, k), jnp.float32, -bound, bound)
    b = jax.random.uniform(kb, (cout,), jnp.float32, -bound, bound)
    return w, b


def init_params(key):
    ks = jax.random.split(key, 11)
    p = {}
    p["e0"] = _init_conv(ks[0], 64, 1, 3)
    p["e1"] = _init_conv(ks[1], 64, 64, 3)      # stride 2
    p["bn1"] = (jnp.ones((64,)), jnp.zeros((64,)))
    p["e2"] = _init_conv(ks[2], 128, 64, 3)
    p["e3"] = _init_conv(ks[3], 128, 128, 3)    # stride 2
    p["bn2"] = (jnp.ones((128,)), jnp.zeros((128,)))
    p["e4"] = _init_conv(ks[4], 256, 128, 3)
    p["e5"] = _init_conv(ks[5], 256, 256, 3)
    p["e6"] = _init_conv(ks[6], 256, 256, 3)    # stride 2
    p["bn3"] = (jnp.ones((256,)), jnp.zeros((256,)))
    p["d0"] = _init_convT(ks[7], 256, 128, 4)
    p["d1"] = _init_convT(ks[8], 128, 64, 4)
    p["d2"] = _init_convT(ks[9], 64, 32, 4)
    p["d3"] = _init_conv(ks[10], 2, 32, 3)
    return p


def _prep_conv(w, b):
    cout, cin, kh, kw = w.shape
    K = kh * kw * cin
    w_mat = jnp.transpose(w, (2, 3, 1, 0)).reshape(K, cout)     # (K, Cout)
    Kp, Np = _round_up(K, 128), _round_up(cout, 128)
    w_mat = jnp.pad(w_mat, ((0, Kp - K), (0, Np - cout))).astype(ACT_DTYPE)[None]
    b_p = jnp.pad(b.astype(jnp.float32), (0, Np - cout))[None]
    return w_mat, b_p                                            # (1,Kp,Np), (1,Np)


def _prep_convT(w, b):
    cin, cout, kh, kw = w.shape                                  # (Cin, Cout, 4, 4)
    K = 4 * cin
    mats = []
    for py in range(2):
        for px in range(2):
            rows = []
            for di in range(2):
                for dj in range(2):
                    rows.append(w[:, :, 3 - py - 2 * di, 3 - px - 2 * dj])
            mats.append(jnp.concatenate(rows, axis=0))           # (4*Cin, Cout)
    wm = jnp.stack(mats, axis=0)                                 # (4, K, Cout)
    Kp, Np = _round_up(K, 128), _round_up(cout, 128)
    wm = jnp.pad(wm, ((0, 0), (0, Kp - K), (0, Np - cout))).astype(ACT_DTYPE)
    b_p = jnp.pad(b.astype(jnp.float32), (0, Np - cout))[None]
    return wm, b_p                                               # (4,Kp,Np), (1,Np)


def prepare_params(raw):
    """One-time layout/pad/cast of all weights to kernel form (run outside jit)."""
    p = {}
    for name in ["e0", "e1", "e2", "e3", "e4", "e5", "e6", "d3"]:
        p[name] = _prep_conv(*raw[name])
    for name in ["d0", "d1", "d2"]:
        p[name] = _prep_convT(*raw[name])
    for name in ["bn1", "bn2", "bn3"]:
        p[name] = raw[name]
    return p


# ---------------------------------------------------------------------------
# Forward pass (matches ColorizationModel.forward, NCHW in / NCHW out)
# ---------------------------------------------------------------------------
def colorization_forward(params, x_nchw):
    x = jnp.transpose(x_nchw, (0, 2, 3, 1)).astype(ACT_DTYPE)   # -> NHWC bf16

    # encoder
    x = conv2d(x, params["e0"], 64, activation="relu")
    x = conv2d(x, params["e1"], 64, stride=2, activation="relu")
    bn = bn_scale_shift(x, *params["bn1"])
    x = conv2d(x, params["e2"], 128, activation="relu", bn=bn)
    x = conv2d(x, params["e3"], 128, stride=2, activation="relu")
    bn = bn_scale_shift(x, *params["bn2"])
    x = conv2d(x, params["e4"], 256, activation="relu", bn=bn)
    x = conv2d(x, params["e5"], 256, activation="relu")
    x = conv2d(x, params["e6"], 256, stride=2, activation="relu")
    bn = bn_scale_shift(x, *params["bn3"])

    # decoder (sub-pixel ConvTranspose, 4 phases fused per call)
    x = conv_transpose2d(x, params["d0"], 128, activation="relu", bn=bn)
    x = conv_transpose2d(x, params["d1"], 64, activation="relu")
    x = conv_transpose2d(x, params["d2"], 32, activation="relu")
    x = conv2d(x, params["d3"], 2, activation="tanh")

    return jnp.transpose(x, (0, 3, 1, 2)).astype(jnp.float32)   # -> NCHW f32


if __name__ == "__main__":
    key = jax.random.PRNGKey(0)
    k_params, k_x = jax.random.split(key)

    raw = init_params(k_params)
    params = prepare_params(raw)       # weight layout/pad/cast once, outside jit

    # grayscale input: batch=2, channels=1, spatial=16x16 (NCHW, like PyTorch)
    x = jax.random.normal(k_x, (2, 1, 16, 16), jnp.float32)

    fwd = jax.jit(colorization_forward)
    out = jax.block_until_ready(fwd(params, x))

    assert out.shape == (2, 2, 16, 16), out.shape
    assert bool(jnp.all(jnp.isfinite(out)))
    assert bool(jnp.all(jnp.abs(out) <= 1.0 + 1e-6))  # tanh range
    print("KERNEL_OK")
</pallas_src>

<mosaic_0001>
module attributes {stable_mosaic.version = 11 : i64} {
  func.func @_mm_bias_act_kernel(%arg0: i32, %arg1: i32, %arg2: i32, %arg3: memref<1x256x128xbf16, #tpu.memory_space<vmem>>, %arg4: memref<1x128x128xbf16, #tpu.memory_space<vmem>>, %arg5: memref<1x128xf32, #tpu.memory_space<vmem>>, %arg6: memref<1x256x128xbf16, #tpu.memory_space<vmem>>) attributes {dimension_semantics = [#tpu.dimension_semantics<parallel>, #tpu.dimension_semantics<parallel>, #tpu.dimension_semantics<parallel>], iteration_bounds = array<i64: 1, 2, 1>, scalar_prefetch = 0 : i64, scratch_operands = 0 : i64, tpu.core_type = #tpu.core_type<tc>, window_params = [{transform_indices = @transform_0, window_bounds = array<i64: 1, 256, 128>}, {transform_indices = @transform_1, window_bounds = array<i64: 1, 128, 128>}, {transform_indices = @transform_2, window_bounds = array<i64: 1, 128>}, {transform_indices = @transform_3, window_bounds = array<i64: 1, 256, 128>}]} {
    %c0 = arith.constant 0 : index
    %c0_0 = arith.constant 0 : index
    %c0_1 = arith.constant 0 : index
    %0 = vector.load %arg3[%c0, %c0_0, %c0_1] : memref<1x256x128xbf16, #tpu.memory_space<vmem>>, vector<1x256x128xbf16>
    %1 = vector.shape_cast %0 : vector<1x256x128xbf16> to vector<256x128xbf16>
    %c0_2 = arith.constant 0 : index
    %c0_3 = arith.constant 0 : index
    %c0_4 = arith.constant 0 : index
    %2 = vector.load %arg4[%c0_2, %c0_3, %c0_4] : memref<1x128x128xbf16, #tpu.memory_space<vmem>>, vector<1x128x128xbf16>
    %3 = vector.shape_cast %2 : vector<1x128x128xbf16> to vector<128x128xbf16>
    %cst = arith.constant dense<0.000000e+00> : vector<256x128xf32>
    %4 = tpu.matmul %1, %3, %cst {dimension_numbers = #tpu.dot_dimension_numbers<[1], [0], [0], [1], [0, 0, 1, 1], [], []>} : vector<256x128xbf16>, vector<128x128xbf16>, vector<256x128xf32> -> vector<256x128xf32>
    %c0_5 = arith.constant 0 : index
    %c0_6 = arith.constant 0 : index
    %5 = vector.load %arg5[%c0_5, %c0_6] : memref<1x128xf32, #tpu.memory_space<vmem>>, vector<1x128xf32>
    %6 = vector.broadcast %5 : vector<1x128xf32> to vector<256x128xf32>
    %7 = arith.addf %4, %6 : vector<256x128xf32>
    %cst_7 = arith.constant 0.000000e+00 : f32
    %8 = vector.broadcast %cst_7 : f32 to vector<256x128xf32>
    %9 = arith.maximumf %7, %8 : vector<256x128xf32>
    %10 = arith.truncf %9 : vector<256x128xf32> to vector<256x128xbf16>
    %c0_8 = arith.constant 0 : index
    %c0_9 = arith.constant 0 : index
    %c0_10 = arith.constant 0 : index
    %11 = vector.load %arg6[%c0_8, %c0_9, %c0_10] : memref<1x256x128xbf16, #tpu.memory_space<vmem>>, vector<1x256x128xbf16>
    %12 = vector.shape_cast %11 : vector<1x256x128xbf16> to vector<256x128xbf16>
    %13 = vector.shape_cast %10 : vector<256x128xbf16> to vector<1x256x128xbf16>
    tpu.vector_store %arg6[%c0_8, %c0_9, %c0_10], %13 {strides = array<i32>} : memref<1x256x128xbf16, #tpu.memory_space<vmem>>, vector<1x256x128xbf16>,
    return
  }
  func.func @transform_0(%arg0: i32, %arg1: i32, %arg2: i32) -> (i32, i32, i32) {
    %c0_i32 = arith.constant 0 : i32
    %c0_i32_0 = arith.constant 0 : i32
    return %arg0, %arg1, %c0_i32 : i32, i32, i32
  }
  func.func @transform_1(%arg0: i32, %arg1: i32, %arg2: i32) -> (i32, i32, i32) {
    %c0_i32 = arith.constant 0 : i32
    %c0_i32_0 = arith.constant 0 : i32
    return %arg0, %c0_i32, %arg2 : i32, i32, i32
  }
  func.func @transform_2(%arg0: i32, %arg1: i32, %arg2: i32) -> (i32, i32) {
    %c0_i32 = arith.constant 0 : i32
    %c0_i32_0 = arith.constant 0 : i32
    return %c0_i32, %arg2 : i32, i32
  }
  func.func @transform_3(%arg0: i32, %arg1: i32, %arg2: i32) -> (i32, i32, i32) {
    %c0_i32 = arith.constant 0 : i32
    return %arg0, %arg1, %arg2 : i32, i32, i32
  }
}

module attributes {stable_mosaic.version = 11 : i64} {
  func.func @_mm_bias_act_kernel(%arg0: i32, %arg1: i32, %arg2: i32, %arg3: memref<1x128x640xbf16, #tpu.memory_space<vmem>>, %arg4: memref<1x640x128xbf16, #tpu.memory_space<vmem>>, %arg5: memref<1x128xf32, #tpu.memory_space<vmem>>, %arg6: memref<1x128x128xbf16, #tpu.memory_space<vmem>>) attributes {dimension_semantics = [#tpu.dimension_semantics<parallel>, #tpu.dimension_semantics<parallel>, #tpu.dimension_semantics<parallel>], iteration_bounds = array<i64: 1, 1, 1>, scalar_prefetch = 0 : i64, scratch_operands = 0 : i64, tpu.core_type = #tpu.core_type<tc>, window_params = [{transform_indices = @transform_0, window_bounds = array<i64: 1, 128, 640>}, {transform_indices = @transform_1, window_bounds = array<i64: 1, 640, 128>}, {transform_indices = @transform_2, window_bounds = array<i64: 1, 128>}, {transform_indices = @transform_3, window_bounds = array<i64: 1, 128, 128>}]} {
    %c0 = arith.constant 0 : index
    %c0_0 = arith.constant 0 : index
    %c0_1 = arith.constant 0 : index
    %0 = vector.load %arg3[%c0, %c0_0, %c0_1] : memref<1x128x640xbf16, #tpu.memory_space<vmem>>, vector<1x128x640xbf16>
    %1 = vector.shape_cast %0 : vector<1x128x640xbf16> to vector<128x640xbf16>
    %c0_2 = arith.constant 0 : index
    %c0_3 = arith.constant 0 : index
    %c0_4 = arith.constant 0 : index
    %2 = vector.load %arg4[%c0_2, %c0_3, %c0_4] : memref<1x640x128xbf16, #tpu.memory_space<vmem>>, vector<1x640x128xbf16>
    %3 = vector.shape_cast %2 : vector<1x640x128xbf16> to vector<640x128xbf16>
    %cst = arith.constant dense<0.000000e+00> : vector<128x128xf32>
    %4 = tpu.matmul %1, %3, %cst {dimension_numbers = #tpu.dot_dimension_numbers<[1], [0], [0], [1], [0, 0, 1, 1], [], []>} : vector<128x640xbf16>, vector<640x128xbf16>, vector<128x128xf32> -> vector<128x128xf32>
    %c0_5 = arith.constant 0 : index
    %c0_6 = arith.constant 0 : index
    %5 = vector.load %arg5[%c0_5, %c0_6] : memref<1x128xf32, #tpu.memory_space<vmem>>, vector<1x128xf32>
    %6 = vector.broadcast %5 : vector<1x128xf32> to vector<128x128xf32>
    %7 = arith.addf %4, %6 : vector<128x128xf32>
    %cst_7 = arith.constant 0.000000e+00 : f32
    %8 = vector.broadcast %cst_7 : f32 to vector<128x128xf32>
    %9 = arith.maximumf %7, %8 : vector<128x128xf32>
    %10 = arith.truncf %9 : vector<128x128xf32> to vector<128x128xbf16>
    %c0_8 = arith.constant 0 : index
    %c0_9 = arith.constant 0 : index
    %c0_10 = arith.constant 0 : index
    %11 = vector.load %arg6[%c0_8, %c0_9, %c0_10] : memref<1x128x128xbf16, #tpu.memory_space<vmem>>, vector<1x128x128xbf16>
    %12 = vector.shape_cast %11 : vector<1x128x128xbf16> to vector<128x128xbf16>
    %13 = vector.shape_cast %10 : vector<128x128xbf16> to vector<1x128x128xbf16>
    tpu.vector_store %arg6[%c0_8, %c0_9, %c0_10], %13 {strides = array<i32>} : memref<1x128x128xbf16, #tpu.memory_space<vmem>>, vector<1x128x128xbf16>,
    return
  }
  func.func @transform_0(%arg0: i32, %arg1: i32, %arg2: i32) -> (i32, i32, i32) {
    %c0_i32 = arith.constant 0 : i32
    %c0_i32_0 = arith.constant 0 : i32
    return %arg0, %arg1, %c0_i32 : i32, i32, i32
  }
  func.func @transform_1(%arg0: i32, %arg1: i32, %arg2: i32) -> (i32, i32, i32) {
    %c0_i32 = arith.constant 0 : i32
    %c0_i32_0 = arith.constant 0 : i32
    return %arg0, %c0_i32, %arg2 : i32, i32, i32
  }
  func.func @transform_2(%arg0: i32, %arg1: i32, %arg2: i32) -> (i32, i32) {
    %c0_i32 = arith.constant 0 : i32
    %c0_i32_0 = arith.constant 0 : i32
    return %c0_i32, %arg2 : i32, i32
  }
  func.func @transform_3(%arg0: i32, %arg1: i32, %arg2: i32) -> (i32, i32, i32) {
    %c0_i32 = arith.constant 0 : i32
    return %arg0, %arg1, %arg2 : i32, i32, i32
  }
}

module attributes {stable_mosaic.version = 11 : i64} {
  func.func @_mm_bias_act_kernel(%arg0: i32, %arg1: i32, %arg2: i32, %arg3: memref<1x32x1152xbf16, #tpu.memory_space<vmem>>, %arg4: memref<1x1152x128xbf16, #tpu.memory_space<vmem>>, %arg5: memref<1x128xf32, #tpu.memory_space<vmem>>, %arg6: memref<1x32x128xbf16, #tpu.memory_space<vmem>>) attributes {dimension_semantics = [#tpu.dimension_semantics<parallel>, #tpu.dimension_semantics<parallel>, #tpu.dimension_semantics<parallel>], iteration_bounds = array<i64: 1, 1, 1>, scalar_prefetch = 0 : i64, scratch_operands = 0 : i64, tpu.core_type = #tpu.core_type<tc>, window_params = [{transform_indices = @transform_0, window_bounds = array<i64: 1, 32, 1152>}, {transform_indices = @transform_1, window_bounds = array<i64: 1, 1152, 128>}, {transform_indices = @transform_2, window_bounds = array<i64: 1, 128>}, {transform_indices = @transform_3, window_bounds = array<i64: 1, 32, 128>}]} {
    %c0 = arith.constant 0 : index
    %c0_0 = arith.constant 0 : index
    %c0_1 = arith.constant 0 : index
    %0 = vector.load %arg3[%c0, %c0_0, %c0_1] : memref<1x32x1152xbf16, #tpu.memory_space<vmem>>, vector<1x32x1152xbf16>
    %1 = vector.shape_cast %0 : vector<1x32x1152xbf16> to vector<32x1152xbf16>
    %c0_2 = arith.constant 0 : index
    %c0_3 = arith.constant 0 : index
    %c0_4 = arith.constant 0 : index
    %2 = vector.load %arg4[%c0_2, %c0_3, %c0_4] : memref<1x1152x128xbf16, #tpu.memory_space<vmem>>, vector<1x1152x128xbf16>
    %3 = vector.shape_cast %2 : vector<1x1152x128xbf16> to vector<1152x128xbf16>
    %cst = arith.constant dense<0.000000e+00> : vector<32x128xf32>
    %4 = tpu.matmul %1, %3, %cst {dimension_numbers = #tpu.dot_dimension_numbers<[1], [0], [0], [1], [0, 0, 1, 1], [], []>} : vector<32x1152xbf16>, vector<1152x128xbf16>, vector<32x128xf32> -> vector<32x128xf32>
    %c0_5 = arith.constant 0 : index
    %c0_6 = arith.constant 0 : index
    %5 = vector.load %arg5[%c0_5, %c0_6] : memref<1x128xf32, #tpu.memory_space<vmem>>, vector<1x128xf32>
    %6 = vector.broadcast %5 : vector<1x128xf32> to vector<32x128xf32>
    %7 = arith.addf %4, %6 : vector<32x128xf32>
    %cst_7 = arith.constant 0.000000e+00 : f32
    %8 = vector.broadcast %cst_7 : f32 to vector<32x128xf32>
    %9 = arith.maximumf %7, %8 : vector<32x128xf32>
    %10 = arith.truncf %9 : vector<32x128xf32> to vector<32x128xbf16>
    %c0_8 = arith.constant 0 : index
    %c0_9 = arith.constant 0 : index
    %c0_10 = arith.constant 0 : index
    %11 = vector.load %arg6[%c0_8, %c0_9, %c0_10] : memref<1x32x128xbf16, #tpu.memory_space<vmem>>, vector<1x32x128xbf16>
    %12 = vector.shape_cast %11 : vector<1x32x128xbf16> to vector<32x128xbf16>
    %13 = vector.shape_cast %10 : vector<32x128xbf16> to vector<1x32x128xbf16>
    tpu.vector_store %arg6[%c0_8, %c0_9, %c0_10], %13 {strides = array<i32>} : memref<1x32x128xbf16, #tpu.memory_space<vmem>>, vector<1x32x128xbf16>,
    return
  }
  func.func @transform_0(%arg0: i32, %arg1: i32, %arg2: i32) -> (i32, i32, i32) {
    %c0_i32 = arith.constant 0 : i32
    %c0_i32_0 = arith.constant 0 : i32
    return %arg0, %arg1, %c0_i32 : i32, i32, i32
  }
  func.func @transform_1(%arg0: i32, %arg1: i32, %arg2: i32) -> (i32, i32, i32) {
    %c0_i32 = arith.constant 0 : i32
    %c0_i32_0 = arith.constant 0 : i32
    return %arg0, %c0_i32, %arg2 : i32, i32, i32
  }
  func.func @transform_2(%arg0: i32, %arg1: i32, %arg2: i32) -> (i32, i32) {
    %c0_i32 = arith.constant 0 : i32
    %c0_i32_0 = arith.constant 0 : i32
    return %c0_i32, %arg2 : i32, i32
  }
  func.func @transform_3(%arg0: i32, %arg1: i32, %arg2: i32) -> (i32, i32, i32) {
    %c0_i32 = arith.constant 0 : i32
    return %arg0, %arg1, %arg2 : i32, i32, i32
  }
}

module attributes {stable_mosaic.version = 11 : i64} {
  func.func @_mm_bias_act_kernel(%arg0: i32, %arg1: i32, %arg2: i32, %arg3: memref<1x32x1152xbf16, #tpu.memory_space<vmem>>, %arg4: memref<1x1152x128xbf16, #tpu.memory_space<vmem>>, %arg5: memref<1x128xf32, #tpu.memory_space<vmem>>, %arg6: memref<1x32x128xbf16, #tpu.memory_space<vmem>>) attributes {dimension_semantics = [#tpu.dimension_semantics<parallel>, #tpu.dimension_semantics<parallel>, #tpu.dimension_semantics<parallel>], iteration_bounds = array<i64: 1, 1, 2>, scalar_prefetch = 0 : i64, scratch_operands = 0 : i64, tpu.core_type = #tpu.core_type<tc>, window_params = [{transform_indices = @transform_0, window_bounds = array<i64: 1, 32, 1152>}, {transform_indices = @transform_1, window_bounds = array<i64: 1, 1152, 128>}, {transform_indices = @transform_2, window_bounds = array<i64: 1, 128>}, {transform_indices = @transform_3, window_bounds = array<i64: 1, 32, 128>}]} {
    %c0 = arith.constant 0 : index
    %c0_0 = arith.constant 0 : index
    %c0_1 = arith.constant 0 : index
    %0 = vector.load %arg3[%c0, %c0_0, %c0_1] : memref<1x32x1152xbf16, #tpu.memory_space<vmem>>, vector<1x32x1152xbf16>
    %1 = vector.shape_cast %0 : vector<1x32x1152xbf16> to vector<32x1152xbf16>
    %c0_2 = arith.constant 0 : index
    %c0_3 = arith.constant 0 : index
    %c0_4 = arith.constant 0 : index
    %2 = vector.load %arg4[%c0_2, %c0_3, %c0_4] : memref<1x1152x128xbf16, #tpu.memory_space<vmem>>, vector<1x1152x128xbf16>
    %3 = vector.shape_cast %2 : vector<1x1152x128xbf16> to vector<1152x128xbf16>
    %cst = arith.constant dense<0.000000e+00> : vector<32x128xf32>
    %4 = tpu.matmul %1, %3, %cst {dimension_numbers = #tpu.dot_dimension_numbers<[1], [0], [0], [1], [0, 0, 1, 1], [], []>} : vector<32x1152xbf16>, vector<1152x128xbf16>, vector<32x128xf32> -> vector<32x128xf32>
    %c0_5 = arith.constant 0 : index
    %c0_6 = arith.constant 0 : index
    %5 = vector.load %arg5[%c0_5, %c0_6] : memref<1x128xf32, #tpu.memory_space<vmem>>, vector<1x128xf32>
    %6 = vector.broadcast %5 : vector<1x128xf32> to vector<32x128xf32>
    %7 = arith.addf %4, %6 : vector<32x128xf32>
    %cst_7 = arith.constant 0.000000e+00 : f32
    %8 = vector.broadcast %cst_7 : f32 to vector<32x128xf32>
    %9 = arith.maximumf %7, %8 : vector<32x128xf32>
    %10 = arith.truncf %9 : vector<32x128xf32> to vector<32x128xbf16>
    %c0_8 = arith.constant 0 : index
    %c0_9 = arith.constant 0 : index
    %c0_10 = arith.constant 0 : index
    %11 = vector.load %arg6[%c0_8, %c0_9, %c0_10] : memref<1x32x128xbf16, #tpu.memory_space<vmem>>, vector<1x32x128xbf16>
    %12 = vector.shape_cast %11 : vector<1x32x128xbf16> to vector<32x128xbf16>
    %13 = vector.shape_cast %10 : vector<32x128xbf16> to vector<1x32x128xbf16>
    tpu.vector_store %arg6[%c0_8, %c0_9, %c0_10], %13 {strides = array<i32>} : memref<1x32x128xbf16, #tpu.memory_space<vmem>>, vector<1x32x128xbf16>,
    return
  }
  func.func @transform_0(%arg0: i32, %arg1: i32, %arg2: i32) -> (i32, i32, i32) {
    %c0_i32 = arith.constant 0 : i32
    %c0_i32_0 = arith.constant 0 : i32
    return %arg0, %arg1, %c0_i32 : i32, i32, i32
  }
  func.func @transform_1(%arg0: i32, %arg1: i32, %arg2: i32) -> (i32, i32, i32) {
    %c0_i32 = arith.constant 0 : i32
    %c0_i32_0 = arith.constant 0 : i32
    return %arg0, %c0_i32, %arg2 : i32, i32, i32
  }
  func.func @transform_2(%arg0: i32, %arg1: i32, %arg2: i32) -> (i32, i32) {
    %c0_i32 = arith.constant 0 : i32
    %c0_i32_0 = arith.constant 0 : i32
    return %c0_i32, %arg2 : i32, i32
  }
  func.func @transform_3(%arg0: i32, %arg1: i32, %arg2: i32) -> (i32, i32, i32) {
    %c0_i32 = arith.constant 0 : i32
    return %arg0, %arg1, %arg2 : i32, i32, i32
  }
}

module attributes {stable_mosaic.version = 11 : i64} {
  func.func @_mm_bias_act_kernel(%arg0: i32, %arg1: i32, %arg2: i32, %arg3: memref<1x32x2304xbf16, #tpu.memory_space<vmem>>, %arg4: memref<1x2304x128xbf16, #tpu.memory_space<vmem>>, %arg5: memref<1x128xf32, #tpu.memory_space<vmem>>, %arg6: memref<1x32x128xbf16, #tpu.memory_space<vmem>>) attributes {dimension_semantics = [#tpu.dimension_semantics<parallel>, #tpu.dimension_semantics<parallel>, #tpu.dimension_semantics<parallel>], iteration_bounds = array<i64: 1, 1, 2>, scalar_prefetch = 0 : i64, scratch_operands = 0 : i64, tpu.core_type = #tpu.core_type<tc>, window_params = [{transform_indices = @transform_0, window_bounds = array<i64: 1, 32, 2304>}, {transform_indices = @transform_1, window_bounds = array<i64: 1, 2304, 128>}, {transform_indices = @transform_2, window_bounds = array<i64: 1, 128>}, {transform_indices = @transform_3, window_bounds = array<i64: 1, 32, 128>}]} {
    %c0 = arith.constant 0 : index
    %c0_0 = arith.constant 0 : index
    %c0_1 = arith.constant 0 : index
    %0 = vector.load %arg3[%c0, %c0_0, %c0_1] : memref<1x32x2304xbf16, #tpu.memory_space<vmem>>, vector<1x32x2304xbf16>
    %1 = vector.shape_cast %0 : vector<1x32x2304xbf16> to vector<32x2304xbf16>
    %c0_2 = arith.constant 0 : index
    %c0_3 = arith.constant 0 : index
    %c0_4 = arith.constant 0 : index
    %2 = vector.load %arg4[%c0_2, %c0_3, %c0_4] : memref<1x2304x128xbf16, #tpu.memory_space<vmem>>, vector<1x2304x128xbf16>
    %3 = vector.shape_cast %2 : vector<1x2304x128xbf16> to vector<2304x128xbf16>
    %cst = arith.constant dense<0.000000e+00> : vector<32x128xf32>
    %4 = tpu.matmul %1, %3, %cst {dimension_numbers = #tpu.dot_dimension_numbers<[1], [0], [0], [1], [0, 0, 1, 1], [], []>} : vector<32x2304xbf16>, vector<2304x128xbf16>, vector<32x128xf32> -> vector<32x128xf32>
    %c0_5 = arith.constant 0 : index
    %c0_6 = arith.constant 0 : index
    %5 = vector.load %arg5[%c0_5, %c0_6] : memref<1x128xf32, #tpu.memory_space<vmem>>, vector<1x128xf32>
    %6 = vector.broadcast %5 : vector<1x128xf32> to vector<32x128xf32>
    %7 = arith.addf %4, %6 : vector<32x128xf32>
    %cst_7 = arith.constant 0.000000e+00 : f32
    %8 = vector.broadcast %cst_7 : f32 to vector<32x128xf32>
    %9 = arith.maximumf %7, %8 : vector<32x128xf32>
    %10 = arith.truncf %9 : vector<32x128xf32> to vector<32x128xbf16>
    %c0_8 = arith.constant 0 : index
    %c0_9 = arith.constant 0 : index
    %c0_10 = arith.constant 0 : index
    %11 = vector.load %arg6[%c0_8, %c0_9, %c0_10] : memref<1x32x128xbf16, #tpu.memory_space<vmem>>, vector<1x32x128xbf16>
    %12 = vector.shape_cast %11 : vector<1x32x128xbf16> to vector<32x128xbf16>
    %13 = vector.shape_cast %10 : vector<32x128xbf16> to vector<1x32x128xbf16>
    tpu.vector_store %arg6[%c0_8, %c0_9, %c0_10], %13 {strides = array<i32>} : memref<1x32x128xbf16, #tpu.memory_space<vmem>>, vector<1x32x128xbf16>,
    return
  }
  func.func @transform_0(%arg0: i32, %arg1: i32, %arg2: i32) -> (i32, i32, i32) {
    %c0_i32 = arith.constant 0 : i32
    %c0_i32_0 = arith.constant 0 : i32
    return %arg0, %arg1, %c0_i32 : i32, i32, i32
  }
  func.func @transform_1(%arg0: i32, %arg1: i32, %arg2: i32) -> (i32, i32, i32) {
    %c0_i32 = arith.constant 0 : i32
    %c0_i32_0 = arith.constant 0 : i32
    return %arg0, %c0_i32, %arg2 : i32, i32, i32
  }
  func.func @transform_2(%arg0: i32, %arg1: i32, %arg2: i32) -> (i32, i32) {
    %c0_i32 = arith.constant 0 : i32
    %c0_i32_0 = arith.constant 0 : i32
    return %c0_i32, %arg2 : i32, i32
  }
  func.func @transform_3(%arg0: i32, %arg1: i32, %arg2: i32) -> (i32, i32, i32) {
    %c0_i32 = arith.constant 0 : i32
    return %arg0, %arg1, %arg2 : i32, i32, i32
  }
}

module attributes {stable_mosaic.version = 11 : i64} {
  func.func @_mm_bias_act_kernel(%arg0: i32, %arg1: i32, %arg2: i32, %arg3: memref<1x16x2304xbf16, #tpu.memory_space<vmem>>, %arg4: memref<1x2304x128xbf16, #tpu.memory_space<vmem>>, %arg5: memref<1x128xf32, #tpu.memory_space<vmem>>, %arg6: memref<1x16x128xbf16, #tpu.memory_space<vmem>>) attributes {dimension_semantics = [#tpu.dimension_semantics<parallel>, #tpu.dimension_semantics<parallel>, #tpu.dimension_semantics<parallel>], iteration_bounds = array<i64: 1, 1, 2>, scalar_prefetch = 0 : i64, scratch_operands = 0 : i64, tpu.core_type = #tpu.core_type<tc>, window_params = [{transform_indices = @transform_0, window_bounds = array<i64: 1, 16, 2304>}, {transform_indices = @transform_1, window_bounds = array<i64: 1, 2304, 128>}, {transform_indices = @transform_2, window_bounds = array<i64: 1, 128>}, {transform_indices = @transform_3, window_bounds = array<i64: 1, 16, 128>}]} {
    %c0 = arith.constant 0 : index
    %c0_0 = arith.constant 0 : index
    %c0_1 = arith.constant 0 : index
    %0 = vector.load %arg3[%c0, %c0_0, %c0_1] : memref<1x16x2304xbf16, #tpu.memory_space<vmem>>, vector<1x16x2304xbf16>
    %1 = vector.shape_cast %0 : vector<1x16x2304xbf16> to vector<16x2304xbf16>
    %c0_2 = arith.constant 0 : index
    %c0_3 = arith.constant 0 : index
    %c0_4 = arith.constant 0 : index
    %2 = vector.load %arg4[%c0_2, %c0_3, %c0_4] : memref<1x2304x128xbf16, #tpu.memory_space<vmem>>, vector<1x2304x128xbf16>
    %3 = vector.shape_cast %2 : vector<1x2304x128xbf16> to vector<2304x128xbf16>
    %cst = arith.constant dense<0.000000e+00> : vector<16x128xf32>
    %4 = tpu.matmul %1, %3, %cst {dimension_numbers = #tpu.dot_dimension_numbers<[1], [0], [0], [1], [0, 0, 1, 1], [], []>} : vector<16x2304xbf16>, vector<2304x128xbf16>, vector<16x128xf32> -> vector<16x128xf32>
    %c0_5 = arith.constant 0 : index
    %c0_6 = arith.constant 0 : index
    %5 = vector.load %arg5[%c0_5, %c0_6] : memref<1x128xf32, #tpu.memory_space<vmem>>, vector<1x128xf32>
    %6 = vector.broadcast %5 : vector<1x128xf32> to vector<16x128xf32>
    %7 = arith.addf %4, %6 : vector<16x128xf32>
    %cst_7 = arith.constant 0.000000e+00 : f32
    %8 = vector.broadcast %cst_7 : f32 to vector<16x128xf32>
    %9 = arith.maximumf %7, %8 : vector<16x128xf32>
    %10 = arith.truncf %9 : vector<16x128xf32> to vector<16x128xbf16>
    %c0_8 = arith.constant 0 : index
    %c0_9 = arith.constant 0 : index
    %c0_10 = arith.constant 0 : index
    %11 = vector.load %arg6[%c0_8, %c0_9, %c0_10] : memref<1x16x128xbf16, #tpu.memory_space<vmem>>, vector<1x16x128xbf16>
    %12 = vector.shape_cast %11 : vector<1x16x128xbf16> to vector<16x128xbf16>
    %13 = vector.shape_cast %10 : vector<16x128xbf16> to vector<1x16x128xbf16>
    tpu.vector_store %arg6[%c0_8, %c0_9, %c0_10], %13 {strides = array<i32>} : memref<1x16x128xbf16, #tpu.memory_space<vmem>>, vector<1x16x128xbf16>,
    return
  }
  func.func @transform_0(%arg0: i32, %arg1: i32, %arg2: i32) -> (i32, i32, i32) {
    %c0_i32 = arith.constant 0 : i32
    %c0_i32_0 = arith.constant 0 : i32
    return %arg0, %arg1, %c0_i32 : i32, i32, i32
  }
  func.func @transform_1(%arg0: i32, %arg1: i32, %arg2: i32) -> (i32, i32, i32) {
    %c0_i32 = arith.constant 0 : i32
    %c0_i32_0 = arith.constant 0 : i32
    return %arg0, %c0_i32, %arg2 : i32, i32, i32
  }
  func.func @transform_2(%arg0: i32, %arg1: i32, %arg2: i32) -> (i32, i32) {
    %c0_i32 = arith.constant 0 : i32
    %c0_i32_0 = arith.constant 0 : i32
    return %c0_i32, %arg2 : i32, i32
  }
  func.func @transform_3(%arg0: i32, %arg1: i32, %arg2: i32) -> (i32, i32, i32) {
    %c0_i32 = arith.constant 0 : i32
    return %arg0, %arg1, %arg2 : i32, i32, i32
  }
}

module attributes {stable_mosaic.version = 11 : i64} {
  func.func @_mm_bias_act_kernel(%arg0: i32, %arg1: i32, %arg2: i32, %arg3: memref<1x16x1024xbf16, #tpu.memory_space<vmem>>, %arg4: memref<1x1024x128xbf16, #tpu.memory_space<vmem>>, %arg5: memref<1x128xf32, #tpu.memory_space<vmem>>, %arg6: memref<1x16x128xbf16, #tpu.memory_space<vmem>>) attributes {dimension_semantics = [#tpu.dimension_semantics<parallel>, #tpu.dimension_semantics<parallel>, #tpu.dimension_semantics<parallel>], iteration_bounds = array<i64: 4, 1, 1>, scalar_prefetch = 0 : i64, scratch_operands = 0 : i64, tpu.core_type = #tpu.core_type<tc>, window_params = [{transform_indices = @transform_0, window_bounds = array<i64: 1, 16, 1024>}, {transform_indices = @transform_1, window_bounds = array<i64: 1, 1024, 128>}, {transform_indices = @transform_2, window_bounds = array<i64: 1, 128>}, {transform_indices = @transform_3, window_bounds = array<i64: 1, 16, 128>}]} {
    %c0 = arith.constant 0 : index
    %c0_0 = arith.constant 0 : index
    %c0_1 = arith.constant 0 : index
    %0 = vector.load %arg3[%c0, %c0_0, %c0_1] : memref<1x16x1024xbf16, #tpu.memory_space<vmem>>, vector<1x16x1024xbf16>
    %1 = vector.shape_cast %0 : vector<1x16x1024xbf16> to vector<16x1024xbf16>
    %c0_2 = arith.constant 0 : index
    %c0_3 = arith.constant 0 : index
    %c0_4 = arith.constant 0 : index
    %2 = vector.load %arg4[%c0_2, %c0_3, %c0_4] : memref<1x1024x128xbf16, #tpu.memory_space<vmem>>, vector<1x1024x128xbf16>
    %3 = vector.shape_cast %2 : vector<1x1024x128xbf16> to vector<1024x128xbf16>
    %cst = arith.constant dense<0.000000e+00> : vector<16x128xf32>
    %4 = tpu.matmul %1, %3, %cst {dimension_numbers = #tpu.dot_dimension_numbers<[1], [0], [0], [1], [0, 0, 1, 1], [], []>} : vector<16x1024xbf16>, vector<1024x128xbf16>, vector<16x128xf32> -> vector<16x128xf32>
    %c0_5 = arith.constant 0 : index
    %c0_6 = arith.constant 0 : index
    %5 = vector.load %arg5[%c0_5, %c0_6] : memref<1x128xf32, #tpu.memory_space<vmem>>, vector<1x128xf32>
    %6 = vector.broadcast %5 : vector<1x128xf32> to vector<16x128xf32>
    %7 = arith.addf %4, %6 : vector<16x128xf32>
    %cst_7 = arith.constant 0.000000e+00 : f32
    %8 = vector.broadcast %cst_7 : f32 to vector<16x128xf32>
    %9 = arith.maximumf %7, %8 : vector<16x128xf32>
    %10 = arith.truncf %9 : vector<16x128xf32> to vector<16x128xbf16>
    %c0_8 = arith.constant 0 : index
    %c0_9 = arith.constant 0 : index
    %c0_10 = arith.constant 0 : index
    %11 = vector.load %arg6[%c0_8, %c0_9, %c0_10] : memref<1x16x128xbf16, #tpu.memory_space<vmem>>, vector<1x16x128xbf16>
    %12 = vector.shape_cast %11 : vector<1x16x128xbf16> to vector<16x128xbf16>
    %13 = vector.shape_cast %10 : vector<16x128xbf16> to vector<1x16x128xbf16>
    tpu.vector_store %arg6[%c0_8, %c0_9, %c0_10], %13 {strides = array<i32>} : memref<1x16x128xbf16, #tpu.memory_space<vmem>>, vector<1x16x128xbf16>,
    return
  }
  func.func @transform_0(%arg0: i32, %arg1: i32, %arg2: i32) -> (i32, i32, i32) {
    %c0_i32 = arith.constant 0 : i32
    %c0_i32_0 = arith.constant 0 : i32
    return %arg0, %arg1, %c0_i32 : i32, i32, i32
  }
  func.func @transform_1(%arg0: i32, %arg1: i32, %arg2: i32) -> (i32, i32, i32) {
    %c0_i32 = arith.constant 0 : i32
    %c0_i32_0 = arith.constant 0 : i32
    return %arg0, %c0_i32, %arg2 : i32, i32, i32
  }
  func.func @transform_2(%arg0: i32, %arg1: i32, %arg2: i32) -> (i32, i32) {
    %c0_i32 = arith.constant 0 : i32
    %c0_i32_0 = arith.constant 0 : i32
    return %c0_i32, %arg2 : i32, i32
  }
  func.func @transform_3(%arg0: i32, %arg1: i32, %arg2: i32) -> (i32, i32, i32) {
    %c0_i32 = arith.constant 0 : i32
    return %arg0, %arg1, %arg2 : i32, i32, i32
  }
}

module attributes {stable_mosaic.version = 11 : i64} {
  func.func @_mm_bias_act_kernel(%arg0: i32, %arg1: i32, %arg2: i32, %arg3: memref<1x32x512xbf16, #tpu.memory_space<vmem>>, %arg4: memref<1x512x128xbf16, #tpu.memory_space<vmem>>, %arg5: memref<1x128xf32, #tpu.memory_space<vmem>>, %arg6: memref<1x32x128xbf16, #tpu.memory_space<vmem>>) attributes {dimension_semantics = [#tpu.dimension_semantics<parallel>, #tpu.dimension_semantics<parallel>, #tpu.dimension_semantics<parallel>], iteration_bounds = array<i64: 4, 1, 1>, scalar_prefetch = 0 : i64, scratch_operands = 0 : i64, tpu.core_type = #tpu.core_type<tc>, window_params = [{transform_indices = @transform_0, window_bounds = array<i64: 1, 32, 512>}, {transform_indices = @transform_1, window_bounds = array<i64: 1, 512, 128>}, {transform_indices = @transform_2, window_bounds = array<i64: 1, 128>}, {transform_indices = @transform_3, window_bounds = array<i64: 1, 32, 128>}]} {
    %c0 = arith.constant 0 : index
    %c0_0 = arith.constant 0 : index
    %c0_1 = arith.constant 0 : index
    %0 = vector.load %arg3[%c0, %c0_0, %c0_1] : memref<1x32x512xbf16, #tpu.memory_space<vmem>>, vector<1x32x512xbf16>
    %1 = vector.shape_cast %0 : vector<1x32x512xbf16> to vector<32x512xbf16>
    %c0_2 = arith.constant 0 : index
    %c0_3 = arith.constant 0 : index
    %c0_4 = arith.constant 0 : index
    %2 = vector.load %arg4[%c0_2, %c0_3, %c0_4] : memref<1x512x128xbf16, #tpu.memory_space<vmem>>, vector<1x512x128xbf16>
    %3 = vector.shape_cast %2 : vector<1x512x128xbf16> to vector<512x128xbf16>
    %cst = arith.constant dense<0.000000e+00> : vector<32x128xf32>
    %4 = tpu.matmul %1, %3, %cst {dimension_numbers = #tpu.dot_dimension_numbers<[1], [0], [0], [1], [0, 0, 1, 1], [], []>} : vector<32x512xbf16>, vector<512x128xbf16>, vector<32x128xf32> -> vector<32x128xf32>
    %c0_5 = arith.constant 0 : index
    %c0_6 = arith.constant 0 : index
    %5 = vector.load %arg5[%c0_5, %c0_6] : memref<1x128xf32, #tpu.memory_space<vmem>>, vector<1x128xf32>
    %6 = vector.broadcast %5 : vector<1x128xf32> to vector<32x128xf32>
    %7 = arith.addf %4, %6 : vector<32x128xf32>
    %cst_7 = arith.constant 0.000000e+00 : f32
    %8 = vector.broadcast %cst_7 : f32 to vector<32x128xf32>
    %9 = arith.maximumf %7, %8 : vector<32x128xf32>
    %10 = arith.truncf %9 : vector<32x128xf32> to vector<32x128xbf16>
    %c0_8 = arith.constant 0 : index
    %c0_9 = arith.constant 0 : index
    %c0_10 = arith.constant 0 : index
    %11 = vector.load %arg6[%c0_8, %c0_9, %c0_10] : memref<1x32x128xbf16, #tpu.memory_space<vmem>>, vector<1x32x128xbf16>
    %12 = vector.shape_cast %11 : vector<1x32x128xbf16> to vector<32x128xbf16>
    %13 = vector.shape_cast %10 : vector<32x128xbf16> to vector<1x32x128xbf16>
    tpu.vector_store %arg6[%c0_8, %c0_9, %c0_10], %13 {strides = array<i32>} : memref<1x32x128xbf16, #tpu.memory_space<vmem>>, vector<1x32x128xbf16>,
    return
  }
  func.func @transform_0(%arg0: i32, %arg1: i32, %arg2: i32) -> (i32, i32, i32) {
    %c0_i32 = arith.constant 0 : i32
    %c0_i32_0 = arith.constant 0 : i32
    return %arg0, %arg1, %c0_i32 : i32, i32, i32
  }
  func.func @transform_1(%arg0: i32, %arg1: i32, %arg2: i32) -> (i32, i32, i32) {
    %c0_i32 = arith.constant 0 : i32
    %c0_i32_0 = arith.constant 0 : i32
    return %arg0, %c0_i32, %arg2 : i32, i32, i32
  }
  func.func @transform_2(%arg0: i32, %arg1: i32, %arg2: i32) -> (i32, i32) {
    %c0_i32 = arith.constant 0 : i32
    %c0_i32_0 = arith.constant 0 : i32
    return %c0_i32, %arg2 : i32, i32
  }
  func.func @transform_3(%arg0: i32, %arg1: i32, %arg2: i32) -> (i32, i32, i32) {
    %c0_i32 = arith.constant 0 : i32
    return %arg0, %arg1, %arg2 : i32, i32, i32
  }
}

module attributes {stable_mosaic.version = 11 : i64} {
  func.func @_mm_bias_act_kernel(%arg0: i32, %arg1: i32, %arg2: i32, %arg3: memref<1x128x256xbf16, #tpu.memory_space<vmem>>, %arg4: memref<1x256x128xbf16, #tpu.memory_space<vmem>>, %arg5: memref<1x128xf32, #tpu.memory_space<vmem>>, %arg6: memref<1x128x128xbf16, #tpu.memory_space<vmem>>) attributes {dimension_semantics = [#tpu.dimension_semantics<parallel>, #tpu.dimension_semantics<parallel>, #tpu.dimension_semantics<parallel>], iteration_bounds = array<i64: 4, 1, 1>, scalar_prefetch = 0 : i64, scratch_operands = 0 : i64, tpu.core_type = #tpu.core_type<tc>, window_params = [{transform_indices = @transform_0, window_bounds = array<i64: 1, 128, 256>}, {transform_indices = @transform_1, window_bounds = array<i64: 1, 256, 128>}, {transform_indices = @transform_2, window_bounds = array<i64: 1, 128>}, {transform_indices = @transform_3, window_bounds = array<i64: 1, 128, 128>}]} {
    %c0 = arith.constant 0 : index
    %c0_0 = arith.constant 0 : index
    %c0_1 = arith.constant 0 : index
    %0 = vector.load %arg3[%c0, %c0_0, %c0_1] : memref<1x128x256xbf16, #tpu.memory_space<vmem>>, vector<1x128x256xbf16>
    %1 = vector.shape_cast %0 : vector<1x128x256xbf16> to vector<128x256xbf16>
    %c0_2 = arith.constant 0 : index
    %c0_3 = arith.constant 0 : index
    %c0_4 = arith.constant 0 : index
    %2 = vector.load %arg4[%c0_2, %c0_3, %c0_4] : memref<1x256x128xbf16, #tpu.memory_space<vmem>>, vector<1x256x128xbf16>
    %3 = vector.shape_cast %2 : vector<1x256x128xbf16> to vector<256x128xbf16>
    %cst = arith.constant dense<0.000000e+00> : vector<128x128xf32>
    %4 = tpu.matmul %1, %3, %cst {dimension_numbers = #tpu.dot_dimension_numbers<[1], [0], [0], [1], [0, 0, 1, 1], [], []>} : vector<128x256xbf16>, vector<256x128xbf16>, vector<128x128xf32> -> vector<128x128xf32>
    %c0_5 = arith.constant 0 : index
    %c0_6 = arith.constant 0 : index
    %5 = vector.load %arg5[%c0_5, %c0_6] : memref<1x128xf32, #tpu.memory_space<vmem>>, vector<1x128xf32>
    %6 = vector.broadcast %5 : vector<1x128xf32> to vector<128x128xf32>
    %7 = arith.addf %4, %6 : vector<128x128xf32>
    %cst_7 = arith.constant 0.000000e+00 : f32
    %8 = vector.broadcast %cst_7 : f32 to vector<128x128xf32>
    %9 = arith.maximumf %7, %8 : vector<128x128xf32>
    %10 = arith.truncf %9 : vector<128x128xf32> to vector<128x128xbf16>
    %c0_8 = arith.constant 0 : index
    %c0_9 = arith.constant 0 : index
    %c0_10 = arith.constant 0 : index
    %11 = vector.load %arg6[%c0_8, %c0_9, %c0_10] : memref<1x128x128xbf16, #tpu.memory_space<vmem>>, vector<1x128x128xbf16>
    %12 = vector.shape_cast %11 : vector<1x128x128xbf16> to vector<128x128xbf16>
    %13 = vector.shape_cast %10 : vector<128x128xbf16> to vector<1x128x128xbf16>
    tpu.vector_store %arg6[%c0_8, %c0_9, %c0_10], %13 {strides = array<i32>} : memref<1x128x128xbf16, #tpu.memory_space<vmem>>, vector<1x128x128xbf16>,
    return
  }
  func.func @transform_0(%arg0: i32, %arg1: i32, %arg2: i32) -> (i32, i32, i32) {
    %c0_i32 = arith.constant 0 : i32
    %c0_i32_0 = arith.constant 0 : i32
    return %arg0, %arg1, %c0_i32 : i32, i32, i32
  }
  func.func @transform_1(%arg0: i32, %arg1: i32, %arg2: i32) -> (i32, i32, i32) {
    %c0_i32 = arith.constant 0 : i32
    %c0_i32_0 = arith.constant 0 : i32
    return %arg0, %c0_i32, %arg2 : i32, i32, i32
  }
  func.func @transform_2(%arg0: i32, %arg1: i32, %arg2: i32) -> (i32, i32) {
    %c0_i32 = arith.constant 0 : i32
    %c0_i32_0 = arith.constant 0 : i32
    return %c0_i32, %arg2 : i32, i32
  }
  func.func @transform_3(%arg0: i32, %arg1: i32, %arg2: i32) -> (i32, i32, i32) {
    %c0_i32 = arith.constant 0 : i32
    return %arg0, %arg1, %arg2 : i32, i32, i32
  }
}

module attributes {stable_mosaic.version = 11 : i64} {
  func.func @_mm_bias_act_kernel(%arg0: i32, %arg1: i32, %arg2: i32, %arg3: memref<1x256x384xbf16, #tpu.memory_space<vmem>>, %arg4: memref<1x384x128xbf16, #tpu.memory_space<vmem>>, %arg5: memref<1x128xf32, #tpu.memory_space<vmem>>, %arg6: memref<1x256x128xbf16, #tpu.memory_space<vmem>>) attributes {dimension_semantics = [#tpu.dimension_semantics<parallel>, #tpu.dimension_semantics<parallel>, #tpu.dimension_semantics<parallel>], iteration_bounds = array<i64: 1, 2, 1>, scalar_prefetch = 0 : i64, scratch_operands = 0 : i64, tpu.core_type = #tpu.core_type<tc>, window_params = [{transform_indices = @transform_0, window_bounds = array<i64: 1, 256, 384>}, {transform_indices = @transform_1, window_bounds = array<i64: 1, 384, 128>}, {transform_indices = @transform_2, window_bounds = array<i64: 1, 128>}, {transform_indices = @transform_3, window_bounds = array<i64: 1, 256, 128>}]} {
    %c0 = arith.constant 0 : index
    %c0_0 = arith.constant 0 : index
    %c0_1 = arith.constant 0 : index
    %0 = vector.load %arg3[%c0, %c0_0, %c0_1] : memref<1x256x384xbf16, #tpu.memory_space<vmem>>, vector<1x256x384xbf16>
    %1 = vector.shape_cast %0 : vector<1x256x384xbf16> to vector<256x384xbf16>
    %c0_2 = arith.constant 0 : index
    %c0_3 = arith.constant 0 : index
    %c0_4 = arith.constant 0 : index
    %2 = vector.load %arg4[%c0_2, %c0_3, %c0_4] : memref<1x384x128xbf16, #tpu.memory_space<vmem>>, vector<1x384x128xbf16>
    %3 = vector.shape_cast %2 : vector<1x384x128xbf16> to vector<384x128xbf16>
    %cst = arith.constant dense<0.000000e+00> : vector<256x128xf32>
    %4 = tpu.matmul %1, %3, %cst {dimension_numbers = #tpu.dot_dimension_numbers<[1], [0], [0], [1], [0, 0, 1, 1], [], []>} : vector<256x384xbf16>, vector<384x128xbf16>, vector<256x128xf32> -> vector<256x128xf32>
    %c0_5 = arith.constant 0 : index
    %c0_6 = arith.constant 0 : index
    %5 = vector.load %arg5[%c0_5, %c0_6] : memref<1x128xf32, #tpu.memory_space<vmem>>, vector<1x128xf32>
    %6 = vector.broadcast %5 : vector<1x128xf32> to vector<256x128xf32>
    %7 = arith.addf %4, %6 : vector<256x128xf32>
    %8 = math.tanh %7 : vector<256x128xf32>
    %9 = arith.truncf %8 : vector<256x128xf32> to vector<256x128xbf16>
    %c0_7 = arith.constant 0 : index
    %c0_8 = arith.constant 0 : index
    %c0_9 = arith.constant 0 : index
    %10 = vector.load %arg6[%c0_7, %c0_8, %c0_9] : memref<1x256x128xbf16, #tpu.memory_space<vmem>>, vector<1x256x128xbf16>
    %11 = vector.shape_cast %10 : vector<1x256x128xbf16> to vector<256x128xbf16>
    %12 = vector.shape_cast %9 : vector<256x128xbf16> to vector<1x256x128xbf16>
    tpu.vector_store %arg6[%c0_7, %c0_8, %c0_9], %12 {strides = array<i32>} : memref<1x256x128xbf16, #tpu.memory_space<vmem>>, vector<1x256x128xbf16>,
    return
  }
  func.func @transform_0(%arg0: i32, %arg1: i32, %arg2: i32) -> (i32, i32, i32) {
    %c0_i32 = arith.constant 0 : i32
    %c0_i32_0 = arith.constant 0 : i32
    return %arg0, %arg1, %c0_i32 : i32, i32, i32
  }
  func.func @transform_1(%arg0: i32, %arg1: i32, %arg2: i32) -> (i32, i32, i32) {
    %c0_i32 = arith.constant 0 : i32
    %c0_i32_0 = arith.constant 0 : i32
    return %arg0, %c0_i32, %arg2 : i32, i32, i32
  }
  func.func @transform_2(%arg0: i32, %arg1: i32, %arg2: i32) -> (i32, i32) {
    %c0_i32 = arith.constant 0 : i32
    %c0_i32_0 = arith.constant 0 : i32
    return %c0_i32, %arg2 : i32, i32
  }
  func.func @transform_3(%arg0: i32, %arg1: i32, %arg2: i32) -> (i32, i32, i32) {
    %c0_i32 = arith.constant 0 : i32
    return %arg0, %arg1, %arg2 : i32, i32, i32
  }
}

</mosaic_0001>

<bundles_post_ra>
// kernel: colorization_forward.11
= control target key start
LH: loop header
LB: loop body
LE: loop exit
PB: predicated region body
PF: predicated region fallthrough
CT: control target
= control target key end

     0   :  { %8 = vsyncpa [#allocation3], 0  ;;  %s1342_s0 = inlined_call_operand.vmem [shape: bf16[1,512,128], index: 0, kind: input, shape index: {}]   ;;  %s1343_s1 = inlined_call_operand.hbm [shape: bf16[1,128,128], index: 1, kind: input, shape index: {}]   ;;  %s1344_s2 = inlined_call_operand.hbm [shape: f32[1,128], index: 2, kind: input, shape index: {}]   ;;  %s1345_s3 = inlined_call_operand.vmem [shape: bf16[1,512,128], index: 3, kind: output, shape index: {}]  }
   0x1   :  { %9 = vsyncpa [#allocation5], 0  ;;  %s1200_s12 = smov 0   ;;  %s1202_s13 = smov 0  }
   0x2   :  { %s1204_s14 = smov 0  }
   0x3 LB: > { %s782_s15 = sadd.s32 4294967295, %s1174_s14   ;;  %s30_s16 = sadd.s32 1, %s1170_s13  ;;  %s1174_s14 = sphi %s1204_s14, %s15_s14   ;;  %s1170_s13 = sphi %s1202_s13, %s1349_s13   ;;  %s1166_s12 = sphi %s1200_s12, %s1348_s12  }
   0x4   : > { %p32_p0 = scmp.ge.s32.totalorder %s30_s16, 2  ;;  %p784_p1 = scmp.ge.s32.totalorder %s1174_s14, 1 }
   0x5   : > { %p151_p2 = scmp.lt.s32.totalorder %s1174_s14, 3  ;;  %p1225_p4 = scmp.eq.s32.totalorder %s782_s15, 0 }
   0x6   : > { %s1351_s16 = smov (%p32_p0, %s30_s16), 0  ;;  %s166_s21 = sshll.u32 %s1343_s1, 4  ;;  %s167_s21 = int_to_ptr.hbm [resolvable:$true] %s166_s21 }
   0x7   : > { %p1221_p3 = pnand %p784_p1, %p151_p2  ;;  %s1176_s22 = smov [#allocation2]  }
   0x8   : > { %s168_s23 = sshll.u32 %s1176_s22, 4  ;;  %s182_s26 = sshll.u32 %s1344_s2, 4  ;;  %s169_s23 = int_to_ptr.vmem [resolvable:$true] %s168_s23  ;;  %s183_s26 = int_to_ptr.hbm [resolvable:$true] %s182_s26 }
   0x9   : > { %p1044_p5 = pneg %p1221_p3  ;;  %s1177_s27 = smov 64  }
   0xa   : > { %s1178_s28 = smov 4   ;;  %s1179_s29 = smov [#allocation4]  }
   0xb   : > { %p1045_p6 = pnand %p1225_p4, %p1044_p5  ;;  %s184_s30 = sshll.u32 %s1179_s29, 4  ;;  %s185_s30 = int_to_ptr.vmem [resolvable:$true] %s184_s30 }
   0xc   : > { %210 = sbr.rel (%p1221_p3) target bundleno = 249 (0xf9), region = 32 }
   0xd   : > { %1047 = dma.hbm_to_vmem [thread:$0]  (!%p1045_p6), %s167_s21, 1024, %s169_s23, [#allocation3], %s1177_s27, %s1177_s27, %s1178_s28  }
   0xe   : > { %1050 = dma.hbm_to_vmem [thread:$0]  (!%p1045_p6), %s183_s26, 16, %s185_s30, [#allocation5]  }
  0x11   : > { %1157 = dma.done.wait (%p1225_p4), [#allocation3], 1024  }
  0x12   : > { %1159 = vsyncadd (%p1225_p4), [#allocation3], 4294966272 }
  0x13   : > { %1161 = dma.done.wait (%p1225_p4), [#allocation5], 16  }
  0x14   : > { %1163 = vsyncadd (%p1225_p4), [#allocation5], 4294967280  ;;  %v916_v0 = vld [vmem:[#allocation2 + $0x38] sm:$0xff]  ;;  %v915_v1 = vld [vmem:[#allocation2 + $0x30] sm:$0xff]  ;;  %s791_s4 = sshll.u32 %s1166_s12, 5 }
  0x15   : > { %470 = vmatpush.bf16.msra.mxu0 %v916_v0  ;;  %1012 = vmatpush.bf16.msra.mxu1 %v916_v0  ;;  %v914_v2 = vld [vmem:[#allocation2 + $0x28] sm:$0xff]  ;;  %v913_v3 = vld [vmem:[#allocation2 + $0x20] sm:$0xff]  ;;  %v912_v4 = vld [vmem:[#allocation2 + $0x18] sm:$0xff]  ;;  %p254_p7 = scmp.lt.s32.totalorder %s791_s4, 63 }
  0x16   : > { %1013 = vmatpush.bf16.msra.mxu2 %v916_v0  ;;  %1014 = vmatpush.bf16.msra.mxu3 %v916_v0  ;;  %v911_v5 = vld [vmem:[#allocation2 + $0x10] sm:$0xff]  ;;  %v910_v6 = vld [vmem:[#allocation2 + $0x8] sm:$0xff]  ;;  %v909_v7 = vld [vmem:[#allocation2] sm:$0xff] }
  0x17   : > { %s1353_s4 = smov (!%p254_p7, %s791_s4), 63  ;;  %v1276_v26 = vld [vmem:[#allocation4] ss:$0 sm:$0xff] }
  0x18   : > { %s792_s5 = sshll.u32 %s1353_s4, 2 }
  0x19   : > { %471 = vmatpush.bf16.msra.mxu0 %v915_v1  ;;  %1015 = vmatpush.bf16.msra.mxu1 %v915_v1  ;;  %s1258_s8 = scalar_lea.vmem %s1342_s0, %s792_s5  ;;  %s1287_s11 = scalar_lea.vmem %s1345_s3, %s792_s5 }
  0x1a   : > { %1016 = vmatpush.bf16.msra.mxu2 %v915_v1  ;;  %1017 = vmatpush.bf16.msra.mxu3 %v915_v1  ;;  %v893_v8 = vld [vmem:[%s1258_s8] sm:$0xff]  ;;  %v894_v12 = vld [vmem:[%s1258_s8 + $0x8] sm:$0xff]  ;;  %v895_v16 = vld [vmem:[%s1258_s8 + $0x10] sm:$0xff] }
  0x1b   : > { %v897_v9 = vld [vmem:[%s1258_s8 + $0x20] sm:$0xff]  ;;  %v898_v13 = vld [vmem:[%s1258_s8 + $0x28] sm:$0xff]  ;;  %v899_v17 = vld [vmem:[%s1258_s8 + $0x30] sm:$0xff] }
  0x1c   : > { %v901_v10 = vld [vmem:[%s1258_s8 + $0x40] sm:$0xff]  ;;  %v902_v14 = vld [vmem:[%s1258_s8 + $0x48] sm:$0xff]  ;;  %v903_v18 = vld [vmem:[%s1258_s8 + $0x50] sm:$0xff] }
  0x1d   : > { %472 = vmatpush.bf16.msra.mxu0 %v914_v2  ;;  %1018 = vmatpush.bf16.msra.mxu1 %v914_v2  ;;  %v905_v11 = vld [vmem:[%s1258_s8 + $0x60] sm:$0xff]  ;;  %v906_v15 = vld [vmem:[%s1258_s8 + $0x68] sm:$0xff]  ;;  %v907_v19 = vld [vmem:[%s1258_s8 + $0x70] sm:$0xff] }
  0x1e   : > { %1019 = vmatpush.bf16.msra.mxu2 %v914_v2  ;;  %1020 = vmatpush.bf16.msra.mxu3 %v914_v2  ;;  %v896_v20 = vld [vmem:[%s1258_s8 + $0x18] sm:$0xff] }
  0x1f   : > { %v900_v21 = vld [vmem:[%s1258_s8 + $0x38] sm:$0xff] }
  0x20   : > { %v904_v22 = vld [vmem:[%s1258_s8 + $0x58] sm:$0xff] }
  0x21   : > { %473 = vmatpush.bf16.msra.mxu0 %v913_v3  ;;  %1021 = vmatpush.bf16.msra.mxu1 %v913_v3  ;;  %v908_v23 = vld [vmem:[%s1258_s8 + $0x78] sm:$0xff] }
  0x22   : > { %1022 = vmatpush.bf16.msra.mxu2 %v913_v3  ;;  %1023 = vmatpush.bf16.msra.mxu3 %v913_v3 }
  0x25   : > { %474 = vmatpush.bf16.msra.mxu0 %v912_v4  ;;  %1024 = vmatpush.bf16.msra.mxu1 %v912_v4 }
  0x26   : > { %1025 = vmatpush.bf16.msra.mxu2 %v912_v4  ;;  %1026 = vmatpush.bf16.msra.mxu3 %v912_v4 }
  0x29   : > { %475 = vmatpush.bf16.msra.mxu0 %v911_v5  ;;  %1027 = vmatpush.bf16.msra.mxu1 %v911_v5 }
  0x2a   : > { %1028 = vmatpush.bf16.msra.mxu2 %v911_v5  ;;  %1029 = vmatpush.bf16.msra.mxu3 %v911_v5 }
  0x2d   : > { %476 = vmatpush.bf16.msra.mxu0 %v910_v6  ;;  %1030 = vmatpush.bf16.msra.mxu1 %v910_v6 }
  0x2e   : > { %1031 = vmatpush.bf16.msra.mxu2 %v910_v6  ;;  %1032 = vmatpush.bf16.msra.mxu3 %v910_v6 }
  0x31   : > { %477 = vmatpush.bf16.msra.mxu0 %v909_v7  ;;  %1033 = vmatpush.bf16.msra.mxu1 %v909_v7 }
  0x32   : > { %1034 = vmatpush.bf16.msra.mxu2 %v909_v7  ;;  %1035 = vmatpush.bf16.msra.mxu3 %v909_v7 }
  0x34   : > { %478 = vmatmul.bf16.vlgmr.msra.gmra.mxu0 %v893_v8  ;;  %498 = vmatmul.bf16.vlgmr.msra.gmra.mxu1 %v897_v9 }
  0x35   : > { %518 = vmatmul.bf16.vlgmr.msra.gmra.mxu2 %v901_v10  ;;  %538 = vmatmul.bf16.vlgmr.msra.gmra.mxu3 %v905_v11 }
  0x44   : > { %483 = vmatmul.bf16.gmra.mxu0 %v894_v12  ;;  %503 = vmatmul.bf16.gmra.mxu1 %v898_v13 }
  0x45   : > { %523 = vmatmul.bf16.gmra.mxu2 %v902_v14  ;;  %543 = vmatmul.bf16.gmra.mxu3 %v906_v15 }
  0x54   : > { %488 = vmatmul.bf16.gmra.mxu0 %v895_v16  ;;  %508 = vmatmul.bf16.gmra.mxu1 %v899_v17 }
  0x55   : > { %528 = vmatmul.bf16.gmra.mxu2 %v903_v18  ;;  %548 = vmatmul.bf16.gmra.mxu3 %v907_v19 }
  0x64   : > { %493 = vmatmul.bf16.gmra.mxu0 %v896_v20  ;;  %513 = vmatmul.bf16.gmra.mxu1 %v900_v21 }
  0x65   : > { %533 = vmatmul.bf16.gmra.mxu2 %v904_v22  ;;  %553 = vmatmul.bf16.gmra.mxu3 %v908_v23 }
  0xb1   : > { %v479_v24 = vpop.f32.mrf.mxu0  ;;  %v499_v25 = vpop.f32.mrf.mxu1 }
  0xb2   : > { %v480_v27 = vadd.f32 %v1276_v26, %v479_v24  ;;  %v500_v28 = vadd.f32 %v1276_v26, %v499_v25 }
  0xb4   : > { %v559_v35 = vmax.f32 %v480_v27, 0.0  ;;  %v567_v36 = vmax.f32 %v500_v28, 0.0 }
  0xb8   : > { %v519_v29 = vpop.f32.mrf.mxu2  ;;  %v539_v30 = vpop.f32.mrf.mxu3 }
  0xb9   : > { %v481_v31 = vpop.f32.mrf.mxu0  ;;  %v501_v32 = vpop.f32.mrf.mxu1  ;;  %v520_v41 = vadd.f32 %v1276_v26, %v519_v29  ;;  %v540_v42 = vadd.f32 %v1276_v26, %v539_v30 }
  0xba   : > { %v482_v33 = vadd.f32 %v1276_v26, %v481_v31  ;;  %v502_v34 = vadd.f32 %v1276_v26, %v501_v32 }
  0xbb   : > { %v575_v49 = vmax.f32 %v520_v41, 0.0  ;;  %v583_v50 = vmax.f32 %v540_v42, 0.0 }
  0xbc   : > { %v560_v37 = vmax.f32 %v482_v33, 0.0  ;;  %v568_v38 = vmax.f32 %v502_v34, 0.0 }
  0xbe   : > { %v920_v39 = vpack.c.bf16 %v560_v37, %v559_v35  ;;  %v940_v40 = vpack.c.bf16 %v568_v38, %v567_v36 }
  0xc0   : > { %921 = vst [vmem:[%s1287_s11] sm:$0xff] %v920_v39   ;;  %v521_v43 = vpop.f32.mrf.mxu2  ;;  %v541_v44 = vpop.f32.mrf.mxu3 }
  0xc1   : > { %1000 = vst [vmem:[%s1287_s11 + $0x20] sm:$0xff] %v940_v40   ;;  %v522_v45 = vadd.f32 %v1276_v26, %v521_v43  ;;  %v542_v46 = vadd.f32 %v1276_v26, %v541_v44  ;;  %v484_v47 = vpop.f32.mrf.mxu0  ;;  %v504_v48 = vpop.f32.mrf.mxu1 }
  0xc2   : > { %v485_v55 = vadd.f32 %v1276_v26, %v484_v47  ;;  %v505_v56 = vadd.f32 %v1276_v26, %v504_v48 }
  0xc3   : > { %v576_v51 = vmax.f32 %v522_v45, 0.0  ;;  %v584_v52 = vmax.f32 %v542_v46, 0.0 }
  0xc4   : > { %v561_v63 = vmax.f32 %v485_v55, 0.0  ;;  %v569_v0 = vmax.f32 %v505_v56, 0.0 }
  0xc5   : > { %v960_v53 = vpack.c.bf16 %v576_v51, %v575_v49  ;;  %v980_v54 = vpack.c.bf16 %v584_v52, %v583_v50 }
  0xc7   : > { %1004 = vst [vmem:[%s1287_s11 + $0x40] sm:$0xff] %v960_v53  }
  0xc8   : > { %1008 = vst [vmem:[%s1287_s11 + $0x60] sm:$0xff] %v980_v54   ;;  %v524_v57 = vpop.f32.mrf.mxu2  ;;  %v544_v58 = vpop.f32.mrf.mxu3 }
  0xc9   : > { %v486_v59 = vpop.f32.mrf.mxu0  ;;  %v506_v60 = vpop.f32.mrf.mxu1  ;;  %v525_v5 = vadd.f32 %v1276_v26, %v524_v57  ;;  %v545_v6 = vadd.f32 %v1276_v26, %v544_v58 }
  0xca   : > { %v487_v61 = vadd.f32 %v1276_v26, %v486_v59  ;;  %v507_v62 = vadd.f32 %v1276_v26, %v506_v60 }
  0xcb   : > { %v577_v13 = vmax.f32 %v525_v5, 0.0  ;;  %v585_v14 = vmax.f32 %v545_v6, 0.0 }
  0xcc   : > { %v562_v1 = vmax.f32 %v487_v61, 0.0  ;;  %v570_v2 = vmax.f32 %v507_v62, 0.0 }
  0xce   : > { %v925_v3 = vpack.c.bf16 %v562_v1, %v561_v63  ;;  %v945_v4 = vpack.c.bf16 %v570_v2, %v569_v0 }
  0xd0   : > { %997 = vst [vmem:[%s1287_s11 + $0x8] sm:$0xff] %v925_v3   ;;  %v526_v7 = vpop.f32.mrf.mxu2  ;;  %v546_v8 = vpop.f32.mrf.mxu3 }
  0xd1   : > { %1001 = vst [vmem:[%s1287_s11 + $0x28] sm:$0xff] %v945_v4   ;;  %v527_v9 = vadd.f32 %v1276_v26, %v526_v7  ;;  %v547_v10 = vadd.f32 %v1276_v26, %v546_v8  ;;  %v489_v11 = vpop.f32.mrf.mxu0  ;;  %v509_v12 = vpop.f32.mrf.mxu1 }
  0xd2   : > { %v490_v19 = vadd.f32 %v1276_v26, %v489_v11  ;;  %v510_v20 = vadd.f32 %v1276_v26, %v509_v12 }
  0xd3   : > { %v578_v15 = vmax.f32 %v527_v9, 0.0  ;;  %v586_v16 = vmax.f32 %v547_v10, 0.0 }
  0xd4   : > { %v563_v28 = vmax.f32 %v490_v19, 0.0  ;;  %v571_v29 = vmax.f32 %v510_v20, 0.0 }
  0xd5   : > { %v965_v17 = vpack.c.bf16 %v578_v15, %v577_v13  ;;  %v985_v18 = vpack.c.bf16 %v586_v16, %v585_v14 }
  0xd7   : > { %1005 = vst [vmem:[%s1287_s11 + $0x48] sm:$0xff] %v965_v17  }
  0xd8   : > { %1009 = vst [vmem:[%s1287_s11 + $0x68] sm:$0xff] %v985_v18   ;;  %v529_v21 = vpop.f32.mrf.mxu2  ;;  %v549_v22 = vpop.f32.mrf.mxu3 }
  0xd9   : > { %v491_v23 = vpop.f32.mrf.mxu0  ;;  %v511_v24 = vpop.f32.mrf.mxu1  ;;  %v530_v34 = vadd.f32 %v1276_v26, %v529_v21  ;;  %v550_v35 = vadd.f32 %v1276_v26, %v549_v22 }
  0xda   : > { %v492_v25 = vadd.f32 %v1276_v26, %v491_v23  ;;  %v512_v27 = vadd.f32 %v1276_v26, %v511_v24 }
  0xdb   : > { %v579_v42 = vmax.f32 %v530_v34, 0.0  ;;  %v587_v43 = vmax.f32 %v550_v35, 0.0 }
  0xdc   : > { %v564_v30 = vmax.f32 %v492_v25, 0.0  ;;  %v572_v31 = vmax.f32 %v512_v27, 0.0 }
  0xde   : > { %v930_v32 = vpack.c.bf16 %v564_v30, %v563_v28  ;;  %v950_v33 = vpack.c.bf16 %v572_v31, %v571_v29 }
  0xe0   : > { %998 = vst [vmem:[%s1287_s11 + $0x10] sm:$0xff] %v930_v32   ;;  %v531_v36 = vpop.f32.mrf.mxu2  ;;  %v551_v37 = vpop.f32.mrf.mxu3 }
  0xe1   : > { %1002 = vst [vmem:[%s1287_s11 + $0x30] sm:$0xff] %v950_v33   ;;  %v532_v38 = vadd.f32 %v1276_v26, %v531_v36  ;;  %v552_v39 = vadd.f32 %v1276_v26, %v551_v37  ;;  %v494_v40 = vpop.f32.mrf.mxu0  ;;  %v514_v41 = vpop.f32.mrf.mxu1 }
  0xe2   : > { %v495_v48 = vadd.f32 %v1276_v26, %v494_v40  ;;  %v515_v49 = vadd.f32 %v1276_v26, %v514_v41 }
  0xe3   : > { %v580_v44 = vmax.f32 %v532_v38, 0.0  ;;  %v588_v45 = vmax.f32 %v552_v39, 0.0 }
  0xe4   : > { %v565_v56 = vmax.f32 %v495_v48, 0.0  ;;  %v573_v57 = vmax.f32 %v515_v49, 0.0 }
  0xe5   : > { %v970_v46 = vpack.c.bf16 %v580_v44, %v579_v42  ;;  %v990_v47 = vpack.c.bf16 %v588_v45, %v587_v43 }
  0xe7   : > { %1006 = vst [vmem:[%s1287_s11 + $0x50] sm:$0xff] %v970_v46  }
  0xe8   : > { %1010 = vst [vmem:[%s1287_s11 + $0x70] sm:$0xff] %v990_v47   ;;  %v534_v50 = vpop.f32.mrf.mxu2  ;;  %v554_v51 = vpop.f32.mrf.mxu3 }
  0xe9   : > { %v496_v52 = vpop.f32.mrf.mxu0  ;;  %v516_v53 = vpop.f32.mrf.mxu1  ;;  %v535_v62 = vadd.f32 %v1276_v26, %v534_v50  ;;  %v555_v63 = vadd.f32 %v1276_v26, %v554_v51 }
  0xea   : > { %v497_v54 = vadd.f32 %v1276_v26, %v496_v52  ;;  %v517_v55 = vadd.f32 %v1276_v26, %v516_v53 }
  0xeb   : > { %v581_v4 = vmax.f32 %v535_v62, 0.0  ;;  %v589_v5 = vmax.f32 %v555_v63, 0.0 }
  0xec   : > { %v566_v58 = vmax.f32 %v497_v54, 0.0  ;;  %v574_v59 = vmax.f32 %v517_v55, 0.0 }
  0xee   : > { %v935_v60 = vpack.c.bf16 %v566_v58, %v565_v56  ;;  %v955_v61 = vpack.c.bf16 %v574_v59, %v573_v57 }
  0xf0   : > { %999 = vst [vmem:[%s1287_s11 + $0x18] sm:$0xff] %v935_v60   ;;  %v536_v0 = vpop.f32.mrf.mxu2  ;;  %v556_v1 = vpop.f32.mrf.mxu3 }
  0xf1   : > { %1003 = vst [vmem:[%s1287_s11 + $0x38] sm:$0xff] %v955_v61   ;;  %v537_v2 = vadd.f32 %v1276_v26, %v536_v0  ;;  %v557_v3 = vadd.f32 %v1276_v26, %v556_v1 }
  0xf3   : > { %v582_v6 = vmax.f32 %v537_v2, 0.0  ;;  %v590_v7 = vmax.f32 %v557_v3, 0.0 }
  0xf5   : > { %v975_v8 = vpack.c.bf16 %v582_v6, %v581_v4  ;;  %v995_v9 = vpack.c.bf16 %v590_v7, %v589_v5 }
  0xf7   : > { %1007 = vst [vmem:[%s1287_s11 + $0x58] sm:$0xff] %v975_v8  }
  0xf8   : > { %1011 = vst [vmem:[%s1287_s11 + $0x78] sm:$0xff] %v995_v9  }
  0xf9 PF: > { %s15_s14 = sadd.s32 1, %s1174_s14   ;;  %s1348_s12 = smov %s1170_s13 }
  0xfa   : > { %p12_p8 = scmp.ge.s32.totalorder %s15_s14, 4   ;;  %s1349_s13 = smov %s1351_s16 }
  0xfc   :  { %14 = sbr.rel (!%p12_p8) target bundleno = 3 (0x3), region = 73 }
 0x101   :  { %691 = vsyncpa [#allocation3], 1 }
 0x102   :  { %693 = vsyncpa [#allocation3 + $0x1], 1 }
 0x103   :  { %694 = vsyncpa [#allocation5], 1 }

// kernel: colorization_forward.12
= control target key start
LH: loop header
LB: loop body
LE: loop exit
PB: predicated region body
PF: predicated region fallthrough
CT: control target
= control target key end

     0   :  { %s1824_s1 = inlined_call_operand.vmem [shape: bf16[1,640,128], index: 1, kind: input, shape index: {}]   ;;  %s1825_s2 = inlined_call_operand.vmem [shape: f32[1,128], index: 2, kind: input, shape index: {}]   ;;  %s1826_s0 = inlined_call_operand.vmem [shape: bf16[1,128,640], index: 0, kind: input, shape index: {}]   ;;  %s1827_s3 = inlined_call_operand.vmem [shape: bf16[1,128,128], index: 3, kind: output, shape index: {}]  }
   0x1   :  { %v1258_v0 = vld [vmem:[%s1824_s1 + $0x38] sm:$0xff]  ;;  %v1257_v1 = vld [vmem:[%s1824_s1 + $0x30] sm:$0xff]  ;;  %v1256_v2 = vld [vmem:[%s1824_s1 + $0x28] sm:$0xff] }
   0x2   :  { %1338 = vmatpush.bf16.msra.mxu1 %v1258_v0  ;;  %1339 = vmatpush.bf16.msra.mxu2 %v1258_v0  ;;  %v1255_v3 = vld [vmem:[%s1824_s1 + $0x20] sm:$0xff]  ;;  %v1254_v4 = vld [vmem:[%s1824_s1 + $0x18] sm:$0xff]  ;;  %v1253_v5 = vld [vmem:[%s1824_s1 + $0x10] sm:$0xff] }
   0x3   :  { %1340 = vmatpush.bf16.msra.mxu3 %v1258_v0  ;;  %594 = vmatpush.bf16.msra.mxu0 %v1258_v0  ;;  %v1252_v6 = vld [vmem:[%s1824_s1 + $0x8] sm:$0xff]  ;;  %v1251_v7 = vld [vmem:[%s1824_s1] sm:$0xff]  ;;  %v933_v8 = vld [vmem:[%s1826_s0 + $0x50] sm:$0xf] }
   0x4   :  { %v1223_v9 = vld [vmem:[%s1826_s0 + $0x60] sm:$0xf0]  ;;  %v973_v10 = vld [vmem:[%s1826_s0 + $0xa0] sm:$0xf]  ;;  %v1233_v11 = vld [vmem:[%s1826_s0 + $0xb0] sm:$0xf0] }
   0x5   :  { %v1013_v12 = vld [vmem:[%s1826_s0 + $0xf0] sm:$0xf]  ;;  %v1243_v13 = vld [vmem:[%s1826_s0 + $0x100] sm:$0xf0]  ;;  %v893_v14 = vld [vmem:[%s1826_s0] sm:$0xf]  ;;  %v934_v18 = vor.u32 %v1223_v9, %v933_v8  ;;  %v974_v19 = vor.u32 %v1233_v11, %v973_v10 }
   0x6   :  { %1341 = vmatpush.bf16.msra.mxu1 %v1257_v1  ;;  %1342 = vmatpush.bf16.msra.mxu2 %v1257_v1  ;;  %v1213_v15 = vld [vmem:[%s1826_s0 + $0x10] sm:$0xf0]  ;;  %v1274_v16 = vld [vmem:[%s1824_s1 + $0xb8] sm:$0xff]  ;;  %v1014_v20 = vor.u32 %v1243_v13, %v1013_v12  ;;  %v1272_v28 = vld [vmem:[%s1824_s1 + $0xa8] sm:$0xff] }
   0x7   :  { %1343 = vmatpush.bf16.msra.mxu3 %v1257_v1  ;;  %595 = vmatpush.bf16.msra.mxu0 %v1257_v1  ;;  %v1266_v17 = vld [vmem:[%s1824_s1 + $0x78] sm:$0xff]  ;;  %v894_v21 = vor.u32 %v1213_v15, %v893_v14  ;;  %v1273_v24 = vld [vmem:[%s1824_s1 + $0xb0] sm:$0xff]  ;;  %v1264_v29 = vld [vmem:[%s1824_s1 + $0x68] sm:$0xff] }
   0x8   :  { %v1282_v22 = vld [vmem:[%s1824_s1 + $0xf8] sm:$0xff]  ;;  %v1265_v25 = vld [vmem:[%s1824_s1 + $0x70] sm:$0xff]  ;;  %v1280_v30 = vld [vmem:[%s1824_s1 + $0xe8] sm:$0xff] }
   0x9   :  { %v1290_v23 = vld [vmem:[%s1824_s1 + $0x138] sm:$0xff]  ;;  %v1281_v26 = vld [vmem:[%s1824_s1 + $0xf0] sm:$0xff]  ;;  %v1288_v31 = vld [vmem:[%s1824_s1 + $0x128] sm:$0xff] }
   0xa   :  { %1344 = vmatpush.bf16.msra.mxu1 %v1256_v2  ;;  %1345 = vmatpush.bf16.msra.mxu2 %v1256_v2  ;;  %v1289_v27 = vld [vmem:[%s1824_s1 + $0x130] sm:$0xff]  ;;  %v1271_v32 = vld [vmem:[%s1824_s1 + $0xa0] sm:$0xff]  ;;  %v953_v36 = vld [vmem:[%s1826_s0 + $0x78] sm:$0xf] }
   0xb   :  { %1346 = vmatpush.bf16.msra.mxu3 %v1256_v2  ;;  %596 = vmatpush.bf16.msra.mxu0 %v1256_v2  ;;  %v1263_v33 = vld [vmem:[%s1824_s1 + $0x60] sm:$0xff]  ;;  %v1228_v37 = vld [vmem:[%s1826_s0 + $0x88] sm:$0xf0]  ;;  %v993_v38 = vld [vmem:[%s1826_s0 + $0xc8] sm:$0xf] }
   0xc   :  { %v1279_v34 = vld [vmem:[%s1824_s1 + $0xe0] sm:$0xff]  ;;  %v1238_v39 = vld [vmem:[%s1826_s0 + $0xd8] sm:$0xf0]  ;;  %v1033_v40 = vld [vmem:[%s1826_s0 + $0x118] sm:$0xf]  ;;  %v954_v46 = vor.u32 %v1228_v37, %v953_v36 }
   0xd   :  { %v1287_v35 = vld [vmem:[%s1824_s1 + $0x120] sm:$0xff]  ;;  %v1248_v41 = vld [vmem:[%s1826_s0 + $0x128] sm:$0xf0]  ;;  %v913_v42 = vld [vmem:[%s1826_s0 + $0x28] sm:$0xf]  ;;  %v994_v47 = vor.u32 %v1238_v39, %v993_v38 }
   0xe   :  { %1347 = vmatpush.bf16.msra.mxu1 %v1255_v3  ;;  %1348 = vmatpush.bf16.msra.mxu2 %v1255_v3  ;;  %v1218_v43 = vld [vmem:[%s1826_s0 + $0x38] sm:$0xf0]  ;;  %v1034_v48 = vor.u32 %v1248_v41, %v1033_v40  ;;  %v1269_v52 = vld [vmem:[%s1824_s1 + $0x90] sm:$0xff]  ;;  %v1268_v56 = vld [vmem:[%s1824_s1 + $0x88] sm:$0xff] }
   0xf   :  { %1349 = vmatpush.bf16.msra.mxu3 %v1255_v3  ;;  %597 = vmatpush.bf16.msra.mxu0 %v1255_v3  ;;  %v1270_v44 = vld [vmem:[%s1824_s1 + $0x98] sm:$0xff]  ;;  %v914_v49 = vor.u32 %v1218_v43, %v913_v42  ;;  %v1261_v53 = vld [vmem:[%s1824_s1 + $0x50] sm:$0xff]  ;;  %v1260_v57 = vld [vmem:[%s1824_s1 + $0x48] sm:$0xff] }
  0x10   :  { %v1262_v45 = vld [vmem:[%s1824_s1 + $0x58] sm:$0xff]  ;;  %v1277_v54 = vld [vmem:[%s1824_s1 + $0xd0] sm:$0xff]  ;;  %v1276_v58 = vld [vmem:[%s1824_s1 + $0xc8] sm:$0xff] }
  0x11   :  { %v1278_v50 = vld [vmem:[%s1824_s1 + $0xd8] sm:$0xff]  ;;  %v1285_v55 = vld [vmem:[%s1824_s1 + $0x110] sm:$0xff]  ;;  %v1284_v59 = vld [vmem:[%s1824_s1 + $0x108] sm:$0xff] }
  0x12   :  { %1350 = vmatpush.bf16.msra.mxu1 %v1254_v4  ;;  %1351 = vmatpush.bf16.msra.mxu2 %v1254_v4  ;;  %v1286_v51 = vld [vmem:[%s1824_s1 + $0x118] sm:$0xff]  ;;  %v1267_v60 = vld [vmem:[%s1824_s1 + $0x80] sm:$0xff]  ;;  %v901_v2 = vld [vmem:[%s1826_s0 + $0x8] sm:$0xf] }
  0x13   :  { %1352 = vmatpush.bf16.msra.mxu3 %v1254_v4  ;;  %598 = vmatpush.bf16.msra.mxu0 %v1254_v4  ;;  %v1259_v61 = vld [vmem:[%s1824_s1 + $0x40] sm:$0xff]  ;;  %v895_v1 = vld [vmem:[%s1826_s0 + $0x14] sm:$0xf0]  ;;  %v1214_v3 = vld [vmem:[%s1826_s0 + $0x18] sm:$0xf0] }
  0x14   :  { %v1275_v62 = vld [vmem:[%s1824_s1 + $0xc0] sm:$0xff]  ;;  %v1212_v4 = vld [vmem:[%s1826_s0 + $0xc] sm:$0xf]  ;;  %v902_v9 = vor.u32 %v1214_v3, %v901_v2  ;;  %v921_v14 = vld [vmem:[%s1826_s0 + $0x30] sm:$0xf] }
  0x15   :  { %v1283_v63 = vld [vmem:[%s1824_s1 + $0x100] sm:$0xff]  ;;  %v1216_v12 = vld [vmem:[%s1826_s0 + $0x2c] sm:$0xf]  ;;  %v1226_v36 = vld [vmem:[%s1826_s0 + $0x7c] sm:$0xf] }
  0x16   :  { %1353 = vmatpush.bf16.msra.mxu1 %v1253_v5  ;;  %1354 = vmatpush.bf16.msra.mxu2 %v1253_v5  ;;  %v1211_v0 = vld [vmem:[%s1826_s0 + $0x4] sm:$0xf]  ;;  %v915_v13 = vld [vmem:[%s1826_s0 + $0x3c] sm:$0xf0]  ;;  %v955_v37 = vld [vmem:[%s1826_s0 + $0x8c] sm:$0xf0] }
  0x17   :  { %1355 = vmatpush.bf16.msra.mxu3 %v1253_v5  ;;  %599 = vmatpush.bf16.msra.mxu0 %v1253_v5  ;;  %v903_v5 = vld [vmem:[%s1826_s0 + $0x1c] sm:$0xf0]  ;;  %v898_v8 = vor.u32 %v1211_v0, %v895_v1  ;;  %v1219_v15 = vld [vmem:[%s1826_s0 + $0x40] sm:$0xf0]  ;;  %v1229_v39 = vld [vmem:[%s1826_s0 + $0x90] sm:$0xf0] }
  0x18   :  { %v906_v10 = vor.u32 %v1212_v4, %v903_v5  ;;  %v961_v38 = vld [vmem:[%s1826_s0 + $0x80] sm:$0xf]  ;;  %v1227_v40 = vld [vmem:[%s1826_s0 + $0x84] sm:$0xf]  ;;  %v963_v41 = vld [vmem:[%s1826_s0 + $0x94] sm:$0xf0] }
  0x19   :  { %v969_v42 = vld [vmem:[%s1826_s0 + $0x88] sm:$0xf]  ;;  %v1230_v43 = vld [vmem:[%s1826_s0 + $0x98] sm:$0xf0]  ;;  %v1237_v0 = vld [vmem:[%s1826_s0 + $0xd4] sm:$0xf] }
  0x1a   :  { %1356 = vmatpush.bf16.msra.mxu1 %v1252_v6  ;;  %1357 = vmatpush.bf16.msra.mxu2 %v1252_v6  ;;  %v1003_v1 = vld [vmem:[%s1826_s0 + $0xe4] sm:$0xf0]  ;;  %v1009_v2 = vld [vmem:[%s1826_s0 + $0xd8] sm:$0xf]  ;;  %v1240_v3 = vld [vmem:[%s1826_s0 + $0xe8] sm:$0xf0] }
  0x1b   :  { %1358 = vmatpush.bf16.msra.mxu3 %v1252_v6  ;;  %600 = vmatpush.bf16.msra.mxu0 %v1252_v6  ;;  %v909_v6 = vld [vmem:[%s1826_s0 + $0x10] sm:$0xf] }
  0x1e   :  { %1359 = vmatpush.bf16.msra.mxu1 %v1251_v7  ;;  %1360 = vmatpush.bf16.msra.mxu2 %v1251_v7 }
  0x1f   :  { %1361 = vmatpush.bf16.msra.mxu3 %v1251_v7  ;;  %601 = vmatpush.bf16.msra.mxu0 %v1251_v7  ;;  %v1215_v7 = vld [vmem:[%s1826_s0 + $0x20] sm:$0xf0] }
  0x20   :  { %v910_v11 = vor.u32 %v1215_v7, %v909_v6  ;;  %v1006_v6 = vor.u32 %v1237_v0, %v1003_v1  ;;  %v1010_v7 = vor.u32 %v1240_v3, %v1009_v2 }
  0x21   :  { %612 = vmatmul.bf16.vlgmr.msra.gmra.mxu1 %v934_v18  ;;  %622 = vmatmul.bf16.vlgmr.msra.gmra.mxu2 %v974_v19  ;;  %v929_v18 = vld [vmem:[%s1826_s0 + $0x38] sm:$0xf]  ;;  %v1220_v19 = vld [vmem:[%s1826_s0 + $0x48] sm:$0xf0] }
  0x22   :  { %692 = vmatpush.bf16.msrb.mxu2 %v1274_v16  ;;  %643 = vmatpush.bf16.msrb.mxu1 %v1266_v17  ;;  %v1217_v16 = vld [vmem:[%s1826_s0 + $0x34] sm:$0xf]  ;;  %v923_v17 = vld [vmem:[%s1826_s0 + $0x44] sm:$0xf0] }
  0x23   :  { %632 = vmatmul.bf16.vlgmr.msra.gmra.mxu3 %v1014_v20  ;;  %602 = vmatmul.bf16.vlgmr.msra.gmra.mxu0 %v894_v21  ;;  %v918_v20 = vor.u32 %v1216_v12, %v915_v13  ;;  %v922_v21 = vor.u32 %v1219_v15, %v921_v14  ;;  %v1242_v12 = vld [vmem:[%s1826_s0 + $0xfc] sm:$0xf]  ;;  %v1023_v13 = vld [vmem:[%s1826_s0 + $0x10c] sm:$0xf0]  ;;  %v1029_v14 = vld [vmem:[%s1826_s0 + $0x100] sm:$0xf] }
  0x24   :  { %741 = vmatpush.bf16.msrb.mxu3 %v1282_v22  ;;  %790 = vmatpush.bf16.msrb.mxu0 %v1290_v23  ;;  %v926_v22 = vor.u32 %v1217_v16, %v923_v17  ;;  %v930_v23 = vor.u32 %v1220_v19, %v929_v18  ;;  %v1245_v15 = vld [vmem:[%s1826_s0 + $0x110] sm:$0xf0]  ;;  %v1026_v19 = vor.u32 %v1242_v12, %v1023_v13 }
  0x26   :  { %693 = vmatpush.bf16.msrb.mxu2 %v1273_v24  ;;  %644 = vmatpush.bf16.msrb.mxu1 %v1265_v25  ;;  %v1221_v24 = vld [vmem:[%s1826_s0 + $0x54] sm:$0xf]  ;;  %v935_v25 = vld [vmem:[%s1826_s0 + $0x64] sm:$0xf0] }
  0x28   :  { %742 = vmatpush.bf16.msrb.mxu3 %v1281_v26  ;;  %791 = vmatpush.bf16.msrb.mxu0 %v1289_v27  ;;  %v941_v26 = vld [vmem:[%s1826_s0 + $0x58] sm:$0xf]  ;;  %v1224_v27 = vld [vmem:[%s1826_s0 + $0x68] sm:$0xf0] }
  0x2a   :  { %694 = vmatpush.bf16.msrb.mxu2 %v1272_v28  ;;  %645 = vmatpush.bf16.msrb.mxu1 %v1264_v29  ;;  %v1222_v28 = vld [vmem:[%s1826_s0 + $0x5c] sm:$0xf]  ;;  %v943_v29 = vld [vmem:[%s1826_s0 + $0x6c] sm:$0xf0] }
  0x2c   :  { %743 = vmatpush.bf16.msrb.mxu3 %v1280_v30  ;;  %792 = vmatpush.bf16.msrb.mxu0 %v1288_v31  ;;  %v949_v30 = vld [vmem:[%s1826_s0 + $0x60] sm:$0xf]  ;;  %v1225_v31 = vld [vmem:[%s1826_s0 + $0x70] sm:$0xf0] }
  0x2e   :  { %695 = vmatpush.bf16.msrb.mxu2 %v1271_v32  ;;  %646 = vmatpush.bf16.msrb.mxu1 %v1263_v33  ;;  %v938_v32 = vor.u32 %v1221_v24, %v935_v25  ;;  %v942_v33 = vor.u32 %v1224_v27, %v941_v26 }
  0x30   :  { %744 = vmatpush.bf16.msrb.mxu3 %v1279_v34  ;;  %793 = vmatpush.bf16.msrb.mxu0 %v1287_v35  ;;  %v946_v34 = vor.u32 %v1222_v28, %v943_v29  ;;  %v950_v35 = vor.u32 %v1225_v31, %v949_v30  ;;  %v1246_v29 = vld [vmem:[%s1826_s0 + $0x11c] sm:$0xf]  ;;  %v1035_v30 = vld [vmem:[%s1826_s0 + $0x12c] sm:$0xf0]  ;;  %v1041_v31 = vld [vmem:[%s1826_s0 + $0x120] sm:$0xf] }
  0x31   :  { %617 = vmatmul.bf16.gmra.mxu1 %v954_v46  ;;  %627 = vmatmul.bf16.gmra.mxu2 %v994_v47  ;;  %v966_v46 = vor.u32 %v1227_v40, %v963_v41  ;;  %v970_v47 = vor.u32 %v1230_v43, %v969_v42  ;;  %v1038_v40 = vor.u32 %v1246_v29, %v1035_v30 }
  0x32   :  { %696 = vmatpush.bf16.msrb.mxu2 %v1270_v44  ;;  %647 = vmatpush.bf16.msrb.mxu1 %v1262_v45  ;;  %v958_v44 = vor.u32 %v1226_v36, %v955_v37  ;;  %v962_v45 = vor.u32 %v1229_v39, %v961_v38  ;;  %v1250_v36 = vld [vmem:[%s1826_s0 + $0x138] sm:$0xf0] }
  0x33   :  { %637 = vmatmul.bf16.gmra.mxu3 %v1034_v48  ;;  %607 = vmatmul.bf16.gmra.mxu0 %v914_v49  ;;  %v1231_v48 = vld [vmem:[%s1826_s0 + $0xa4] sm:$0xf]  ;;  %v975_v49 = vld [vmem:[%s1826_s0 + $0xb4] sm:$0xf0] }
  0x34   :  { %745 = vmatpush.bf16.msrb.mxu3 %v1278_v50  ;;  %794 = vmatpush.bf16.msrb.mxu0 %v1286_v51  ;;  %v981_v50 = vld [vmem:[%s1826_s0 + $0xa8] sm:$0xf]  ;;  %v1234_v51 = vld [vmem:[%s1826_s0 + $0xb8] sm:$0xf0] }
  0x36   :  { %697 = vmatpush.bf16.msrb.mxu2 %v1269_v52  ;;  %648 = vmatpush.bf16.msrb.mxu1 %v1261_v53  ;;  %v1232_v52 = vld [vmem:[%s1826_s0 + $0xac] sm:$0xf]  ;;  %v983_v53 = vld [vmem:[%s1826_s0 + $0xbc] sm:$0xf0] }
  0x38   :  { %746 = vmatpush.bf16.msrb.mxu3 %v1277_v54  ;;  %795 = vmatpush.bf16.msrb.mxu0 %v1285_v55  ;;  %v989_v54 = vld [vmem:[%s1826_s0 + $0xb0] sm:$0xf]  ;;  %v1235_v55 = vld [vmem:[%s1826_s0 + $0xc0] sm:$0xf0] }
  0x3a   :  { %698 = vmatpush.bf16.msrb.mxu2 %v1268_v56  ;;  %649 = vmatpush.bf16.msrb.mxu1 %v1260_v57  ;;  %v978_v56 = vor.u32 %v1231_v48, %v975_v49  ;;  %v982_v57 = vor.u32 %v1234_v51, %v981_v50 }
  0x3c   :  { %747 = vmatpush.bf16.msrb.mxu3 %v1276_v58  ;;  %796 = vmatpush.bf16.msrb.mxu0 %v1284_v59  ;;  %v986_v58 = vor.u32 %v1232_v52, %v983_v53  ;;  %v990_v59 = vor.u32 %v1235_v55, %v989_v54 }
  0x3e   :  { %699 = vmatpush.bf16.msrb.mxu2 %v1267_v60  ;;  %650 = vmatpush.bf16.msrb.mxu1 %v1259_v61  ;;  %v1236_v60 = vld [vmem:[%s1826_s0 + $0xcc] sm:$0xf]  ;;  %v995_v61 = vld [vmem:[%s1826_s0 + $0xdc] sm:$0xf0] }
  0x3f   :  { %v998_v4 = vor.u32 %v1236_v60, %v995_v61 }
  0x40   :  { %748 = vmatpush.bf16.msrb.mxu3 %v1275_v62  ;;  %797 = vmatpush.bf16.msrb.mxu0 %v1283_v63  ;;  %v1001_v62 = vld [vmem:[%s1826_s0 + $0xd0] sm:$0xf]  ;;  %v1239_v63 = vld [vmem:[%s1826_s0 + $0xe0] sm:$0xf0] }
  0x41   :  { %651 = vmatmul.bf16.vlgmr.msrb.gmra.mxu1 %v898_v8  ;;  %700 = vmatmul.bf16.vlgmr.msrb.gmra.mxu2 %v902_v9  ;;  %v1002_v5 = vor.u32 %v1239_v63, %v1001_v62  ;;  %v1241_v8 = vld [vmem:[%s1826_s0 + $0xf4] sm:$0xf]  ;;  %v1015_v9 = vld [vmem:[%s1826_s0 + $0x104] sm:$0xf0] }
  0x42   :  { %v1018_v16 = vor.u32 %v1241_v8, %v1015_v9 }
  0x43   :  { %749 = vmatmul.bf16.vlgmr.msrb.gmra.mxu3 %v906_v10  ;;  %798 = vmatmul.bf16.vlgmr.msrb.gmra.mxu0 %v910_v11  ;;  %v1021_v10 = vld [vmem:[%s1826_s0 + $0xf8] sm:$0xf]  ;;  %v1244_v11 = vld [vmem:[%s1826_s0 + $0x108] sm:$0xf0] }
  0x44   :  { %v1022_v17 = vor.u32 %v1244_v11, %v1021_v10 }
  0x51   :  { %656 = vmatmul.bf16.gmra.mxu1 %v918_v20  ;;  %705 = vmatmul.bf16.gmra.mxu2 %v922_v21  ;;  %v1030_v20 = vor.u32 %v1245_v15, %v1029_v14 }
  0x53   :  { %754 = vmatmul.bf16.gmra.mxu3 %v926_v22  ;;  %803 = vmatmul.bf16.gmra.mxu0 %v930_v23  ;;  %v1724_v22 = vld [vmem:[%s1825_s2] ss:$0 sm:$0xff] }
  0x61   :  { %661 = vmatmul.bf16.gmra.mxu1 %v938_v32  ;;  %710 = vmatmul.bf16.gmra.mxu2 %v942_v33  ;;  %v1249_v32 = vld [vmem:[%s1826_s0 + $0x130] sm:$0xf0]  ;;  %v1247_v33 = vld [vmem:[%s1826_s0 + $0x124] sm:$0xf] }
  0x62   :  { %v1042_v41 = vor.u32 %v1249_v32, %v1041_v31 }
  0x63   :  { %759 = vmatmul.bf16.gmra.mxu3 %v946_v34  ;;  %808 = vmatmul.bf16.gmra.mxu0 %v950_v35  ;;  %v1043_v34 = vld [vmem:[%s1826_s0 + $0x134] sm:$0xf0]  ;;  %v1049_v35 = vld [vmem:[%s1826_s0 + $0x128] sm:$0xf] }
  0x71   :  { %666 = vmatmul.bf16.gmra.mxu1 %v958_v44  ;;  %715 = vmatmul.bf16.gmra.mxu2 %v962_v45  ;;  %v1046_v44 = vor.u32 %v1247_v33, %v1043_v34  ;;  %v1050_v45 = vor.u32 %v1250_v36, %v1049_v35 }
  0x73   :  { %764 = vmatmul.bf16.gmra.mxu3 %v966_v46  ;;  %813 = vmatmul.bf16.gmra.mxu0 %v970_v47 }
  0x81   :  { %671 = vmatmul.bf16.gmra.mxu1 %v978_v56  ;;  %720 = vmatmul.bf16.gmra.mxu2 %v982_v57 }
  0x83   :  { %769 = vmatmul.bf16.gmra.mxu3 %v986_v58  ;;  %818 = vmatmul.bf16.gmra.mxu0 %v990_v59 }
  0x91   :  { %676 = vmatmul.bf16.gmra.mxu1 %v998_v4  ;;  %725 = vmatmul.bf16.gmra.mxu2 %v1002_v5 }
  0x93   :  { %774 = vmatmul.bf16.gmra.mxu3 %v1006_v6  ;;  %823 = vmatmul.bf16.gmra.mxu0 %v1010_v7 }
  0x9e   :  { %v1719_v18 = vpop.f32.mrf.mxu1 }
  0xa0   :  { %v603_v21 = vpop.f32.mrf.mxu0 }
  0xa1   :  { %681 = vmatmul.bf16.gmra.mxu1 %v1018_v16  ;;  %730 = vmatmul.bf16.gmra.mxu2 %v1022_v17  ;;  %v604_v59 = vadd.f32 %v1724_v22, %v603_v21 }
  0xa3   :  { %779 = vmatmul.bf16.gmra.mxu3 %v1026_v19  ;;  %828 = vmatmul.bf16.gmra.mxu0 %v1030_v20 }
  0xa4   :  { %v623_v23 = vpop.f32.mrf.mxu2 }
  0xa5   :  { %v1727_v24 = vadd.f32 %v1724_v22, %v623_v23 }
  0xa6   :  { %v633_v25 = vpop.f32.mrf.mxu3  ;;  %v1732_v27 = vpop.f32.mrf.mxu1 }
  0xa7   :  { %v1730_v26 = vadd.f32 %v1724_v22, %v633_v25 }
  0xa8   :  { %v605_v28 = vpop.f32.mrf.mxu0 }
  0xa9   :  { %v606_v2 = vadd.f32 %v1724_v22, %v605_v28 }
  0xac   :  { %v625_v37 = vpop.f32.mrf.mxu2 }
  0xad   :  { %v1759_v38 = vadd.f32 %v1724_v22, %v625_v37 }
  0xae   :  { %v635_v39 = vpop.f32.mrf.mxu3  ;;  %v1764_v43 = vpop.f32.mrf.mxu1 }
  0xaf   :  { %v1762_v42 = vadd.f32 %v1724_v22, %v635_v39 }
  0xb0   :  { %v608_v46 = vpop.f32.mrf.mxu0 }
  0xb1   :  { %686 = vmatmul.bf16.gmra.mxu1 %v1038_v40  ;;  %735 = vmatmul.bf16.gmra.mxu2 %v1042_v41  ;;  %v609_v13 = vadd.f32 %v1724_v22, %v608_v46  ;;  %v614_v40 = vadd.f32 %v1724_v22, %v1719_v18 }
  0xb3   :  { %784 = vmatmul.bf16.gmra.mxu3 %v1046_v44  ;;  %833 = vmatmul.bf16.gmra.mxu0 %v1050_v45 }
  0xb4   :  { %v628_v47 = vpop.f32.mrf.mxu2 }
  0xb5   :  { %v1767_v48 = vadd.f32 %v1724_v22, %v628_v47 }
  0xb6   :  { %v638_v49 = vpop.f32.mrf.mxu3  ;;  %v1772_v51 = vpop.f32.mrf.mxu1 }
  0xb7   :  { %v1770_v50 = vadd.f32 %v1724_v22, %v638_v49 }
  0xb8   :  { %v610_v52 = vpop.f32.mrf.mxu0 }
  0xb9   :  { %v611_v28 = vadd.f32 %v1724_v22, %v610_v52 }
  0xbc   :  { %v630_v53 = vpop.f32.mrf.mxu2 }
  0xbd   :  { %v1775_v54 = vadd.f32 %v1724_v22, %v630_v53 }
  0xbe   :  { %v640_v55 = vpop.f32.mrf.mxu3  ;;  %v652_v57 = vpop.f32.mrf.mxu1 }
  0xbf   :  { %v1778_v56 = vadd.f32 %v1724_v22, %v640_v55  ;;  %v653_v61 = vadd.f32 %v652_v57, %v604_v59  ;;  %v616_v57 = vadd.f32 %v1724_v22, %v1732_v27 }
  0xc0   :  { %v799_v58 = vpop.f32.mrf.mxu0 }
  0xc4   :  { %v701_v60 = vpop.f32.mrf.mxu2 }
  0xc5   :  { %v702_v0 = vadd.f32 %v701_v60, %v653_v61 }
  0xc6   :  { %v750_v62 = vpop.f32.mrf.mxu3  ;;  %v654_v63 = vpop.f32.mrf.mxu1 }
  0xc7   :  { %v751_v3 = vadd.f32 %v750_v62, %v702_v0  ;;  %v655_v4 = vadd.f32 %v654_v63, %v606_v2 }
  0xc8   :  { %v801_v1 = vpop.f32.mrf.mxu0 }
  0xc9   :  { %v800_v9 = vadd.f32 %v799_v58, %v751_v3  ;;  %v619_v3 = vadd.f32 %v1724_v22, %v1764_v43 }
  0xcb   :  { %v839_v14 = vmax.f32 %v800_v9, 0.0 }
  0xcc   :  { %v703_v5 = vpop.f32.mrf.mxu2 }
  0xcd   :  { %v704_v6 = vadd.f32 %v703_v5, %v655_v4 }
  0xce   :  { %v752_v7 = vpop.f32.mrf.mxu3  ;;  %v657_v8 = vpop.f32.mrf.mxu1 }
  0xcf   :  { %v753_v10 = vadd.f32 %v752_v7, %v704_v6  ;;  %v658_v19 = vadd.f32 %v657_v8, %v609_v13 }
  0xd0   :  { %v804_v11 = vpop.f32.mrf.mxu0 }
  0xd1   :  { %v802_v12 = vadd.f32 %v801_v1, %v753_v10 }
  0xd3   :  { %v840_v15 = vmax.f32 %v802_v12, 0.0  ;;  %v621_v12 = vadd.f32 %v1724_v22, %v1772_v51 }
  0xd4   :  { %v706_v16 = vpop.f32.mrf.mxu2 }
  0xd5   :  { %v1294_v17 = vpack.c.bf16 %v840_v15, %v839_v14  ;;  %v707_v23 = vadd.f32 %v706_v16, %v658_v19 }
  0xd6   :  { %v755_v20 = vpop.f32.mrf.mxu3  ;;  %v659_v21 = vpop.f32.mrf.mxu1 }
  0xd7   :  { %1295 = vst [vmem:[%s1827_s3] sm:$0xff] %v1294_v17   ;;  %v756_v29 = vadd.f32 %v755_v20, %v707_v23  ;;  %v660_v30 = vadd.f32 %v659_v21, %v611_v28 }
  0xd8   :  { %v806_v25 = vpop.f32.mrf.mxu0 }
  0xd9   :  { %v805_v35 = vadd.f32 %v804_v11, %v756_v29 }
  0xdb   :  { %v841_v41 = vmax.f32 %v805_v35, 0.0 }
  0xdc   :  { %v708_v31 = vpop.f32.mrf.mxu2 }
  0xdd   :  { %v709_v32 = vadd.f32 %v708_v31, %v660_v30 }
  0xde   :  { %v757_v33 = vpop.f32.mrf.mxu3  ;;  %v662_v34 = vpop.f32.mrf.mxu1 }
  0xdf   :  { %v758_v36 = vadd.f32 %v757_v33, %v709_v32  ;;  %v663_v47 = vadd.f32 %v662_v34, %v614_v40 }
  0xe0   :  { %v809_v37 = vpop.f32.mrf.mxu0 }
  0xe1   :  { %v807_v39 = vadd.f32 %v806_v25, %v758_v36 }
  0xe3   :  { %v842_v44 = vmax.f32 %v807_v39, 0.0 }
  0xe4   :  { %v711_v45 = vpop.f32.mrf.mxu2 }
  0xe5   :  { %v1299_v46 = vpack.c.bf16 %v842_v44, %v841_v41  ;;  %v712_v53 = vadd.f32 %v711_v45, %v663_v47 }
  0xe6   :  { %v760_v49 = vpop.f32.mrf.mxu3  ;;  %v664_v52 = vpop.f32.mrf.mxu1 }
  0xe7   :  { %1331 = vst [vmem:[%s1827_s3 + $0x8] sm:$0xff] %v1299_v46   ;;  %v761_v58 = vadd.f32 %v760_v49, %v712_v53  ;;  %v665_v59 = vadd.f32 %v664_v52, %v616_v57 }
  0xe8   :  { %v811_v55 = vpop.f32.mrf.mxu0 }
  0xe9   :  { %v810_v63 = vadd.f32 %v809_v37, %v761_v58 }
  0xeb   :  { %v843_v4 = vmax.f32 %v810_v63, 0.0 }
  0xec   :  { %v713_v60 = vpop.f32.mrf.mxu2 }
  0xed   :  { %v714_v18 = vadd.f32 %v713_v60, %v665_v59 }
  0xee   :  { %v762_v61 = vpop.f32.mrf.mxu3  ;;  %v667_v62 = vpop.f32.mrf.mxu1 }
  0xef   :  { %v763_v0 = vadd.f32 %v762_v61, %v714_v18  ;;  %v668_v8 = vadd.f32 %v667_v62, %v619_v3 }
  0xf0   :  { %v814_v1 = vpop.f32.mrf.mxu0 }
  0xf1   :  { %v812_v2 = vadd.f32 %v811_v55, %v763_v0 }
  0xf3   :  { %v844_v5 = vmax.f32 %v812_v2, 0.0 }
  0xf4   :  { %v716_v6 = vpop.f32.mrf.mxu2 }
  0xf5   :  { %v1304_v7 = vpack.c.bf16 %v844_v5, %v843_v4  ;;  %v717_v10 = vadd.f32 %v716_v6, %v668_v8 }
  0xf6   :  { %v765_v9 = vpop.f32.mrf.mxu3  ;;  %v669_v27 = vpop.f32.mrf.mxu1 }
  0xf7   :  { %1332 = vst [vmem:[%s1827_s3 + $0x10] sm:$0xff] %v1304_v7   ;;  %v766_v13 = vadd.f32 %v765_v9, %v717_v10  ;;  %v670_v14 = vadd.f32 %v669_v27, %v621_v12 }
  0xf8   :  { %v816_v11 = vpop.f32.mrf.mxu0 }
  0xf9   :  { %v815_v19 = vadd.f32 %v814_v1, %v766_v13 }
  0xfb   :  { %v845_v25 = vmax.f32 %v815_v19, 0.0 }
  0xfc   :  { %v718_v15 = vpop.f32.mrf.mxu2 }
  0xfd   :  { %v719_v43 = vadd.f32 %v718_v15, %v670_v14 }
  0xfe   :  { %v767_v16 = vpop.f32.mrf.mxu3  ;;  %v672_v17 = vpop.f32.mrf.mxu1 }
  0xff   :  { %v768_v20 = vadd.f32 %v767_v16, %v719_v43  ;;  %v673_v31 = vadd.f32 %v672_v17, %v1727_v24 }
 0x100   :  { %v819_v21 = vpop.f32.mrf.mxu0 }
 0x101   :  { %v817_v23 = vadd.f32 %v816_v11, %v768_v20 }
 0x103   :  { %v846_v28 = vmax.f32 %v817_v23, 0.0 }
 0x104   :  { %v721_v29 = vpop.f32.mrf.mxu2 }
 0x105   :  { %v1309_v30 = vpack.c.bf16 %v846_v28, %v845_v25  ;;  %v722_v22 = vadd.f32 %v721_v29, %v673_v31 }
 0x106   :  { %v770_v32 = vpop.f32.mrf.mxu3  ;;  %v674_v33 = vpop.f32.mrf.mxu1 }
 0x107   :  { %1333 = vst [vmem:[%s1827_s3 + $0x18] sm:$0xff] %v1309_v30   ;;  %v771_v34 = vadd.f32 %v770_v32, %v722_v22  ;;  %v675_v35 = vadd.f32 %v674_v33, %v1759_v38 }
 0x108   :  { %v821_v51 = vpop.f32.mrf.mxu0 }
 0x109   :  { %v820_v41 = vadd.f32 %v819_v21, %v771_v34 }
 0x10b   :  { %v847_v24 = vmax.f32 %v820_v41, 0.0 }
 0x10c   :  { %v723_v36 = vpop.f32.mrf.mxu2 }
 0x10d   :  { %v724_v37 = vadd.f32 %v723_v36, %v675_v35 }
 0x10e   :  { %v772_v39 = vpop.f32.mrf.mxu3  ;;  %v677_v40 = vpop.f32.mrf.mxu1 }
 0x10f   :  { %v773_v44 = vadd.f32 %v772_v39, %v724_v37  ;;  %v678_v53 = vadd.f32 %v677_v40, %v1767_v48 }
 0x110   :  { %v824_v45 = vpop.f32.mrf.mxu0 }
 0x111   :  { %v822_v46 = vadd.f32 %v821_v51, %v773_v44 }
 0x113   :  { %v848_v47 = vmax.f32 %v822_v46, 0.0 }
 0x114   :  { %v726_v49 = vpop.f32.mrf.mxu2 }
 0x115   :  { %v1314_v52 = vpack.c.bf16 %v848_v47, %v847_v24  ;;  %v727_v38 = vadd.f32 %v726_v49, %v678_v53 }
 0x116   :  { %v775_v55 = vpop.f32.mrf.mxu3  ;;  %v679_v57 = vpop.f32.mrf.mxu1 }
 0x117   :  { %1334 = vst [vmem:[%s1827_s3 + $0x20] sm:$0xff] %v1314_v52   ;;  %v776_v59 = vadd.f32 %v775_v55, %v727_v38  ;;  %v680_v60 = vadd.f32 %v679_v57, %v1775_v54 }
 0x118   :  { %v826_v58 = vpop.f32.mrf.mxu0 }
 0x119   :  { %v825_v0 = vadd.f32 %v824_v45, %v776_v59 }
 0x11b   :  { %v849_v48 = vmax.f32 %v825_v0, 0.0 }
 0x11c   :  { %v728_v18 = vpop.f32.mrf.mxu2 }
 0x11d   :  { %v729_v61 = vadd.f32 %v728_v18, %v680_v60 }
 0x11e   :  { %v777_v62 = vpop.f32.mrf.mxu3  ;;  %v682_v63 = vpop.f32.mrf.mxu1 }
 0x11f   :  { %v778_v1 = vadd.f32 %v777_v62, %v729_v61  ;;  %v683_v7 = vadd.f32 %v682_v63, %v1730_v26 }
 0x120   :  { %v829_v3 = vpop.f32.mrf.mxu0 }
 0x121   :  { %v827_v2 = vadd.f32 %v826_v58, %v778_v1 }
 0x123   :  { %v850_v4 = vmax.f32 %v827_v2, 0.0 }
 0x124   :  { %v731_v5 = vpop.f32.mrf.mxu2 }
 0x125   :  { %v1319_v6 = vpack.c.bf16 %v850_v4, %v849_v48  ;;  %v732_v54 = vadd.f32 %v731_v5, %v683_v7 }
 0x126   :  { %v780_v8 = vpop.f32.mrf.mxu3  ;;  %v684_v9 = vpop.f32.mrf.mxu1 }
 0x127   :  { %1335 = vst [vmem:[%s1827_s3 + $0x28] sm:$0xff] %v1319_v6   ;;  %v781_v27 = vadd.f32 %v780_v8, %v732_v54  ;;  %v685_v10 = vadd.f32 %v684_v9, %v1762_v42 }
 0x128   :  { %v831_v11 = vpop.f32.mrf.mxu0 }
 0x129   :  { %v830_v43 = vadd.f32 %v829_v3, %v781_v27 }
 0x12b   :  { %v851_v19 = vmax.f32 %v830_v43, 0.0 }
 0x12c   :  { %v733_v12 = vpop.f32.mrf.mxu2 }
 0x12d   :  { %v734_v13 = vadd.f32 %v733_v12, %v685_v10 }
 0x12e   :  { %v782_v14 = vpop.f32.mrf.mxu3  ;;  %v687_v15 = vpop.f32.mrf.mxu1 }
 0x12f   :  { %v783_v16 = vadd.f32 %v782_v14, %v734_v13  ;;  %v688_v23 = vadd.f32 %v687_v15, %v1770_v50 }
 0x130   :  { %v834_v28 = vpop.f32.mrf.mxu0 }
 0x131   :  { %v832_v17 = vadd.f32 %v831_v11, %v783_v16 }
 0x133   :  { %v852_v26 = vmax.f32 %v832_v17, 0.0 }
 0x134   :  { %v736_v20 = vpop.f32.mrf.mxu2 }
 0x135   :  { %v1324_v21 = vpack.c.bf16 %v852_v26, %v851_v19  ;;  %v737_v42 = vadd.f32 %v736_v20, %v688_v23 }
 0x136   :  { %v785_v25 = vpop.f32.mrf.mxu3  ;;  %v689_v29 = vpop.f32.mrf.mxu1 }
 0x137   :  { %1336 = vst [vmem:[%s1827_s3 + $0x30] sm:$0xff] %v1324_v21   ;;  %v786_v30 = vadd.f32 %v785_v25, %v737_v42  ;;  %v690_v31 = vadd.f32 %v689_v29, %v1778_v56 }
 0x138   :  { %v836_v35 = vpop.f32.mrf.mxu0 }
 0x139   :  { %v835_v51 = vadd.f32 %v834_v28, %v786_v30 }
 0x13b   :  { %v853_v37 = vmax.f32 %v835_v51, 0.0 }
 0x13c   :  { %v738_v32 = vpop.f32.mrf.mxu2 }
 0x13d   :  { %v739_v33 = vadd.f32 %v738_v32, %v690_v31 }
 0x13e   :  { %v787_v22 = vpop.f32.mrf.mxu3 }
 0x13f   :  { %v788_v34 = vadd.f32 %v787_v22, %v739_v33 }
 0x141   :  { %v837_v36 = vadd.f32 %v836_v35, %v788_v34 }
 0x143   :  { %v854_v50 = vmax.f32 %v837_v36, 0.0 }
 0x145   :  { %v1329_v39 = vpack.c.bf16 %v854_v50, %v853_v37 }
 0x147   :  { %1337 = vst [vmem:[%s1827_s3 + $0x38] sm:$0xff] %v1329_v39  }

// kernel: squeeze.12
= control target key start
LH: loop header
LB: loop body
LE: loop exit
PB: predicated region body
PF: predicated region fallthrough
CT: control target
= control target key end

     0   :  { %s391_s0 = inlined_call_operand.vmem [shape: bf16[1,32,256], index: 0, kind: input, shape index: {}]   ;;  %s392_s1 = inlined_call_operand.vmem [shape: bf16[2,4,4,256], index: 1, kind: output, shape index: {}]  }
   0x1   :  { %v319_v0 = vld [vmem:[%s391_s0 + $0x10] sm:$0xff]   ;;  %v320_v2 = vld [vmem:[%s391_s0 + $0x8] sm:$0xff]   ;;  %v315_v3 = vld [vmem:[%s391_s0] sm:$0xff]  }
   0x2   :  { %v308_v1 = vunpack.c.l.bf16 %v319_v0  ;;  %v316_v4 = vunpack.c.l.bf16 %v315_v3  ;;  %v317_v5 = vunpack.c.h.bf16 %v315_v3  ;;  %v312_v6 = vunpack.c.l.bf16 %v320_v2  ;;  %v318_v8 = vld [vmem:[%s391_s0 + $0x18] sm:$0xff]  }
   0x3   :  { %v313_v7 = vunpack.c.h.bf16 %v320_v2  ;;  %v309_v9 = vunpack.c.h.bf16 %v319_v0  ;;  %v304_v10 = vunpack.c.l.bf16 %v318_v8  ;;  %v305_v12 = vunpack.c.h.bf16 %v318_v8 }
   0x4   :  { %147 = vst [vmem:[#allocation0 + $0x40] sm:$0xf] %v308_v1  }
   0x5   :  { %123 = vst [vmem:[#allocation0] sm:$0xf] %v316_v4  }
   0x6   :  { %125 = vst [vmem:[#allocation0 + $0xc] sm:$0xf0] %v316_v4  }
   0x7   :  { %129 = vst [vmem:[#allocation0 + $0x8] sm:$0xf] %v317_v5  }
   0x8   :  { %131 = vst [vmem:[#allocation0 + $0x14] sm:$0xf0] %v317_v5  }
   0x9   :  { %135 = vst [vmem:[#allocation0 + $0x20] sm:$0xf] %v312_v6  }
   0xa   :  { %137 = vst [vmem:[#allocation0 + $0x2c] sm:$0xf0] %v312_v6  }
   0xb   :  { %141 = vst [vmem:[#allocation0 + $0x28] sm:$0xf] %v313_v7   ;;  %v225_v26 = vld [vmem:[#allocation0 + $0x40] sm:$0xf] }
   0xc   :  { %143 = vst [vmem:[#allocation0 + $0x34] sm:$0xf0] %v313_v7   ;;  %v170_v11 = vld [vmem:[#allocation0] sm:$0xf]  ;;  %v226_v31 = vpack.c.bf16 0.0, %v225_v26 }
   0xd   :  { %149 = vst [vmem:[#allocation0 + $0x4c] sm:$0xf0] %v308_v1   ;;  %v183_v14 = vld [vmem:[#allocation0 + $0x10] sm:$0xf]  ;;  %v171_v15 = vpack.c.bf16 0.0, %v170_v11 }
   0xe   :  { %153 = vst [vmem:[#allocation0 + $0x48] sm:$0xf] %v309_v9   ;;  %v176_v13 = vld [vmem:[#allocation0 + $0x8] sm:$0xf]  ;;  %v184_v19 = vpack.c.bf16 0.0, %v183_v14 }
   0xf   :  { %155 = vst [vmem:[#allocation0 + $0x54] sm:$0xf0] %v309_v9   ;;  %v190_v16 = vld [vmem:[#allocation0 + $0x18] sm:$0xf]  ;;  %v177_v17 = vpack.c.bf16 0.0, %v176_v13 }
  0x10   :  { %159 = vst [vmem:[#allocation0 + $0x60] sm:$0xf] %v304_v10   ;;  %v197_v18 = vld [vmem:[#allocation0 + $0x20] sm:$0xf]  ;;  %v191_v21 = vpack.c.bf16 0.0, %v190_v16 }
  0x11   :  { %161 = vst [vmem:[#allocation0 + $0x6c] sm:$0xf0] %v304_v10   ;;  %v211_v22 = vld [vmem:[#allocation0 + $0x30] sm:$0xf]  ;;  %v198_v23 = vpack.c.bf16 0.0, %v197_v18 }
  0x12   :  { %165 = vst [vmem:[#allocation0 + $0x68] sm:$0xf] %v305_v12   ;;  %v204_v20 = vld [vmem:[#allocation0 + $0x28] sm:$0xf]  ;;  %v212_v27 = vpack.c.bf16 0.0, %v211_v22 }
  0x13   :  { %167 = vst [vmem:[#allocation0 + $0x74] sm:$0xf0] %v305_v12   ;;  %v218_v24 = vld [vmem:[#allocation0 + $0x38] sm:$0xf]  ;;  %v205_v25 = vpack.c.bf16 0.0, %v204_v20 }
  0x14   :  { %174 = vst [vmem:[%s392_s1] sm:$0x3] %v171_v15  ;;  %v219_v29 = vpack.c.bf16 0.0, %v218_v24  ;;  %v239_v30 = vld [vmem:[#allocation0 + $0x50] sm:$0xf] }
  0x15   :  { %287 = vst [vmem:[%s392_s1 + $0x2] sm:$0x3] %v177_v17  ;;  %v232_v28 = vld [vmem:[#allocation0 + $0x48] sm:$0xf]  ;;  %v240_v35 = vpack.c.bf16 0.0, %v239_v30 }
  0x16   :  { %288 = vst [vmem:[%s392_s1 + $0x4] sm:$0x3] %v184_v19  ;;  %v246_v32 = vld [vmem:[#allocation0 + $0x58] sm:$0xf]  ;;  %v233_v33 = vpack.c.bf16 0.0, %v232_v28 }
  0x17   :  { %289 = vst [vmem:[%s392_s1 + $0x6] sm:$0x3] %v191_v21  ;;  %v253_v34 = vld [vmem:[#allocation0 + $0x60] sm:$0xf]  ;;  %v247_v37 = vpack.c.bf16 0.0, %v246_v32 }
  0x18   :  { %290 = vst [vmem:[%s392_s1 + $0x8] sm:$0x3] %v198_v23  ;;  %v267_v38 = vld [vmem:[#allocation0 + $0x70] sm:$0xf]  ;;  %v254_v39 = vpack.c.bf16 0.0, %v253_v34 }
  0x19   :  { %291 = vst [vmem:[%s392_s1 + $0xa] sm:$0x3] %v205_v25  ;;  %v260_v36 = vld [vmem:[#allocation0 + $0x68] sm:$0xf]  ;;  %v268_v42 = vpack.c.bf16 0.0, %v267_v38 }
  0x1a   :  { %292 = vst [vmem:[%s392_s1 + $0xc] sm:$0x3] %v212_v27  ;;  %v274_v40 = vld [vmem:[#allocation0 + $0x78] sm:$0xf]  ;;  %v261_v41 = vpack.c.bf16 0.0, %v260_v36 }
  0x1b   :  { %293 = vst [vmem:[%s392_s1 + $0xe] sm:$0x3] %v219_v29  ;;  %v275_v43 = vpack.c.bf16 0.0, %v274_v40 }
  0x1c   :  { %294 = vst [vmem:[%s392_s1 + $0x10] sm:$0x3] %v226_v31 }
  0x1d   :  { %295 = vst [vmem:[%s392_s1 + $0x12] sm:$0x3] %v233_v33 }
  0x1e   :  { %296 = vst [vmem:[%s392_s1 + $0x14] sm:$0x3] %v240_v35 }
  0x1f   :  { %297 = vst [vmem:[%s392_s1 + $0x16] sm:$0x3] %v247_v37 }
  0x20   :  { %298 = vst [vmem:[%s392_s1 + $0x18] sm:$0x3] %v254_v39 }
  0x21   :  { %299 = vst [vmem:[%s392_s1 + $0x1a] sm:$0x3] %v261_v41 }
  0x22   :  { %300 = vst [vmem:[%s392_s1 + $0x1c] sm:$0x3] %v268_v42 }
  0x23   :  { %301 = vst [vmem:[%s392_s1 + $0x1e] sm:$0x3] %v275_v43 }

// kernel: colorization_forward.14
= control target key start
LH: loop header
LB: loop body
LE: loop exit
PB: predicated region body
PF: predicated region fallthrough
CT: control target
= control target key end

     0   :  { %s1716_s1 = inlined_call_operand.vmem [shape: bf16[1,1152,128], index: 1, kind: input, shape index: {}]   ;;  %s1717_s0 = inlined_call_operand.vmem [shape: bf16[1,32,1152], index: 0, kind: input, shape index: {}]   ;;  %s1718_s2 = inlined_call_operand.vmem [shape: f32[1,128], index: 2, kind: input, shape index: {}]   ;;  %s1719_s3 = inlined_call_operand.vmem [shape: bf16[1,32,128], index: 3, kind: output, shape index: {}]  }
   0x1   :  { %v1278_v0 = vld [vmem:[%s1716_s1 + $0x38] sm:$0xff]  ;;  %v1277_v4 = vld [vmem:[%s1716_s1 + $0x30] sm:$0xff]  ;;  %v1276_v8 = vld [vmem:[%s1716_s1 + $0x28] sm:$0xff] }
   0x2   :  { %v1286_v1 = vld [vmem:[%s1716_s1 + $0x78] sm:$0xff]  ;;  %706 = vmatpush.bf16.msra.mxu0 %v1278_v0  ;;  %v1285_v5 = vld [vmem:[%s1716_s1 + $0x70] sm:$0xff]  ;;  %v1284_v9 = vld [vmem:[%s1716_s1 + $0x68] sm:$0xff] }
   0x3   :  { %v1294_v2 = vld [vmem:[%s1716_s1 + $0xb8] sm:$0xff]  ;;  %725 = vmatpush.bf16.msra.mxu1 %v1286_v1  ;;  %v1293_v6 = vld [vmem:[%s1716_s1 + $0xb0] sm:$0xff]  ;;  %v1292_v10 = vld [vmem:[%s1716_s1 + $0xa8] sm:$0xff] }
   0x4   :  { %v1302_v3 = vld [vmem:[%s1716_s1 + $0xf8] sm:$0xff]  ;;  %744 = vmatpush.bf16.msra.mxu2 %v1294_v2  ;;  %v1301_v7 = vld [vmem:[%s1716_s1 + $0xf0] sm:$0xff]  ;;  %v1300_v11 = vld [vmem:[%s1716_s1 + $0xe8] sm:$0xff] }
   0x5   :  { %763 = vmatpush.bf16.msra.mxu3 %v1302_v3  ;;  %v1275_v12 = vld [vmem:[%s1716_s1 + $0x20] sm:$0xff]  ;;  %v1274_v16 = vld [vmem:[%s1716_s1 + $0x18] sm:$0xff]  ;;  %v1273_v20 = vld [vmem:[%s1716_s1 + $0x10] sm:$0xff] }
   0x6   :  { %707 = vmatpush.bf16.msra.mxu0 %v1277_v4  ;;  %v1283_v13 = vld [vmem:[%s1716_s1 + $0x60] sm:$0xff]  ;;  %v1282_v17 = vld [vmem:[%s1716_s1 + $0x58] sm:$0xff]  ;;  %v1281_v21 = vld [vmem:[%s1716_s1 + $0x50] sm:$0xff] }
   0x7   :  { %726 = vmatpush.bf16.msra.mxu1 %v1285_v5  ;;  %v1291_v14 = vld [vmem:[%s1716_s1 + $0xa0] sm:$0xff]  ;;  %v1290_v18 = vld [vmem:[%s1716_s1 + $0x98] sm:$0xff]  ;;  %v1289_v22 = vld [vmem:[%s1716_s1 + $0x90] sm:$0xff] }
   0x8   :  { %745 = vmatpush.bf16.msra.mxu2 %v1293_v6  ;;  %v1299_v15 = vld [vmem:[%s1716_s1 + $0xe0] sm:$0xff]  ;;  %v1298_v19 = vld [vmem:[%s1716_s1 + $0xd8] sm:$0xff]  ;;  %v1297_v23 = vld [vmem:[%s1716_s1 + $0xd0] sm:$0xff] }
   0x9   :  { %764 = vmatpush.bf16.msra.mxu3 %v1301_v7  ;;  %v1272_v24 = vld [vmem:[%s1716_s1 + $0x8] sm:$0xff]  ;;  %v1271_v28 = vld [vmem:[%s1716_s1] sm:$0xff]  ;;  %v905_v39 = vld [vmem:[%s1717_s0 + $0x2c] sm:$0xf0] }
   0xa   :  { %708 = vmatpush.bf16.msra.mxu0 %v1276_v8  ;;  %v1280_v25 = vld [vmem:[%s1716_s1 + $0x48] sm:$0xff]  ;;  %v1279_v29 = vld [vmem:[%s1716_s1 + $0x40] sm:$0xff]  ;;  %v1310_v40 = vld [vmem:[%s1716_s1 + $0x138] sm:$0xff] }
   0xb   :  { %727 = vmatpush.bf16.msra.mxu1 %v1284_v9  ;;  %v1288_v26 = vld [vmem:[%s1716_s1 + $0x88] sm:$0xff]  ;;  %v1287_v30 = vld [vmem:[%s1716_s1 + $0x80] sm:$0xff]  ;;  %v1318_v41 = vld [vmem:[%s1716_s1 + $0x178] sm:$0xff] }
   0xc   :  { %746 = vmatpush.bf16.msra.mxu2 %v1292_v10  ;;  %v1296_v27 = vld [vmem:[%s1716_s1 + $0xc8] sm:$0xff]  ;;  %v1295_v31 = vld [vmem:[%s1716_s1 + $0xc0] sm:$0xff]  ;;  %v1326_v46 = vld [vmem:[%s1716_s1 + $0x1b8] sm:$0xff] }
   0xd   :  { %765 = vmatpush.bf16.msra.mxu3 %v1300_v11  ;;  %v895_v32 = vld [vmem:[%s1717_s0] sm:$0xf]  ;;  %v1257_v33 = vld [vmem:[%s1717_s0 + $0x20] sm:$0xf0]  ;;  %v897_v35 = vld [vmem:[%s1717_s0 + $0x24] sm:$0xf0] }
   0xe   :  { %709 = vmatpush.bf16.msra.mxu0 %v1275_v12  ;;  %v1253_v34 = vld [vmem:[%s1717_s0 + $0x4] sm:$0xf]  ;;  %v903_v36 = vld [vmem:[%s1717_s0 + $0x8] sm:$0xf]  ;;  %v1258_v37 = vld [vmem:[%s1717_s0 + $0x28] sm:$0xf0]  ;;  %v896_v42 = vor.u32 %v1257_v33, %v895_v32 }
   0xf   :  { %728 = vmatpush.bf16.msra.mxu1 %v1283_v13  ;;  %v1254_v38 = vld [vmem:[%s1717_s0 + $0xc] sm:$0xf]  ;;  %v900_v43 = vor.u32 %v1253_v34, %v897_v35  ;;  %v904_v44 = vor.u32 %v1258_v37, %v903_v36  ;;  %v1334_v47 = vld [vmem:[%s1716_s1 + $0x1f8] sm:$0xff]  ;;  %v1309_v48 = vld [vmem:[%s1716_s1 + $0x130] sm:$0xff] }
  0x10   :  { %747 = vmatpush.bf16.msra.mxu2 %v1291_v14  ;;  %v908_v45 = vor.u32 %v1254_v38, %v905_v39  ;;  %v1317_v49 = vld [vmem:[%s1716_s1 + $0x170] sm:$0xff]  ;;  %v1308_v52 = vld [vmem:[%s1716_s1 + $0x128] sm:$0xff]  ;;  %v1307_v56 = vld [vmem:[%s1716_s1 + $0x120] sm:$0xff] }
  0x11   :  { %766 = vmatpush.bf16.msra.mxu3 %v1299_v15  ;;  %v1325_v50 = vld [vmem:[%s1716_s1 + $0x1b0] sm:$0xff]  ;;  %v1316_v53 = vld [vmem:[%s1716_s1 + $0x168] sm:$0xff]  ;;  %v1315_v57 = vld [vmem:[%s1716_s1 + $0x160] sm:$0xff] }
  0x12   :  { %710 = vmatpush.bf16.msra.mxu0 %v1274_v16  ;;  %v1333_v51 = vld [vmem:[%s1716_s1 + $0x1f0] sm:$0xff]  ;;  %v1324_v54 = vld [vmem:[%s1716_s1 + $0x1a8] sm:$0xff]  ;;  %v1323_v58 = vld [vmem:[%s1716_s1 + $0x1a0] sm:$0xff] }
  0x13   :  { %729 = vmatpush.bf16.msra.mxu1 %v1282_v17  ;;  %v1332_v55 = vld [vmem:[%s1716_s1 + $0x1e8] sm:$0xff]  ;;  %v1331_v59 = vld [vmem:[%s1716_s1 + $0x1e0] sm:$0xff]  ;;  %v933_v63 = vld [vmem:[%s1717_s0 + $0x6c] sm:$0xf0] }
  0x14   :  { %748 = vmatpush.bf16.msra.mxu2 %v1290_v18  ;;  %v931_v60 = vld [vmem:[%s1717_s0 + $0x48] sm:$0xf]  ;;  %v1266_v61 = vld [vmem:[%s1717_s0 + $0x68] sm:$0xf0]  ;;  %v939_v0 = vld [vmem:[%s1717_s0 + $0x50] sm:$0xf] }
  0x15   :  { %767 = vmatpush.bf16.msra.mxu3 %v1298_v19  ;;  %v1262_v62 = vld [vmem:[%s1717_s0 + $0x4c] sm:$0xf]  ;;  %v1267_v1 = vld [vmem:[%s1717_s0 + $0x70] sm:$0xf0]  ;;  %v941_v3 = vld [vmem:[%s1717_s0 + $0x74] sm:$0xf0]  ;;  %v932_v6 = vor.u32 %v1266_v61, %v931_v60 }
  0x16   :  { %711 = vmatpush.bf16.msra.mxu0 %v1273_v20  ;;  %v1263_v2 = vld [vmem:[%s1717_s0 + $0x54] sm:$0xf]  ;;  %v1306_v4 = vld [vmem:[%s1716_s1 + $0x118] sm:$0xff]  ;;  %v936_v7 = vor.u32 %v1262_v62, %v933_v63  ;;  %v940_v8 = vor.u32 %v1267_v1, %v939_v0  ;;  %v1304_v16 = vld [vmem:[%s1716_s1 + $0x108] sm:$0xff] }
  0x17   :  { %730 = vmatpush.bf16.msra.mxu1 %v1281_v21  ;;  %v1314_v5 = vld [vmem:[%s1716_s1 + $0x158] sm:$0xff]  ;;  %v944_v9 = vor.u32 %v1263_v2, %v941_v3  ;;  %v1305_v12 = vld [vmem:[%s1716_s1 + $0x110] sm:$0xff]  ;;  %v1312_v17 = vld [vmem:[%s1716_s1 + $0x148] sm:$0xff] }
  0x18   :  { %749 = vmatpush.bf16.msra.mxu2 %v1289_v22  ;;  %v1322_v10 = vld [vmem:[%s1716_s1 + $0x198] sm:$0xff]  ;;  %v1313_v13 = vld [vmem:[%s1716_s1 + $0x150] sm:$0xff]  ;;  %v1320_v18 = vld [vmem:[%s1716_s1 + $0x188] sm:$0xff] }
  0x19   :  { %768 = vmatpush.bf16.msra.mxu3 %v1297_v23  ;;  %v1330_v11 = vld [vmem:[%s1716_s1 + $0x1d8] sm:$0xff]  ;;  %v1321_v14 = vld [vmem:[%s1716_s1 + $0x190] sm:$0xff]  ;;  %v1328_v19 = vld [vmem:[%s1716_s1 + $0x1c8] sm:$0xff] }
  0x1a   :  { %712 = vmatpush.bf16.msra.mxu0 %v1272_v24  ;;  %v1329_v15 = vld [vmem:[%s1716_s1 + $0x1d0] sm:$0xff]  ;;  %v1303_v20 = vld [vmem:[%s1716_s1 + $0x100] sm:$0xff]  ;;  %v1340_v38 = vld [vmem:[%s1716_s1 + $0x228] sm:$0xff] }
  0x1b   :  { %731 = vmatpush.bf16.msra.mxu1 %v1280_v25  ;;  %v1311_v21 = vld [vmem:[%s1716_s1 + $0x140] sm:$0xff]  ;;  %v911_v24 = vld [vmem:[%s1717_s0 + $0x10] sm:$0xf]  ;;  %v1259_v25 = vld [vmem:[%s1717_s0 + $0x30] sm:$0xf0] }
  0x1c   :  { %750 = vmatpush.bf16.msra.mxu2 %v1288_v26  ;;  %v1319_v22 = vld [vmem:[%s1716_s1 + $0x180] sm:$0xff]  ;;  %v1342_v26 = vld [vmem:[%s1716_s1 + $0x238] sm:$0xff]  ;;  %v912_v33 = vor.u32 %v1259_v25, %v911_v24  ;;  %v1341_v37 = vld [vmem:[%s1716_s1 + $0x230] sm:$0xff] }
  0x1d   :  { %769 = vmatpush.bf16.msra.mxu3 %v1296_v27  ;;  %v1327_v23 = vld [vmem:[%s1716_s1 + $0x1c0] sm:$0xff]  ;;  %v1255_v27 = vld [vmem:[%s1717_s0 + $0x14] sm:$0xf] }
  0x1e   :  { %713 = vmatpush.bf16.msra.mxu0 %v1271_v28  ;;  %v913_v28 = vld [vmem:[%s1717_s0 + $0x34] sm:$0xf0]  ;;  %v921_v32 = vld [vmem:[%s1717_s0 + $0x3c] sm:$0xf0] }
  0x1f   :  { %732 = vmatpush.bf16.msra.mxu1 %v1279_v29  ;;  %v919_v29 = vld [vmem:[%s1717_s0 + $0x18] sm:$0xf]  ;;  %v916_v34 = vor.u32 %v1255_v27, %v913_v28  ;;  %v1339_v39 = vld [vmem:[%s1716_s1 + $0x220] sm:$0xff] }
  0x20   :  { %751 = vmatpush.bf16.msra.mxu2 %v1287_v30  ;;  %v1260_v30 = vld [vmem:[%s1717_s0 + $0x38] sm:$0xf0] }
  0x21   :  { %770 = vmatpush.bf16.msra.mxu3 %v1295_v31  ;;  %714 = vmatmul.bf16.vlgmr.msra.gmra.mxu0 %v896_v42  ;;  %v1256_v31 = vld [vmem:[%s1717_s0 + $0x1c] sm:$0xf]  ;;  %v920_v35 = vor.u32 %v1260_v30, %v919_v29 }
  0x22   :  { %782 = vmatpush.bf16.msrb.mxu0 %v1310_v40  ;;  %733 = vmatmul.bf16.vlgmr.msra.gmra.mxu1 %v900_v43  ;;  %v924_v36 = vor.u32 %v1256_v31, %v921_v32  ;;  %v947_v40 = vld [vmem:[%s1717_s0 + $0x58] sm:$0xf]  ;;  %v1264_v42 = vld [vmem:[%s1717_s0 + $0x5c] sm:$0xf]  ;;  %v949_v43 = vld [vmem:[%s1717_s0 + $0x7c] sm:$0xf0] }
  0x23   :  { %801 = vmatpush.bf16.msrb.mxu1 %v1318_v41  ;;  %752 = vmatmul.bf16.vlgmr.msra.gmra.mxu2 %v904_v44  ;;  %v1268_v41 = vld [vmem:[%s1717_s0 + $0x78] sm:$0xf0]  ;;  %v955_v44 = vld [vmem:[%s1717_s0 + $0x60] sm:$0xf] }
  0x24   :  { %771 = vmatmul.bf16.vlgmr.msra.gmra.mxu3 %v908_v45  ;;  %820 = vmatpush.bf16.msrb.mxu2 %v1326_v46  ;;  %v1269_v45 = vld [vmem:[%s1717_s0 + $0x80] sm:$0xf0] }
  0x25   :  { %839 = vmatpush.bf16.msrb.mxu3 %v1334_v47  ;;  %v1265_v46 = vld [vmem:[%s1717_s0 + $0x64] sm:$0xf]  ;;  %v957_v47 = vld [vmem:[%s1717_s0 + $0x84] sm:$0xf0] }
  0x26   :  { %783 = vmatpush.bf16.msrb.mxu0 %v1309_v48  ;;  %v1338_v48 = vld [vmem:[%s1716_s1 + $0x218] sm:$0xff] }
  0x27   :  { %802 = vmatpush.bf16.msrb.mxu1 %v1317_v49  ;;  %v948_v49 = vor.u32 %v1268_v41, %v947_v40 }
  0x28   :  { %821 = vmatpush.bf16.msrb.mxu2 %v1325_v50  ;;  %v952_v50 = vor.u32 %v1264_v42, %v949_v43 }
  0x29   :  { %840 = vmatpush.bf16.msrb.mxu3 %v1333_v51  ;;  %v956_v51 = vor.u32 %v1269_v45, %v955_v44 }
  0x2a   :  { %784 = vmatpush.bf16.msrb.mxu0 %v1308_v52  ;;  %v960_v52 = vor.u32 %v1265_v46, %v957_v47 }
  0x2b   :  { %803 = vmatpush.bf16.msrb.mxu1 %v1316_v53  ;;  %v1337_v53 = vld [vmem:[%s1716_s1 + $0x210] sm:$0xff] }
  0x2c   :  { %822 = vmatpush.bf16.msrb.mxu2 %v1324_v54  ;;  %v1336_v54 = vld [vmem:[%s1716_s1 + $0x208] sm:$0xff] }
  0x2d   :  { %841 = vmatpush.bf16.msrb.mxu3 %v1332_v55  ;;  %v1335_v55 = vld [vmem:[%s1716_s1 + $0x200] sm:$0xff] }
  0x2e   :  { %785 = vmatpush.bf16.msrb.mxu0 %v1307_v56  ;;  %v927_v56 = vld [vmem:[%s1717_s0 + $0x20] sm:$0xf] }
  0x2f   :  { %804 = vmatpush.bf16.msrb.mxu1 %v1315_v57  ;;  %v1261_v57 = vld [vmem:[%s1717_s0 + $0x40] sm:$0xf0] }
  0x30   :  { %823 = vmatpush.bf16.msrb.mxu2 %v1323_v58  ;;  %v963_v58 = vld [vmem:[%s1717_s0 + $0x68] sm:$0xf]  ;;  %v928_v60 = vor.u32 %v1261_v57, %v927_v56 }
  0x31   :  { %842 = vmatpush.bf16.msrb.mxu3 %v1331_v59  ;;  %719 = vmatmul.bf16.gmra.mxu0 %v932_v6  ;;  %v1270_v59 = vld [vmem:[%s1717_s0 + $0x88] sm:$0xf0] }
  0x32   :  { %786 = vmatpush.bf16.msrb.mxu0 %v1306_v4  ;;  %738 = vmatmul.bf16.gmra.mxu1 %v936_v7  ;;  %v964_v61 = vor.u32 %v1270_v59, %v963_v58 }
  0x33   :  { %805 = vmatpush.bf16.msrb.mxu1 %v1314_v5  ;;  %757 = vmatmul.bf16.gmra.mxu2 %v940_v8 }
  0x34   :  { %776 = vmatmul.bf16.gmra.mxu3 %v944_v9  ;;  %824 = vmatpush.bf16.msrb.mxu2 %v1322_v10 }
  0x35   :  { %843 = vmatpush.bf16.msrb.mxu3 %v1330_v11 }
  0x36   :  { %787 = vmatpush.bf16.msrb.mxu0 %v1305_v12 }
  0x37   :  { %806 = vmatpush.bf16.msrb.mxu1 %v1313_v13 }
  0x38   :  { %825 = vmatpush.bf16.msrb.mxu2 %v1321_v14 }
  0x39   :  { %844 = vmatpush.bf16.msrb.mxu3 %v1329_v15 }
  0x3a   :  { %788 = vmatpush.bf16.msrb.mxu0 %v1304_v16 }
  0x3b   :  { %807 = vmatpush.bf16.msrb.mxu1 %v1312_v17 }
  0x3c   :  { %826 = vmatpush.bf16.msrb.mxu2 %v1320_v18 }
  0x3d   :  { %845 = vmatpush.bf16.msrb.mxu3 %v1328_v19 }
  0x3e   :  { %789 = vmatpush.bf16.msrb.mxu0 %v1303_v20  ;;  %v1362_v20 = vld [vmem:[%s1718_s2] ss:$0 sm:$0xff] }
  0x3f   :  { %808 = vmatpush.bf16.msrb.mxu1 %v1311_v21 }
  0x40   :  { %827 = vmatpush.bf16.msrb.mxu2 %v1319_v22 }
  0x41   :  { %846 = vmatpush.bf16.msrb.mxu3 %v1327_v23  ;;  %790 = vmatmul.bf16.vlgmr.msrb.gmra.mxu0 %v912_v33 }
  0x42   :  { %858 = vmatpush.bf16.msra.mxu0 %v1342_v26  ;;  %809 = vmatmul.bf16.vlgmr.msrb.gmra.mxu1 %v916_v34 }
  0x43   :  { %1354 = vmatpush.bf16.msra.mxu1 %v1342_v26  ;;  %828 = vmatmul.bf16.vlgmr.msrb.gmra.mxu2 %v920_v35 }
  0x44   :  { %847 = vmatmul.bf16.vlgmr.msrb.gmra.mxu3 %v924_v36 }
  0x46   :  { %859 = vmatpush.bf16.msra.mxu0 %v1341_v37 }
  0x47   :  { %1355 = vmatpush.bf16.msra.mxu1 %v1341_v37 }
  0x4a   :  { %860 = vmatpush.bf16.msra.mxu0 %v1340_v38 }
  0x4b   :  { %1356 = vmatpush.bf16.msra.mxu1 %v1340_v38 }
  0x4e   :  { %861 = vmatpush.bf16.msra.mxu0 %v1339_v39 }
  0x4f   :  { %1357 = vmatpush.bf16.msra.mxu1 %v1339_v39 }
  0x51   :  { %795 = vmatmul.bf16.gmra.mxu0 %v948_v49 }
  0x52   :  { %862 = vmatpush.bf16.msra.mxu0 %v1338_v48  ;;  %814 = vmatmul.bf16.gmra.mxu1 %v952_v50 }
  0x53   :  { %1358 = vmatpush.bf16.msra.mxu1 %v1338_v48  ;;  %833 = vmatmul.bf16.gmra.mxu2 %v956_v51 }
  0x54   :  { %852 = vmatmul.bf16.gmra.mxu3 %v960_v52 }
  0x56   :  { %863 = vmatpush.bf16.msra.mxu0 %v1337_v53 }
  0x57   :  { %1359 = vmatpush.bf16.msra.mxu1 %v1337_v53 }
  0x5a   :  { %864 = vmatpush.bf16.msra.mxu0 %v1336_v54 }
  0x5b   :  { %1360 = vmatpush.bf16.msra.mxu1 %v1336_v54 }
  0x5e   :  { %865 = vmatpush.bf16.msra.mxu0 %v1335_v55 }
  0x5f   :  { %1361 = vmatpush.bf16.msra.mxu1 %v1335_v55 }
  0x61   :  { %866 = vmatmul.bf16.vlgmr.msra.gmra.mxu0 %v928_v60 }
  0x62   :  { %871 = vmatmul.bf16.vlgmr.msra.gmra.mxu1 %v964_v61 }
  0x9e   :  { %v715_v62 = vpop.f32.mrf.mxu0 }
  0x9f   :  { %v734_v63 = vpop.f32.mrf.mxu1  ;;  %v716_v21 = vadd.f32 %v1362_v20, %v715_v62 }
  0xa1   :  { %v735_v29 = vadd.f32 %v734_v63, %v716_v21 }
  0xa6   :  { %v753_v0 = vpop.f32.mrf.mxu2  ;;  %v717_v2 = vpop.f32.mrf.mxu0 }
  0xa7   :  { %v772_v1 = vpop.f32.mrf.mxu3  ;;  %v736_v3 = vpop.f32.mrf.mxu1  ;;  %v718_v26 = vadd.f32 %v1362_v20, %v717_v2  ;;  %v754_v31 = vadd.f32 %v753_v0, %v735_v29 }
  0xa9   :  { %v737_v32 = vadd.f32 %v736_v3, %v718_v26  ;;  %v773_v40 = vadd.f32 %v772_v1, %v754_v31 }
  0xae   :  { %v755_v4 = vpop.f32.mrf.mxu2  ;;  %v720_v6 = vpop.f32.mrf.mxu0 }
  0xaf   :  { %v774_v5 = vpop.f32.mrf.mxu3  ;;  %v739_v7 = vpop.f32.mrf.mxu1  ;;  %v721_v22 = vadd.f32 %v1362_v20, %v720_v6  ;;  %v756_v35 = vadd.f32 %v755_v4, %v737_v32 }
  0xb1   :  { %v740_v30 = vadd.f32 %v739_v7, %v721_v22  ;;  %v775_v42 = vadd.f32 %v774_v5, %v756_v35 }
  0xb6   :  { %v758_v8 = vpop.f32.mrf.mxu2  ;;  %v722_v10 = vpop.f32.mrf.mxu0 }
  0xb7   :  { %v777_v9 = vpop.f32.mrf.mxu3  ;;  %v741_v11 = vpop.f32.mrf.mxu1  ;;  %v723_v27 = vadd.f32 %v1362_v20, %v722_v10  ;;  %v759_v33 = vadd.f32 %v758_v8, %v740_v30 }
  0xb9   :  { %v742_v34 = vadd.f32 %v741_v11, %v723_v27  ;;  %v778_v41 = vadd.f32 %v777_v9, %v759_v33 }
  0xbe   :  { %v760_v12 = vpop.f32.mrf.mxu2  ;;  %v791_v14 = vpop.f32.mrf.mxu0 }
  0xbf   :  { %v779_v13 = vpop.f32.mrf.mxu3  ;;  %v810_v15 = vpop.f32.mrf.mxu1  ;;  %v761_v36 = vadd.f32 %v760_v12, %v742_v34  ;;  %v792_v44 = vadd.f32 %v791_v14, %v773_v40 }
  0xc1   :  { %v780_v43 = vadd.f32 %v779_v13, %v761_v36  ;;  %v811_v49 = vadd.f32 %v810_v15, %v792_v44 }
  0xc6   :  { %v829_v16 = vpop.f32.mrf.mxu2  ;;  %v793_v18 = vpop.f32.mrf.mxu0 }
  0xc7   :  { %v848_v17 = vpop.f32.mrf.mxu3  ;;  %v812_v19 = vpop.f32.mrf.mxu1  ;;  %v794_v47 = vadd.f32 %v793_v18, %v775_v42  ;;  %v830_v54 = vadd.f32 %v829_v16, %v811_v49 }
  0xc9   :  { %v813_v55 = vadd.f32 %v812_v19, %v794_v47  ;;  %v849_v60 = vadd.f32 %v848_v17, %v830_v54 }
  0xce   :  { %v831_v23 = vpop.f32.mrf.mxu2  ;;  %v796_v24 = vpop.f32.mrf.mxu0 }
  0xcf   :  { %v815_v25 = vpop.f32.mrf.mxu1  ;;  %v850_v28 = vpop.f32.mrf.mxu3  ;;  %v797_v45 = vadd.f32 %v796_v24, %v778_v41  ;;  %v832_v58 = vadd.f32 %v831_v23, %v813_v55 }
  0xd1   :  { %v816_v50 = vadd.f32 %v815_v25, %v797_v45  ;;  %v851_v63 = vadd.f32 %v850_v28, %v832_v58 }
  0xd6   :  { %v834_v37 = vpop.f32.mrf.mxu2  ;;  %v798_v38 = vpop.f32.mrf.mxu0 }
  0xd7   :  { %v817_v39 = vpop.f32.mrf.mxu1  ;;  %v853_v46 = vpop.f32.mrf.mxu3  ;;  %v799_v48 = vadd.f32 %v798_v38, %v780_v43  ;;  %v835_v56 = vadd.f32 %v834_v37, %v816_v50 }
  0xd9   :  { %v818_v57 = vadd.f32 %v817_v39, %v799_v48  ;;  %v854_v61 = vadd.f32 %v853_v46, %v835_v56 }
  0xde   :  { %v836_v51 = vpop.f32.mrf.mxu2  ;;  %v867_v52 = vpop.f32.mrf.mxu0 }
  0xdf   :  { %v872_v53 = vpop.f32.mrf.mxu1  ;;  %v837_v59 = vadd.f32 %v836_v51, %v818_v57  ;;  %v855_v62 = vpop.f32.mrf.mxu3  ;;  %v868_v1 = vadd.f32 %v867_v52, %v849_v60 }
  0xe0   :  { %v873_v2 = vadd.f32 %v872_v53, %v854_v61 }
  0xe1   :  { %v856_v0 = vadd.f32 %v855_v62, %v837_v59  ;;  %v877_v7 = vmax.f32 %v868_v1, 0.0 }
  0xe2   :  { %v879_v8 = vmax.f32 %v873_v2, 0.0 }
  0xe6   :  { %v869_v3 = vpop.f32.mrf.mxu0 }
  0xe7   :  { %v874_v4 = vpop.f32.mrf.mxu1  ;;  %v870_v5 = vadd.f32 %v869_v3, %v851_v63 }
  0xe8   :  { %v875_v6 = vadd.f32 %v874_v4, %v856_v0 }
  0xe9   :  { %v878_v9 = vmax.f32 %v870_v5, 0.0 }
  0xea   :  { %v880_v10 = vmax.f32 %v875_v6, 0.0 }
  0xeb   :  { %v1346_v11 = vpack.c.bf16 %v878_v9, %v877_v7 }
  0xec   :  { %v1351_v12 = vpack.c.bf16 %v880_v10, %v879_v8 }
  0xed   :  { %1347 = vst [vmem:[%s1719_s3] sm:$0xff] %v1346_v11  }
  0xee   :  { %1353 = vst [vmem:[%s1719_s3 + $0x8] sm:$0xff] %v1351_v12  }

// kernel: colorization_forward.15
= control target key start
LH: loop header
LB: loop body
LE: loop exit
PB: predicated region body
PF: predicated region fallthrough
CT: control target
= control target key end

     0   :  { %s2494_s12 = smov 0   ;;  %s2496_s13 = smov 0   ;;  %s3057_s0 = inlined_call_operand.vmem [shape: bf16[1,32,1152], index: 0, kind: input, shape index: {}]   ;;  %s3058_s1 = inlined_call_operand.vmem [shape: bf16[1,1152,256], index: 1, kind: input, shape index: {}]   ;;  %s3059_s2 = inlined_call_operand.vmem [shape: f32[1,256], index: 2, kind: input, shape index: {}]   ;;  %s3060_s3 = inlined_call_operand.vmem [shape: bf16[1,32,256], index: 3, kind: output, shape index: {}]  }
   0x1   :  { %s2498_s14 = smov 0   ;;  %s2500_s15 = smov 0  }
   0x2   :  { %s2502_s16 = smov 0  }
   0x3 LB: > { %s25_s17 = sadd.s32 1, %s2468_s15  ;;  %s1910_s18 = sadd.s32 4294967295, %s2472_s16   ;;  %s2472_s16 = sphi %s2502_s16, %s13_s16   ;;  %s2468_s15 = sphi %s2500_s15, %s3065_s15   ;;  %s2464_s14 = sphi %s2498_s14, %s3064_s14   ;;  %s2460_s13 = sphi %s2496_s13, %s3063_s13   ;;  %s2456_s12 = sphi %s2494_s12, %s3062_s12  }
   0x4   : > { %p26_p0 = scmp.ge.s32.totalorder %s25_s17, 2  ;;  %p76_p1 = scmp.ne.s32.totalorder %s2460_s13, %s2456_s12 }
   0x5   : > { %p77_p2 = scmp.eq.s32.totalorder %s2472_s16, 0  ;;  %p136_p4 = scmp.eq.s32.totalorder %s1910_s18, 1 }
   0x6   : > { %s3067_s17 = smov (%p26_p0, %s25_s17), 0  ;;  %s69_s20 = sadd.s32 1, %s2460_s13 }
   0x7   : > { %p78_p3 = por %p77_p2, %p76_p1  ;;  %s65_s19 = ssub.s32 %s2468_s15, %s3067_s17 }
   0x8   : > { %p67_p5 = scmp.eq.s32.totalorder %s65_s19, 0  ;;  %p2529_p6 = por %p136_p4, %p76_p1 }
   0x9   : > { %p1914_p7 = scmp.ge.s32.totalorder %s2472_s16, 2 }
   0xa   : > { %s2534_s22 = scalar_select %p67_p5, %s2460_s13, %s69_s20  }
   0xb   : > { %172 = sbr.rel (%p1914_p7) target bundleno = 165 (0xa5), region = 20 }
  0x10   : > { %175 = sbr.rel (!%p78_p3) target bundleno = 165 (0xa5), region = 24  ;;  %s177_s23 = sand.u32 (%p78_p3), 1, %s2460_s13  }
  0x11   : > { %s1915_s24 = sshll.u32 (%p78_p3), %s2468_s15, 2  ;;  %s2391_s25 = smul.u32 (%p78_p3), 576, %s177_s23 }
  0x12   : > { %s2542_s28 = scalar_lea.vmem (%p78_p3), %s3058_s1, %s1915_s24 }
  0x13   : > { %v200_v0 = vld [vmem:[%s2542_s28] sm:$0xf] (%p78_p3)  ;;  %v202_v1 = vld [vmem:[%s2542_s28 + $0x8] sm:$0xf] (%p78_p3)  ;;  %v204_v2 = vld [vmem:[%s2542_s28 + $0x10] sm:$0xf] (%p78_p3) }
  0x14   : > { %s2547_s29 = scalar_lea.vmem (%p78_p3), [#allocation2], %s2391_s25  ;;  %v206_v3 = vld [vmem:[%s2542_s28 + $0x18] sm:$0xf] (%p78_p3)  ;;  %v208_v4 = vld [vmem:[%s2542_s28 + $0x20] sm:$0xf] (%p78_p3) }
  0x15   : > { %201 = vst [vmem:[%s2547_s29] sm:$0xf] %v200_v0  ;;  %v210_v5 = vld [vmem:[%s2542_s28 + $0x28] sm:$0xf]  ;;  %v212_v6 = vld [vmem:[%s2542_s28 + $0x30] sm:$0xf] }
  0x16   : > { %203 = vst [vmem:[%s2547_s29 + $0x4] sm:$0xf] %v202_v1  ;;  %v214_v7 = vld [vmem:[%s2542_s28 + $0x38] sm:$0xf]  ;;  %v216_v8 = vld [vmem:[%s2542_s28 + $0x40] sm:$0xf] }
  0x17   : > { %205 = vst [vmem:[%s2547_s29 + $0x8] sm:$0xf] %v204_v2  ;;  %v218_v9 = vld [vmem:[%s2542_s28 + $0x48] sm:$0xf]  ;;  %v220_v10 = vld [vmem:[%s2542_s28 + $0x50] sm:$0xf] }
  0x18   : > { %207 = vst [vmem:[%s2547_s29 + $0xc] sm:$0xf] %v206_v3  ;;  %v222_v11 = vld [vmem:[%s2542_s28 + $0x58] sm:$0xf]  ;;  %v224_v12 = vld [vmem:[%s2542_s28 + $0x60] sm:$0xf] }
  0x19   : > { %209 = vst [vmem:[%s2547_s29 + $0x10] sm:$0xf] %v208_v4  ;;  %v226_v13 = vld [vmem:[%s2542_s28 + $0x68] sm:$0xf]  ;;  %v228_v14 = vld [vmem:[%s2542_s28 + $0x70] sm:$0xf] }
  0x1a   : > { %211 = vst [vmem:[%s2547_s29 + $0x14] sm:$0xf] %v210_v5  ;;  %v230_v15 = vld [vmem:[%s2542_s28 + $0x78] sm:$0xf]  ;;  %v232_v16 = vld [vmem:[%s2542_s28 + $0x80] sm:$0xf] }
  0x1b   : > { %213 = vst [vmem:[%s2547_s29 + $0x18] sm:$0xf] %v212_v6  ;;  %v234_v17 = vld [vmem:[%s2542_s28 + $0x88] sm:$0xf]  ;;  %v236_v18 = vld [vmem:[%s2542_s28 + $0x90] sm:$0xf] }
  0x1c   : > { %215 = vst [vmem:[%s2547_s29 + $0x1c] sm:$0xf] %v214_v7  ;;  %v238_v19 = vld [vmem:[%s2542_s28 + $0x98] sm:$0xf]  ;;  %v240_v20 = vld [vmem:[%s2542_s28 + $0xa0] sm:$0xf] }
  0x1d   : > { %217 = vst [vmem:[%s2547_s29 + $0x20] sm:$0xf] %v216_v8  ;;  %v242_v21 = vld [vmem:[%s2542_s28 + $0xa8] sm:$0xf]  ;;  %v244_v22 = vld [vmem:[%s2542_s28 + $0xb0] sm:$0xf] }
  0x1e   : > { %219 = vst [vmem:[%s2547_s29 + $0x24] sm:$0xf] %v218_v9  ;;  %v246_v23 = vld [vmem:[%s2542_s28 + $0xb8] sm:$0xf]  ;;  %v248_v24 = vld [vmem:[%s2542_s28 + $0xc0] sm:$0xf] }
  0x1f   : > { %221 = vst [vmem:[%s2547_s29 + $0x28] sm:$0xf] %v220_v10  ;;  %v250_v25 = vld [vmem:[%s2542_s28 + $0xc8] sm:$0xf]  ;;  %v252_v26 = vld [vmem:[%s2542_s28 + $0xd0] sm:$0xf] }
  0x20   : > { %223 = vst [vmem:[%s2547_s29 + $0x2c] sm:$0xf] %v222_v11  ;;  %v254_v27 = vld [vmem:[%s2542_s28 + $0xd8] sm:$0xf]  ;;  %v256_v28 = vld [vmem:[%s2542_s28 + $0xe0] sm:$0xf] }
  0x21   : > { %225 = vst [vmem:[%s2547_s29 + $0x30] sm:$0xf] %v224_v12  ;;  %v258_v29 = vld [vmem:[%s2542_s28 + $0xe8] sm:$0xf]  ;;  %v260_v30 = vld [vmem:[%s2542_s28 + $0xf0] sm:$0xf] }
  0x22   : > { %227 = vst [vmem:[%s2547_s29 + $0x34] sm:$0xf] %v226_v13  ;;  %v262_v31 = vld [vmem:[%s2542_s28 + $0xf8] sm:$0xf]  ;;  %v264_v32 = vld [vmem:[%s2542_s28 + $0x100] sm:$0xf] }
  0x23   : > { %229 = vst [vmem:[%s2547_s29 + $0x38] sm:$0xf] %v228_v14  ;;  %v266_v33 = vld [vmem:[%s2542_s28 + $0x108] sm:$0xf]  ;;  %v268_v34 = vld [vmem:[%s2542_s28 + $0x110] sm:$0xf] }
  0x24   : > { %231 = vst [vmem:[%s2547_s29 + $0x3c] sm:$0xf] %v230_v15  ;;  %v270_v35 = vld [vmem:[%s2542_s28 + $0x118] sm:$0xf]  ;;  %v272_v36 = vld [vmem:[%s2542_s28 + $0x120] sm:$0xf] }
  0x25   : > { %233 = vst [vmem:[%s2547_s29 + $0x40] sm:$0xf] %v232_v16  ;;  %v274_v37 = vld [vmem:[%s2542_s28 + $0x128] sm:$0xf]  ;;  %v276_v38 = vld [vmem:[%s2542_s28 + $0x130] sm:$0xf] }
  0x26   : > { %235 = vst [vmem:[%s2547_s29 + $0x44] sm:$0xf] %v234_v17  ;;  %v278_v39 = vld [vmem:[%s2542_s28 + $0x138] sm:$0xf]  ;;  %v280_v40 = vld [vmem:[%s2542_s28 + $0x140] sm:$0xf] }
  0x27   : > { %237 = vst [vmem:[%s2547_s29 + $0x48] sm:$0xf] %v236_v18  ;;  %v282_v41 = vld [vmem:[%s2542_s28 + $0x148] sm:$0xf]  ;;  %v284_v42 = vld [vmem:[%s2542_s28 + $0x150] sm:$0xf] }
  0x28   : > { %239 = vst [vmem:[%s2547_s29 + $0x4c] sm:$0xf] %v238_v19  ;;  %v286_v43 = vld [vmem:[%s2542_s28 + $0x158] sm:$0xf]  ;;  %v288_v44 = vld [vmem:[%s2542_s28 + $0x160] sm:$0xf] }
  0x29   : > { %241 = vst [vmem:[%s2547_s29 + $0x50] sm:$0xf] %v240_v20  ;;  %v290_v45 = vld [vmem:[%s2542_s28 + $0x168] sm:$0xf]  ;;  %v292_v46 = vld [vmem:[%s2542_s28 + $0x170] sm:$0xf] }
  0x2a   : > { %243 = vst [vmem:[%s2547_s29 + $0x54] sm:$0xf] %v242_v21  ;;  %v294_v47 = vld [vmem:[%s2542_s28 + $0x178] sm:$0xf]  ;;  %v296_v48 = vld [vmem:[%s2542_s28 + $0x180] sm:$0xf] }
  0x2b   : > { %245 = vst [vmem:[%s2547_s29 + $0x58] sm:$0xf] %v244_v22  ;;  %v298_v49 = vld [vmem:[%s2542_s28 + $0x188] sm:$0xf]  ;;  %v300_v50 = vld [vmem:[%s2542_s28 + $0x190] sm:$0xf] }
  0x2c   : > { %247 = vst [vmem:[%s2547_s29 + $0x5c] sm:$0xf] %v246_v23  ;;  %v302_v51 = vld [vmem:[%s2542_s28 + $0x198] sm:$0xf]  ;;  %v304_v52 = vld [vmem:[%s2542_s28 + $0x1a0] sm:$0xf] }
  0x2d   : > { %249 = vst [vmem:[%s2547_s29 + $0x60] sm:$0xf] %v248_v24  ;;  %v306_v53 = vld [vmem:[%s2542_s28 + $0x1a8] sm:$0xf]  ;;  %v308_v54 = vld [vmem:[%s2542_s28 + $0x1b0] sm:$0xf] }
  0x2e   : > { %251 = vst [vmem:[%s2547_s29 + $0x64] sm:$0xf] %v250_v25  ;;  %v310_v55 = vld [vmem:[%s2542_s28 + $0x1b8] sm:$0xf]  ;;  %v312_v56 = vld [vmem:[%s2542_s28 + $0x1c0] sm:$0xf] }
  0x2f   : > { %253 = vst [vmem:[%s2547_s29 + $0x68] sm:$0xf] %v252_v26  ;;  %v314_v57 = vld [vmem:[%s2542_s28 + $0x1c8] sm:$0xf]  ;;  %v316_v58 = vld [vmem:[%s2542_s28 + $0x1d0] sm:$0xf] }
  0x30   : > { %255 = vst [vmem:[%s2547_s29 + $0x6c] sm:$0xf] %v254_v27  ;;  %v318_v59 = vld [vmem:[%s2542_s28 + $0x1d8] sm:$0xf]  ;;  %v320_v60 = vld [vmem:[%s2542_s28 + $0x1e0] sm:$0xf] }
  0x31   : > { %257 = vst [vmem:[%s2547_s29 + $0x70] sm:$0xf] %v256_v28  ;;  %v322_v61 = vld [vmem:[%s2542_s28 + $0x1e8] sm:$0xf]  ;;  %v324_v62 = vld [vmem:[%s2542_s28 + $0x1f0] sm:$0xf] }
  0x32   : > { %259 = vst [vmem:[%s2547_s29 + $0x74] sm:$0xf] %v258_v29  ;;  %v326_v63 = vld [vmem:[%s2542_s28 + $0x1f8] sm:$0xf]  ;;  %v328_v0 = vld [vmem:[%s2542_s28 + $0x200] sm:$0xf] }
  0x33   : > { %261 = vst [vmem:[%s2547_s29 + $0x78] sm:$0xf] %v260_v30  ;;  %v330_v1 = vld [vmem:[%s2542_s28 + $0x208] sm:$0xf]  ;;  %v332_v2 = vld [vmem:[%s2542_s28 + $0x210] sm:$0xf] }
  0x34   : > { %263 = vst [vmem:[%s2547_s29 + $0x7c] sm:$0xf] %v262_v31  ;;  %v334_v3 = vld [vmem:[%s2542_s28 + $0x218] sm:$0xf]  ;;  %v336_v4 = vld [vmem:[%s2542_s28 + $0x220] sm:$0xf] }
  0x35   : > { %265 = vst [vmem:[%s2547_s29 + $0x80] sm:$0xf] %v264_v32  ;;  %v338_v5 = vld [vmem:[%s2542_s28 + $0x228] sm:$0xf]  ;;  %v340_v6 = vld [vmem:[%s2542_s28 + $0x230] sm:$0xf] }
  0x36   : > { %267 = vst [vmem:[%s2547_s29 + $0x84] sm:$0xf] %v266_v33  ;;  %v342_v7 = vld [vmem:[%s2542_s28 + $0x238] sm:$0xf]  ;;  %v344_v8 = vld [vmem:[%s2542_s28 + $0x240] sm:$0xf] }
  0x37   : > { %269 = vst [vmem:[%s2547_s29 + $0x88] sm:$0xf] %v268_v34  ;;  %v346_v9 = vld [vmem:[%s2542_s28 + $0x248] sm:$0xf]  ;;  %v348_v10 = vld [vmem:[%s2542_s28 + $0x250] sm:$0xf] }
  0x38   : > { %271 = vst [vmem:[%s2547_s29 + $0x8c] sm:$0xf] %v270_v35  ;;  %v350_v11 = vld [vmem:[%s2542_s28 + $0x258] sm:$0xf]  ;;  %v352_v12 = vld [vmem:[%s2542_s28 + $0x260] sm:$0xf] }
  0x39   : > { %273 = vst [vmem:[%s2547_s29 + $0x90] sm:$0xf] %v272_v36  ;;  %v354_v13 = vld [vmem:[%s2542_s28 + $0x268] sm:$0xf]  ;;  %v356_v14 = vld [vmem:[%s2542_s28 + $0x270] sm:$0xf] }
  0x3a   : > { %275 = vst [vmem:[%s2547_s29 + $0x94] sm:$0xf] %v274_v37  ;;  %v358_v15 = vld [vmem:[%s2542_s28 + $0x278] sm:$0xf]  ;;  %v360_v16 = vld [vmem:[%s2542_s28 + $0x280] sm:$0xf] }
  0x3b   : > { %277 = vst [vmem:[%s2547_s29 + $0x98] sm:$0xf] %v276_v38  ;;  %v362_v17 = vld [vmem:[%s2542_s28 + $0x288] sm:$0xf]  ;;  %v364_v18 = vld [vmem:[%s2542_s28 + $0x290] sm:$0xf] }
  0x3c   : > { %279 = vst [vmem:[%s2547_s29 + $0x9c] sm:$0xf] %v278_v39  ;;  %v366_v19 = vld [vmem:[%s2542_s28 + $0x298] sm:$0xf]  ;;  %v368_v20 = vld [vmem:[%s2542_s28 + $0x2a0] sm:$0xf] }
  0x3d   : > { %281 = vst [vmem:[%s2547_s29 + $0xa0] sm:$0xf] %v280_v40  ;;  %v370_v21 = vld [vmem:[%s2542_s28 + $0x2a8] sm:$0xf]  ;;  %v372_v22 = vld [vmem:[%s2542_s28 + $0x2b0] sm:$0xf] }
  0x3e   : > { %283 = vst [vmem:[%s2547_s29 + $0xa4] sm:$0xf] %v282_v41  ;;  %v374_v23 = vld [vmem:[%s2542_s28 + $0x2b8] sm:$0xf]  ;;  %v376_v24 = vld [vmem:[%s2542_s28 + $0x2c0] sm:$0xf] }
  0x3f   : > { %285 = vst [vmem:[%s2547_s29 + $0xa8] sm:$0xf] %v284_v42  ;;  %v378_v25 = vld [vmem:[%s2542_s28 + $0x2c8] sm:$0xf]  ;;  %v380_v26 = vld [vmem:[%s2542_s28 + $0x2d0] sm:$0xf] }
  0x40   : > { %287 = vst [vmem:[%s2547_s29 + $0xac] sm:$0xf] %v286_v43  ;;  %v382_v27 = vld [vmem:[%s2542_s28 + $0x2d8] sm:$0xf]  ;;  %v384_v28 = vld [vmem:[%s2542_s28 + $0x2e0] sm:$0xf] }
  0x41   : > { %289 = vst [vmem:[%s2547_s29 + $0xb0] sm:$0xf] %v288_v44  ;;  %v386_v29 = vld [vmem:[%s2542_s28 + $0x2e8] sm:$0xf]  ;;  %v388_v30 = vld [vmem:[%s2542_s28 + $0x2f0] sm:$0xf] }
  0x42   : > { %291 = vst [vmem:[%s2547_s29 + $0xb4] sm:$0xf] %v290_v45  ;;  %v390_v31 = vld [vmem:[%s2542_s28 + $0x2f8] sm:$0xf]  ;;  %v392_v32 = vld [vmem:[%s2542_s28 + $0x300] sm:$0xf] }
  0x43   : > { %293 = vst [vmem:[%s2547_s29 + $0xb8] sm:$0xf] %v292_v46  ;;  %v394_v33 = vld [vmem:[%s2542_s28 + $0x308] sm:$0xf]  ;;  %v396_v34 = vld [vmem:[%s2542_s28 + $0x310] sm:$0xf] }
  0x44   : > { %295 = vst [vmem:[%s2547_s29 + $0xbc] sm:$0xf] %v294_v47  ;;  %v398_v35 = vld [vmem:[%s2542_s28 + $0x318] sm:$0xf]  ;;  %v400_v36 = vld [vmem:[%s2542_s28 + $0x320] sm:$0xf] }
  0x45   : > { %297 = vst [vmem:[%s2547_s29 + $0xc0] sm:$0xf] %v296_v48  ;;  %v402_v37 = vld [vmem:[%s2542_s28 + $0x328] sm:$0xf]  ;;  %v404_v38 = vld [vmem:[%s2542_s28 + $0x330] sm:$0xf] }
  0x46   : > { %299 = vst [vmem:[%s2547_s29 + $0xc4] sm:$0xf] %v298_v49  ;;  %v406_v39 = vld [vmem:[%s2542_s28 + $0x338] sm:$0xf]  ;;  %v408_v40 = vld [vmem:[%s2542_s28 + $0x340] sm:$0xf] }
  0x47   : > { %301 = vst [vmem:[%s2547_s29 + $0xc8] sm:$0xf] %v300_v50  ;;  %v410_v41 = vld [vmem:[%s2542_s28 + $0x348] sm:$0xf]  ;;  %v412_v42 = vld [vmem:[%s2542_s28 + $0x350] sm:$0xf] }
  0x48   : > { %303 = vst [vmem:[%s2547_s29 + $0xcc] sm:$0xf] %v302_v51  ;;  %v414_v43 = vld [vmem:[%s2542_s28 + $0x358] sm:$0xf]  ;;  %v416_v44 = vld [vmem:[%s2542_s28 + $0x360] sm:$0xf] }
  0x49   : > { %305 = vst [vmem:[%s2547_s29 + $0xd0] sm:$0xf] %v304_v52  ;;  %v418_v45 = vld [vmem:[%s2542_s28 + $0x368] sm:$0xf]  ;;  %v420_v46 = vld [vmem:[%s2542_s28 + $0x370] sm:$0xf] }
  0x4a   : > { %307 = vst [vmem:[%s2547_s29 + $0xd4] sm:$0xf] %v306_v53  ;;  %v422_v47 = vld [vmem:[%s2542_s28 + $0x378] sm:$0xf]  ;;  %v424_v48 = vld [vmem:[%s2542_s28 + $0x380] sm:$0xf] }
  0x4b   : > { %309 = vst [vmem:[%s2547_s29 + $0xd8] sm:$0xf] %v308_v54  ;;  %v426_v49 = vld [vmem:[%s2542_s28 + $0x388] sm:$0xf]  ;;  %v428_v50 = vld [vmem:[%s2542_s28 + $0x390] sm:$0xf] }
  0x4c   : > { %311 = vst [vmem:[%s2547_s29 + $0xdc] sm:$0xf] %v310_v55  ;;  %v430_v51 = vld [vmem:[%s2542_s28 + $0x398] sm:$0xf]  ;;  %v432_v52 = vld [vmem:[%s2542_s28 + $0x3a0] sm:$0xf] }
  0x4d   : > { %313 = vst [vmem:[%s2547_s29 + $0xe0] sm:$0xf] %v312_v56  ;;  %v434_v53 = vld [vmem:[%s2542_s28 + $0x3a8] sm:$0xf]  ;;  %v436_v54 = vld [vmem:[%s2542_s28 + $0x3b0] sm:$0xf] }
  0x4e   : > { %315 = vst [vmem:[%s2547_s29 + $0xe4] sm:$0xf] %v314_v57  ;;  %v438_v55 = vld [vmem:[%s2542_s28 + $0x3b8] sm:$0xf]  ;;  %v440_v56 = vld [vmem:[%s2542_s28 + $0x3c0] sm:$0xf] }
  0x4f   : > { %317 = vst [vmem:[%s2547_s29 + $0xe8] sm:$0xf] %v316_v58  ;;  %v442_v57 = vld [vmem:[%s2542_s28 + $0x3c8] sm:$0xf]  ;;  %v444_v58 = vld [vmem:[%s2542_s28 + $0x3d0] sm:$0xf] }
  0x50   : > { %319 = vst [vmem:[%s2547_s29 + $0xec] sm:$0xf] %v318_v59  ;;  %v446_v59 = vld [vmem:[%s2542_s28 + $0x3d8] sm:$0xf] }
  0x51   : > { %321 = vst [vmem:[%s2547_s29 + $0xf0] sm:$0xf] %v320_v60  ;;  %v448_v60 = vld [vmem:[%s2542_s28 + $0x3e0] sm:$0xf] }
  0x52   : > { %323 = vst [vmem:[%s2547_s29 + $0xf4] sm:$0xf] %v322_v61  ;;  %v450_v61 = vld [vmem:[%s2542_s28 + $0x3e8] sm:$0xf] }
  0x53   : > { %325 = vst [vmem:[%s2547_s29 + $0xf8] sm:$0xf] %v324_v62  ;;  %v452_v62 = vld [vmem:[%s2542_s28 + $0x3f0] sm:$0xf] }
  0x54   : > { %327 = vst [vmem:[%s2547_s29 + $0xfc] sm:$0xf] %v326_v63  ;;  %v454_v63 = vld [vmem:[%s2542_s28 + $0x3f8] sm:$0xf] }
  0x55   : > { %329 = vst [vmem:[%s2547_s29 + $0x100] sm:$0xf] %v328_v0  ;;  %v456_v0 = vld [vmem:[%s2542_s28 + $0x400] sm:$0xf] }
  0x56   : > { %331 = vst [vmem:[%s2547_s29 + $0x104] sm:$0xf] %v330_v1  ;;  %v458_v1 = vld [vmem:[%s2542_s28 + $0x408] sm:$0xf] }
  0x57   : > { %333 = vst [vmem:[%s2547_s29 + $0x108] sm:$0xf] %v332_v2  ;;  %v460_v2 = vld [vmem:[%s2542_s28 + $0x410] sm:$0xf] }
  0x58   : > { %335 = vst [vmem:[%s2547_s29 + $0x10c] sm:$0xf] %v334_v3  ;;  %v462_v3 = vld [vmem:[%s2542_s28 + $0x418] sm:$0xf] }
  0x59   : > { %337 = vst [vmem:[%s2547_s29 + $0x110] sm:$0xf] %v336_v4  ;;  %v464_v4 = vld [vmem:[%s2542_s28 + $0x420] sm:$0xf] }
  0x5a   : > { %339 = vst [vmem:[%s2547_s29 + $0x114] sm:$0xf] %v338_v5  ;;  %v466_v5 = vld [vmem:[%s2542_s28 + $0x428] sm:$0xf] }
  0x5b   : > { %341 = vst [vmem:[%s2547_s29 + $0x118] sm:$0xf] %v340_v6  ;;  %v468_v6 = vld [vmem:[%s2542_s28 + $0x430] sm:$0xf] }
  0x5c   : > { %343 = vst [vmem:[%s2547_s29 + $0x11c] sm:$0xf] %v342_v7  ;;  %v470_v7 = vld [vmem:[%s2542_s28 + $0x438] sm:$0xf] }
  0x5d   : > { %345 = vst [vmem:[%s2547_s29 + $0x120] sm:$0xf] %v344_v8  ;;  %v472_v8 = vld [vmem:[%s2542_s28 + $0x440] sm:$0xf] }
  0x5e   : > { %347 = vst [vmem:[%s2547_s29 + $0x124] sm:$0xf] %v346_v9  ;;  %v474_v9 = vld [vmem:[%s2542_s28 + $0x448] sm:$0xf] }
  0x5f   : > { %349 = vst [vmem:[%s2547_s29 + $0x128] sm:$0xf] %v348_v10  ;;  %v476_v10 = vld [vmem:[%s2542_s28 + $0x450] sm:$0xf] }
  0x60   : > { %351 = vst [vmem:[%s2547_s29 + $0x12c] sm:$0xf] %v350_v11  ;;  %v478_v11 = vld [vmem:[%s2542_s28 + $0x458] sm:$0xf] }
  0x61   : > { %353 = vst [vmem:[%s2547_s29 + $0x130] sm:$0xf] %v352_v12  ;;  %v480_v12 = vld [vmem:[%s2542_s28 + $0x460] sm:$0xf] }
  0x62   : > { %355 = vst [vmem:[%s2547_s29 + $0x134] sm:$0xf] %v354_v13  ;;  %v482_v13 = vld [vmem:[%s2542_s28 + $0x468] sm:$0xf] }
  0x63   : > { %357 = vst [vmem:[%s2547_s29 + $0x138] sm:$0xf] %v356_v14  ;;  %v484_v14 = vld [vmem:[%s2542_s28 + $0x470] sm:$0xf] }
  0x64   : > { %359 = vst [vmem:[%s2547_s29 + $0x13c] sm:$0xf] %v358_v15  ;;  %v486_v15 = vld [vmem:[%s2542_s28 + $0x478] sm:$0xf] }
  0x65   : > { %361 = vst [vmem:[%s2547_s29 + $0x140] sm:$0xf] %v360_v16 }
  0x66   : > { %363 = vst [vmem:[%s2547_s29 + $0x144] sm:$0xf] %v362_v17 }
  0x67   : > { %365 = vst [vmem:[%s2547_s29 + $0x148] sm:$0xf] %v364_v18 }
  0x68   : > { %367 = vst [vmem:[%s2547_s29 + $0x14c] sm:$0xf] %v366_v19 }
  0x69   : > { %369 = vst [vmem:[%s2547_s29 + $0x150] sm:$0xf] %v368_v20 }
  0x6a   : > { %371 = vst [vmem:[%s2547_s29 + $0x154] sm:$0xf] %v370_v21 }
  0x6b   : > { %373 = vst [vmem:[%s2547_s29 + $0x158] sm:$0xf] %v372_v22 }
  0x6c   : > { %375 = vst [vmem:[%s2547_s29 + $0x15c] sm:$0xf] %v374_v23 }
  0x6d   : > { %377 = vst [vmem:[%s2547_s29 + $0x160] sm:$0xf] %v376_v24 }
  0x6e   : > { %379 = vst [vmem:[%s2547_s29 + $0x164] sm:$0xf] %v378_v25 }
  0x6f   : > { %381 = vst [vmem:[%s2547_s29 + $0x168] sm:$0xf] %v380_v26 }
  0x70   : > { %383 = vst [vmem:[%s2547_s29 + $0x16c] sm:$0xf] %v382_v27 }
  0x71   : > { %385 = vst [vmem:[%s2547_s29 + $0x170] sm:$0xf] %v384_v28 }
  0x72   : > { %387 = vst [vmem:[%s2547_s29 + $0x174] sm:$0xf] %v386_v29 }
  0x73   : > { %389 = vst [vmem:[%s2547_s29 + $0x178] sm:$0xf] %v388_v30 }
  0x74   : > { %391 = vst [vmem:[%s2547_s29 + $0x17c] sm:$0xf] %v390_v31 }
  0x75   : > { %393 = vst [vmem:[%s2547_s29 + $0x180] sm:$0xf] %v392_v32 }
  0x76   : > { %395 = vst [vmem:[%s2547_s29 + $0x184] sm:$0xf] %v394_v33 }
  0x77   : > { %397 = vst [vmem:[%s2547_s29 + $0x188] sm:$0xf] %v396_v34 }
  0x78   : > { %399 = vst [vmem:[%s2547_s29 + $0x18c] sm:$0xf] %v398_v35 }
  0x79   : > { %401 = vst [vmem:[%s2547_s29 + $0x190] sm:$0xf] %v400_v36 }
  0x7a   : > { %403 = vst [vmem:[%s2547_s29 + $0x194] sm:$0xf] %v402_v37 }
  0x7b   : > { %405 = vst [vmem:[%s2547_s29 + $0x198] sm:$0xf] %v404_v38 }
  0x7c   : > { %407 = vst [vmem:[%s2547_s29 + $0x19c] sm:$0xf] %v406_v39 }
  0x7d   : > { %409 = vst [vmem:[%s2547_s29 + $0x1a0] sm:$0xf] %v408_v40 }
  0x7e   : > { %411 = vst [vmem:[%s2547_s29 + $0x1a4] sm:$0xf] %v410_v41 }
  0x7f   : > { %413 = vst [vmem:[%s2547_s29 + $0x1a8] sm:$0xf] %v412_v42 }
  0x80   : > { %415 = vst [vmem:[%s2547_s29 + $0x1ac] sm:$0xf] %v414_v43 }
  0x81   : > { %417 = vst [vmem:[%s2547_s29 + $0x1b0] sm:$0xf] %v416_v44 }
  0x82   : > { %419 = vst [vmem:[%s2547_s29 + $0x1b4] sm:$0xf] %v418_v45 }
  0x83   : > { %421 = vst [vmem:[%s2547_s29 + $0x1b8] sm:$0xf] %v420_v46 }
  0x84   : > { %423 = vst [vmem:[%s2547_s29 + $0x1bc] sm:$0xf] %v422_v47 }
  0x85   : > { %425 = vst [vmem:[%s2547_s29 + $0x1c0] sm:$0xf] %v424_v48 }
  0x86   : > { %427 = vst [vmem:[%s2547_s29 + $0x1c4] sm:$0xf] %v426_v49 }
  0x87   : > { %429 = vst [vmem:[%s2547_s29 + $0x1c8] sm:$0xf] %v428_v50 }
  0x88   : > { %431 = vst [vmem:[%s2547_s29 + $0x1cc] sm:$0xf] %v430_v51 }
  0x89   : > { %433 = vst [vmem:[%s2547_s29 + $0x1d0] sm:$0xf] %v432_v52 }
  0x8a   : > { %435 = vst [vmem:[%s2547_s29 + $0x1d4] sm:$0xf] %v434_v53 }
  0x8b   : > { %437 = vst [vmem:[%s2547_s29 + $0x1d8] sm:$0xf] %v436_v54 }
  0x8c   : > { %439 = vst [vmem:[%s2547_s29 + $0x1dc] sm:$0xf] %v438_v55 }
  0x8d   : > { %441 = vst [vmem:[%s2547_s29 + $0x1e0] sm:$0xf] %v440_v56 }
  0x8e   : > { %443 = vst [vmem:[%s2547_s29 + $0x1e4] sm:$0xf] %v442_v57 }
  0x8f   : > { %445 = vst [vmem:[%s2547_s29 + $0x1e8] sm:$0xf] %v444_v58 }
  0x90   : > { %447 = vst [vmem:[%s2547_s29 + $0x1ec] sm:$0xf] %v446_v59 }
  0x91   : > { %449 = vst [vmem:[%s2547_s29 + $0x1f0] sm:$0xf] %v448_v60 }
  0x92   : > { %451 = vst [vmem:[%s2547_s29 + $0x1f4] sm:$0xf] %v450_v61 }
  0x93   : > { %453 = vst [vmem:[%s2547_s29 + $0x1f8] sm:$0xf] %v452_v62 }
  0x94   : > { %455 = vst [vmem:[%s2547_s29 + $0x1fc] sm:$0xf] %v454_v63 }
  0x95   : > { %457 = vst [vmem:[%s2547_s29 + $0x200] sm:$0xf] %v456_v0 }
  0x96   : > { %459 = vst [vmem:[%s2547_s29 + $0x204] sm:$0xf] %v458_v1 }
  0x97   : > { %461 = vst [vmem:[%s2547_s29 + $0x208] sm:$0xf] %v460_v2 }
  0x98   : > { %463 = vst [vmem:[%s2547_s29 + $0x20c] sm:$0xf] %v462_v3 }
  0x99   : > { %465 = vst [vmem:[%s2547_s29 + $0x210] sm:$0xf] %v464_v4 }
  0x9a   : > { %467 = vst [vmem:[%s2547_s29 + $0x214] sm:$0xf] %v466_v5 }
  0x9b   : > { %469 = vst [vmem:[%s2547_s29 + $0x218] sm:$0xf] %v468_v6 }
  0x9c   : > { %471 = vst [vmem:[%s2547_s29 + $0x21c] sm:$0xf] %v470_v7 }
  0x9d   : > { %473 = vst [vmem:[%s2547_s29 + $0x220] sm:$0xf] %v472_v8 }
  0x9e   : > { %475 = vst [vmem:[%s2547_s29 + $0x224] sm:$0xf] %v474_v9 }
  0x9f   : > { %477 = vst [vmem:[%s2547_s29 + $0x228] sm:$0xf] %v476_v10 }
  0xa0   : > { %479 = vst [vmem:[%s2547_s29 + $0x22c] sm:$0xf] %v478_v11 }
  0xa1   : > { %481 = vst [vmem:[%s2547_s29 + $0x230] sm:$0xf] %v480_v12 }
  0xa2   : > { %483 = vst [vmem:[%s2547_s29 + $0x234] sm:$0xf] %v482_v13 }
  0xa3   : > { %485 = vst [vmem:[%s2547_s29 + $0x238] sm:$0xf] %v484_v14 }
  0xa4   : > { %487 = vst [vmem:[%s2547_s29 + $0x23c] sm:$0xf] %v486_v15 }
  0xa5 PF: > { %p1916_p8 = scmp.ge.s32.totalorder %s2472_s16, 1  ;;  %p804_p9 = scmp.lt.s32.totalorder %s2472_s16, 3 }
  0xa7   : > { %p805_p10 = pnand %p1916_p8, %p804_p9 }
  0xa8   : > { %s811_s30 = sand.u32 (!%p805_p10), 1, %s2456_s12   ;;  %p857_p11 = scmp.lt.s32.totalorder (!%p805_p10), %s2464_s14, 1 }
  0xa9   : > { %808 = sbr.rel (%p805_p10) target bundleno = 422 (0x1a6), region = 69 }
  0xaa   : > { %s2392_s4 = smul.u32 (!%p805_p10), 576, %s811_s30 }
  0xac   : > { %s2839_s5 = scalar_lea.vmem (!%p805_p10), [#allocation2], %s2392_s4 }
  0xae   : > { %v2307_v16 = vld [vmem:[%s2839_s5 + $0x38] sm:$0xff]  ;;  %v2306_v20 = vld [vmem:[%s2839_s5 + $0x30] sm:$0xff]  ;;  %v2305_v24 = vld [vmem:[%s2839_s5 + $0x28] sm:$0xff]  ;;  %s2865_s6 = scalar_select %p857_p11, %s2464_s14, 1 }
  0xaf   : > { %v2315_v17 = vld [vmem:[%s2839_s5 + $0x78] sm:$0xff]  ;;  %1553 = vmatpush.bf16.msra.mxu0 %v2307_v16  ;;  %v2314_v21 = vld [vmem:[%s2839_s5 + $0x70] sm:$0xff]  ;;  %v2313_v25 = vld [vmem:[%s2839_s5 + $0x68] sm:$0xff]  ;;  %s2279_s7 = sshll.u32 (%p2529_p6), %s2464_s14, 2 }
  0xb0   : > { %v2323_v18 = vld [vmem:[%s2839_s5 + $0xb8] sm:$0xff]  ;;  %1572 = vmatpush.bf16.msra.mxu1 %v2315_v17  ;;  %v2322_v22 = vld [vmem:[%s2839_s5 + $0xb0] sm:$0xff]  ;;  %v2321_v26 = vld [vmem:[%s2839_s5 + $0xa8] sm:$0xff]  ;;  %s859_s9 = scalar_lea.vmem %s3059_s2, %s2865_s6  ;;  %s1917_s6 = sshll.u32 %s811_s30, 4 }
  0xb1   : > { %v2331_v19 = vld [vmem:[%s2839_s5 + $0xf8] sm:$0xff]  ;;  %1591 = vmatpush.bf16.msra.mxu2 %v2323_v18  ;;  %v2330_v23 = vld [vmem:[%s2839_s5 + $0xf0] sm:$0xff]  ;;  %v2329_v27 = vld [vmem:[%s2839_s5 + $0xe8] sm:$0xff]  ;;  %s1749_s8 = scalar_lea.vmem (%p2529_p6), %s3060_s3, %s2279_s7 }
  0xb2   : > { %1610 = vmatpush.bf16.msra.mxu3 %v2331_v19  ;;  %v2304_v28 = vld [vmem:[%s2839_s5 + $0x20] sm:$0xff]  ;;  %v2303_v32 = vld [vmem:[%s2839_s5 + $0x18] sm:$0xff]  ;;  %v2302_v36 = vld [vmem:[%s2839_s5 + $0x10] sm:$0xff] }
  0xb3   : > { %1554 = vmatpush.bf16.msra.mxu0 %v2306_v20  ;;  %v2312_v29 = vld [vmem:[%s2839_s5 + $0x60] sm:$0xff]  ;;  %v2311_v33 = vld [vmem:[%s2839_s5 + $0x58] sm:$0xff]  ;;  %v2310_v37 = vld [vmem:[%s2839_s5 + $0x50] sm:$0xff] }
  0xb4   : > { %1573 = vmatpush.bf16.msra.mxu1 %v2314_v21  ;;  %v2320_v30 = vld [vmem:[%s2839_s5 + $0xa0] sm:$0xff]  ;;  %v2319_v34 = vld [vmem:[%s2839_s5 + $0x98] sm:$0xff]  ;;  %v2318_v38 = vld [vmem:[%s2839_s5 + $0x90] sm:$0xff] }
  0xb5   : > { %1592 = vmatpush.bf16.msra.mxu2 %v2322_v22  ;;  %v2328_v31 = vld [vmem:[%s2839_s5 + $0xe0] sm:$0xff]  ;;  %v2327_v35 = vld [vmem:[%s2839_s5 + $0xd8] sm:$0xff]  ;;  %v2326_v39 = vld [vmem:[%s2839_s5 + $0xd0] sm:$0xff] }
  0xb6   : > { %1611 = vmatpush.bf16.msra.mxu3 %v2330_v23  ;;  %v2301_v40 = vld [vmem:[%s2839_s5 + $0x8] sm:$0xff]  ;;  %v2300_v44 = vld [vmem:[%s2839_s5] sm:$0xff]  ;;  %v1930_v55 = vld [vmem:[%s3057_s0 + $0x2c] sm:$0xf0] }
  0xb7   : > { %1555 = vmatpush.bf16.msra.mxu0 %v2305_v24  ;;  %v2309_v41 = vld [vmem:[%s2839_s5 + $0x48] sm:$0xff]  ;;  %v1920_v45 = vld [vmem:[%s3057_s0] sm:$0xf]  ;;  %v2286_v46 = vld [vmem:[%s3057_s0 + $0x20] sm:$0xf0] }
  0xb8   : > { %1574 = vmatpush.bf16.msra.mxu1 %v2313_v25  ;;  %v2317_v42 = vld [vmem:[%s2839_s5 + $0x88] sm:$0xff]  ;;  %v2308_v47 = vld [vmem:[%s2839_s5 + $0x40] sm:$0xff]  ;;  %v2339_v56 = vld [vmem:[%s2839_s5 + $0x138] sm:$0xff]  ;;  %v1921_v58 = vor.u32 %v2286_v46, %v1920_v45 }
  0xb9   : > { %1593 = vmatpush.bf16.msra.mxu2 %v2321_v26  ;;  %v2325_v43 = vld [vmem:[%s2839_s5 + $0xc8] sm:$0xff]  ;;  %v2316_v48 = vld [vmem:[%s2839_s5 + $0x80] sm:$0xff]  ;;  %v2347_v57 = vld [vmem:[%s2839_s5 + $0x178] sm:$0xff] }
  0xba   : > { %1612 = vmatpush.bf16.msra.mxu3 %v2329_v27  ;;  %v2324_v49 = vld [vmem:[%s2839_s5 + $0xc0] sm:$0xff]  ;;  %v1922_v51 = vld [vmem:[%s3057_s0 + $0x24] sm:$0xf0]  ;;  %v2287_v53 = vld [vmem:[%s3057_s0 + $0x28] sm:$0xf0] }
  0xbb   : > { %1556 = vmatpush.bf16.msra.mxu0 %v2304_v28  ;;  %v2282_v50 = vld [vmem:[%s3057_s0 + $0x4] sm:$0xf]  ;;  %v1928_v52 = vld [vmem:[%s3057_s0 + $0x8] sm:$0xf]  ;;  %v2283_v54 = vld [vmem:[%s3057_s0 + $0xc] sm:$0xf] }
  0xbc   : > { %1575 = vmatpush.bf16.msra.mxu1 %v2312_v29  ;;  %v1925_v59 = vor.u32 %v2282_v50, %v1922_v51  ;;  %v1929_v60 = vor.u32 %v2287_v53, %v1928_v52  ;;  %v1933_v61 = vor.u32 %v2283_v54, %v1930_v55  ;;  %v2355_v62 = vld [vmem:[%s2839_s5 + $0x1b8] sm:$0xff]  ;;  %v2338_v0 = vld [vmem:[%s2839_s5 + $0x130] sm:$0xff]  ;;  %v2337_v4 = vld [vmem:[%s2839_s5 + $0x128] sm:$0xff] }
  0xbd   : > { %1594 = vmatpush.bf16.msra.mxu2 %v2320_v30  ;;  %v2363_v63 = vld [vmem:[%s2839_s5 + $0x1f8] sm:$0xff]  ;;  %v2346_v1 = vld [vmem:[%s2839_s5 + $0x170] sm:$0xff]  ;;  %v2345_v5 = vld [vmem:[%s2839_s5 + $0x168] sm:$0xff] }
  0xbe   : > { %1613 = vmatpush.bf16.msra.mxu3 %v2328_v31  ;;  %v2354_v2 = vld [vmem:[%s2839_s5 + $0x1b0] sm:$0xff]  ;;  %v2353_v6 = vld [vmem:[%s2839_s5 + $0x1a8] sm:$0xff]  ;;  %v2336_v8 = vld [vmem:[%s2839_s5 + $0x120] sm:$0xff] }
  0xbf   : > { %1557 = vmatpush.bf16.msra.mxu0 %v2303_v32  ;;  %v2362_v3 = vld [vmem:[%s2839_s5 + $0x1f0] sm:$0xff]  ;;  %v2361_v7 = vld [vmem:[%s2839_s5 + $0x1e8] sm:$0xff]  ;;  %v2344_v9 = vld [vmem:[%s2839_s5 + $0x160] sm:$0xff] }
  0xc0   : > { %1576 = vmatpush.bf16.msra.mxu1 %v2311_v33  ;;  %v2352_v10 = vld [vmem:[%s2839_s5 + $0x1a0] sm:$0xff]  ;;  %v1956_v12 = vld [vmem:[%s3057_s0 + $0x48] sm:$0xf]  ;;  %v2295_v13 = vld [vmem:[%s3057_s0 + $0x68] sm:$0xf0] }
  0xc1   : > { %1595 = vmatpush.bf16.msra.mxu2 %v2319_v34  ;;  %v2360_v11 = vld [vmem:[%s2839_s5 + $0x1e0] sm:$0xff]  ;;  %v2291_v14 = vld [vmem:[%s3057_s0 + $0x4c] sm:$0xf]  ;;  %v1958_v15 = vld [vmem:[%s3057_s0 + $0x6c] sm:$0xf0]  ;;  %v1957_v22 = vor.u32 %v2295_v13, %v1956_v12 }
  0xc2   : > { %1614 = vmatpush.bf16.msra.mxu3 %v2327_v35  ;;  %v1964_v16 = vld [vmem:[%s3057_s0 + $0x50] sm:$0xf]  ;;  %v2296_v17 = vld [vmem:[%s3057_s0 + $0x70] sm:$0xf0]  ;;  %v1966_v19 = vld [vmem:[%s3057_s0 + $0x74] sm:$0xf0]  ;;  %v1961_v23 = vor.u32 %v2291_v14, %v1958_v15 }
  0xc3   : > { %1558 = vmatpush.bf16.msra.mxu0 %v2302_v36  ;;  %v2292_v18 = vld [vmem:[%s3057_s0 + $0x54] sm:$0xf]  ;;  %v2335_v20 = vld [vmem:[%s2839_s5 + $0x118] sm:$0xff]  ;;  %v1965_v24 = vor.u32 %v2296_v17, %v1964_v16  ;;  %v2333_v32 = vld [vmem:[%s2839_s5 + $0x108] sm:$0xff] }
  0xc4   : > { %1577 = vmatpush.bf16.msra.mxu1 %v2310_v37  ;;  %v2343_v21 = vld [vmem:[%s2839_s5 + $0x158] sm:$0xff]  ;;  %v1969_v25 = vor.u32 %v2292_v18, %v1966_v19  ;;  %v2334_v28 = vld [vmem:[%s2839_s5 + $0x110] sm:$0xff]  ;;  %v2341_v33 = vld [vmem:[%s2839_s5 + $0x148] sm:$0xff] }
  0xc5   : > { %1596 = vmatpush.bf16.msra.mxu2 %v2318_v38  ;;  %v2351_v26 = vld [vmem:[%s2839_s5 + $0x198] sm:$0xff]  ;;  %v2342_v29 = vld [vmem:[%s2839_s5 + $0x150] sm:$0xff]  ;;  %v2349_v34 = vld [vmem:[%s2839_s5 + $0x188] sm:$0xff] }
  0xc6   : > { %1615 = vmatpush.bf16.msra.mxu3 %v2326_v39  ;;  %v2359_v27 = vld [vmem:[%s2839_s5 + $0x1d8] sm:$0xff]  ;;  %v2350_v30 = vld [vmem:[%s2839_s5 + $0x190] sm:$0xff]  ;;  %v2357_v35 = vld [vmem:[%s2839_s5 + $0x1c8] sm:$0xff] }
  0xc7   : > { %1559 = vmatpush.bf16.msra.mxu0 %v2301_v40  ;;  %v2358_v31 = vld [vmem:[%s2839_s5 + $0x1d0] sm:$0xff]  ;;  %v2332_v36 = vld [vmem:[%s2839_s5 + $0x100] sm:$0xff]  ;;  %v1944_v45 = vld [vmem:[%s3057_s0 + $0x18] sm:$0xf] }
  0xc8   : > { %1578 = vmatpush.bf16.msra.mxu1 %v2309_v41  ;;  %v2340_v37 = vld [vmem:[%s2839_s5 + $0x140] sm:$0xff]  ;;  %v1936_v40 = vld [vmem:[%s3057_s0 + $0x10] sm:$0xf]  ;;  %v2288_v41 = vld [vmem:[%s3057_s0 + $0x30] sm:$0xf0] }
  0xc9   : > { %1597 = vmatpush.bf16.msra.mxu2 %v2317_v42  ;;  %v2348_v38 = vld [vmem:[%s2839_s5 + $0x180] sm:$0xff]  ;;  %v2371_v42 = vld [vmem:[%s2839_s5 + $0x238] sm:$0xff]  ;;  %v2370_v53 = vld [vmem:[%s2839_s5 + $0x230] sm:$0xff] }
  0xca   : > { %1616 = vmatpush.bf16.msra.mxu3 %v2325_v43  ;;  %v2356_v39 = vld [vmem:[%s2839_s5 + $0x1c0] sm:$0xff]  ;;  %v2284_v43 = vld [vmem:[%s3057_s0 + $0x14] sm:$0xf]  ;;  %v2289_v46 = vld [vmem:[%s3057_s0 + $0x38] sm:$0xf0] }
  0xcb   : > { %1560 = vmatpush.bf16.msra.mxu0 %v2300_v44  ;;  %v1938_v44 = vld [vmem:[%s3057_s0 + $0x34] sm:$0xf0]  ;;  %v1945_v51 = vor.u32 %v2289_v46, %v1944_v45  ;;  %v2369_v54 = vld [vmem:[%s2839_s5 + $0x228] sm:$0xff]  ;;  %v2368_v55 = vld [vmem:[%s2839_s5 + $0x220] sm:$0xff] }
  0xcc   : > { %1579 = vmatpush.bf16.msra.mxu1 %v2308_v47  ;;  %v2285_v47 = vld [vmem:[%s3057_s0 + $0x1c] sm:$0xf]  ;;  %v1941_v50 = vor.u32 %v2284_v43, %v1938_v44 }
  0xcd   : > { %1598 = vmatpush.bf16.msra.mxu2 %v2316_v48  ;;  %v1946_v48 = vld [vmem:[%s3057_s0 + $0x3c] sm:$0xf0] }
  0xce   : > { %1617 = vmatpush.bf16.msra.mxu3 %v2324_v49  ;;  %1561 = vmatmul.bf16.vlgmr.msra.gmra.mxu0 %v1921_v58  ;;  %v1937_v49 = vor.u32 %v2288_v41, %v1936_v40  ;;  %v1949_v52 = vor.u32 %v2285_v47, %v1946_v48  ;;  %v2293_v58 = vld [vmem:[%s3057_s0 + $0x5c] sm:$0xf] }
  0xcf   : > { %1629 = vmatpush.bf16.msrb.mxu0 %v2339_v56  ;;  %1580 = vmatmul.bf16.vlgmr.msra.gmra.mxu1 %v1925_v59  ;;  %v1972_v56 = vld [vmem:[%s3057_s0 + $0x58] sm:$0xf]  ;;  %v1974_v59 = vld [vmem:[%s3057_s0 + $0x7c] sm:$0xf0] }
  0xd0   : > { %1648 = vmatpush.bf16.msrb.mxu1 %v2347_v57  ;;  %1599 = vmatmul.bf16.vlgmr.msra.gmra.mxu2 %v1929_v60  ;;  %v2297_v57 = vld [vmem:[%s3057_s0 + $0x78] sm:$0xf0]  ;;  %v1980_v60 = vld [vmem:[%s3057_s0 + $0x60] sm:$0xf] }
  0xd1   : > { %1618 = vmatmul.bf16.vlgmr.msra.gmra.mxu3 %v1933_v61  ;;  %1667 = vmatpush.bf16.msrb.mxu2 %v2355_v62  ;;  %v2298_v61 = vld [vmem:[%s3057_s0 + $0x80] sm:$0xf0] }
  0xd2   : > { %1686 = vmatpush.bf16.msrb.mxu3 %v2363_v63  ;;  %v2294_v62 = vld [vmem:[%s3057_s0 + $0x64] sm:$0xf]  ;;  %v1982_v63 = vld [vmem:[%s3057_s0 + $0x84] sm:$0xf0] }
  0xd3   : > { %1630 = vmatpush.bf16.msrb.mxu0 %v2338_v0  ;;  %v2367_v0 = vld [vmem:[%s2839_s5 + $0x218] sm:$0xff] }
  0xd4   : > { %1649 = vmatpush.bf16.msrb.mxu1 %v2346_v1  ;;  %v1973_v1 = vor.u32 %v2297_v57, %v1972_v56 }
  0xd5   : > { %1668 = vmatpush.bf16.msrb.mxu2 %v2354_v2  ;;  %v1977_v2 = vor.u32 %v2293_v58, %v1974_v59 }
  0xd6   : > { %1687 = vmatpush.bf16.msrb.mxu3 %v2362_v3  ;;  %v1981_v3 = vor.u32 %v2298_v61, %v1980_v60 }
  0xd7   : > { %1631 = vmatpush.bf16.msrb.mxu0 %v2337_v4  ;;  %v1985_v4 = vor.u32 %v2294_v62, %v1982_v63 }
  0xd8   : > { %1650 = vmatpush.bf16.msrb.mxu1 %v2345_v5  ;;  %v2366_v5 = vld [vmem:[%s2839_s5 + $0x210] sm:$0xff] }
  0xd9   : > { %1669 = vmatpush.bf16.msrb.mxu2 %v2353_v6  ;;  %v2365_v6 = vld [vmem:[%s2839_s5 + $0x208] sm:$0xff] }
  0xda   : > { %1688 = vmatpush.bf16.msrb.mxu3 %v2361_v7  ;;  %v2364_v7 = vld [vmem:[%s2839_s5 + $0x200] sm:$0xff] }
  0xdb   : > { %1632 = vmatpush.bf16.msrb.mxu0 %v2336_v8  ;;  %v1952_v8 = vld [vmem:[%s3057_s0 + $0x20] sm:$0xf] }
  0xdc   : > { %1651 = vmatpush.bf16.msrb.mxu1 %v2344_v9  ;;  %v2290_v9 = vld [vmem:[%s3057_s0 + $0x40] sm:$0xf0] }
  0xdd   : > { %1670 = vmatpush.bf16.msrb.mxu2 %v2352_v10  ;;  %v1988_v10 = vld [vmem:[%s3057_s0 + $0x68] sm:$0xf]  ;;  %v1953_v12 = vor.u32 %v2290_v9, %v1952_v8 }
  0xde   : > { %1689 = vmatpush.bf16.msrb.mxu3 %v2360_v11  ;;  %1566 = vmatmul.bf16.gmra.mxu0 %v1957_v22  ;;  %v2299_v11 = vld [vmem:[%s3057_s0 + $0x88] sm:$0xf0] }
  0xdf   : > { %1633 = vmatpush.bf16.msrb.mxu0 %v2335_v20  ;;  %1585 = vmatmul.bf16.gmra.mxu1 %v1961_v23  ;;  %v1989_v13 = vor.u32 %v2299_v11, %v1988_v10 }
  0xe0   : > { %1652 = vmatpush.bf16.msrb.mxu1 %v2343_v21  ;;  %1604 = vmatmul.bf16.gmra.mxu2 %v1965_v24 }
  0xe1   : > { %1623 = vmatmul.bf16.gmra.mxu3 %v1969_v25  ;;  %1671 = vmatpush.bf16.msrb.mxu2 %v2351_v26 }
  0xe2   : > { %1690 = vmatpush.bf16.msrb.mxu3 %v2359_v27 }
  0xe3   : > { %1634 = vmatpush.bf16.msrb.mxu0 %v2334_v28 }
  0xe4   : > { %1653 = vmatpush.bf16.msrb.mxu1 %v2342_v29 }
  0xe5   : > { %1672 = vmatpush.bf16.msrb.mxu2 %v2350_v30 }
  0xe6   : > { %1691 = vmatpush.bf16.msrb.mxu3 %v2358_v31 }
  0xe7   : > { %1635 = vmatpush.bf16.msrb.mxu0 %v2333_v32 }
  0xe8   : > { %1654 = vmatpush.bf16.msrb.mxu1 %v2341_v33 }
  0xe9   : > { %1673 = vmatpush.bf16.msrb.mxu2 %v2349_v34 }
  0xea   : > { %1692 = vmatpush.bf16.msrb.mxu3 %v2357_v35 }
  0xeb   : > { %1636 = vmatpush.bf16.msrb.mxu0 %v2332_v36  ;;  %v2433_v36 = vld [vmem:[%s859_s9] ss:$0 sm:$0xff]  ;;  %s845_s9 = scalar_lea.vmem [#allocation3], %s1917_s6 }
  0xec   : > { %1655 = vmatpush.bf16.msrb.mxu1 %v2340_v37 }
  0xed   : > { %1674 = vmatpush.bf16.msrb.mxu2 %v2348_v38 }
  0xee   : > { %1693 = vmatpush.bf16.msrb.mxu3 %v2356_v39  ;;  %1637 = vmatmul.bf16.vlgmr.msrb.gmra.mxu0 %v1937_v49 }
  0xef   : > { %1705 = vmatpush.bf16.msra.mxu0 %v2371_v42  ;;  %1656 = vmatmul.bf16.vlgmr.msrb.gmra.mxu1 %v1941_v50 }
  0xf0   : > { %2383 = vmatpush.bf16.msra.mxu1 %v2371_v42  ;;  %1675 = vmatmul.bf16.vlgmr.msrb.gmra.mxu2 %v1945_v51 }
  0xf1   : > { %1694 = vmatmul.bf16.vlgmr.msrb.gmra.mxu3 %v1949_v52 }
  0xf3   : > { %1706 = vmatpush.bf16.msra.mxu0 %v2370_v53 }
  0xf4   : > { %2384 = vmatpush.bf16.msra.mxu1 %v2370_v53 }
  0xf7   : > { %1707 = vmatpush.bf16.msra.mxu0 %v2369_v54 }
  0xf8   : > { %2385 = vmatpush.bf16.msra.mxu1 %v2369_v54 }
  0xfb   : > { %1708 = vmatpush.bf16.msra.mxu0 %v2368_v55 }
  0xfc   : > { %2386 = vmatpush.bf16.msra.mxu1 %v2368_v55 }
  0xfe   : > { %1642 = vmatmul.bf16.gmra.mxu0 %v1973_v1 }
  0xff   : > { %1709 = vmatpush.bf16.msra.mxu0 %v2367_v0  ;;  %1661 = vmatmul.bf16.gmra.mxu1 %v1977_v2 }
 0x100   : > { %2387 = vmatpush.bf16.msra.mxu1 %v2367_v0  ;;  %1680 = vmatmul.bf16.gmra.mxu2 %v1981_v3 }
 0x101   : > { %1699 = vmatmul.bf16.gmra.mxu3 %v1985_v4 }
 0x103   : > { %1710 = vmatpush.bf16.msra.mxu0 %v2366_v5 }
 0x104   : > { %2388 = vmatpush.bf16.msra.mxu1 %v2366_v5 }
 0x107   : > { %1711 = vmatpush.bf16.msra.mxu0 %v2365_v6 }
 0x108   : > { %2389 = vmatpush.bf16.msra.mxu1 %v2365_v6 }
 0x10b   : > { %1712 = vmatpush.bf16.msra.mxu0 %v2364_v7 }
 0x10c   : > { %2390 = vmatpush.bf16.msra.mxu1 %v2364_v7 }
 0x10e   : > { %1713 = vmatmul.bf16.vlgmr.msra.gmra.mxu0 %v1953_v12 }
 0x10f   : > { %1718 = vmatmul.bf16.vlgmr.msra.gmra.mxu1 %v1989_v13 }
 0x14b   : > { %v1562_v14 = vpop.f32.mrf.mxu0 }
 0x14c   : > { %v1581_v15 = vpop.f32.mrf.mxu1  ;;  %v1563_v37 = vadd.f32 %v2433_v36, %v1562_v14 }
 0x14e   : > { %v1582_v45 = vadd.f32 %v1581_v15, %v1563_v37 }
 0x153   : > { %v1600_v16 = vpop.f32.mrf.mxu2  ;;  %v1564_v18 = vpop.f32.mrf.mxu0 }
 0x154   : > { %v1619_v17 = vpop.f32.mrf.mxu3  ;;  %v1583_v19 = vpop.f32.mrf.mxu1  ;;  %v1565_v42 = vadd.f32 %v2433_v36, %v1564_v18  ;;  %v1601_v47 = vadd.f32 %v1600_v16, %v1582_v45 }
 0x156   : > { %v1584_v48 = vadd.f32 %v1583_v19, %v1565_v42  ;;  %v1620_v56 = vadd.f32 %v1619_v17, %v1601_v47 }
 0x15b   : > { %v1602_v20 = vpop.f32.mrf.mxu2  ;;  %v1567_v22 = vpop.f32.mrf.mxu0 }
 0x15c   : > { %v1621_v21 = vpop.f32.mrf.mxu3  ;;  %v1586_v23 = vpop.f32.mrf.mxu1  ;;  %v1568_v38 = vadd.f32 %v2433_v36, %v1567_v22  ;;  %v1603_v51 = vadd.f32 %v1602_v20, %v1584_v48 }
 0x15e   : > { %v1587_v46 = vadd.f32 %v1586_v23, %v1568_v38  ;;  %v1622_v58 = vadd.f32 %v1621_v21, %v1603_v51 }
 0x163   : > { %v1605_v24 = vpop.f32.mrf.mxu2  ;;  %v1569_v26 = vpop.f32.mrf.mxu0 }
 0x164   : > { %v1624_v25 = vpop.f32.mrf.mxu3  ;;  %v1588_v27 = vpop.f32.mrf.mxu1  ;;  %v1570_v43 = vadd.f32 %v2433_v36, %v1569_v26  ;;  %v1606_v49 = vadd.f32 %v1605_v24, %v1587_v46 }
 0x166   : > { %v1589_v50 = vadd.f32 %v1588_v27, %v1570_v43  ;;  %v1625_v57 = vadd.f32 %v1624_v25, %v1606_v49 }
 0x16b   : > { %v1607_v28 = vpop.f32.mrf.mxu2  ;;  %v1638_v30 = vpop.f32.mrf.mxu0 }
 0x16c   : > { %v1626_v29 = vpop.f32.mrf.mxu3  ;;  %v1657_v31 = vpop.f32.mrf.mxu1  ;;  %v1608_v52 = vadd.f32 %v1607_v28, %v1589_v50  ;;  %v1639_v60 = vadd.f32 %v1638_v30, %v1620_v56 }
 0x16e   : > { %v1627_v59 = vadd.f32 %v1626_v29, %v1608_v52  ;;  %v1658_v1 = vadd.f32 %v1657_v31, %v1639_v60 }
 0x173   : > { %v1676_v32 = vpop.f32.mrf.mxu2  ;;  %v1640_v34 = vpop.f32.mrf.mxu0 }
 0x174   : > { %v1695_v33 = vpop.f32.mrf.mxu3  ;;  %v1659_v35 = vpop.f32.mrf.mxu1  ;;  %v1641_v63 = vadd.f32 %v1640_v34, %v1622_v58  ;;  %v1677_v6 = vadd.f32 %v1676_v32, %v1658_v1 }
 0x176   : > { %v1660_v7 = vadd.f32 %v1659_v35, %v1641_v63  ;;  %v1696_v12 = vadd.f32 %v1695_v33, %v1677_v6 }
 0x17b   : > { %v1678_v39 = vpop.f32.mrf.mxu2  ;;  %v1643_v40 = vpop.f32.mrf.mxu0 }
 0x17c   : > { %v1662_v41 = vpop.f32.mrf.mxu1  ;;  %v1697_v44 = vpop.f32.mrf.mxu3  ;;  %v1644_v61 = vadd.f32 %v1643_v40, %v1625_v57  ;;  %v1679_v10 = vadd.f32 %v1678_v39, %v1660_v7 }
 0x17e   : > { %v1663_v2 = vadd.f32 %v1662_v41, %v1644_v61  ;;  %v1698_v15 = vadd.f32 %v1697_v44, %v1679_v10 }
 0x183   : > { %v1681_v53 = vpop.f32.mrf.mxu2  ;;  %v1645_v54 = vpop.f32.mrf.mxu0 }
 0x184   : > { %v1664_v55 = vpop.f32.mrf.mxu1  ;;  %v1700_v62 = vpop.f32.mrf.mxu3  ;;  %v1646_v0 = vadd.f32 %v1645_v54, %v1627_v59  ;;  %v1682_v8 = vadd.f32 %v1681_v53, %v1663_v2 }
 0x186   : > { %v1665_v9 = vadd.f32 %v1664_v55, %v1646_v0  ;;  %v1701_v13 = vadd.f32 %v1700_v62, %v1682_v8 }
 0x18b   : > { %v1683_v3 = vpop.f32.mrf.mxu2  ;;  %v1714_v4 = vpop.f32.mrf.mxu0 }
 0x18c   : > { %v1719_v5 = vpop.f32.mrf.mxu1  ;;  %v1684_v11 = vadd.f32 %v1683_v3, %v1665_v9  ;;  %v1702_v14 = vpop.f32.mrf.mxu3  ;;  %v1715_v17 = vadd.f32 %v1714_v4, %v1696_v12 }
 0x18d   : > { %v1720_v18 = vadd.f32 %v1719_v5, %v1701_v13 }
 0x18e   : > { %v1703_v16 = vadd.f32 %v1702_v14, %v1684_v11  ;;  %v1724_v23 = vmax.f32 %v1715_v17, 0.0 }
 0x18f   : > { %v1726_v24 = vmax.f32 %v1720_v18, 0.0 }
 0x193   : > { %v1716_v19 = vpop.f32.mrf.mxu0 }
 0x194   : > { %v1721_v20 = vpop.f32.mrf.mxu1  ;;  %v1717_v21 = vadd.f32 %v1716_v19, %v1698_v15 }
 0x195   : > { %v1722_v22 = vadd.f32 %v1721_v20, %v1703_v16 }
 0x196   : > { %v1725_v25 = vmax.f32 %v1717_v21, 0.0 }
 0x197   : > { %v1727_v26 = vmax.f32 %v1722_v22, 0.0  ;;  %1742 = sbr.rel (!%p2529_p6) target bundleno = 422 (0x1a6), region = 77 }
 0x198   : > { %v2375_v27 = vpack.c.bf16 %v1725_v25, %v1724_v23 }
 0x199   : > { %v2380_v28 = vpack.c.bf16 %v1727_v26, %v1726_v24 }
 0x19a   : > { %2376 = vst [vmem:[%s845_s9] sm:$0xff] %v2375_v27  }
 0x19b   : > { %2382 = vst [vmem:[%s845_s9 + $0x8] sm:$0xff] %v2380_v28  }
 0x1a1   : > { %v1766_v29 = vld [vmem:[%s845_s9] sm:$0xf]  ;;  %v1768_v30 = vld [vmem:[%s845_s9 + $0x4] sm:$0xf] }
 0x1a2   : > { %v1770_v31 = vld [vmem:[%s845_s9 + $0x8] sm:$0xf]  ;;  %1767 = vst [vmem:[%s1749_s8] sm:$0xf] %v1766_v29  ;;  %v1772_v32 = vld [vmem:[%s845_s9 + $0xc] sm:$0xf] }
 0x1a3   : > { %1769 = vst [vmem:[%s1749_s8 + $0x8] sm:$0xf] %v1768_v30 }
 0x1a4   : > { %1771 = vst [vmem:[%s1749_s8 + $0x10] sm:$0xf] %v1770_v31 }
 0x1a5   : > { %1773 = vst [vmem:[%s1749_s8 + $0x18] sm:$0xf] %v1772_v32 }
 0x1a6 PF: > { %s13_s16 = sadd.s32 1, %s2472_s16   ;;  %s3062_s12 = smov %s2460_s13 }
 0x1a7   : > { %p10_p12 = scmp.ge.s32.totalorder %s13_s16, 4   ;;  %s3063_s13 = smov %s2534_s22 }
 0x1a8   : > { %s3064_s14 = smov %s2468_s15  ;;  %s3065_s15 = smov %s3067_s17 }
 0x1a9   :  { %12 = sbr.rel (!%p10_p12) target bundleno = 3 (0x3), region = 155 }

// kernel: colorization_forward.16
= control target key start
LH: loop header
LB: loop body
LE: loop exit
PB: predicated region body
PF: predicated region fallthrough
CT: control target
= control target key end

     0   :  { %s5565_s12 = smov 0   ;;  %s5567_s13 = smov 0   ;;  %s6596_s0 = inlined_call_operand.vmem [shape: bf16[1,32,2304], index: 0, kind: input, shape index: {}]   ;;  %s6597_s1 = inlined_call_operand.vmem [shape: bf16[1,2304,256], index: 1, kind: input, shape index: {}]   ;;  %s6598_s2 = inlined_call_operand.vmem [shape: f32[1,256], index: 2, kind: input, shape index: {}]   ;;  %s6599_s3 = inlined_call_operand.vmem [shape: bf16[1,32,256], index: 3, kind: output, shape index: {}]  }
   0x1   :  { %s5569_s14 = smov 0   ;;  %s5571_s15 = smov 0  }
   0x2   :  { %s5573_s16 = smov 0  }
   0x3 LB: > { %s25_s17 = sadd.s32 1, %s5539_s15  ;;  %s4523_s18 = sadd.s32 4294967295, %s5543_s16   ;;  %s5543_s16 = sphi %s5573_s16, %s13_s16   ;;  %s5539_s15 = sphi %s5571_s15, %s6604_s15   ;;  %s5535_s14 = sphi %s5569_s14, %s6603_s14   ;;  %s5531_s13 = sphi %s5567_s13, %s6602_s13   ;;  %s5527_s12 = sphi %s5565_s12, %s6601_s12  }
   0x4   : > { %p26_p0 = scmp.ge.s32.totalorder %s25_s17, 2  ;;  %p76_p1 = scmp.ne.s32.totalorder %s5531_s13, %s5527_s12 }
   0x5   : > { %p77_p2 = scmp.eq.s32.totalorder %s5543_s16, 0  ;;  %p136_p4 = scmp.eq.s32.totalorder %s4523_s18, 1 }
   0x6   : > { %s6606_s17 = smov (%p26_p0, %s25_s17), 0  ;;  %s69_s20 = sadd.s32 1, %s5531_s13 }
   0x7   : > { %p78_p3 = por %p77_p2, %p76_p1  ;;  %s65_s19 = ssub.s32 %s5539_s15, %s6606_s17 }
   0x8   : > { %p67_p5 = scmp.eq.s32.totalorder %s65_s19, 0  ;;  %p5600_p6 = por %p136_p4, %p76_p1 }
   0x9   : > { %p4527_p7 = scmp.ge.s32.totalorder %s5543_s16, 2 }
   0xa   : > { %s5605_s22 = scalar_select %p67_p5, %s5531_s13, %s69_s20  }
   0xb   : > { %172 = sbr.rel (%p4527_p7) target bundleno = 309 (0x135), region = 20 }
  0x10   : > { %175 = sbr.rel (!%p78_p3) target bundleno = 309 (0x135), region = 24  ;;  %s177_s23 = sand.u32 (%p78_p3), 1, %s5531_s13  }
  0x11   : > { %s4528_s24 = sshll.u32 (%p78_p3), %s5539_s15, 2  ;;  %s5462_s25 = smul.u32 (%p78_p3), 1152, %s177_s23 }
  0x12   : > { %s5613_s28 = scalar_lea.vmem (%p78_p3), %s6597_s1, %s4528_s24 }
  0x13   : > { %v200_v0 = vld [vmem:[%s5613_s28] sm:$0xf] (%p78_p3)  ;;  %v202_v1 = vld [vmem:[%s5613_s28 + $0x8] sm:$0xf] (%p78_p3)  ;;  %v204_v2 = vld [vmem:[%s5613_s28 + $0x10] sm:$0xf] (%p78_p3) }
  0x14   : > { %s5618_s29 = scalar_lea.vmem (%p78_p3), [#allocation2], %s5462_s25  ;;  %v206_v3 = vld [vmem:[%s5613_s28 + $0x18] sm:$0xf] (%p78_p3)  ;;  %v208_v4 = vld [vmem:[%s5613_s28 + $0x20] sm:$0xf] (%p78_p3) }
  0x15   : > { %201 = vst [vmem:[%s5618_s29] sm:$0xf] %v200_v0  ;;  %v210_v5 = vld [vmem:[%s5613_s28 + $0x28] sm:$0xf]  ;;  %v212_v6 = vld [vmem:[%s5613_s28 + $0x30] sm:$0xf] }
  0x16   : > { %203 = vst [vmem:[%s5618_s29 + $0x4] sm:$0xf] %v202_v1  ;;  %v214_v7 = vld [vmem:[%s5613_s28 + $0x38] sm:$0xf]  ;;  %v216_v8 = vld [vmem:[%s5613_s28 + $0x40] sm:$0xf] }
  0x17   : > { %205 = vst [vmem:[%s5618_s29 + $0x8] sm:$0xf] %v204_v2  ;;  %v218_v9 = vld [vmem:[%s5613_s28 + $0x48] sm:$0xf]  ;;  %v220_v10 = vld [vmem:[%s5613_s28 + $0x50] sm:$0xf] }
  0x18   : > { %207 = vst [vmem:[%s5618_s29 + $0xc] sm:$0xf] %v206_v3  ;;  %v222_v11 = vld [vmem:[%s5613_s28 + $0x58] sm:$0xf]  ;;  %v224_v12 = vld [vmem:[%s5613_s28 + $0x60] sm:$0xf] }
  0x19   : > { %209 = vst [vmem:[%s5618_s29 + $0x10] sm:$0xf] %v208_v4  ;;  %v226_v13 = vld [vmem:[%s5613_s28 + $0x68] sm:$0xf]  ;;  %v228_v14 = vld [vmem:[%s5613_s28 + $0x70] sm:$0xf] }
  0x1a   : > { %211 = vst [vmem:[%s5618_s29 + $0x14] sm:$0xf] %v210_v5  ;;  %v230_v15 = vld [vmem:[%s5613_s28 + $0x78] sm:$0xf]  ;;  %v232_v16 = vld [vmem:[%s5613_s28 + $0x80] sm:$0xf] }
  0x1b   : > { %213 = vst [vmem:[%s5618_s29 + $0x18] sm:$0xf] %v212_v6  ;;  %v234_v17 = vld [vmem:[%s5613_s28 + $0x88] sm:$0xf]  ;;  %v236_v18 = vld [vmem:[%s5613_s28 + $0x90] sm:$0xf] }
  0x1c   : > { %215 = vst [vmem:[%s5618_s29 + $0x1c] sm:$0xf] %v214_v7  ;;  %v238_v19 = vld [vmem:[%s5613_s28 + $0x98] sm:$0xf]  ;;  %v240_v20 = vld [vmem:[%s5613_s28 + $0xa0] sm:$0xf] }
  0x1d   : > { %217 = vst [vmem:[%s5618_s29 + $0x20] sm:$0xf] %v216_v8  ;;  %v242_v21 = vld [vmem:[%s5613_s28 + $0xa8] sm:$0xf]  ;;  %v244_v22 = vld [vmem:[%s5613_s28 + $0xb0] sm:$0xf] }
  0x1e   : > { %219 = vst [vmem:[%s5618_s29 + $0x24] sm:$0xf] %v218_v9  ;;  %v246_v23 = vld [vmem:[%s5613_s28 + $0xb8] sm:$0xf]  ;;  %v248_v24 = vld [vmem:[%s5613_s28 + $0xc0] sm:$0xf] }
  0x1f   : > { %221 = vst [vmem:[%s5618_s29 + $0x28] sm:$0xf] %v220_v10  ;;  %v250_v25 = vld [vmem:[%s5613_s28 + $0xc8] sm:$0xf]  ;;  %v252_v26 = vld [vmem:[%s5613_s28 + $0xd0] sm:$0xf] }
  0x20   : > { %223 = vst [vmem:[%s5618_s29 + $0x2c] sm:$0xf] %v222_v11  ;;  %v254_v27 = vld [vmem:[%s5613_s28 + $0xd8] sm:$0xf]  ;;  %v256_v28 = vld [vmem:[%s5613_s28 + $0xe0] sm:$0xf] }
  0x21   : > { %225 = vst [vmem:[%s5618_s29 + $0x30] sm:$0xf] %v224_v12  ;;  %v258_v29 = vld [vmem:[%s5613_s28 + $0xe8] sm:$0xf]  ;;  %v260_v30 = vld [vmem:[%s5613_s28 + $0xf0] sm:$0xf] }
  0x22   : > { %227 = vst [vmem:[%s5618_s29 + $0x34] sm:$0xf] %v226_v13  ;;  %v262_v31 = vld [vmem:[%s5613_s28 + $0xf8] sm:$0xf]  ;;  %v264_v32 = vld [vmem:[%s5613_s28 + $0x100] sm:$0xf] }
  0x23   : > { %229 = vst [vmem:[%s5618_s29 + $0x38] sm:$0xf] %v228_v14  ;;  %v266_v33 = vld [vmem:[%s5613_s28 + $0x108] sm:$0xf]  ;;  %v268_v34 = vld [vmem:[%s5613_s28 + $0x110] sm:$0xf] }
  0x24   : > { %231 = vst [vmem:[%s5618_s29 + $0x3c] sm:$0xf] %v230_v15  ;;  %v270_v35 = vld [vmem:[%s5613_s28 + $0x118] sm:$0xf]  ;;  %v272_v36 = vld [vmem:[%s5613_s28 + $0x120] sm:$0xf] }
  0x25   : > { %233 = vst [vmem:[%s5618_s29 + $0x40] sm:$0xf] %v232_v16  ;;  %v274_v37 = vld [vmem:[%s5613_s28 + $0x128] sm:$0xf]  ;;  %v276_v38 = vld [vmem:[%s5613_s28 + $0x130] sm:$0xf] }
  0x26   : > { %235 = vst [vmem:[%s5618_s29 + $0x44] sm:$0xf] %v234_v17  ;;  %v278_v39 = vld [vmem:[%s5613_s28 + $0x138] sm:$0xf]  ;;  %v280_v40 = vld [vmem:[%s5613_s28 + $0x140] sm:$0xf] }
  0x27   : > { %237 = vst [vmem:[%s5618_s29 + $0x48] sm:$0xf] %v236_v18  ;;  %v282_v41 = vld [vmem:[%s5613_s28 + $0x148] sm:$0xf]  ;;  %v284_v42 = vld [vmem:[%s5613_s28 + $0x150] sm:$0xf] }
  0x28   : > { %239 = vst [vmem:[%s5618_s29 + $0x4c] sm:$0xf] %v238_v19  ;;  %v286_v43 = vld [vmem:[%s5613_s28 + $0x158] sm:$0xf]  ;;  %v288_v44 = vld [vmem:[%s5613_s28 + $0x160] sm:$0xf] }
  0x29   : > { %241 = vst [vmem:[%s5618_s29 + $0x50] sm:$0xf] %v240_v20  ;;  %v290_v45 = vld [vmem:[%s5613_s28 + $0x168] sm:$0xf]  ;;  %v292_v46 = vld [vmem:[%s5613_s28 + $0x170] sm:$0xf] }
  0x2a   : > { %243 = vst [vmem:[%s5618_s29 + $0x54] sm:$0xf] %v242_v21  ;;  %v294_v47 = vld [vmem:[%s5613_s28 + $0x178] sm:$0xf]  ;;  %v296_v48 = vld [vmem:[%s5613_s28 + $0x180] sm:$0xf] }
  0x2b   : > { %245 = vst [vmem:[%s5618_s29 + $0x58] sm:$0xf] %v244_v22  ;;  %v298_v49 = vld [vmem:[%s5613_s28 + $0x188] sm:$0xf]  ;;  %v300_v50 = vld [vmem:[%s5613_s28 + $0x190] sm:$0xf] }
  0x2c   : > { %247 = vst [vmem:[%s5618_s29 + $0x5c] sm:$0xf] %v246_v23  ;;  %v302_v51 = vld [vmem:[%s5613_s28 + $0x198] sm:$0xf]  ;;  %v304_v52 = vld [vmem:[%s5613_s28 + $0x1a0] sm:$0xf] }
  0x2d   : > { %249 = vst [vmem:[%s5618_s29 + $0x60] sm:$0xf] %v248_v24  ;;  %v306_v53 = vld [vmem:[%s5613_s28 + $0x1a8] sm:$0xf]  ;;  %v308_v54 = vld [vmem:[%s5613_s28 + $0x1b0] sm:$0xf] }
  0x2e   : > { %251 = vst [vmem:[%s5618_s29 + $0x64] sm:$0xf] %v250_v25  ;;  %v310_v55 = vld [vmem:[%s5613_s28 + $0x1b8] sm:$0xf]  ;;  %v312_v56 = vld [vmem:[%s5613_s28 + $0x1c0] sm:$0xf] }
  0x2f   : > { %253 = vst [vmem:[%s5618_s29 + $0x68] sm:$0xf] %v252_v26  ;;  %v314_v57 = vld [vmem:[%s5613_s28 + $0x1c8] sm:$0xf]  ;;  %v316_v58 = vld [vmem:[%s5613_s28 + $0x1d0] sm:$0xf] }
  0x30   : > { %255 = vst [vmem:[%s5618_s29 + $0x6c] sm:$0xf] %v254_v27  ;;  %v318_v59 = vld [vmem:[%s5613_s28 + $0x1d8] sm:$0xf]  ;;  %v320_v60 = vld [vmem:[%s5613_s28 + $0x1e0] sm:$0xf] }
  0x31   : > { %257 = vst [vmem:[%s5618_s29 + $0x70] sm:$0xf] %v256_v28  ;;  %v322_v61 = vld [vmem:[%s5613_s28 + $0x1e8] sm:$0xf]  ;;  %v324_v62 = vld [vmem:[%s5613_s28 + $0x1f0] sm:$0xf] }
  0x32   : > { %259 = vst [vmem:[%s5618_s29 + $0x74] sm:$0xf] %v258_v29  ;;  %v326_v63 = vld [vmem:[%s5613_s28 + $0x1f8] sm:$0xf]  ;;  %v328_v0 = vld [vmem:[%s5613_s28 + $0x200] sm:$0xf] }
  0x33   : > { %261 = vst [vmem:[%s5618_s29 + $0x78] sm:$0xf] %v260_v30  ;;  %v330_v1 = vld [vmem:[%s5613_s28 + $0x208] sm:$0xf]  ;;  %v332_v2 = vld [vmem:[%s5613_s28 + $0x210] sm:$0xf] }
  0x34   : > { %263 = vst [vmem:[%s5618_s29 + $0x7c] sm:$0xf] %v262_v31  ;;  %v334_v3 = vld [vmem:[%s5613_s28 + $0x218] sm:$0xf]  ;;  %v336_v4 = vld [vmem:[%s5613_s28 + $0x220] sm:$0xf] }
  0x35   : > { %265 = vst [vmem:[%s5618_s29 + $0x80] sm:$0xf] %v264_v32  ;;  %v338_v5 = vld [vmem:[%s5613_s28 + $0x228] sm:$0xf]  ;;  %v340_v6 = vld [vmem:[%s5613_s28 + $0x230] sm:$0xf] }
  0x36   : > { %267 = vst [vmem:[%s5618_s29 + $0x84] sm:$0xf] %v266_v33  ;;  %v342_v7 = vld [vmem:[%s5613_s28 + $0x238] sm:$0xf]  ;;  %v344_v8 = vld [vmem:[%s5613_s28 + $0x240] sm:$0xf] }
  0x37   : > { %269 = vst [vmem:[%s5618_s29 + $0x88] sm:$0xf] %v268_v34  ;;  %v346_v9 = vld [vmem:[%s5613_s28 + $0x248] sm:$0xf]  ;;  %v348_v10 = vld [vmem:[%s5613_s28 + $0x250] sm:$0xf] }
  0x38   : > { %271 = vst [vmem:[%s5618_s29 + $0x8c] sm:$0xf] %v270_v35  ;;  %v350_v11 = vld [vmem:[%s5613_s28 + $0x258] sm:$0xf]  ;;  %v352_v12 = vld [vmem:[%s5613_s28 + $0x260] sm:$0xf] }
  0x39   : > { %273 = vst [vmem:[%s5618_s29 + $0x90] sm:$0xf] %v272_v36  ;;  %v354_v13 = vld [vmem:[%s5613_s28 + $0x268] sm:$0xf]  ;;  %v356_v14 = vld [vmem:[%s5613_s28 + $0x270] sm:$0xf] }
  0x3a   : > { %275 = vst [vmem:[%s5618_s29 + $0x94] sm:$0xf] %v274_v37  ;;  %v358_v15 = vld [vmem:[%s5613_s28 + $0x278] sm:$0xf]  ;;  %v360_v16 = vld [vmem:[%s5613_s28 + $0x280] sm:$0xf] }
  0x3b   : > { %277 = vst [vmem:[%s5618_s29 + $0x98] sm:$0xf] %v276_v38  ;;  %v362_v17 = vld [vmem:[%s5613_s28 + $0x288] sm:$0xf]  ;;  %v364_v18 = vld [vmem:[%s5613_s28 + $0x290] sm:$0xf] }
  0x3c   : > { %279 = vst [vmem:[%s5618_s29 + $0x9c] sm:$0xf] %v278_v39  ;;  %v366_v19 = vld [vmem:[%s5613_s28 + $0x298] sm:$0xf]  ;;  %v368_v20 = vld [vmem:[%s5613_s28 + $0x2a0] sm:$0xf] }
  0x3d   : > { %281 = vst [vmem:[%s5618_s29 + $0xa0] sm:$0xf] %v280_v40  ;;  %v370_v21 = vld [vmem:[%s5613_s28 + $0x2a8] sm:$0xf]  ;;  %v372_v22 = vld [vmem:[%s5613_s28 + $0x2b0] sm:$0xf] }
  0x3e   : > { %283 = vst [vmem:[%s5618_s29 + $0xa4] sm:$0xf] %v282_v41  ;;  %v374_v23 = vld [vmem:[%s5613_s28 + $0x2b8] sm:$0xf]  ;;  %v376_v24 = vld [vmem:[%s5613_s28 + $0x2c0] sm:$0xf] }
  0x3f   : > { %285 = vst [vmem:[%s5618_s29 + $0xa8] sm:$0xf] %v284_v42  ;;  %v378_v25 = vld [vmem:[%s5613_s28 + $0x2c8] sm:$0xf]  ;;  %v380_v26 = vld [vmem:[%s5613_s28 + $0x2d0] sm:$0xf] }
  0x40   : > { %287 = vst [vmem:[%s5618_s29 + $0xac] sm:$0xf] %v286_v43  ;;  %v382_v27 = vld [vmem:[%s5613_s28 + $0x2d8] sm:$0xf]  ;;  %v384_v28 = vld [vmem:[%s5613_s28 + $0x2e0] sm:$0xf] }
  0x41   : > { %289 = vst [vmem:[%s5618_s29 + $0xb0] sm:$0xf] %v288_v44  ;;  %v386_v29 = vld [vmem:[%s5613_s28 + $0x2e8] sm:$0xf]  ;;  %v388_v30 = vld [vmem:[%s5613_s28 + $0x2f0] sm:$0xf] }
  0x42   : > { %291 = vst [vmem:[%s5618_s29 + $0xb4] sm:$0xf] %v290_v45  ;;  %v390_v31 = vld [vmem:[%s5613_s28 + $0x2f8] sm:$0xf]  ;;  %v392_v32 = vld [vmem:[%s5613_s28 + $0x300] sm:$0xf] }
  0x43   : > { %293 = vst [vmem:[%s5618_s29 + $0xb8] sm:$0xf] %v292_v46  ;;  %v394_v33 = vld [vmem:[%s5613_s28 + $0x308] sm:$0xf]  ;;  %v396_v34 = vld [vmem:[%s5613_s28 + $0x310] sm:$0xf] }
  0x44   : > { %295 = vst [vmem:[%s5618_s29 + $0xbc] sm:$0xf] %v294_v47  ;;  %v398_v35 = vld [vmem:[%s5613_s28 + $0x318] sm:$0xf]  ;;  %v400_v36 = vld [vmem:[%s5613_s28 + $0x320] sm:$0xf] }
  0x45   : > { %297 = vst [vmem:[%s5618_s29 + $0xc0] sm:$0xf] %v296_v48  ;;  %v402_v37 = vld [vmem:[%s5613_s28 + $0x328] sm:$0xf]  ;;  %v404_v38 = vld [vmem:[%s5613_s28 + $0x330] sm:$0xf] }
  0x46   : > { %299 = vst [vmem:[%s5618_s29 + $0xc4] sm:$0xf] %v298_v49  ;;  %v406_v39 = vld [vmem:[%s5613_s28 + $0x338] sm:$0xf]  ;;  %v408_v40 = vld [vmem:[%s5613_s28 + $0x340] sm:$0xf] }
  0x47   : > { %301 = vst [vmem:[%s5618_s29 + $0xc8] sm:$0xf] %v300_v50  ;;  %v410_v41 = vld [vmem:[%s5613_s28 + $0x348] sm:$0xf]  ;;  %v412_v42 = vld [vmem:[%s5613_s28 + $0x350] sm:$0xf] }
  0x48   : > { %303 = vst [vmem:[%s5618_s29 + $0xcc] sm:$0xf] %v302_v51  ;;  %v414_v43 = vld [vmem:[%s5613_s28 + $0x358] sm:$0xf]  ;;  %v416_v44 = vld [vmem:[%s5613_s28 + $0x360] sm:$0xf] }
  0x49   : > { %305 = vst [vmem:[%s5618_s29 + $0xd0] sm:$0xf] %v304_v52  ;;  %v418_v45 = vld [vmem:[%s5613_s28 + $0x368] sm:$0xf]  ;;  %v420_v46 = vld [vmem:[%s5613_s28 + $0x370] sm:$0xf] }
  0x4a   : > { %307 = vst [vmem:[%s5618_s29 + $0xd4] sm:$0xf] %v306_v53  ;;  %v422_v47 = vld [vmem:[%s5613_s28 + $0x378] sm:$0xf]  ;;  %v424_v48 = vld [vmem:[%s5613_s28 + $0x380] sm:$0xf] }
  0x4b   : > { %309 = vst [vmem:[%s5618_s29 + $0xd8] sm:$0xf] %v308_v54  ;;  %v426_v49 = vld [vmem:[%s5613_s28 + $0x388] sm:$0xf]  ;;  %v428_v50 = vld [vmem:[%s5613_s28 + $0x390] sm:$0xf] }
  0x4c   : > { %311 = vst [vmem:[%s5618_s29 + $0xdc] sm:$0xf] %v310_v55  ;;  %v430_v51 = vld [vmem:[%s5613_s28 + $0x398] sm:$0xf]  ;;  %v432_v52 = vld [vmem:[%s5613_s28 + $0x3a0] sm:$0xf] }
  0x4d   : > { %313 = vst [vmem:[%s5618_s29 + $0xe0] sm:$0xf] %v312_v56  ;;  %v434_v53 = vld [vmem:[%s5613_s28 + $0x3a8] sm:$0xf]  ;;  %v436_v54 = vld [vmem:[%s5613_s28 + $0x3b0] sm:$0xf] }
  0x4e   : > { %315 = vst [vmem:[%s5618_s29 + $0xe4] sm:$0xf] %v314_v57  ;;  %v438_v55 = vld [vmem:[%s5613_s28 + $0x3b8] sm:$0xf]  ;;  %v440_v56 = vld [vmem:[%s5613_s28 + $0x3c0] sm:$0xf] }
  0x4f   : > { %317 = vst [vmem:[%s5618_s29 + $0xe8] sm:$0xf] %v316_v58  ;;  %v442_v57 = vld [vmem:[%s5613_s28 + $0x3c8] sm:$0xf]  ;;  %v444_v58 = vld [vmem:[%s5613_s28 + $0x3d0] sm:$0xf] }
  0x50   : > { %319 = vst [vmem:[%s5618_s29 + $0xec] sm:$0xf] %v318_v59  ;;  %v446_v59 = vld [vmem:[%s5613_s28 + $0x3d8] sm:$0xf] }
  0x51   : > { %321 = vst [vmem:[%s5618_s29 + $0xf0] sm:$0xf] %v320_v60  ;;  %v448_v60 = vld [vmem:[%s5613_s28 + $0x3e0] sm:$0xf] }
  0x52   : > { %323 = vst [vmem:[%s5618_s29 + $0xf4] sm:$0xf] %v322_v61  ;;  %v450_v61 = vld [vmem:[%s5613_s28 + $0x3e8] sm:$0xf] }
  0x53   : > { %325 = vst [vmem:[%s5618_s29 + $0xf8] sm:$0xf] %v324_v62  ;;  %v452_v62 = vld [vmem:[%s5613_s28 + $0x3f0] sm:$0xf] }
  0x54   : > { %327 = vst [vmem:[%s5618_s29 + $0xfc] sm:$0xf] %v326_v63  ;;  %v454_v63 = vld [vmem:[%s5613_s28 + $0x3f8] sm:$0xf] }
  0x55   : > { %329 = vst [vmem:[%s5618_s29 + $0x100] sm:$0xf] %v328_v0  ;;  %v456_v0 = vld [vmem:[%s5613_s28 + $0x400] sm:$0xf] }
  0x56   : > { %331 = vst [vmem:[%s5618_s29 + $0x104] sm:$0xf] %v330_v1  ;;  %v458_v1 = vld [vmem:[%s5613_s28 + $0x408] sm:$0xf] }
  0x57   : > { %333 = vst [vmem:[%s5618_s29 + $0x108] sm:$0xf] %v332_v2  ;;  %v460_v2 = vld [vmem:[%s5613_s28 + $0x410] sm:$0xf] }
  0x58   : > { %335 = vst [vmem:[%s5618_s29 + $0x10c] sm:$0xf] %v334_v3  ;;  %v462_v3 = vld [vmem:[%s5613_s28 + $0x418] sm:$0xf] }
  0x59   : > { %337 = vst [vmem:[%s5618_s29 + $0x110] sm:$0xf] %v336_v4  ;;  %v464_v4 = vld [vmem:[%s5613_s28 + $0x420] sm:$0xf] }
  0x5a   : > { %339 = vst [vmem:[%s5618_s29 + $0x114] sm:$0xf] %v338_v5  ;;  %v466_v5 = vld [vmem:[%s5613_s28 + $0x428] sm:$0xf] }
  0x5b   : > { %341 = vst [vmem:[%s5618_s29 + $0x118] sm:$0xf] %v340_v6  ;;  %v468_v6 = vld [vmem:[%s5613_s28 + $0x430] sm:$0xf] }
  0x5c   : > { %343 = vst [vmem:[%s5618_s29 + $0x11c] sm:$0xf] %v342_v7  ;;  %v470_v7 = vld [vmem:[%s5613_s28 + $0x438] sm:$0xf] }
  0x5d   : > { %345 = vst [vmem:[%s5618_s29 + $0x120] sm:$0xf] %v344_v8  ;;  %v472_v8 = vld [vmem:[%s5613_s28 + $0x440] sm:$0xf] }
  0x5e   : > { %347 = vst [vmem:[%s5618_s29 + $0x124] sm:$0xf] %v346_v9  ;;  %v474_v9 = vld [vmem:[%s5613_s28 + $0x448] sm:$0xf] }
  0x5f   : > { %349 = vst [vmem:[%s5618_s29 + $0x128] sm:$0xf] %v348_v10  ;;  %v476_v10 = vld [vmem:[%s5613_s28 + $0x450] sm:$0xf] }
  0x60   : > { %351 = vst [vmem:[%s5618_s29 + $0x12c] sm:$0xf] %v350_v11  ;;  %v478_v11 = vld [vmem:[%s5613_s28 + $0x458] sm:$0xf] }
  0x61   : > { %353 = vst [vmem:[%s5618_s29 + $0x130] sm:$0xf] %v352_v12  ;;  %v480_v12 = vld [vmem:[%s5613_s28 + $0x460] sm:$0xf] }
  0x62   : > { %355 = vst [vmem:[%s5618_s29 + $0x134] sm:$0xf] %v354_v13  ;;  %v482_v13 = vld [vmem:[%s5613_s28 + $0x468] sm:$0xf] }
  0x63   : > { %357 = vst [vmem:[%s5618_s29 + $0x138] sm:$0xf] %v356_v14  ;;  %v484_v14 = vld [vmem:[%s5613_s28 + $0x470] sm:$0xf] }
  0x64   : > { %359 = vst [vmem:[%s5618_s29 + $0x13c] sm:$0xf] %v358_v15  ;;  %v486_v15 = vld [vmem:[%s5613_s28 + $0x478] sm:$0xf] }
  0x65   : > { %361 = vst [vmem:[%s5618_s29 + $0x140] sm:$0xf] %v360_v16  ;;  %v488_v16 = vld [vmem:[%s5613_s28 + $0x480] sm:$0xf] }
  0x66   : > { %363 = vst [vmem:[%s5618_s29 + $0x144] sm:$0xf] %v362_v17  ;;  %v490_v17 = vld [vmem:[%s5613_s28 + $0x488] sm:$0xf] }
  0x67   : > { %365 = vst [vmem:[%s5618_s29 + $0x148] sm:$0xf] %v364_v18  ;;  %v492_v18 = vld [vmem:[%s5613_s28 + $0x490] sm:$0xf] }
  0x68   : > { %367 = vst [vmem:[%s5618_s29 + $0x14c] sm:$0xf] %v366_v19  ;;  %v494_v19 = vld [vmem:[%s5613_s28 + $0x498] sm:$0xf] }
  0x69   : > { %369 = vst [vmem:[%s5618_s29 + $0x150] sm:$0xf] %v368_v20  ;;  %v496_v20 = vld [vmem:[%s5613_s28 + $0x4a0] sm:$0xf] }
  0x6a   : > { %371 = vst [vmem:[%s5618_s29 + $0x154] sm:$0xf] %v370_v21  ;;  %v498_v21 = vld [vmem:[%s5613_s28 + $0x4a8] sm:$0xf] }
  0x6b   : > { %373 = vst [vmem:[%s5618_s29 + $0x158] sm:$0xf] %v372_v22  ;;  %v500_v22 = vld [vmem:[%s5613_s28 + $0x4b0] sm:$0xf] }
  0x6c   : > { %375 = vst [vmem:[%s5618_s29 + $0x15c] sm:$0xf] %v374_v23  ;;  %v502_v23 = vld [vmem:[%s5613_s28 + $0x4b8] sm:$0xf] }
  0x6d   : > { %377 = vst [vmem:[%s5618_s29 + $0x160] sm:$0xf] %v376_v24  ;;  %v504_v24 = vld [vmem:[%s5613_s28 + $0x4c0] sm:$0xf] }
  0x6e   : > { %379 = vst [vmem:[%s5618_s29 + $0x164] sm:$0xf] %v378_v25  ;;  %v506_v25 = vld [vmem:[%s5613_s28 + $0x4c8] sm:$0xf] }
  0x6f   : > { %381 = vst [vmem:[%s5618_s29 + $0x168] sm:$0xf] %v380_v26  ;;  %v508_v26 = vld [vmem:[%s5613_s28 + $0x4d0] sm:$0xf] }
  0x70   : > { %383 = vst [vmem:[%s5618_s29 + $0x16c] sm:$0xf] %v382_v27  ;;  %v510_v27 = vld [vmem:[%s5613_s28 + $0x4d8] sm:$0xf] }
  0x71   : > { %385 = vst [vmem:[%s5618_s29 + $0x170] sm:$0xf] %v384_v28  ;;  %v512_v28 = vld [vmem:[%s5613_s28 + $0x4e0] sm:$0xf] }
  0x72   : > { %387 = vst [vmem:[%s5618_s29 + $0x174] sm:$0xf] %v386_v29  ;;  %v514_v29 = vld [vmem:[%s5613_s28 + $0x4e8] sm:$0xf] }
  0x73   : > { %389 = vst [vmem:[%s5618_s29 + $0x178] sm:$0xf] %v388_v30  ;;  %v516_v30 = vld [vmem:[%s5613_s28 + $0x4f0] sm:$0xf] }
  0x74   : > { %391 = vst [vmem:[%s5618_s29 + $0x17c] sm:$0xf] %v390_v31  ;;  %v518_v31 = vld [vmem:[%s5613_s28 + $0x4f8] sm:$0xf] }
  0x75   : > { %393 = vst [vmem:[%s5618_s29 + $0x180] sm:$0xf] %v392_v32  ;;  %v520_v32 = vld [vmem:[%s5613_s28 + $0x500] sm:$0xf] }
  0x76   : > { %395 = vst [vmem:[%s5618_s29 + $0x184] sm:$0xf] %v394_v33  ;;  %v522_v33 = vld [vmem:[%s5613_s28 + $0x508] sm:$0xf] }
  0x77   : > { %397 = vst [vmem:[%s5618_s29 + $0x188] sm:$0xf] %v396_v34  ;;  %v524_v34 = vld [vmem:[%s5613_s28 + $0x510] sm:$0xf] }
  0x78   : > { %399 = vst [vmem:[%s5618_s29 + $0x18c] sm:$0xf] %v398_v35  ;;  %v526_v35 = vld [vmem:[%s5613_s28 + $0x518] sm:$0xf] }
  0x79   : > { %401 = vst [vmem:[%s5618_s29 + $0x190] sm:$0xf] %v400_v36  ;;  %v528_v36 = vld [vmem:[%s5613_s28 + $0x520] sm:$0xf] }
  0x7a   : > { %403 = vst [vmem:[%s5618_s29 + $0x194] sm:$0xf] %v402_v37  ;;  %v530_v37 = vld [vmem:[%s5613_s28 + $0x528] sm:$0xf] }
  0x7b   : > { %405 = vst [vmem:[%s5618_s29 + $0x198] sm:$0xf] %v404_v38  ;;  %v532_v38 = vld [vmem:[%s5613_s28 + $0x530] sm:$0xf] }
  0x7c   : > { %407 = vst [vmem:[%s5618_s29 + $0x19c] sm:$0xf] %v406_v39  ;;  %v534_v39 = vld [vmem:[%s5613_s28 + $0x538] sm:$0xf] }
  0x7d   : > { %409 = vst [vmem:[%s5618_s29 + $0x1a0] sm:$0xf] %v408_v40  ;;  %v536_v40 = vld [vmem:[%s5613_s28 + $0x540] sm:$0xf] }
  0x7e   : > { %411 = vst [vmem:[%s5618_s29 + $0x1a4] sm:$0xf] %v410_v41  ;;  %v538_v41 = vld [vmem:[%s5613_s28 + $0x548] sm:$0xf] }
  0x7f   : > { %413 = vst [vmem:[%s5618_s29 + $0x1a8] sm:$0xf] %v412_v42  ;;  %v540_v42 = vld [vmem:[%s5613_s28 + $0x550] sm:$0xf] }
  0x80   : > { %415 = vst [vmem:[%s5618_s29 + $0x1ac] sm:$0xf] %v414_v43  ;;  %v542_v43 = vld [vmem:[%s5613_s28 + $0x558] sm:$0xf] }
  0x81   : > { %417 = vst [vmem:[%s5618_s29 + $0x1b0] sm:$0xf] %v416_v44  ;;  %v544_v44 = vld [vmem:[%s5613_s28 + $0x560] sm:$0xf] }
  0x82   : > { %419 = vst [vmem:[%s5618_s29 + $0x1b4] sm:$0xf] %v418_v45  ;;  %v546_v45 = vld [vmem:[%s5613_s28 + $0x568] sm:$0xf] }
  0x83   : > { %421 = vst [vmem:[%s5618_s29 + $0x1b8] sm:$0xf] %v420_v46  ;;  %v548_v46 = vld [vmem:[%s5613_s28 + $0x570] sm:$0xf] }
  0x84   : > { %423 = vst [vmem:[%s5618_s29 + $0x1bc] sm:$0xf] %v422_v47  ;;  %v550_v47 = vld [vmem:[%s5613_s28 + $0x578] sm:$0xf] }
  0x85   : > { %425 = vst [vmem:[%s5618_s29 + $0x1c0] sm:$0xf] %v424_v48  ;;  %v552_v48 = vld [vmem:[%s5613_s28 + $0x580] sm:$0xf] }
  0x86   : > { %427 = vst [vmem:[%s5618_s29 + $0x1c4] sm:$0xf] %v426_v49  ;;  %v554_v49 = vld [vmem:[%s5613_s28 + $0x588] sm:$0xf] }
  0x87   : > { %429 = vst [vmem:[%s5618_s29 + $0x1c8] sm:$0xf] %v428_v50  ;;  %v556_v50 = vld [vmem:[%s5613_s28 + $0x590] sm:$0xf] }
  0x88   : > { %431 = vst [vmem:[%s5618_s29 + $0x1cc] sm:$0xf] %v430_v51  ;;  %v558_v51 = vld [vmem:[%s5613_s28 + $0x598] sm:$0xf] }
  0x89   : > { %433 = vst [vmem:[%s5618_s29 + $0x1d0] sm:$0xf] %v432_v52  ;;  %v560_v52 = vld [vmem:[%s5613_s28 + $0x5a0] sm:$0xf] }
  0x8a   : > { %435 = vst [vmem:[%s5618_s29 + $0x1d4] sm:$0xf] %v434_v53  ;;  %v562_v53 = vld [vmem:[%s5613_s28 + $0x5a8] sm:$0xf] }
  0x8b   : > { %437 = vst [vmem:[%s5618_s29 + $0x1d8] sm:$0xf] %v436_v54  ;;  %v564_v54 = vld [vmem:[%s5613_s28 + $0x5b0] sm:$0xf] }
  0x8c   : > { %439 = vst [vmem:[%s5618_s29 + $0x1dc] sm:$0xf] %v438_v55  ;;  %v566_v55 = vld [vmem:[%s5613_s28 + $0x5b8] sm:$0xf] }
  0x8d   : > { %441 = vst [vmem:[%s5618_s29 + $0x1e0] sm:$0xf] %v440_v56  ;;  %v568_v56 = vld [vmem:[%s5613_s28 + $0x5c0] sm:$0xf] }
  0x8e   : > { %443 = vst [vmem:[%s5618_s29 + $0x1e4] sm:$0xf] %v442_v57  ;;  %v570_v57 = vld [vmem:[%s5613_s28 + $0x5c8] sm:$0xf] }
  0x8f   : > { %445 = vst [vmem:[%s5618_s29 + $0x1e8] sm:$0xf] %v444_v58  ;;  %v572_v58 = vld [vmem:[%s5613_s28 + $0x5d0] sm:$0xf] }
  0x90   : > { %447 = vst [vmem:[%s5618_s29 + $0x1ec] sm:$0xf] %v446_v59  ;;  %v574_v59 = vld [vmem:[%s5613_s28 + $0x5d8] sm:$0xf] }
  0x91   : > { %449 = vst [vmem:[%s5618_s29 + $0x1f0] sm:$0xf] %v448_v60  ;;  %v576_v60 = vld [vmem:[%s5613_s28 + $0x5e0] sm:$0xf] }
  0x92   : > { %451 = vst [vmem:[%s5618_s29 + $0x1f4] sm:$0xf] %v450_v61  ;;  %v578_v61 = vld [vmem:[%s5613_s28 + $0x5e8] sm:$0xf] }
  0x93   : > { %453 = vst [vmem:[%s5618_s29 + $0x1f8] sm:$0xf] %v452_v62  ;;  %v580_v62 = vld [vmem:[%s5613_s28 + $0x5f0] sm:$0xf] }
  0x94   : > { %455 = vst [vmem:[%s5618_s29 + $0x1fc] sm:$0xf] %v454_v63  ;;  %v582_v63 = vld [vmem:[%s5613_s28 + $0x5f8] sm:$0xf] }
  0x95   : > { %457 = vst [vmem:[%s5618_s29 + $0x200] sm:$0xf] %v456_v0  ;;  %v584_v0 = vld [vmem:[%s5613_s28 + $0x600] sm:$0xf] }
  0x96   : > { %459 = vst [vmem:[%s5618_s29 + $0x204] sm:$0xf] %v458_v1  ;;  %v586_v1 = vld [vmem:[%s5613_s28 + $0x608] sm:$0xf] }
  0x97   : > { %461 = vst [vmem:[%s5618_s29 + $0x208] sm:$0xf] %v460_v2  ;;  %v588_v2 = vld [vmem:[%s5613_s28 + $0x610] sm:$0xf] }
  0x98   : > { %463 = vst [vmem:[%s5618_s29 + $0x20c] sm:$0xf] %v462_v3  ;;  %v590_v3 = vld [vmem:[%s5613_s28 + $0x618] sm:$0xf] }
  0x99   : > { %465 = vst [vmem:[%s5618_s29 + $0x210] sm:$0xf] %v464_v4  ;;  %v592_v4 = vld [vmem:[%s5613_s28 + $0x620] sm:$0xf] }
  0x9a   : > { %467 = vst [vmem:[%s5618_s29 + $0x214] sm:$0xf] %v466_v5  ;;  %v594_v5 = vld [vmem:[%s5613_s28 + $0x628] sm:$0xf] }
  0x9b   : > { %469 = vst [vmem:[%s5618_s29 + $0x218] sm:$0xf] %v468_v6  ;;  %v596_v6 = vld [vmem:[%s5613_s28 + $0x630] sm:$0xf] }
  0x9c   : > { %471 = vst [vmem:[%s5618_s29 + $0x21c] sm:$0xf] %v470_v7  ;;  %v598_v7 = vld [vmem:[%s5613_s28 + $0x638] sm:$0xf] }
  0x9d   : > { %473 = vst [vmem:[%s5618_s29 + $0x220] sm:$0xf] %v472_v8  ;;  %v600_v8 = vld [vmem:[%s5613_s28 + $0x640] sm:$0xf] }
  0x9e   : > { %475 = vst [vmem:[%s5618_s29 + $0x224] sm:$0xf] %v474_v9  ;;  %v602_v9 = vld [vmem:[%s5613_s28 + $0x648] sm:$0xf] }
  0x9f   : > { %477 = vst [vmem:[%s5618_s29 + $0x228] sm:$0xf] %v476_v10  ;;  %v604_v10 = vld [vmem:[%s5613_s28 + $0x650] sm:$0xf] }
  0xa0   : > { %479 = vst [vmem:[%s5618_s29 + $0x22c] sm:$0xf] %v478_v11  ;;  %v606_v11 = vld [vmem:[%s5613_s28 + $0x658] sm:$0xf] }
  0xa1   : > { %481 = vst [vmem:[%s5618_s29 + $0x230] sm:$0xf] %v480_v12  ;;  %v608_v12 = vld [vmem:[%s5613_s28 + $0x660] sm:$0xf] }
  0xa2   : > { %483 = vst [vmem:[%s5618_s29 + $0x234] sm:$0xf] %v482_v13  ;;  %v610_v13 = vld [vmem:[%s5613_s28 + $0x668] sm:$0xf] }
  0xa3   : > { %485 = vst [vmem:[%s5618_s29 + $0x238] sm:$0xf] %v484_v14  ;;  %v612_v14 = vld [vmem:[%s5613_s28 + $0x670] sm:$0xf] }
  0xa4   : > { %487 = vst [vmem:[%s5618_s29 + $0x23c] sm:$0xf] %v486_v15  ;;  %v614_v15 = vld [vmem:[%s5613_s28 + $0x678] sm:$0xf] }
  0xa5   : > { %489 = vst [vmem:[%s5618_s29 + $0x240] sm:$0xf] %v488_v16  ;;  %v616_v16 = vld [vmem:[%s5613_s28 + $0x680] sm:$0xf] }
  0xa6   : > { %491 = vst [vmem:[%s5618_s29 + $0x244] sm:$0xf] %v490_v17  ;;  %v618_v17 = vld [vmem:[%s5613_s28 + $0x688] sm:$0xf] }
  0xa7   : > { %493 = vst [vmem:[%s5618_s29 + $0x248] sm:$0xf] %v492_v18  ;;  %v620_v18 = vld [vmem:[%s5613_s28 + $0x690] sm:$0xf] }
  0xa8   : > { %495 = vst [vmem:[%s5618_s29 + $0x24c] sm:$0xf] %v494_v19  ;;  %v622_v19 = vld [vmem:[%s5613_s28 + $0x698] sm:$0xf] }
  0xa9   : > { %497 = vst [vmem:[%s5618_s29 + $0x250] sm:$0xf] %v496_v20  ;;  %v624_v20 = vld [vmem:[%s5613_s28 + $0x6a0] sm:$0xf] }
  0xaa   : > { %499 = vst [vmem:[%s5618_s29 + $0x254] sm:$0xf] %v498_v21  ;;  %v626_v21 = vld [vmem:[%s5613_s28 + $0x6a8] sm:$0xf] }
  0xab   : > { %501 = vst [vmem:[%s5618_s29 + $0x258] sm:$0xf] %v500_v22  ;;  %v628_v22 = vld [vmem:[%s5613_s28 + $0x6b0] sm:$0xf] }
  0xac   : > { %503 = vst [vmem:[%s5618_s29 + $0x25c] sm:$0xf] %v502_v23  ;;  %v630_v23 = vld [vmem:[%s5613_s28 + $0x6b8] sm:$0xf] }
  0xad   : > { %505 = vst [vmem:[%s5618_s29 + $0x260] sm:$0xf] %v504_v24  ;;  %v632_v24 = vld [vmem:[%s5613_s28 + $0x6c0] sm:$0xf] }
  0xae   : > { %507 = vst [vmem:[%s5618_s29 + $0x264] sm:$0xf] %v506_v25  ;;  %v634_v25 = vld [vmem:[%s5613_s28 + $0x6c8] sm:$0xf] }
  0xaf   : > { %509 = vst [vmem:[%s5618_s29 + $0x268] sm:$0xf] %v508_v26  ;;  %v636_v26 = vld [vmem:[%s5613_s28 + $0x6d0] sm:$0xf] }
  0xb0   : > { %511 = vst [vmem:[%s5618_s29 + $0x26c] sm:$0xf] %v510_v27  ;;  %v638_v27 = vld [vmem:[%s5613_s28 + $0x6d8] sm:$0xf] }
  0xb1   : > { %513 = vst [vmem:[%s5618_s29 + $0x270] sm:$0xf] %v512_v28  ;;  %v640_v28 = vld [vmem:[%s5613_s28 + $0x6e0] sm:$0xf] }
  0xb2   : > { %515 = vst [vmem:[%s5618_s29 + $0x274] sm:$0xf] %v514_v29  ;;  %v642_v29 = vld [vmem:[%s5613_s28 + $0x6e8] sm:$0xf] }
  0xb3   : > { %517 = vst [vmem:[%s5618_s29 + $0x278] sm:$0xf] %v516_v30  ;;  %v644_v30 = vld [vmem:[%s5613_s28 + $0x6f0] sm:$0xf] }
  0xb4   : > { %519 = vst [vmem:[%s5618_s29 + $0x27c] sm:$0xf] %v518_v31  ;;  %v646_v31 = vld [vmem:[%s5613_s28 + $0x6f8] sm:$0xf] }
  0xb5   : > { %521 = vst [vmem:[%s5618_s29 + $0x280] sm:$0xf] %v520_v32  ;;  %v648_v32 = vld [vmem:[%s5613_s28 + $0x700] sm:$0xf] }
  0xb6   : > { %523 = vst [vmem:[%s5618_s29 + $0x284] sm:$0xf] %v522_v33  ;;  %v650_v33 = vld [vmem:[%s5613_s28 + $0x708] sm:$0xf] }
  0xb7   : > { %525 = vst [vmem:[%s5618_s29 + $0x288] sm:$0xf] %v524_v34  ;;  %v652_v34 = vld [vmem:[%s5613_s28 + $0x710] sm:$0xf] }
  0xb8   : > { %527 = vst [vmem:[%s5618_s29 + $0x28c] sm:$0xf] %v526_v35  ;;  %v654_v35 = vld [vmem:[%s5613_s28 + $0x718] sm:$0xf] }
  0xb9   : > { %529 = vst [vmem:[%s5618_s29 + $0x290] sm:$0xf] %v528_v36  ;;  %v656_v36 = vld [vmem:[%s5613_s28 + $0x720] sm:$0xf] }
  0xba   : > { %531 = vst [vmem:[%s5618_s29 + $0x294] sm:$0xf] %v530_v37  ;;  %v658_v37 = vld [vmem:[%s5613_s28 + $0x728] sm:$0xf] }
  0xbb   : > { %533 = vst [vmem:[%s5618_s29 + $0x298] sm:$0xf] %v532_v38  ;;  %v660_v38 = vld [vmem:[%s5613_s28 + $0x730] sm:$0xf] }
  0xbc   : > { %535 = vst [vmem:[%s5618_s29 + $0x29c] sm:$0xf] %v534_v39  ;;  %v662_v39 = vld [vmem:[%s5613_s28 + $0x738] sm:$0xf] }
  0xbd   : > { %537 = vst [vmem:[%s5618_s29 + $0x2a0] sm:$0xf] %v536_v40  ;;  %v664_v40 = vld [vmem:[%s5613_s28 + $0x740] sm:$0xf] }
  0xbe   : > { %539 = vst [vmem:[%s5618_s29 + $0x2a4] sm:$0xf] %v538_v41  ;;  %v666_v41 = vld [vmem:[%s5613_s28 + $0x748] sm:$0xf] }
  0xbf   : > { %541 = vst [vmem:[%s5618_s29 + $0x2a8] sm:$0xf] %v540_v42  ;;  %v668_v42 = vld [vmem:[%s5613_s28 + $0x750] sm:$0xf] }
  0xc0   : > { %543 = vst [vmem:[%s5618_s29 + $0x2ac] sm:$0xf] %v542_v43  ;;  %v670_v43 = vld [vmem:[%s5613_s28 + $0x758] sm:$0xf] }
  0xc1   : > { %545 = vst [vmem:[%s5618_s29 + $0x2b0] sm:$0xf] %v544_v44  ;;  %v672_v44 = vld [vmem:[%s5613_s28 + $0x760] sm:$0xf] }
  0xc2   : > { %547 = vst [vmem:[%s5618_s29 + $0x2b4] sm:$0xf] %v546_v45  ;;  %v674_v45 = vld [vmem:[%s5613_s28 + $0x768] sm:$0xf] }
  0xc3   : > { %549 = vst [vmem:[%s5618_s29 + $0x2b8] sm:$0xf] %v548_v46  ;;  %v676_v46 = vld [vmem:[%s5613_s28 + $0x770] sm:$0xf] }
  0xc4   : > { %551 = vst [vmem:[%s5618_s29 + $0x2bc] sm:$0xf] %v550_v47  ;;  %v678_v47 = vld [vmem:[%s5613_s28 + $0x778] sm:$0xf] }
  0xc5   : > { %553 = vst [vmem:[%s5618_s29 + $0x2c0] sm:$0xf] %v552_v48  ;;  %v680_v48 = vld [vmem:[%s5613_s28 + $0x780] sm:$0xf] }
  0xc6   : > { %555 = vst [vmem:[%s5618_s29 + $0x2c4] sm:$0xf] %v554_v49  ;;  %v682_v49 = vld [vmem:[%s5613_s28 + $0x788] sm:$0xf] }
  0xc7   : > { %557 = vst [vmem:[%s5618_s29 + $0x2c8] sm:$0xf] %v556_v50  ;;  %v684_v50 = vld [vmem:[%s5613_s28 + $0x790] sm:$0xf] }
  0xc8   : > { %559 = vst [vmem:[%s5618_s29 + $0x2cc] sm:$0xf] %v558_v51  ;;  %v686_v51 = vld [vmem:[%s5613_s28 + $0x798] sm:$0xf] }
  0xc9   : > { %561 = vst [vmem:[%s5618_s29 + $0x2d0] sm:$0xf] %v560_v52  ;;  %v688_v52 = vld [vmem:[%s5613_s28 + $0x7a0] sm:$0xf] }
  0xca   : > { %563 = vst [vmem:[%s5618_s29 + $0x2d4] sm:$0xf] %v562_v53  ;;  %v690_v53 = vld [vmem:[%s5613_s28 + $0x7a8] sm:$0xf] }
  0xcb   : > { %565 = vst [vmem:[%s5618_s29 + $0x2d8] sm:$0xf] %v564_v54  ;;  %v692_v54 = vld [vmem:[%s5613_s28 + $0x7b0] sm:$0xf] }
  0xcc   : > { %567 = vst [vmem:[%s5618_s29 + $0x2dc] sm:$0xf] %v566_v55  ;;  %v694_v55 = vld [vmem:[%s5613_s28 + $0x7b8] sm:$0xf] }
  0xcd   : > { %569 = vst [vmem:[%s5618_s29 + $0x2e0] sm:$0xf] %v568_v56  ;;  %v696_v56 = vld [vmem:[%s5613_s28 + $0x7c0] sm:$0xf] }
  0xce   : > { %571 = vst [vmem:[%s5618_s29 + $0x2e4] sm:$0xf] %v570_v57  ;;  %v698_v57 = vld [vmem:[%s5613_s28 + $0x7c8] sm:$0xf] }
  0xcf   : > { %573 = vst [vmem:[%s5618_s29 + $0x2e8] sm:$0xf] %v572_v58  ;;  %v700_v58 = vld [vmem:[%s5613_s28 + $0x7d0] sm:$0xf] }
  0xd0   : > { %575 = vst [vmem:[%s5618_s29 + $0x2ec] sm:$0xf] %v574_v59  ;;  %v702_v59 = vld [vmem:[%s5613_s28 + $0x7d8] sm:$0xf] }
  0xd1   : > { %577 = vst [vmem:[%s5618_s29 + $0x2f0] sm:$0xf] %v576_v60  ;;  %v704_v60 = vld [vmem:[%s5613_s28 + $0x7e0] sm:$0xf] }
  0xd2   : > { %579 = vst [vmem:[%s5618_s29 + $0x2f4] sm:$0xf] %v578_v61  ;;  %v706_v61 = vld [vmem:[%s5613_s28 + $0x7e8] sm:$0xf] }
  0xd3   : > { %581 = vst [vmem:[%s5618_s29 + $0x2f8] sm:$0xf] %v580_v62  ;;  %v708_v62 = vld [vmem:[%s5613_s28 + $0x7f0] sm:$0xf] }
  0xd4   : > { %583 = vst [vmem:[%s5618_s29 + $0x2fc] sm:$0xf] %v582_v63  ;;  %v710_v63 = vld [vmem:[%s5613_s28 + $0x7f8] sm:$0xf] }
  0xd5   : > { %585 = vst [vmem:[%s5618_s29 + $0x300] sm:$0xf] %v584_v0  ;;  %v712_v0 = vld [vmem:[%s5613_s28 + $0x800] sm:$0xf] }
  0xd6   : > { %587 = vst [vmem:[%s5618_s29 + $0x304] sm:$0xf] %v586_v1  ;;  %v714_v1 = vld [vmem:[%s5613_s28 + $0x808] sm:$0xf] }
  0xd7   : > { %589 = vst [vmem:[%s5618_s29 + $0x308] sm:$0xf] %v588_v2  ;;  %v716_v2 = vld [vmem:[%s5613_s28 + $0x810] sm:$0xf] }
  0xd8   : > { %591 = vst [vmem:[%s5618_s29 + $0x30c] sm:$0xf] %v590_v3  ;;  %v718_v3 = vld [vmem:[%s5613_s28 + $0x818] sm:$0xf] }
  0xd9   : > { %593 = vst [vmem:[%s5618_s29 + $0x310] sm:$0xf] %v592_v4  ;;  %v720_v4 = vld [vmem:[%s5613_s28 + $0x820] sm:$0xf] }
  0xda   : > { %595 = vst [vmem:[%s5618_s29 + $0x314] sm:$0xf] %v594_v5  ;;  %v722_v5 = vld [vmem:[%s5613_s28 + $0x828] sm:$0xf] }
  0xdb   : > { %597 = vst [vmem:[%s5618_s29 + $0x318] sm:$0xf] %v596_v6  ;;  %v724_v6 = vld [vmem:[%s5613_s28 + $0x830] sm:$0xf] }
  0xdc   : > { %599 = vst [vmem:[%s5618_s29 + $0x31c] sm:$0xf] %v598_v7  ;;  %v726_v7 = vld [vmem:[%s5613_s28 + $0x838] sm:$0xf] }
  0xdd   : > { %601 = vst [vmem:[%s5618_s29 + $0x320] sm:$0xf] %v600_v8  ;;  %v728_v8 = vld [vmem:[%s5613_s28 + $0x840] sm:$0xf] }
  0xde   : > { %603 = vst [vmem:[%s5618_s29 + $0x324] sm:$0xf] %v602_v9  ;;  %v730_v9 = vld [vmem:[%s5613_s28 + $0x848] sm:$0xf] }
  0xdf   : > { %605 = vst [vmem:[%s5618_s29 + $0x328] sm:$0xf] %v604_v10  ;;  %v732_v10 = vld [vmem:[%s5613_s28 + $0x850] sm:$0xf] }
  0xe0   : > { %607 = vst [vmem:[%s5618_s29 + $0x32c] sm:$0xf] %v606_v11  ;;  %v734_v11 = vld [vmem:[%s5613_s28 + $0x858] sm:$0xf] }
  0xe1   : > { %609 = vst [vmem:[%s5618_s29 + $0x330] sm:$0xf] %v608_v12  ;;  %v736_v12 = vld [vmem:[%s5613_s28 + $0x860] sm:$0xf] }
  0xe2   : > { %611 = vst [vmem:[%s5618_s29 + $0x334] sm:$0xf] %v610_v13  ;;  %v738_v13 = vld [vmem:[%s5613_s28 + $0x868] sm:$0xf] }
  0xe3   : > { %613 = vst [vmem:[%s5618_s29 + $0x338] sm:$0xf] %v612_v14  ;;  %v740_v14 = vld [vmem:[%s5613_s28 + $0x870] sm:$0xf] }
  0xe4   : > { %615 = vst [vmem:[%s5618_s29 + $0x33c] sm:$0xf] %v614_v15  ;;  %v742_v15 = vld [vmem:[%s5613_s28 + $0x878] sm:$0xf] }
  0xe5   : > { %617 = vst [vmem:[%s5618_s29 + $0x340] sm:$0xf] %v616_v16  ;;  %v744_v16 = vld [vmem:[%s5613_s28 + $0x880] sm:$0xf] }
  0xe6   : > { %619 = vst [vmem:[%s5618_s29 + $0x344] sm:$0xf] %v618_v17  ;;  %v746_v17 = vld [vmem:[%s5613_s28 + $0x888] sm:$0xf] }
  0xe7   : > { %621 = vst [vmem:[%s5618_s29 + $0x348] sm:$0xf] %v620_v18  ;;  %v748_v18 = vld [vmem:[%s5613_s28 + $0x890] sm:$0xf] }
  0xe8   : > { %623 = vst [vmem:[%s5618_s29 + $0x34c] sm:$0xf] %v622_v19  ;;  %v750_v19 = vld [vmem:[%s5613_s28 + $0x898] sm:$0xf] }
  0xe9   : > { %625 = vst [vmem:[%s5618_s29 + $0x350] sm:$0xf] %v624_v20  ;;  %v752_v20 = vld [vmem:[%s5613_s28 + $0x8a0] sm:$0xf] }
  0xea   : > { %627 = vst [vmem:[%s5618_s29 + $0x354] sm:$0xf] %v626_v21  ;;  %v754_v21 = vld [vmem:[%s5613_s28 + $0x8a8] sm:$0xf] }
  0xeb   : > { %629 = vst [vmem:[%s5618_s29 + $0x358] sm:$0xf] %v628_v22  ;;  %v756_v22 = vld [vmem:[%s5613_s28 + $0x8b0] sm:$0xf] }
  0xec   : > { %631 = vst [vmem:[%s5618_s29 + $0x35c] sm:$0xf] %v630_v23  ;;  %v758_v23 = vld [vmem:[%s5613_s28 + $0x8b8] sm:$0xf] }
  0xed   : > { %633 = vst [vmem:[%s5618_s29 + $0x360] sm:$0xf] %v632_v24  ;;  %v760_v24 = vld [vmem:[%s5613_s28 + $0x8c0] sm:$0xf] }
  0xee   : > { %635 = vst [vmem:[%s5618_s29 + $0x364] sm:$0xf] %v634_v25  ;;  %v762_v25 = vld [vmem:[%s5613_s28 + $0x8c8] sm:$0xf] }
  0xef   : > { %637 = vst [vmem:[%s5618_s29 + $0x368] sm:$0xf] %v636_v26  ;;  %v764_v26 = vld [vmem:[%s5613_s28 + $0x8d0] sm:$0xf] }
  0xf0   : > { %639 = vst [vmem:[%s5618_s29 + $0x36c] sm:$0xf] %v638_v27  ;;  %v766_v27 = vld [vmem:[%s5613_s28 + $0x8d8] sm:$0xf] }
  0xf1   : > { %641 = vst [vmem:[%s5618_s29 + $0x370] sm:$0xf] %v640_v28  ;;  %v768_v28 = vld [vmem:[%s5613_s28 + $0x8e0] sm:$0xf] }
  0xf2   : > { %643 = vst [vmem:[%s5618_s29 + $0x374] sm:$0xf] %v642_v29  ;;  %v770_v29 = vld [vmem:[%s5613_s28 + $0x8e8] sm:$0xf] }
  0xf3   : > { %645 = vst [vmem:[%s5618_s29 + $0x378] sm:$0xf] %v644_v30  ;;  %v772_v30 = vld [vmem:[%s5613_s28 + $0x8f0] sm:$0xf] }
  0xf4   : > { %647 = vst [vmem:[%s5618_s29 + $0x37c] sm:$0xf] %v646_v31  ;;  %v774_v31 = vld [vmem:[%s5613_s28 + $0x8f8] sm:$0xf] }
  0xf5   : > { %649 = vst [vmem:[%s5618_s29 + $0x380] sm:$0xf] %v648_v32 }
  0xf6   : > { %651 = vst [vmem:[%s5618_s29 + $0x384] sm:$0xf] %v650_v33 }
  0xf7   : > { %653 = vst [vmem:[%s5618_s29 + $0x388] sm:$0xf] %v652_v34 }
  0xf8   : > { %655 = vst [vmem:[%s5618_s29 + $0x38c] sm:$0xf] %v654_v35 }
  0xf9   : > { %657 = vst [vmem:[%s5618_s29 + $0x390] sm:$0xf] %v656_v36 }
  0xfa   : > { %659 = vst [vmem:[%s5618_s29 + $0x394] sm:$0xf] %v658_v37 }
  0xfb   : > { %661 = vst [vmem:[%s5618_s29 + $0x398] sm:$0xf] %v660_v38 }
  0xfc   : > { %663 = vst [vmem:[%s5618_s29 + $0x39c] sm:$0xf] %v662_v39 }
  0xfd   : > { %665 = vst [vmem:[%s5618_s29 + $0x3a0] sm:$0xf] %v664_v40 }
  0xfe   : > { %667 = vst [vmem:[%s5618_s29 + $0x3a4] sm:$0xf] %v666_v41 }
  0xff   : > { %669 = vst [vmem:[%s5618_s29 + $0x3a8] sm:$0xf] %v668_v42 }
 0x100   : > { %671 = vst [vmem:[%s5618_s29 + $0x3ac] sm:$0xf] %v670_v43 }
 0x101   : > { %673 = vst [vmem:[%s5618_s29 + $0x3b0] sm:$0xf] %v672_v44 }
 0x102   : > { %675 = vst [vmem:[%s5618_s29 + $0x3b4] sm:$0xf] %v674_v45 }
 0x103   : > { %677 = vst [vmem:[%s5618_s29 + $0x3b8] sm:$0xf] %v676_v46 }
 0x104   : > { %679 = vst [vmem:[%s5618_s29 + $0x3bc] sm:$0xf] %v678_v47 }
 0x105   : > { %681 = vst [vmem:[%s5618_s29 + $0x3c0] sm:$0xf] %v680_v48 }
 0x106   : > { %683 = vst [vmem:[%s5618_s29 + $0x3c4] sm:$0xf] %v682_v49 }
 0x107   : > { %685 = vst [vmem:[%s5618_s29 + $0x3c8] sm:$0xf] %v684_v50 }
 0x108   : > { %687 = vst [vmem:[%s5618_s29 + $0x3cc] sm:$0xf] %v686_v51 }
 0x109   : > { %689 = vst [vmem:[%s5618_s29 + $0x3d0] sm:$0xf] %v688_v52 }
 0x10a   : > { %691 = vst [vmem:[%s5618_s29 + $0x3d4] sm:$0xf] %v690_v53 }
 0x10b   : > { %693 = vst [vmem:[%s5618_s29 + $0x3d8] sm:$0xf] %v692_v54 }
 0x10c   : > { %695 = vst [vmem:[%s5618_s29 + $0x3dc] sm:$0xf] %v694_v55 }
 0x10d   : > { %697 = vst [vmem:[%s5618_s29 + $0x3e0] sm:$0xf] %v696_v56 }
 0x10e   : > { %699 = vst [vmem:[%s5618_s29 + $0x3e4] sm:$0xf] %v698_v57 }
 0x10f   : > { %701 = vst [vmem:[%s5618_s29 + $0x3e8] sm:$0xf] %v700_v58 }
 0x110   : > { %703 = vst [vmem:[%s5618_s29 + $0x3ec] sm:$0xf] %v702_v59 }
 0x111   : > { %705 = vst [vmem:[%s5618_s29 + $0x3f0] sm:$0xf] %v704_v60 }
 0x112   : > { %707 = vst [vmem:[%s5618_s29 + $0x3f4] sm:$0xf] %v706_v61 }
 0x113   : > { %709 = vst [vmem:[%s5618_s29 + $0x3f8] sm:$0xf] %v708_v62 }
 0x114   : > { %711 = vst [vmem:[%s5618_s29 + $0x3fc] sm:$0xf] %v710_v63 }
 0x115   : > { %713 = vst [vmem:[%s5618_s29 + $0x400] sm:$0xf] %v712_v0 }
 0x116   : > { %715 = vst [vmem:[%s5618_s29 + $0x404] sm:$0xf] %v714_v1 }
 0x117   : > { %717 = vst [vmem:[%s5618_s29 + $0x408] sm:$0xf] %v716_v2 }
 0x118   : > { %719 = vst [vmem:[%s5618_s29 + $0x40c] sm:$0xf] %v718_v3 }
 0x119   : > { %721 = vst [vmem:[%s5618_s29 + $0x410] sm:$0xf] %v720_v4 }
 0x11a   : > { %723 = vst [vmem:[%s5618_s29 + $0x414] sm:$0xf] %v722_v5 }
 0x11b   : > { %725 = vst [vmem:[%s5618_s29 + $0x418] sm:$0xf] %v724_v6 }
 0x11c   : > { %727 = vst [vmem:[%s5618_s29 + $0x41c] sm:$0xf] %v726_v7 }
 0x11d   : > { %729 = vst [vmem:[%s5618_s29 + $0x420] sm:$0xf] %v728_v8 }
 0x11e   : > { %731 = vst [vmem:[%s5618_s29 + $0x424] sm:$0xf] %v730_v9 }
 0x11f   : > { %733 = vst [vmem:[%s5618_s29 + $0x428] sm:$0xf] %v732_v10 }
 0x120   : > { %735 = vst [vmem:[%s5618_s29 + $0x42c] sm:$0xf] %v734_v11 }
 0x121   : > { %737 = vst [vmem:[%s5618_s29 + $0x430] sm:$0xf] %v736_v12 }
 0x122   : > { %739 = vst [vmem:[%s5618_s29 + $0x434] sm:$0xf] %v738_v13 }
 0x123   : > { %741 = vst [vmem:[%s5618_s29 + $0x438] sm:$0xf] %v740_v14 }
 0x124   : > { %743 = vst [vmem:[%s5618_s29 + $0x43c] sm:$0xf] %v742_v15 }
 0x125   : > { %745 = vst [vmem:[%s5618_s29 + $0x440] sm:$0xf] %v744_v16 }
 0x126   : > { %747 = vst [vmem:[%s5618_s29 + $0x444] sm:$0xf] %v746_v17 }
 0x127   : > { %749 = vst [vmem:[%s5618_s29 + $0x448] sm:$0xf] %v748_v18 }
 0x128   : > { %751 = vst [vmem:[%s5618_s29 + $0x44c] sm:$0xf] %v750_v19 }
 0x129   : > { %753 = vst [vmem:[%s5618_s29 + $0x450] sm:$0xf] %v752_v20 }
 0x12a   : > { %755 = vst [vmem:[%s5618_s29 + $0x454] sm:$0xf] %v754_v21 }
 0x12b   : > { %757 = vst [vmem:[%s5618_s29 + $0x458] sm:$0xf] %v756_v22 }
 0x12c   : > { %759 = vst [vmem:[%s5618_s29 + $0x45c] sm:$0xf] %v758_v23 }
 0x12d   : > { %761 = vst [vmem:[%s5618_s29 + $0x460] sm:$0xf] %v760_v24 }
 0x12e   : > { %763 = vst [vmem:[%s5618_s29 + $0x464] sm:$0xf] %v762_v25 }
 0x12f   : > { %765 = vst [vmem:[%s5618_s29 + $0x468] sm:$0xf] %v764_v26 }
 0x130   : > { %767 = vst [vmem:[%s5618_s29 + $0x46c] sm:$0xf] %v766_v27 }
 0x131   : > { %769 = vst [vmem:[%s5618_s29 + $0x470] sm:$0xf] %v768_v28 }
 0x132   : > { %771 = vst [vmem:[%s5618_s29 + $0x474] sm:$0xf] %v770_v29 }
 0x133   : > { %773 = vst [vmem:[%s5618_s29 + $0x478] sm:$0xf] %v772_v30 }
 0x134   : > { %775 = vst [vmem:[%s5618_s29 + $0x47c] sm:$0xf] %v774_v31 }
 0x135 PF: > { %p4529_p8 = scmp.ge.s32.totalorder %s5543_s16, 1  ;;  %p2558_p9 = scmp.lt.s32.totalorder %s5543_s16, 3 }
 0x137   : > { %p2559_p10 = pnand %p4529_p8, %p2558_p9 }
 0x138   : > { %s2565_s30 = sand.u32 (!%p2559_p10), 1, %s5527_s12   ;;  %p2611_p11 = scmp.lt.s32.totalorder (!%p2559_p10), %s5535_s14, 1 }
 0x139   : > { %2562 = sbr.rel (%p2559_p10) target bundleno = 638 (0x27e), region = 80  ;;  %s4530_s25 = sshll.u32 (!%p2559_p10), %s2565_s30, 4 }
 0x13a   : > { %s5463_s4 = smul.u32 (!%p2559_p10), 1152, %s2565_s30  ;;  %s2599_s26 = scalar_lea.vmem (!%p2559_p10), [#allocation3], %s4530_s25 }
 0x13c   : > { %s6198_s5 = scalar_lea.vmem (!%p2559_p10), [#allocation2], %s5463_s4 }
 0x13e   : > { %v5298_v32 = vld [vmem:[%s6198_s5 + $0x38] sm:$0xff]  ;;  %v5297_v36 = vld [vmem:[%s6198_s5 + $0x30] sm:$0xff]  ;;  %v5296_v40 = vld [vmem:[%s6198_s5 + $0x28] sm:$0xff]  ;;  %s6240_s10 = scalar_select %p2611_p11, %s5535_s14, 1 }
 0x13f   : > { %v5306_v33 = vld [vmem:[%s6198_s5 + $0x78] sm:$0xff]  ;;  %3987 = vmatpush.bf16.msra.mxu0 %v5298_v32  ;;  %v5305_v37 = vld [vmem:[%s6198_s5 + $0x70] sm:$0xff]  ;;  %v5304_v41 = vld [vmem:[%s6198_s5 + $0x68] sm:$0xff]  ;;  %s5252_s12 = sshll.u32 (%p5600_p6), %s5535_s14, 2 }
 0x140   : > { %v5314_v34 = vld [vmem:[%s6198_s5 + $0xb8] sm:$0xff]  ;;  %4006 = vmatpush.bf16.msra.mxu1 %v5306_v33  ;;  %v5313_v38 = vld [vmem:[%s6198_s5 + $0xb0] sm:$0xff]  ;;  %v5312_v42 = vld [vmem:[%s6198_s5 + $0xa8] sm:$0xff]  ;;  %s2613_s8 = scalar_lea.vmem %s6598_s2, %s6240_s10  ;;  %s4354_s28 = scalar_lea.vmem (%p5600_p6), %s6599_s3, %s5252_s12 }
 0x141   : > { %v5322_v35 = vld [vmem:[%s6198_s5 + $0xf8] sm:$0xff]  ;;  %4025 = vmatpush.bf16.msra.mxu2 %v5314_v34  ;;  %v5321_v39 = vld [vmem:[%s6198_s5 + $0xf0] sm:$0xff]  ;;  %v5320_v43 = vld [vmem:[%s6198_s5 + $0xe8] sm:$0xff] }
 0x142   : > { %4044 = vmatpush.bf16.msra.mxu3 %v5322_v35  ;;  %v5295_v44 = vld [vmem:[%s6198_s5 + $0x20] sm:$0xff]  ;;  %v5294_v48 = vld [vmem:[%s6198_s5 + $0x18] sm:$0xff]  ;;  %v5293_v52 = vld [vmem:[%s6198_s5 + $0x10] sm:$0xff] }
 0x143   : > { %3988 = vmatpush.bf16.msra.mxu0 %v5297_v36  ;;  %v5303_v45 = vld [vmem:[%s6198_s5 + $0x60] sm:$0xff]  ;;  %v5302_v49 = vld [vmem:[%s6198_s5 + $0x58] sm:$0xff]  ;;  %v5301_v53 = vld [vmem:[%s6198_s5 + $0x50] sm:$0xff] }
 0x144   : > { %4007 = vmatpush.bf16.msra.mxu1 %v5305_v37  ;;  %v5311_v46 = vld [vmem:[%s6198_s5 + $0xa0] sm:$0xff]  ;;  %v5310_v50 = vld [vmem:[%s6198_s5 + $0x98] sm:$0xff]  ;;  %v5309_v54 = vld [vmem:[%s6198_s5 + $0x90] sm:$0xff] }
 0x145   : > { %4026 = vmatpush.bf16.msra.mxu2 %v5313_v38  ;;  %v5319_v47 = vld [vmem:[%s6198_s5 + $0xe0] sm:$0xff]  ;;  %v5318_v51 = vld [vmem:[%s6198_s5 + $0xd8] sm:$0xff]  ;;  %v5317_v55 = vld [vmem:[%s6198_s5 + $0xd0] sm:$0xff] }
 0x146   : > { %4045 = vmatpush.bf16.msra.mxu3 %v5321_v39  ;;  %v5292_v56 = vld [vmem:[%s6198_s5 + $0x8] sm:$0xff]  ;;  %v5291_v60 = vld [vmem:[%s6198_s5] sm:$0xff]  ;;  %v5265_v5 = vld [vmem:[%s6596_s0 + $0x4c] sm:$0xf0] }
 0x147   : > { %3989 = vmatpush.bf16.msra.mxu0 %v5296_v40  ;;  %v5300_v57 = vld [vmem:[%s6198_s5 + $0x48] sm:$0xff]  ;;  %v4533_v61 = vld [vmem:[%s6596_s0] sm:$0xf]  ;;  %v5255_v2 = vld [vmem:[%s6596_s0 + $0x4] sm:$0xf] }
 0x148   : > { %4008 = vmatpush.bf16.msra.mxu1 %v5304_v41  ;;  %v5308_v58 = vld [vmem:[%s6198_s5 + $0x88] sm:$0xff]  ;;  %v5299_v63 = vld [vmem:[%s6198_s5 + $0x40] sm:$0xff]  ;;  %v4543_v7 = vld [vmem:[%s6596_s0 + $0x50] sm:$0xf0] }
 0x149   : > { %4027 = vmatpush.bf16.msra.mxu2 %v5312_v42  ;;  %v5316_v59 = vld [vmem:[%s6198_s5 + $0xc8] sm:$0xff]  ;;  %v5307_v0 = vld [vmem:[%s6198_s5 + $0x80] sm:$0xff]  ;;  %v5346_v8 = vld [vmem:[%s6198_s5 + $0x1b8] sm:$0xff] }
 0x14a   : > { %4046 = vmatpush.bf16.msra.mxu3 %v5320_v43  ;;  %v5264_v62 = vld [vmem:[%s6596_s0 + $0x44] sm:$0xf0]  ;;  %v5315_v1 = vld [vmem:[%s6198_s5 + $0xc0] sm:$0xff]  ;;  %v4535_v3 = vld [vmem:[%s6596_s0 + $0x48] sm:$0xf0] }
 0x14b   : > { %3990 = vmatpush.bf16.msra.mxu0 %v5295_v44  ;;  %v4541_v4 = vld [vmem:[%s6596_s0 + $0x8] sm:$0xf]  ;;  %v5256_v6 = vld [vmem:[%s6596_s0 + $0xc] sm:$0xf]  ;;  %v5330_v9 = vld [vmem:[%s6198_s5 + $0x138] sm:$0xff]  ;;  %v4534_v10 = vor.u32 %v5264_v62, %v4533_v61  ;;  %v4538_v11 = vor.u32 %v5255_v2, %v4535_v3 }
 0x14c   : > { %4009 = vmatpush.bf16.msra.mxu1 %v5303_v45  ;;  %v4542_v12 = vor.u32 %v5265_v5, %v4541_v4  ;;  %v4546_v13 = vor.u32 %v5256_v6, %v4543_v7  ;;  %v5338_v14 = vld [vmem:[%s6198_s5 + $0x178] sm:$0xff]  ;;  %v5345_v16 = vld [vmem:[%s6198_s5 + $0x1b0] sm:$0xff]  ;;  %v5344_v20 = vld [vmem:[%s6198_s5 + $0x1a8] sm:$0xff] }
 0x14d   : > { %4028 = vmatpush.bf16.msra.mxu2 %v5311_v46  ;;  %v5354_v15 = vld [vmem:[%s6198_s5 + $0x1f8] sm:$0xff]  ;;  %v5329_v17 = vld [vmem:[%s6198_s5 + $0x130] sm:$0xff]  ;;  %v5328_v21 = vld [vmem:[%s6198_s5 + $0x128] sm:$0xff] }
 0x14e   : > { %4047 = vmatpush.bf16.msra.mxu3 %v5319_v47  ;;  %v5337_v18 = vld [vmem:[%s6198_s5 + $0x170] sm:$0xff]  ;;  %v5336_v22 = vld [vmem:[%s6198_s5 + $0x168] sm:$0xff]  ;;  %v5343_v24 = vld [vmem:[%s6198_s5 + $0x1a0] sm:$0xff] }
 0x14f   : > { %3991 = vmatpush.bf16.msra.mxu0 %v5294_v48  ;;  %v5353_v19 = vld [vmem:[%s6198_s5 + $0x1f0] sm:$0xff]  ;;  %v5352_v23 = vld [vmem:[%s6198_s5 + $0x1e8] sm:$0xff]  ;;  %v5327_v25 = vld [vmem:[%s6198_s5 + $0x120] sm:$0xff] }
 0x150   : > { %4010 = vmatpush.bf16.msra.mxu1 %v5302_v49  ;;  %v5335_v26 = vld [vmem:[%s6198_s5 + $0x160] sm:$0xff]  ;;  %v4605_v28 = vld [vmem:[%s6596_s0 + $0x90] sm:$0xf]  ;;  %v5282_v29 = vld [vmem:[%s6596_s0 + $0xd4] sm:$0xf0] }
 0x151   : > { %4029 = vmatpush.bf16.msra.mxu2 %v5310_v50  ;;  %v5351_v27 = vld [vmem:[%s6198_s5 + $0x1e0] sm:$0xff]  ;;  %v5273_v30 = vld [vmem:[%s6596_s0 + $0x94] sm:$0xf]  ;;  %v4607_v31 = vld [vmem:[%s6596_s0 + $0xd8] sm:$0xf0]  ;;  %v4606_v38 = vor.u32 %v5282_v29, %v4605_v28 }
 0x152   : > { %4048 = vmatpush.bf16.msra.mxu3 %v5318_v51  ;;  %v4613_v32 = vld [vmem:[%s6596_s0 + $0x98] sm:$0xf]  ;;  %v5283_v33 = vld [vmem:[%s6596_s0 + $0xdc] sm:$0xf0]  ;;  %v5274_v34 = vld [vmem:[%s6596_s0 + $0x9c] sm:$0xf]  ;;  %v4610_v39 = vor.u32 %v5273_v30, %v4607_v31 }
 0x153   : > { %3992 = vmatpush.bf16.msra.mxu0 %v5293_v52  ;;  %v4615_v35 = vld [vmem:[%s6596_s0 + $0xe0] sm:$0xf0]  ;;  %v5342_v36 = vld [vmem:[%s6198_s5 + $0x198] sm:$0xff]  ;;  %v4614_v40 = vor.u32 %v5283_v33, %v4613_v32  ;;  %v5341_v44 = vld [vmem:[%s6198_s5 + $0x190] sm:$0xff] }
 0x154   : > { %4011 = vmatpush.bf16.msra.mxu1 %v5301_v53  ;;  %v5326_v37 = vld [vmem:[%s6198_s5 + $0x118] sm:$0xff]  ;;  %v4618_v41 = vor.u32 %v5274_v34, %v4615_v35  ;;  %v5325_v45 = vld [vmem:[%s6198_s5 + $0x110] sm:$0xff]  ;;  %v5340_v48 = vld [vmem:[%s6198_s5 + $0x188] sm:$0xff] }
 0x155   : > { %4030 = vmatpush.bf16.msra.mxu2 %v5309_v54  ;;  %v5334_v42 = vld [vmem:[%s6198_s5 + $0x158] sm:$0xff]  ;;  %v5333_v46 = vld [vmem:[%s6198_s5 + $0x150] sm:$0xff]  ;;  %v5324_v49 = vld [vmem:[%s6198_s5 + $0x108] sm:$0xff] }
 0x156   : > { %4049 = vmatpush.bf16.msra.mxu3 %v5317_v55  ;;  %v5350_v43 = vld [vmem:[%s6198_s5 + $0x1d8] sm:$0xff]  ;;  %v5349_v47 = vld [vmem:[%s6198_s5 + $0x1d0] sm:$0xff]  ;;  %v5332_v50 = vld [vmem:[%s6198_s5 + $0x148] sm:$0xff] }
 0x157   : > { %3993 = vmatpush.bf16.msra.mxu0 %v5292_v56  ;;  %v5348_v51 = vld [vmem:[%s6198_s5 + $0x1c8] sm:$0xff]  ;;  %v5339_v52 = vld [vmem:[%s6198_s5 + $0x180] sm:$0xff]  ;;  %v4549_v56 = vld [vmem:[%s6596_s0 + $0x10] sm:$0xf] }
 0x158   : > { %4012 = vmatpush.bf16.msra.mxu1 %v5300_v57  ;;  %v5323_v53 = vld [vmem:[%s6198_s5 + $0x100] sm:$0xff]  ;;  %v5378_v57 = vld [vmem:[%s6198_s5 + $0x2b8] sm:$0xff]  ;;  %v5377_v5 = vld [vmem:[%s6198_s5 + $0x2b0] sm:$0xff] }
 0x159   : > { %4031 = vmatpush.bf16.msra.mxu2 %v5308_v58  ;;  %v5331_v54 = vld [vmem:[%s6198_s5 + $0x140] sm:$0xff]  ;;  %v5362_v58 = vld [vmem:[%s6198_s5 + $0x238] sm:$0xff]  ;;  %v4631_v29 = vld [vmem:[%s6596_s0 + $0xf0] sm:$0xf0] }
 0x15a   : > { %4050 = vmatpush.bf16.msra.mxu3 %v5316_v59  ;;  %v5347_v55 = vld [vmem:[%s6198_s5 + $0x1c0] sm:$0xff]  ;;  %v5266_v59 = vld [vmem:[%s6596_s0 + $0x54] sm:$0xf0]  ;;  %v4551_v61 = vld [vmem:[%s6596_s0 + $0x58] sm:$0xf0] }
 0x15b   : > { %3994 = vmatpush.bf16.msra.mxu0 %v5291_v60  ;;  %v5257_v60 = vld [vmem:[%s6596_s0 + $0x14] sm:$0xf]  ;;  %v4557_v62 = vld [vmem:[%s6596_s0 + $0x18] sm:$0xf]  ;;  %v4550_v4 = vor.u32 %v5266_v59, %v4549_v56  ;;  %v4567_v56 = vld [vmem:[%s6596_s0 + $0x68] sm:$0xf0] }
 0x15c   : > { %4013 = vmatpush.bf16.msra.mxu1 %v5299_v63  ;;  %v5267_v63 = vld [vmem:[%s6596_s0 + $0x5c] sm:$0xf0]  ;;  %v5370_v2 = vld [vmem:[%s6198_s5 + $0x278] sm:$0xff]  ;;  %v4554_v6 = vor.u32 %v5257_v60, %v4551_v61  ;;  %v5373_v33 = vld [vmem:[%s6198_s5 + $0x290] sm:$0xff] }
 0x15d   : > { %4032 = vmatpush.bf16.msra.mxu2 %v5307_v0  ;;  %v5258_v0 = vld [vmem:[%s6596_s0 + $0x1c] sm:$0xf]  ;;  %v4558_v7 = vor.u32 %v5267_v63, %v4557_v62  ;;  %v5260_v59 = vld [vmem:[%s6596_s0 + $0x2c] sm:$0xf]  ;;  %v4575_v60 = vld [vmem:[%s6596_s0 + $0x70] sm:$0xf0] }
 0x15e   : > { %4051 = vmatpush.bf16.msra.mxu3 %v5315_v1  ;;  %3995 = vmatmul.bf16.vlgmr.msra.gmra.mxu0 %v4534_v10  ;;  %v4559_v1 = vld [vmem:[%s6596_s0 + $0x60] sm:$0xf0]  ;;  %v5386_v3 = vld [vmem:[%s6198_s5 + $0x2f8] sm:$0xff]  ;;  %v5369_v10 = vld [vmem:[%s6198_s5 + $0x270] sm:$0xff] }
 0x15f   : > { %4063 = vmatpush.bf16.msrb.mxu0 %v5330_v9  ;;  %4014 = vmatmul.bf16.vlgmr.msra.gmra.mxu1 %v4538_v11  ;;  %v5361_v9 = vld [vmem:[%s6198_s5 + $0x230] sm:$0xff]  ;;  %v5358_v28 = vld [vmem:[%s6198_s5 + $0x218] sm:$0xff] }
 0x160   : > { %4033 = vmatmul.bf16.vlgmr.msra.gmra.mxu2 %v4542_v12  ;;  %4082 = vmatpush.bf16.msrb.mxu1 %v5338_v14  ;;  %v5385_v11 = vld [vmem:[%s6198_s5 + $0x2f0] sm:$0xff]  ;;  %v5376_v12 = vld [vmem:[%s6198_s5 + $0x2a8] sm:$0xff]  ;;  %v5366_v30 = vld [vmem:[%s6198_s5 + $0x258] sm:$0xff] }
 0x161   : > { %4101 = vmatpush.bf16.msrb.mxu2 %v5346_v8  ;;  %4052 = vmatmul.bf16.vlgmr.msra.gmra.mxu3 %v4546_v13  ;;  %v4562_v8 = vor.u32 %v5258_v0, %v4559_v1  ;;  %v5360_v13 = vld [vmem:[%s6198_s5 + $0x228] sm:$0xff]  ;;  %v5382_v31 = vld [vmem:[%s6198_s5 + $0x2d8] sm:$0xff]  ;;  %v5401_v62 = vld [vmem:[%s6198_s5 + $0x370] sm:$0xff]  ;;  %v4578_v1 = vor.u32 %v5260_v59, %v4575_v60 }
 0x162   : > { %4120 = vmatpush.bf16.msrb.mxu3 %v5354_v15  ;;  %v5368_v14 = vld [vmem:[%s6198_s5 + $0x268] sm:$0xff]  ;;  %v5431_v59 = vld [vmem:[%s6198_s5 + $0x460] sm:$0xff]  ;;  %v5422_v60 = vld [vmem:[%s6198_s5 + $0x418] sm:$0xff] }
 0x163   : > { %4064 = vmatpush.bf16.msrb.mxu0 %v5329_v17  ;;  %v5384_v15 = vld [vmem:[%s6198_s5 + $0x2e8] sm:$0xff]  ;;  %v5359_v17 = vld [vmem:[%s6198_s5 + $0x220] sm:$0xff] }
 0x164   : > { %4083 = vmatpush.bf16.msrb.mxu1 %v5337_v18  ;;  %v5367_v18 = vld [vmem:[%s6198_s5 + $0x260] sm:$0xff] }
 0x165   : > { %4102 = vmatpush.bf16.msrb.mxu2 %v5345_v16  ;;  %v5375_v16 = vld [vmem:[%s6198_s5 + $0x2a0] sm:$0xff] }
 0x166   : > { %4121 = vmatpush.bf16.msrb.mxu3 %v5353_v19  ;;  %v5383_v19 = vld [vmem:[%s6198_s5 + $0x2e0] sm:$0xff] }
 0x167   : > { %4065 = vmatpush.bf16.msrb.mxu0 %v5328_v21  ;;  %v5284_v21 = vld [vmem:[%s6596_s0 + $0xe4] sm:$0xf0] }
 0x168   : > { %4084 = vmatpush.bf16.msrb.mxu1 %v5336_v22  ;;  %v5374_v22 = vld [vmem:[%s6198_s5 + $0x298] sm:$0xff] }
 0x169   : > { %4103 = vmatpush.bf16.msrb.mxu2 %v5344_v20  ;;  %v4621_v20 = vld [vmem:[%s6596_s0 + $0xa0] sm:$0xf] }
 0x16a   : > { %4122 = vmatpush.bf16.msrb.mxu3 %v5352_v23  ;;  %v5275_v23 = vld [vmem:[%s6596_s0 + $0xa4] sm:$0xf]  ;;  %v4622_v32 = vor.u32 %v5284_v21, %v4621_v20  ;;  %v5278_v20 = vld [vmem:[%s6596_s0 + $0xbc] sm:$0xf] }
 0x16b   : > { %4066 = vmatpush.bf16.msrb.mxu0 %v5327_v25  ;;  %v4629_v25 = vld [vmem:[%s6596_s0 + $0xa8] sm:$0xf]  ;;  %v5390_v21 = vld [vmem:[%s6198_s5 + $0x318] sm:$0xff] }
 0x16c   : > { %4085 = vmatpush.bf16.msrb.mxu1 %v5335_v26  ;;  %v5285_v26 = vld [vmem:[%s6596_s0 + $0xec] sm:$0xf0] }
 0x16d   : > { %4104 = vmatpush.bf16.msrb.mxu2 %v5343_v24  ;;  %v4623_v24 = vld [vmem:[%s6596_s0 + $0xe8] sm:$0xf0]  ;;  %v4630_v35 = vor.u32 %v5285_v26, %v4629_v25  ;;  %v5397_v26 = vld [vmem:[%s6198_s5 + $0x350] sm:$0xff] }
 0x16e   : > { %4123 = vmatpush.bf16.msrb.mxu3 %v5351_v27  ;;  %4000 = vmatmul.bf16.gmra.mxu0 %v4606_v38  ;;  %v5276_v27 = vld [vmem:[%s6596_s0 + $0xac] sm:$0xf]  ;;  %v4626_v34 = vor.u32 %v5275_v23, %v4623_v24  ;;  %v5365_v38 = vld [vmem:[%s6198_s5 + $0x250] sm:$0xff]  ;;  %v5414_v23 = vld [vmem:[%s6198_s5 + $0x3d8] sm:$0xff] }
 0x16f   : > { %4067 = vmatpush.bf16.msrb.mxu0 %v5326_v37  ;;  %4019 = vmatmul.bf16.gmra.mxu1 %v4610_v39  ;;  %v5357_v37 = vld [vmem:[%s6198_s5 + $0x210] sm:$0xff] }
 0x170   : > { %4038 = vmatmul.bf16.gmra.mxu2 %v4614_v40  ;;  %4086 = vmatpush.bf16.msrb.mxu1 %v5334_v42  ;;  %v5381_v39 = vld [vmem:[%s6198_s5 + $0x2d0] sm:$0xff]  ;;  %v5372_v40 = vld [vmem:[%s6198_s5 + $0x288] sm:$0xff] }
 0x171   : > { %4105 = vmatpush.bf16.msrb.mxu2 %v5342_v36  ;;  %4057 = vmatmul.bf16.gmra.mxu3 %v4618_v41  ;;  %v4634_v36 = vor.u32 %v5276_v27, %v4631_v29  ;;  %v5356_v41 = vld [vmem:[%s6198_s5 + $0x208] sm:$0xff]  ;;  %v5405_v24 = vld [vmem:[%s6198_s5 + $0x390] sm:$0xff] }
 0x172   : > { %4124 = vmatpush.bf16.msrb.mxu3 %v5350_v43  ;;  %v5364_v42 = vld [vmem:[%s6198_s5 + $0x248] sm:$0xff] }
 0x173   : > { %4068 = vmatpush.bf16.msrb.mxu0 %v5325_v45  ;;  %v5380_v43 = vld [vmem:[%s6198_s5 + $0x2c8] sm:$0xff]  ;;  %v5410_v45 = vld [vmem:[%s6198_s5 + $0x3b8] sm:$0xff] }
 0x174   : > { %4087 = vmatpush.bf16.msrb.mxu1 %v5333_v46  ;;  %v5355_v46 = vld [vmem:[%s6198_s5 + $0x200] sm:$0xff] }
 0x175   : > { %4106 = vmatpush.bf16.msrb.mxu2 %v5341_v44  ;;  %v5371_v44 = vld [vmem:[%s6198_s5 + $0x280] sm:$0xff] }
 0x176   : > { %4125 = vmatpush.bf16.msrb.mxu3 %v5349_v47  ;;  %v5363_v47 = vld [vmem:[%s6198_s5 + $0x240] sm:$0xff] }
 0x177   : > { %4069 = vmatpush.bf16.msrb.mxu0 %v5324_v49  ;;  %v4565_v49 = vld [vmem:[%s6596_s0 + $0x20] sm:$0xf] }
 0x178   : > { %4088 = vmatpush.bf16.msrb.mxu1 %v5332_v50  ;;  %v5268_v50 = vld [vmem:[%s6596_s0 + $0x64] sm:$0xf0] }
 0x179   : > { %4107 = vmatpush.bf16.msrb.mxu2 %v5340_v48  ;;  %v5379_v48 = vld [vmem:[%s6198_s5 + $0x2c0] sm:$0xff]  ;;  %v4566_v61 = vor.u32 %v5268_v50, %v4565_v49  ;;  %v5262_v50 = vld [vmem:[%s6596_s0 + $0x3c] sm:$0xf] }
 0x17a   : > { %4126 = vmatpush.bf16.msrb.mxu3 %v5348_v51  ;;  %v5394_v51 = vld [vmem:[%s6198_s5 + $0x338] sm:$0xff]  ;;  %v5271_v49 = vld [vmem:[%s6596_s0 + $0x7c] sm:$0xf0] }
 0x17b   : > { %4070 = vmatpush.bf16.msrb.mxu0 %v5323_v53  ;;  %v5259_v53 = vld [vmem:[%s6596_s0 + $0x24] sm:$0xf] }
 0x17c   : > { %4089 = vmatpush.bf16.msrb.mxu1 %v5331_v54  ;;  %v5418_v54 = vld [vmem:[%s6198_s5 + $0x3f8] sm:$0xff]  ;;  %v4570_v63 = vor.u32 %v5259_v53, %v4567_v56  ;;  %v5424_v56 = vld [vmem:[%s6198_s5 + $0x428] sm:$0xff] }
 0x17d   : > { %4108 = vmatpush.bf16.msrb.mxu2 %v5339_v52  ;;  %v5402_v52 = vld [vmem:[%s6198_s5 + $0x378] sm:$0xff] }
 0x17e   : > { %4127 = vmatpush.bf16.msrb.mxu3 %v5347_v55  ;;  %4071 = vmatmul.bf16.vlgmr.msrb.gmra.mxu0 %v4550_v4  ;;  %v5409_v55 = vld [vmem:[%s6198_s5 + $0x3b0] sm:$0xff]  ;;  %v5408_v4 = vld [vmem:[%s6198_s5 + $0x3a8] sm:$0xff] }
 0x17f   : > { %4139 = vmatpush.bf16.msra.mxu0 %v5362_v58  ;;  %4090 = vmatmul.bf16.vlgmr.msrb.gmra.mxu1 %v4554_v6  ;;  %v5269_v58 = vld [vmem:[%s6596_s0 + $0x6c] sm:$0xf0]  ;;  %v5392_v6 = vld [vmem:[%s6198_s5 + $0x328] sm:$0xff] }
 0x180   : > { %4158 = vmatpush.bf16.msra.mxu1 %v5370_v2  ;;  %4109 = vmatmul.bf16.vlgmr.msrb.gmra.mxu2 %v4558_v7  ;;  %v5393_v2 = vld [vmem:[%s6198_s5 + $0x330] sm:$0xff]  ;;  %v5416_v7 = vld [vmem:[%s6198_s5 + $0x3e8] sm:$0xff] }
 0x181   : > { %4177 = vmatpush.bf16.msra.mxu2 %v5378_v57  ;;  %4128 = vmatmul.bf16.vlgmr.msrb.gmra.mxu3 %v4562_v8  ;;  %v4573_v57 = vld [vmem:[%s6596_s0 + $0x28] sm:$0xf]  ;;  %v5407_v8 = vld [vmem:[%s6198_s5 + $0x3a0] sm:$0xff] }
 0x182   : > { %4196 = vmatpush.bf16.msra.mxu3 %v5386_v3  ;;  %v4574_v0 = vor.u32 %v5269_v58, %v4573_v57  ;;  %v5417_v3 = vld [vmem:[%s6198_s5 + $0x3f0] sm:$0xff]  ;;  %v5432_v57 = vld [vmem:[%s6198_s5 + $0x468] sm:$0xff]  ;;  %v5423_v58 = vld [vmem:[%s6198_s5 + $0x420] sm:$0xff] }
 0x183   : > { %4140 = vmatpush.bf16.msra.mxu0 %v5361_v9  ;;  %v5399_v9 = vld [vmem:[%s6198_s5 + $0x360] sm:$0xff] }
 0x184   : > { %4159 = vmatpush.bf16.msra.mxu1 %v5369_v10  ;;  %v5391_v10 = vld [vmem:[%s6198_s5 + $0x320] sm:$0xff] }
 0x185   : > { %4178 = vmatpush.bf16.msra.mxu2 %v5377_v5  ;;  %v5400_v5 = vld [vmem:[%s6198_s5 + $0x368] sm:$0xff] }
 0x186   : > { %4197 = vmatpush.bf16.msra.mxu3 %v5385_v11  ;;  %v5415_v11 = vld [vmem:[%s6198_s5 + $0x3e0] sm:$0xff] }
 0x187   : > { %4141 = vmatpush.bf16.msra.mxu0 %v5360_v13  ;;  %v4637_v13 = vld [vmem:[%s6596_s0 + $0xb0] sm:$0xf] }
 0x188   : > { %4160 = vmatpush.bf16.msra.mxu1 %v5368_v14  ;;  %v5286_v14 = vld [vmem:[%s6596_s0 + $0xf4] sm:$0xf0] }
 0x189   : > { %4179 = vmatpush.bf16.msra.mxu2 %v5376_v12  ;;  %v5406_v12 = vld [vmem:[%s6198_s5 + $0x398] sm:$0xff]  ;;  %v4638_v25 = vor.u32 %v5286_v14, %v4637_v13  ;;  %v5428_v13 = vld [vmem:[%s6198_s5 + $0x448] sm:$0xff]  ;;  %v5419_v14 = vld [vmem:[%s6198_s5 + $0x400] sm:$0xff] }
 0x18a   : > { %4198 = vmatpush.bf16.msra.mxu3 %v5384_v15  ;;  %v5398_v15 = vld [vmem:[%s6198_s5 + $0x358] sm:$0xff] }
 0x18b   : > { %4142 = vmatpush.bf16.msra.mxu0 %v5359_v17  ;;  %v4639_v17 = vld [vmem:[%s6596_s0 + $0xf8] sm:$0xf0] }
 0x18c   : > { %4161 = vmatpush.bf16.msra.mxu1 %v5367_v18  ;;  %v4645_v18 = vld [vmem:[%s6596_s0 + $0xb8] sm:$0xf] }
 0x18d   : > { %4180 = vmatpush.bf16.msra.mxu2 %v5375_v16  ;;  %v5277_v16 = vld [vmem:[%s6596_s0 + $0xb4] sm:$0xf] }
 0x18e   : > { %4199 = vmatpush.bf16.msra.mxu3 %v5383_v19  ;;  %4076 = vmatmul.bf16.gmra.mxu0 %v4622_v32  ;;  %v5287_v19 = vld [vmem:[%s6596_s0 + $0xfc] sm:$0xf0]  ;;  %v4642_v27 = vor.u32 %v5277_v16, %v4639_v17  ;;  %v5404_v32 = vld [vmem:[%s6198_s5 + $0x388] sm:$0xff] }
 0x18f   : > { %4143 = vmatpush.bf16.msra.mxu0 %v5358_v28  ;;  %4095 = vmatmul.bf16.gmra.mxu1 %v4626_v34  ;;  %v4646_v28 = vor.u32 %v5287_v19, %v4645_v18  ;;  %v5388_v34 = vld [vmem:[%s6198_s5 + $0x308] sm:$0xff]  ;;  %v5504_v16 = vld [vmem:[%s2613_s8] ss:$0 sm:$0xff]  ;;  %v4669_v19 = vld [vmem:[%s6596_s0 + $0xd0] sm:$0xf] }
 0x190   : > { %4162 = vmatpush.bf16.msra.mxu1 %v5366_v30  ;;  %4114 = vmatmul.bf16.gmra.mxu2 %v4630_v35  ;;  %v5389_v30 = vld [vmem:[%s6198_s5 + $0x310] sm:$0xff]  ;;  %v5412_v35 = vld [vmem:[%s6198_s5 + $0x3c8] sm:$0xff]  ;;  %v4597_v17 = vld [vmem:[%s6596_s0 + $0x40] sm:$0xf] }
 0x191   : > { %4181 = vmatpush.bf16.msra.mxu2 %v5374_v22  ;;  %4133 = vmatmul.bf16.gmra.mxu3 %v4634_v36  ;;  %v4647_v22 = vld [vmem:[%s6596_s0 + $0x100] sm:$0xf0]  ;;  %v5272_v18 = vld [vmem:[%s6596_s0 + $0x84] sm:$0xf0] }
 0x192   : > { %4200 = vmatpush.bf16.msra.mxu3 %v5382_v31  ;;  %v4650_v29 = vor.u32 %v5278_v20, %v4647_v22  ;;  %v5413_v31 = vld [vmem:[%s6198_s5 + $0x3d0] sm:$0xff]  ;;  %v5403_v36 = vld [vmem:[%s6198_s5 + $0x380] sm:$0xff]  ;;  %v5290_v20 = vld [vmem:[%s6596_s0 + $0x114] sm:$0xf0] }
 0x193   : > { %4144 = vmatpush.bf16.msra.mxu0 %v5357_v37  ;;  %v5395_v37 = vld [vmem:[%s6198_s5 + $0x340] sm:$0xff]  ;;  %v4599_v22 = vld [vmem:[%s6596_s0 + $0x88] sm:$0xf0] }
 0x194   : > { %4163 = vmatpush.bf16.msra.mxu1 %v5365_v38  ;;  %v5426_v38 = vld [vmem:[%s6198_s5 + $0x438] sm:$0xff] }
 0x195   : > { %4182 = vmatpush.bf16.msra.mxu2 %v5373_v33  ;;  %v5396_v33 = vld [vmem:[%s6198_s5 + $0x348] sm:$0xff] }
 0x196   : > { %4201 = vmatpush.bf16.msra.mxu3 %v5381_v39  ;;  %v5434_v39 = vld [vmem:[%s6198_s5 + $0x478] sm:$0xff] }
 0x197   : > { %4145 = vmatpush.bf16.msra.mxu0 %v5356_v41  ;;  %v5411_v41 = vld [vmem:[%s6198_s5 + $0x3c0] sm:$0xff] }
 0x198   : > { %4164 = vmatpush.bf16.msra.mxu1 %v5364_v42  ;;  %v4581_v42 = vld [vmem:[%s6596_s0 + $0x30] sm:$0xf] }
 0x199   : > { %4183 = vmatpush.bf16.msra.mxu2 %v5372_v40  ;;  %v5387_v40 = vld [vmem:[%s6198_s5 + $0x300] sm:$0xff] }
 0x19a   : > { %4202 = vmatpush.bf16.msra.mxu3 %v5380_v43  ;;  %v5425_v43 = vld [vmem:[%s6198_s5 + $0x430] sm:$0xff] }
 0x19b   : > { %4146 = vmatpush.bf16.msra.mxu0 %v5355_v46  ;;  %v5433_v46 = vld [vmem:[%s6198_s5 + $0x470] sm:$0xff] }
 0x19c   : > { %4165 = vmatpush.bf16.msra.mxu1 %v5363_v47  ;;  %v4583_v47 = vld [vmem:[%s6596_s0 + $0x78] sm:$0xf0] }
 0x19d   : > { %4184 = vmatpush.bf16.msra.mxu2 %v5371_v44  ;;  %v5270_v44 = vld [vmem:[%s6596_s0 + $0x74] sm:$0xf0] }
 0x19e   : > { %4203 = vmatpush.bf16.msra.mxu3 %v5379_v48  ;;  %4147 = vmatmul.bf16.vlgmr.msra.gmra.mxu0 %v4566_v61  ;;  %v4589_v48 = vld [vmem:[%s6596_s0 + $0x38] sm:$0xf] }
 0x19f   : > { %4215 = vmatpush.bf16.msrb.mxu0 %v5394_v51  ;;  %4166 = vmatmul.bf16.vlgmr.msra.gmra.mxu1 %v4570_v63  ;;  %v4591_v51 = vld [vmem:[%s6596_s0 + $0x80] sm:$0xf0]  ;;  %v5430_v61 = vld [vmem:[%s6198_s5 + $0x458] sm:$0xff]  ;;  %v5288_v63 = vld [vmem:[%s6596_s0 + $0x104] sm:$0xf0] }
 0x1a0   : > { %4234 = vmatpush.bf16.msrb.mxu1 %v5402_v52  ;;  %4185 = vmatmul.bf16.vlgmr.msra.gmra.mxu2 %v4574_v0  ;;  %v4582_v52 = vor.u32 %v5270_v44, %v4581_v42  ;;  %v5279_v0 = vld [vmem:[%s6596_s0 + $0xc4] sm:$0xf] }
 0x1a1   : > { %4253 = vmatpush.bf16.msrb.mxu2 %v5410_v45  ;;  %4204 = vmatmul.bf16.vlgmr.msra.gmra.mxu3 %v4578_v1  ;;  %v5261_v45 = vld [vmem:[%s6596_s0 + $0x34] sm:$0xf]  ;;  %v4655_v1 = vld [vmem:[%s6596_s0 + $0x108] sm:$0xf0] }
 0x1a2   : > { %4272 = vmatpush.bf16.msrb.mxu3 %v5418_v54  ;;  %v4586_v53 = vor.u32 %v5261_v45, %v4583_v47  ;;  %v4590_v54 = vor.u32 %v5271_v49, %v4589_v48 }
 0x1a3   : > { %4216 = vmatpush.bf16.msrb.mxu0 %v5393_v2  ;;  %v4661_v2 = vld [vmem:[%s6596_s0 + $0xc8] sm:$0xf] }
 0x1a4   : > { %4235 = vmatpush.bf16.msrb.mxu1 %v5401_v62  ;;  %v4653_v62 = vld [vmem:[%s6596_s0 + $0xc0] sm:$0xf] }
 0x1a5   : > { %4254 = vmatpush.bf16.msrb.mxu2 %v5409_v55  ;;  %v4594_v55 = vor.u32 %v5262_v50, %v4591_v51 }
 0x1a6   : > { %4273 = vmatpush.bf16.msrb.mxu3 %v5417_v3  ;;  %v5289_v3 = vld [vmem:[%s6596_s0 + $0x10c] sm:$0xf0] }
 0x1a7   : > { %4217 = vmatpush.bf16.msrb.mxu0 %v5392_v6  ;;  %v4663_v6 = vld [vmem:[%s6596_s0 + $0x110] sm:$0xf0] }
 0x1a8   : > { %4236 = vmatpush.bf16.msrb.mxu1 %v5400_v5  ;;  %v5280_v5 = vld [vmem:[%s6596_s0 + $0xcc] sm:$0xf] }
 0x1a9   : > { %4255 = vmatpush.bf16.msrb.mxu2 %v5408_v4  ;;  %v5421_v4 = vld [vmem:[%s6198_s5 + $0x410] sm:$0xff] }
 0x1aa   : > { %4274 = vmatpush.bf16.msrb.mxu3 %v5416_v7  ;;  %v5429_v7 = vld [vmem:[%s6198_s5 + $0x450] sm:$0xff] }
 0x1ab   : > { %4218 = vmatpush.bf16.msrb.mxu0 %v5391_v10  ;;  %v4662_v10 = vor.u32 %v5289_v3, %v4661_v2 }
 0x1ac   : > { %4237 = vmatpush.bf16.msrb.mxu1 %v5399_v9  ;;  %v4658_v9 = vor.u32 %v5279_v0, %v4655_v1 }
 0x1ad   : > { %4256 = vmatpush.bf16.msrb.mxu2 %v5407_v8  ;;  %v4654_v8 = vor.u32 %v5288_v63, %v4653_v62 }
 0x1ae   : > { %4275 = vmatpush.bf16.msrb.mxu3 %v5415_v11  ;;  %4152 = vmatmul.bf16.gmra.mxu0 %v4638_v25  ;;  %v4666_v11 = vor.u32 %v5280_v5, %v4663_v6  ;;  %v4598_v25 = vor.u32 %v5272_v18, %v4597_v17 }
 0x1af   : > { %4219 = vmatpush.bf16.msrb.mxu0 %v5390_v21  ;;  %4171 = vmatmul.bf16.gmra.mxu1 %v4642_v27  ;;  %v5263_v21 = vld [vmem:[%s6596_s0 + $0x44] sm:$0xf] }
 0x1b0   : > { %4238 = vmatpush.bf16.msrb.mxu1 %v5398_v15  ;;  %4190 = vmatmul.bf16.gmra.mxu2 %v4646_v28  ;;  %v5427_v15 = vld [vmem:[%s6198_s5 + $0x440] sm:$0xff]  ;;  %v4670_v28 = vor.u32 %v5290_v20, %v4669_v19 }
 0x1b1   : > { %4257 = vmatpush.bf16.msrb.mxu2 %v5406_v12  ;;  %4209 = vmatmul.bf16.gmra.mxu3 %v4650_v29  ;;  %v5420_v12 = vld [vmem:[%s6198_s5 + $0x408] sm:$0xff]  ;;  %v4602_v29 = vor.u32 %v5263_v21, %v4599_v22 }
 0x1b2   : > { %4276 = vmatpush.bf16.msrb.mxu3 %v5414_v23  ;;  %v5281_v23 = vld [vmem:[%s6596_s0 + $0xd4] sm:$0xf] }
 0x1b3   : > { %4220 = vmatpush.bf16.msrb.mxu0 %v5389_v30 }
 0x1b4   : > { %4239 = vmatpush.bf16.msrb.mxu1 %v5397_v26 }
 0x1b5   : > { %4258 = vmatpush.bf16.msrb.mxu2 %v5405_v24  ;;  %v4671_v24 = vld [vmem:[%s6596_s0 + $0x118] sm:$0xf0] }
 0x1b6   : > { %4277 = vmatpush.bf16.msrb.mxu3 %v5413_v31  ;;  %v4674_v31 = vor.u32 %v5281_v23, %v4671_v24 }
 0x1b7   : > { %4221 = vmatpush.bf16.msrb.mxu0 %v5388_v34 }
 0x1b8   : > { %4240 = vmatpush.bf16.msrb.mxu1 %v5396_v33 }
 0x1b9   : > { %4259 = vmatpush.bf16.msrb.mxu2 %v5404_v32 }
 0x1ba   : > { %4278 = vmatpush.bf16.msrb.mxu3 %v5412_v35 }
 0x1bb   : > { %4222 = vmatpush.bf16.msrb.mxu0 %v5387_v40 }
 0x1bc   : > { %4241 = vmatpush.bf16.msrb.mxu1 %v5395_v37 }
 0x1bd   : > { %4260 = vmatpush.bf16.msrb.mxu2 %v5403_v36 }
 0x1be   : > { %4279 = vmatpush.bf16.msrb.mxu3 %v5411_v41  ;;  %4223 = vmatmul.bf16.vlgmr.msrb.gmra.mxu0 %v4582_v52 }
 0x1bf   : > { %4291 = vmatpush.bf16.msra.mxu0 %v5426_v38  ;;  %4242 = vmatmul.bf16.vlgmr.msrb.gmra.mxu1 %v4586_v53 }
 0x1c0   : > { %4310 = vmatpush.bf16.msra.mxu1 %v5434_v39  ;;  %4261 = vmatmul.bf16.vlgmr.msrb.gmra.mxu2 %v4590_v54 }
 0x1c1   : > { %5446 = vmatpush.bf16.msra.mxu2 %v5426_v38  ;;  %4280 = vmatmul.bf16.vlgmr.msrb.gmra.mxu3 %v4594_v55 }
 0x1c2   : > { %5454 = vmatpush.bf16.msra.mxu3 %v5434_v39 }
 0x1c3   : > { %4292 = vmatpush.bf16.msra.mxu0 %v5425_v43 }
 0x1c4   : > { %4311 = vmatpush.bf16.msra.mxu1 %v5433_v46 }
 0x1c5   : > { %5447 = vmatpush.bf16.msra.mxu2 %v5425_v43 }
 0x1c6   : > { %5455 = vmatpush.bf16.msra.mxu3 %v5433_v46 }
 0x1c7   : > { %4293 = vmatpush.bf16.msra.mxu0 %v5424_v56 }
 0x1c8   : > { %4312 = vmatpush.bf16.msra.mxu1 %v5432_v57 }
 0x1c9   : > { %5448 = vmatpush.bf16.msra.mxu2 %v5424_v56 }
 0x1ca   : > { %5456 = vmatpush.bf16.msra.mxu3 %v5432_v57 }
 0x1cb   : > { %4294 = vmatpush.bf16.msra.mxu0 %v5423_v58 }
 0x1cc   : > { %4313 = vmatpush.bf16.msra.mxu1 %v5431_v59 }
 0x1cd   : > { %5449 = vmatpush.bf16.msra.mxu2 %v5423_v58 }
 0x1ce   : > { %5457 = vmatpush.bf16.msra.mxu3 %v5431_v59  ;;  %4228 = vmatmul.bf16.gmra.mxu0 %v4654_v8 }
 0x1cf   : > { %4295 = vmatpush.bf16.msra.mxu0 %v5422_v60  ;;  %4247 = vmatmul.bf16.gmra.mxu1 %v4658_v9 }
 0x1d0   : > { %4314 = vmatpush.bf16.msra.mxu1 %v5430_v61  ;;  %4266 = vmatmul.bf16.gmra.mxu2 %v4662_v10 }
 0x1d1   : > { %5450 = vmatpush.bf16.msra.mxu2 %v5422_v60  ;;  %4285 = vmatmul.bf16.gmra.mxu3 %v4666_v11 }
 0x1d2   : > { %5458 = vmatpush.bf16.msra.mxu3 %v5430_v61 }
 0x1d3   : > { %4296 = vmatpush.bf16.msra.mxu0 %v5421_v4 }
 0x1d4   : > { %4315 = vmatpush.bf16.msra.mxu1 %v5429_v7 }
 0x1d5   : > { %5451 = vmatpush.bf16.msra.mxu2 %v5421_v4 }
 0x1d6   : > { %5459 = vmatpush.bf16.msra.mxu3 %v5429_v7 }
 0x1d7   : > { %4297 = vmatpush.bf16.msra.mxu0 %v5420_v12 }
 0x1d8   : > { %4316 = vmatpush.bf16.msra.mxu1 %v5428_v13 }
 0x1d9   : > { %5452 = vmatpush.bf16.msra.mxu2 %v5420_v12 }
 0x1da   : > { %5460 = vmatpush.bf16.msra.mxu3 %v5428_v13 }
 0x1db   : > { %4298 = vmatpush.bf16.msra.mxu0 %v5419_v14  ;;  %v3996_v26 = vpop.f32.mrf.mxu0 }
 0x1dc   : > { %4317 = vmatpush.bf16.msra.mxu1 %v5427_v15  ;;  %v4015_v27 = vpop.f32.mrf.mxu1  ;;  %v3997_v30 = vadd.f32 %v5504_v16, %v3996_v26 }
 0x1dd   : > { %5453 = vmatpush.bf16.msra.mxu2 %v5419_v14 }
 0x1de   : > { %5461 = vmatpush.bf16.msra.mxu3 %v5427_v15  ;;  %v4016_v32 = vadd.f32 %v4015_v27, %v3997_v30  ;;  %4299 = vmatmul.bf16.vlgmr.msra.gmra.mxu0 %v4598_v25 }
 0x1df   : > { %4318 = vmatmul.bf16.vlgmr.msra.gmra.mxu1 %v4602_v29 }
 0x1e0   : > { %4304 = vmatmul.bf16.vlgmr.msra.gmra.mxu2 %v4670_v28 }
 0x1e1   : > { %4323 = vmatmul.bf16.vlgmr.msra.gmra.mxu3 %v4674_v31 }
 0x1e3   : > { %v4034_v33 = vpop.f32.mrf.mxu2  ;;  %v3998_v36 = vpop.f32.mrf.mxu0 }
 0x1e4   : > { %v4053_v34 = vpop.f32.mrf.mxu3  ;;  %v4035_v35 = vadd.f32 %v4034_v33, %v4016_v32  ;;  %v4017_v37 = vpop.f32.mrf.mxu1  ;;  %v3999_v38 = vadd.f32 %v5504_v16, %v3998_v36 }
 0x1e6   : > { %v4054_v39 = vadd.f32 %v4053_v34, %v4035_v35  ;;  %v4018_v40 = vadd.f32 %v4017_v37, %v3999_v38 }
 0x1eb   : > { %v4036_v41 = vpop.f32.mrf.mxu2  ;;  %v4001_v44 = vpop.f32.mrf.mxu0 }
 0x1ec   : > { %v4055_v42 = vpop.f32.mrf.mxu3  ;;  %v4037_v43 = vadd.f32 %v4036_v41, %v4018_v40  ;;  %v4020_v45 = vpop.f32.mrf.mxu1  ;;  %v4002_v46 = vadd.f32 %v5504_v16, %v4001_v44 }
 0x1ee   : > { %v4056_v47 = vadd.f32 %v4055_v42, %v4037_v43  ;;  %v4021_v48 = vadd.f32 %v4020_v45, %v4002_v46 }
 0x1f3   : > { %v4039_v49 = vpop.f32.mrf.mxu2  ;;  %v4003_v52 = vpop.f32.mrf.mxu0 }
 0x1f4   : > { %v4058_v50 = vpop.f32.mrf.mxu3  ;;  %v4040_v51 = vadd.f32 %v4039_v49, %v4021_v48  ;;  %v4022_v53 = vpop.f32.mrf.mxu1  ;;  %v4004_v54 = vadd.f32 %v5504_v16, %v4003_v52 }
 0x1f6   : > { %v4059_v55 = vadd.f32 %v4058_v50, %v4040_v51  ;;  %v4023_v56 = vadd.f32 %v4022_v53, %v4004_v54 }
 0x1fb   : > { %v4041_v57 = vpop.f32.mrf.mxu2  ;;  %v4072_v60 = vpop.f32.mrf.mxu0 }
 0x1fc   : > { %v4060_v58 = vpop.f32.mrf.mxu3  ;;  %v4042_v59 = vadd.f32 %v4041_v57, %v4023_v56  ;;  %v4073_v61 = vadd.f32 %v4072_v60, %v4054_v39  ;;  %v4091_v62 = vpop.f32.mrf.mxu1 }
 0x1fe   : > { %v4061_v63 = vadd.f32 %v4060_v58, %v4042_v59  ;;  %v4092_v0 = vadd.f32 %v4091_v62, %v4073_v61 }
 0x203   : > { %v4110_v1 = vpop.f32.mrf.mxu2  ;;  %v4074_v4 = vpop.f32.mrf.mxu0 }
 0x204   : > { %v4111_v2 = vadd.f32 %v4110_v1, %v4092_v0  ;;  %v4129_v3 = vpop.f32.mrf.mxu3  ;;  %v4075_v5 = vadd.f32 %v4074_v4, %v4056_v47  ;;  %v4093_v6 = vpop.f32.mrf.mxu1 }
 0x206   : > { %v4130_v7 = vadd.f32 %v4129_v3, %v4111_v2  ;;  %v4094_v8 = vadd.f32 %v4093_v6, %v4075_v5 }
 0x20b   : > { %v4112_v9 = vpop.f32.mrf.mxu2  ;;  %v4077_v12 = vpop.f32.mrf.mxu0 }
 0x20c   : > { %v4113_v10 = vadd.f32 %v4112_v9, %v4094_v8  ;;  %v4131_v11 = vpop.f32.mrf.mxu3  ;;  %v4078_v13 = vadd.f32 %v4077_v12, %v4059_v55  ;;  %v4096_v14 = vpop.f32.mrf.mxu1 }
 0x20e   : > { %v4132_v15 = vadd.f32 %v4131_v11, %v4113_v10  ;;  %v4097_v16 = vadd.f32 %v4096_v14, %v4078_v13 }
 0x213   : > { %v4115_v17 = vpop.f32.mrf.mxu2  ;;  %v4079_v20 = vpop.f32.mrf.mxu0 }
 0x214   : > { %v4116_v18 = vadd.f32 %v4115_v17, %v4097_v16  ;;  %v4134_v19 = vpop.f32.mrf.mxu3  ;;  %v4098_v21 = vpop.f32.mrf.mxu1  ;;  %v4080_v47 = vadd.f32 %v4079_v20, %v4061_v63 }
 0x216   : > { %v4135_v22 = vadd.f32 %v4134_v19, %v4116_v18  ;;  %v4099_v50 = vadd.f32 %v4098_v21, %v4080_v47 }
 0x21b   : > { %v4117_v23 = vpop.f32.mrf.mxu2  ;;  %v4148_v25 = vpop.f32.mrf.mxu0 }
 0x21c   : > { %v4136_v24 = vpop.f32.mrf.mxu3  ;;  %v4167_v26 = vpop.f32.mrf.mxu1  ;;  %v4149_v48 = vadd.f32 %v4148_v25, %v4130_v7  ;;  %v4118_v56 = vadd.f32 %v4117_v23, %v4099_v50 }
 0x21e   : > { %v4168_v53 = vadd.f32 %v4167_v26, %v4149_v48  ;;  %v4137_v60 = vadd.f32 %v4136_v24, %v4118_v56 }
 0x223   : > { %v4186_v27 = vpop.f32.mrf.mxu2  ;;  %v4150_v29 = vpop.f32.mrf.mxu0 }
 0x224   : > { %v4205_v28 = vpop.f32.mrf.mxu3  ;;  %v4169_v30 = vpop.f32.mrf.mxu1  ;;  %v4151_v54 = vadd.f32 %v4150_v29, %v4132_v15  ;;  %v4187_v57 = vadd.f32 %v4186_v27, %v4168_v53 }
 0x226   : > { %v4170_v59 = vadd.f32 %v4169_v30, %v4151_v54  ;;  %v4206_v61 = vadd.f32 %v4205_v28, %v4187_v57 }
 0x22b   : > { %v4188_v31 = vpop.f32.mrf.mxu2  ;;  %v4153_v33 = vpop.f32.mrf.mxu0 }
 0x22c   : > { %v4207_v32 = vpop.f32.mrf.mxu3  ;;  %v4172_v34 = vpop.f32.mrf.mxu1  ;;  %v4154_v58 = vadd.f32 %v4153_v33, %v4135_v22  ;;  %v4189_v62 = vadd.f32 %v4188_v31, %v4170_v59 }
 0x22e   : > { %v4173_v1 = vadd.f32 %v4172_v34, %v4154_v58  ;;  %v4208_v7 = vadd.f32 %v4207_v32, %v4189_v62 }
 0x233   : > { %v4191_v35 = vpop.f32.mrf.mxu2  ;;  %v4155_v37 = vpop.f32.mrf.mxu0 }
 0x234   : > { %v4210_v36 = vpop.f32.mrf.mxu3  ;;  %v4174_v38 = vpop.f32.mrf.mxu1  ;;  %v4156_v2 = vadd.f32 %v4155_v37, %v4137_v60  ;;  %v4192_v6 = vadd.f32 %v4191_v35, %v4173_v1 }
 0x236   : > { %v4175_v8 = vadd.f32 %v4174_v38, %v4156_v2  ;;  %v4211_v11 = vadd.f32 %v4210_v36, %v4192_v6 }
 0x23b   : > { %v4193_v39 = vpop.f32.mrf.mxu2  ;;  %v4224_v41 = vpop.f32.mrf.mxu0 }
 0x23c   : > { %v4212_v40 = vpop.f32.mrf.mxu3  ;;  %v4243_v42 = vpop.f32.mrf.mxu1  ;;  %v4225_v4 = vadd.f32 %v4224_v41, %v4206_v61  ;;  %v4194_v12 = vadd.f32 %v4193_v39, %v4175_v8 }
 0x23e   : > { %v4244_v9 = vadd.f32 %v4243_v42, %v4225_v4  ;;  %v4213_v20 = vadd.f32 %v4212_v40, %v4194_v12 }
 0x243   : > { %v4262_v43 = vpop.f32.mrf.mxu2  ;;  %v4226_v45 = vpop.f32.mrf.mxu0 }
 0x244   : > { %v4281_v44 = vpop.f32.mrf.mxu3  ;;  %v4245_v46 = vpop.f32.mrf.mxu1  ;;  %v4227_v10 = vadd.f32 %v4226_v45, %v4208_v7  ;;  %v4263_v13 = vadd.f32 %v4262_v43, %v4244_v9 }
 0x246   : > { %v4246_v18 = vadd.f32 %v4245_v46, %v4227_v10  ;;  %v4282_v21 = vadd.f32 %v4281_v44, %v4263_v13 }
 0x24b   : > { %v4264_v49 = vpop.f32.mrf.mxu2  ;;  %v4229_v52 = vpop.f32.mrf.mxu0 }
 0x24c   : > { %v4283_v51 = vpop.f32.mrf.mxu3  ;;  %v4248_v55 = vpop.f32.mrf.mxu1  ;;  %v4230_v15 = vadd.f32 %v4229_v52, %v4211_v11  ;;  %v4265_v22 = vadd.f32 %v4264_v49, %v4246_v18 }
 0x24e   : > { %v4249_v23 = vadd.f32 %v4248_v55, %v4230_v15  ;;  %v4284_v27 = vadd.f32 %v4283_v51, %v4265_v22 }
 0x253   : > { %v4267_v0 = vpop.f32.mrf.mxu2  ;;  %v4231_v63 = vpop.f32.mrf.mxu0 }
 0x254   : > { %v4286_v3 = vpop.f32.mrf.mxu3  ;;  %v4250_v5 = vpop.f32.mrf.mxu1  ;;  %v4232_v24 = vadd.f32 %v4231_v63, %v4213_v20  ;;  %v4268_v26 = vadd.f32 %v4267_v0, %v4249_v23 }
 0x256   : > { %v4251_v29 = vadd.f32 %v4250_v5, %v4232_v24  ;;  %v4287_v34 = vadd.f32 %v4286_v3, %v4268_v26 }
 0x25b   : > { %v4269_v14 = vpop.f32.mrf.mxu2  ;;  %v4300_v17 = vpop.f32.mrf.mxu0 }
 0x25c   : > { %v4288_v16 = vpop.f32.mrf.mxu3  ;;  %v4319_v19 = vpop.f32.mrf.mxu1  ;;  %v4301_v25 = vadd.f32 %v4300_v17, %v4282_v21  ;;  %v4270_v35 = vadd.f32 %v4269_v14, %v4251_v29 }
 0x25e   : > { %v4320_v32 = vadd.f32 %v4319_v19, %v4301_v25  ;;  %v4289_v41 = vadd.f32 %v4288_v16, %v4270_v35 }
 0x260   : > { %v4329_v39 = vmax.f32 %v4320_v32, 0.0 }
 0x263   : > { %v4305_v28 = vpop.f32.mrf.mxu2  ;;  %v4302_v31 = vpop.f32.mrf.mxu0 }
 0x264   : > { %v4324_v30 = vpop.f32.mrf.mxu3  ;;  %v4303_v33 = vadd.f32 %v4302_v31, %v4284_v27  ;;  %v4321_v36 = vpop.f32.mrf.mxu1  ;;  %v4306_v38 = vadd.f32 %v4305_v28, %v4287_v34 }
 0x266   : > { %v4322_v37 = vadd.f32 %v4321_v36, %v4303_v33  ;;  %v4325_v44 = vadd.f32 %v4324_v30, %v4306_v38 }
 0x268   : > { %v4330_v40 = vmax.f32 %v4322_v37, 0.0  ;;  %v4331_v48 = vmax.f32 %v4325_v44, 0.0 }
 0x26a   : > { %v5438_v42 = vpack.c.bf16 %v4330_v40, %v4329_v39 }
 0x26b   : > { %v4307_v43 = vpop.f32.mrf.mxu2 }
 0x26c   : > { %v4308_v45 = vadd.f32 %v4307_v43, %v4289_v41  ;;  %5439 = vst [vmem:[%s2599_s26] sm:$0xff] %v5438_v42   ;;  %v4326_v46 = vpop.f32.mrf.mxu3 }
 0x26e   : > { %v4327_v47 = vadd.f32 %v4326_v46, %v4308_v45 }
 0x270   : > { %v4332_v49 = vmax.f32 %v4327_v47, 0.0  ;;  %4347 = sbr.rel (!%p5600_p6) target bundleno = 638 (0x27e), region = 88 }
 0x272   : > { %v5443_v50 = vpack.c.bf16 %v4332_v49, %v4331_v48 }
 0x273   : > { %v4371_v51 = vld [vmem:[%s2599_s26] sm:$0xf] (%p5600_p6)  ;;  %v4373_v52 = vld [vmem:[%s2599_s26 + $0x4] sm:$0xf] (%p5600_p6) }
 0x274   : > { %5445 = vst [vmem:[%s2599_s26 + $0x8] sm:$0xff] %v5443_v50  }
 0x275   : > { %4372 = vst [vmem:[%s4354_s28] sm:$0xf] %v4371_v51 }
 0x276   : > { %4374 = vst [vmem:[%s4354_s28 + $0x8] sm:$0xf] %v4373_v52 }
 0x27b   : > { %v4375_v53 = vld [vmem:[%s2599_s26 + $0x8] sm:$0xf]  ;;  %v4377_v54 = vld [vmem:[%s2599_s26 + $0xc] sm:$0xf] }
 0x27c   : > { %4376 = vst [vmem:[%s4354_s28 + $0x10] sm:$0xf] %v4375_v53 }
 0x27d   : > { %4378 = vst [vmem:[%s4354_s28 + $0x18] sm:$0xf] %v4377_v54 }
 0x27e PF: > { %s13_s16 = sadd.s32 1, %s5543_s16   ;;  %s6601_s12 = smov %s5531_s13 }
 0x27f   : > { %p10_p12 = scmp.ge.s32.totalorder %s13_s16, 4   ;;  %s6602_s13 = smov %s5605_s22 }
 0x280   : > { %s6603_s14 = smov %s5539_s15  ;;  %s6604_s15 = smov %s6606_s17 }
 0x281   :  { %12 = sbr.rel (!%p10_p12) target bundleno = 3 (0x3), region = 170 }

// kernel: colorization_forward.17
= control target key start
LH: loop header
LB: loop body
LE: loop exit
PB: predicated region body
PF: predicated region fallthrough
CT: control target
= control target key end

     0   :  { %s5241_s12 = smov 0   ;;  %s5243_s13 = smov 0   ;;  %s6166_s0 = inlined_call_operand.vmem [shape: bf16[1,16,2304], index: 0, kind: input, shape index: {}]   ;;  %s6167_s1 = inlined_call_operand.vmem [shape: bf16[1,2304,256], index: 1, kind: input, shape index: {}]   ;;  %s6168_s2 = inlined_call_operand.vmem [shape: f32[1,256], index: 2, kind: input, shape index: {}]   ;;  %s6169_s3 = inlined_call_operand.vmem [shape: bf16[1,16,256], index: 3, kind: output, shape index: {}]  }
   0x1   :  { %s5245_s14 = smov 0   ;;  %s5247_s15 = smov 0  }
   0x2   :  { %s5249_s16 = smov 0  }
   0x3 LB: > { %s25_s17 = sadd.s32 1, %s5215_s15  ;;  %s4311_s18 = sadd.s32 4294967295, %s5219_s16   ;;  %s5219_s16 = sphi %s5249_s16, %s13_s16   ;;  %s5215_s15 = sphi %s5247_s15, %s6174_s15   ;;  %s5211_s14 = sphi %s5245_s14, %s6173_s14   ;;  %s5207_s13 = sphi %s5243_s13, %s6172_s13   ;;  %s5203_s12 = sphi %s5241_s12, %s6171_s12  }
   0x4   : > { %p26_p0 = scmp.ge.s32.totalorder %s25_s17, 2  ;;  %p76_p1 = scmp.ne.s32.totalorder %s5207_s13, %s5203_s12 }
   0x5   : > { %p77_p2 = scmp.eq.s32.totalorder %s5219_s16, 0  ;;  %p136_p4 = scmp.eq.s32.totalorder %s4311_s18, 1 }
   0x6   : > { %s6176_s17 = smov (%p26_p0, %s25_s17), 0  ;;  %s69_s20 = sadd.s32 1, %s5207_s13 }
   0x7   : > { %p78_p3 = por %p77_p2, %p76_p1  ;;  %s65_s19 = ssub.s32 %s5215_s15, %s6176_s17 }
   0x8   : > { %p67_p5 = scmp.eq.s32.totalorder %s65_s19, 0  ;;  %p5276_p6 = por %p136_p4, %p76_p1 }
   0x9   : > { %p4315_p7 = scmp.ge.s32.totalorder %s5219_s16, 2 }
   0xa   : > { %s5281_s22 = scalar_select %p67_p5, %s5207_s13, %s69_s20  }
   0xb   : > { %172 = sbr.rel (%p4315_p7) target bundleno = 309 (0x135), region = 20 }
  0x10   : > { %175 = sbr.rel (!%p78_p3) target bundleno = 309 (0x135), region = 24  ;;  %s177_s23 = sand.u32 (%p78_p3), 1, %s5207_s13  }
  0x11   : > { %s4316_s24 = sshll.u32 (%p78_p3), %s5215_s15, 2  ;;  %s5138_s25 = smul.u32 (%p78_p3), 1152, %s177_s23 }
  0x12   : > { %s5289_s28 = scalar_lea.vmem (%p78_p3), %s6167_s1, %s4316_s24 }
  0x13   : > { %v200_v0 = vld [vmem:[%s5289_s28] sm:$0xf] (%p78_p3)  ;;  %v202_v1 = vld [vmem:[%s5289_s28 + $0x8] sm:$0xf] (%p78_p3)  ;;  %v204_v2 = vld [vmem:[%s5289_s28 + $0x10] sm:$0xf] (%p78_p3) }
  0x14   : > { %s5294_s29 = scalar_lea.vmem (%p78_p3), [#allocation2], %s5138_s25  ;;  %v206_v3 = vld [vmem:[%s5289_s28 + $0x18] sm:$0xf] (%p78_p3)  ;;  %v208_v4 = vld [vmem:[%s5289_s28 + $0x20] sm:$0xf] (%p78_p3) }
  0x15   : > { %201 = vst [vmem:[%s5294_s29] sm:$0xf] %v200_v0  ;;  %v210_v5 = vld [vmem:[%s5289_s28 + $0x28] sm:$0xf]  ;;  %v212_v6 = vld [vmem:[%s5289_s28 + $0x30] sm:$0xf] }
  0x16   : > { %203 = vst [vmem:[%s5294_s29 + $0x4] sm:$0xf] %v202_v1  ;;  %v214_v7 = vld [vmem:[%s5289_s28 + $0x38] sm:$0xf]  ;;  %v216_v8 = vld [vmem:[%s5289_s28 + $0x40] sm:$0xf] }
  0x17   : > { %205 = vst [vmem:[%s5294_s29 + $0x8] sm:$0xf] %v204_v2  ;;  %v218_v9 = vld [vmem:[%s5289_s28 + $0x48] sm:$0xf]  ;;  %v220_v10 = vld [vmem:[%s5289_s28 + $0x50] sm:$0xf] }
  0x18   : > { %207 = vst [vmem:[%s5294_s29 + $0xc] sm:$0xf] %v206_v3  ;;  %v222_v11 = vld [vmem:[%s5289_s28 + $0x58] sm:$0xf]  ;;  %v224_v12 = vld [vmem:[%s5289_s28 + $0x60] sm:$0xf] }
  0x19   : > { %209 = vst [vmem:[%s5294_s29 + $0x10] sm:$0xf] %v208_v4  ;;  %v226_v13 = vld [vmem:[%s5289_s28 + $0x68] sm:$0xf]  ;;  %v228_v14 = vld [vmem:[%s5289_s28 + $0x70] sm:$0xf] }
  0x1a   : > { %211 = vst [vmem:[%s5294_s29 + $0x14] sm:$0xf] %v210_v5  ;;  %v230_v15 = vld [vmem:[%s5289_s28 + $0x78] sm:$0xf]  ;;  %v232_v16 = vld [vmem:[%s5289_s28 + $0x80] sm:$0xf] }
  0x1b   : > { %213 = vst [vmem:[%s5294_s29 + $0x18] sm:$0xf] %v212_v6  ;;  %v234_v17 = vld [vmem:[%s5289_s28 + $0x88] sm:$0xf]  ;;  %v236_v18 = vld [vmem:[%s5289_s28 + $0x90] sm:$0xf] }
  0x1c   : > { %215 = vst [vmem:[%s5294_s29 + $0x1c] sm:$0xf] %v214_v7  ;;  %v238_v19 = vld [vmem:[%s5289_s28 + $0x98] sm:$0xf]  ;;  %v240_v20 = vld [vmem:[%s5289_s28 + $0xa0] sm:$0xf] }
  0x1d   : > { %217 = vst [vmem:[%s5294_s29 + $0x20] sm:$0xf] %v216_v8  ;;  %v242_v21 = vld [vmem:[%s5289_s28 + $0xa8] sm:$0xf]  ;;  %v244_v22 = vld [vmem:[%s5289_s28 + $0xb0] sm:$0xf] }
  0x1e   : > { %219 = vst [vmem:[%s5294_s29 + $0x24] sm:$0xf] %v218_v9  ;;  %v246_v23 = vld [vmem:[%s5289_s28 + $0xb8] sm:$0xf]  ;;  %v248_v24 = vld [vmem:[%s5289_s28 + $0xc0] sm:$0xf] }
  0x1f   : > { %221 = vst [vmem:[%s5294_s29 + $0x28] sm:$0xf] %v220_v10  ;;  %v250_v25 = vld [vmem:[%s5289_s28 + $0xc8] sm:$0xf]  ;;  %v252_v26 = vld [vmem:[%s5289_s28 + $0xd0] sm:$0xf] }
  0x20   : > { %223 = vst [vmem:[%s5294_s29 + $0x2c] sm:$0xf] %v222_v11  ;;  %v254_v27 = vld [vmem:[%s5289_s28 + $0xd8] sm:$0xf]  ;;  %v256_v28 = vld [vmem:[%s5289_s28 + $0xe0] sm:$0xf] }
  0x21   : > { %225 = vst [vmem:[%s5294_s29 + $0x30] sm:$0xf] %v224_v12  ;;  %v258_v29 = vld [vmem:[%s5289_s28 + $0xe8] sm:$0xf]  ;;  %v260_v30 = vld [vmem:[%s5289_s28 + $0xf0] sm:$0xf] }
  0x22   : > { %227 = vst [vmem:[%s5294_s29 + $0x34] sm:$0xf] %v226_v13  ;;  %v262_v31 = vld [vmem:[%s5289_s28 + $0xf8] sm:$0xf]  ;;  %v264_v32 = vld [vmem:[%s5289_s28 + $0x100] sm:$0xf] }
  0x23   : > { %229 = vst [vmem:[%s5294_s29 + $0x38] sm:$0xf] %v228_v14  ;;  %v266_v33 = vld [vmem:[%s5289_s28 + $0x108] sm:$0xf]  ;;  %v268_v34 = vld [vmem:[%s5289_s28 + $0x110] sm:$0xf] }
  0x24   : > { %231 = vst [vmem:[%s5294_s29 + $0x3c] sm:$0xf] %v230_v15  ;;  %v270_v35 = vld [vmem:[%s5289_s28 + $0x118] sm:$0xf]  ;;  %v272_v36 = vld [vmem:[%s5289_s28 + $0x120] sm:$0xf] }
  0x25   : > { %233 = vst [vmem:[%s5294_s29 + $0x40] sm:$0xf] %v232_v16  ;;  %v274_v37 = vld [vmem:[%s5289_s28 + $0x128] sm:$0xf]  ;;  %v276_v38 = vld [vmem:[%s5289_s28 + $0x130] sm:$0xf] }
  0x26   : > { %235 = vst [vmem:[%s5294_s29 + $0x44] sm:$0xf] %v234_v17  ;;  %v278_v39 = vld [vmem:[%s5289_s28 + $0x138] sm:$0xf]  ;;  %v280_v40 = vld [vmem:[%s5289_s28 + $0x140] sm:$0xf] }
  0x27   : > { %237 = vst [vmem:[%s5294_s29 + $0x48] sm:$0xf] %v236_v18  ;;  %v282_v41 = vld [vmem:[%s5289_s28 + $0x148] sm:$0xf]  ;;  %v284_v42 = vld [vmem:[%s5289_s28 + $0x150] sm:$0xf] }
  0x28   : > { %239 = vst [vmem:[%s5294_s29 + $0x4c] sm:$0xf] %v238_v19  ;;  %v286_v43 = vld [vmem:[%s5289_s28 + $0x158] sm:$0xf]  ;;  %v288_v44 = vld [vmem:[%s5289_s28 + $0x160] sm:$0xf] }
  0x29   : > { %241 = vst [vmem:[%s5294_s29 + $0x50] sm:$0xf] %v240_v20  ;;  %v290_v45 = vld [vmem:[%s5289_s28 + $0x168] sm:$0xf]  ;;  %v292_v46 = vld [vmem:[%s5289_s28 + $0x170] sm:$0xf] }
  0x2a   : > { %243 = vst [vmem:[%s5294_s29 + $0x54] sm:$0xf] %v242_v21  ;;  %v294_v47 = vld [vmem:[%s5289_s28 + $0x178] sm:$0xf]  ;;  %v296_v48 = vld [vmem:[%s5289_s28 + $0x180] sm:$0xf] }
  0x2b   : > { %245 = vst [vmem:[%s5294_s29 + $0x58] sm:$0xf] %v244_v22  ;;  %v298_v49 = vld [vmem:[%s5289_s28 + $0x188] sm:$0xf]  ;;  %v300_v50 = vld [vmem:[%s5289_s28 + $0x190] sm:$0xf] }
  0x2c   : > { %247 = vst [vmem:[%s5294_s29 + $0x5c] sm:$0xf] %v246_v23  ;;  %v302_v51 = vld [vmem:[%s5289_s28 + $0x198] sm:$0xf]  ;;  %v304_v52 = vld [vmem:[%s5289_s28 + $0x1a0] sm:$0xf] }
  0x2d   : > { %249 = vst [vmem:[%s5294_s29 + $0x60] sm:$0xf] %v248_v24  ;;  %v306_v53 = vld [vmem:[%s5289_s28 + $0x1a8] sm:$0xf]  ;;  %v308_v54 = vld [vmem:[%s5289_s28 + $0x1b0] sm:$0xf] }
  0x2e   : > { %251 = vst [vmem:[%s5294_s29 + $0x64] sm:$0xf] %v250_v25  ;;  %v310_v55 = vld [vmem:[%s5289_s28 + $0x1b8] sm:$0xf]  ;;  %v312_v56 = vld [vmem:[%s5289_s28 + $0x1c0] sm:$0xf] }
  0x2f   : > { %253 = vst [vmem:[%s5294_s29 + $0x68] sm:$0xf] %v252_v26  ;;  %v314_v57 = vld [vmem:[%s5289_s28 + $0x1c8] sm:$0xf]  ;;  %v316_v58 = vld [vmem:[%s5289_s28 + $0x1d0] sm:$0xf] }
  0x30   : > { %255 = vst [vmem:[%s5294_s29 + $0x6c] sm:$0xf] %v254_v27  ;;  %v318_v59 = vld [vmem:[%s5289_s28 + $0x1d8] sm:$0xf]  ;;  %v320_v60 = vld [vmem:[%s5289_s28 + $0x1e0] sm:$0xf] }
  0x31   : > { %257 = vst [vmem:[%s5294_s29 + $0x70] sm:$0xf] %v256_v28  ;;  %v322_v61 = vld [vmem:[%s5289_s28 + $0x1e8] sm:$0xf]  ;;  %v324_v62 = vld [vmem:[%s5289_s28 + $0x1f0] sm:$0xf] }
  0x32   : > { %259 = vst [vmem:[%s5294_s29 + $0x74] sm:$0xf] %v258_v29  ;;  %v326_v63 = vld [vmem:[%s5289_s28 + $0x1f8] sm:$0xf]  ;;  %v328_v0 = vld [vmem:[%s5289_s28 + $0x200] sm:$0xf] }
  0x33   : > { %261 = vst [vmem:[%s5294_s29 + $0x78] sm:$0xf] %v260_v30  ;;  %v330_v1 = vld [vmem:[%s5289_s28 + $0x208] sm:$0xf]  ;;  %v332_v2 = vld [vmem:[%s5289_s28 + $0x210] sm:$0xf] }
  0x34   : > { %263 = vst [vmem:[%s5294_s29 + $0x7c] sm:$0xf] %v262_v31  ;;  %v334_v3 = vld [vmem:[%s5289_s28 + $0x218] sm:$0xf]  ;;  %v336_v4 = vld [vmem:[%s5289_s28 + $0x220] sm:$0xf] }
  0x35   : > { %265 = vst [vmem:[%s5294_s29 + $0x80] sm:$0xf] %v264_v32  ;;  %v338_v5 = vld [vmem:[%s5289_s28 + $0x228] sm:$0xf]  ;;  %v340_v6 = vld [vmem:[%s5289_s28 + $0x230] sm:$0xf] }
  0x36   : > { %267 = vst [vmem:[%s5294_s29 + $0x84] sm:$0xf] %v266_v33  ;;  %v342_v7 = vld [vmem:[%s5289_s28 + $0x238] sm:$0xf]  ;;  %v344_v8 = vld [vmem:[%s5289_s28 + $0x240] sm:$0xf] }
  0x37   : > { %269 = vst [vmem:[%s5294_s29 + $0x88] sm:$0xf] %v268_v34  ;;  %v346_v9 = vld [vmem:[%s5289_s28 + $0x248] sm:$0xf]  ;;  %v348_v10 = vld [vmem:[%s5289_s28 + $0x250] sm:$0xf] }
  0x38   : > { %271 = vst [vmem:[%s5294_s29 + $0x8c] sm:$0xf] %v270_v35  ;;  %v350_v11 = vld [vmem:[%s5289_s28 + $0x258] sm:$0xf]  ;;  %v352_v12 = vld [vmem:[%s5289_s28 + $0x260] sm:$0xf] }
  0x39   : > { %273 = vst [vmem:[%s5294_s29 + $0x90] sm:$0xf] %v272_v36  ;;  %v354_v13 = vld [vmem:[%s5289_s28 + $0x268] sm:$0xf]  ;;  %v356_v14 = vld [vmem:[%s5289_s28 + $0x270] sm:$0xf] }
  0x3a   : > { %275 = vst [vmem:[%s5294_s29 + $0x94] sm:$0xf] %v274_v37  ;;  %v358_v15 = vld [vmem:[%s5289_s28 + $0x278] sm:$0xf]  ;;  %v360_v16 = vld [vmem:[%s5289_s28 + $0x280] sm:$0xf] }
  0x3b   : > { %277 = vst [vmem:[%s5294_s29 + $0x98] sm:$0xf] %v276_v38  ;;  %v362_v17 = vld [vmem:[%s5289_s28 + $0x288] sm:$0xf]  ;;  %v364_v18 = vld [vmem:[%s5289_s28 + $0x290] sm:$0xf] }
  0x3c   : > { %279 = vst [vmem:[%s5294_s29 + $0x9c] sm:$0xf] %v278_v39  ;;  %v366_v19 = vld [vmem:[%s5289_s28 + $0x298] sm:$0xf]  ;;  %v368_v20 = vld [vmem:[%s5289_s28 + $0x2a0] sm:$0xf] }
  0x3d   : > { %281 = vst [vmem:[%s5294_s29 + $0xa0] sm:$0xf] %v280_v40  ;;  %v370_v21 = vld [vmem:[%s5289_s28 + $0x2a8] sm:$0xf]  ;;  %v372_v22 = vld [vmem:[%s5289_s28 + $0x2b0] sm:$0xf] }
  0x3e   : > { %283 = vst [vmem:[%s5294_s29 + $0xa4] sm:$0xf] %v282_v41  ;;  %v374_v23 = vld [vmem:[%s5289_s28 + $0x2b8] sm:$0xf]  ;;  %v376_v24 = vld [vmem:[%s5289_s28 + $0x2c0] sm:$0xf] }
  0x3f   : > { %285 = vst [vmem:[%s5294_s29 + $0xa8] sm:$0xf] %v284_v42  ;;  %v378_v25 = vld [vmem:[%s5289_s28 + $0x2c8] sm:$0xf]  ;;  %v380_v26 = vld [vmem:[%s5289_s28 + $0x2d0] sm:$0xf] }
  0x40   : > { %287 = vst [vmem:[%s5294_s29 + $0xac] sm:$0xf] %v286_v43  ;;  %v382_v27 = vld [vmem:[%s5289_s28 + $0x2d8] sm:$0xf]  ;;  %v384_v28 = vld [vmem:[%s5289_s28 + $0x2e0] sm:$0xf] }
  0x41   : > { %289 = vst [vmem:[%s5294_s29 + $0xb0] sm:$0xf] %v288_v44  ;;  %v386_v29 = vld [vmem:[%s5289_s28 + $0x2e8] sm:$0xf]  ;;  %v388_v30 = vld [vmem:[%s5289_s28 + $0x2f0] sm:$0xf] }
  0x42   : > { %291 = vst [vmem:[%s5294_s29 + $0xb4] sm:$0xf] %v290_v45  ;;  %v390_v31 = vld [vmem:[%s5289_s28 + $0x2f8] sm:$0xf]  ;;  %v392_v32 = vld [vmem:[%s5289_s28 + $0x300] sm:$0xf] }
  0x43   : > { %293 = vst [vmem:[%s5294_s29 + $0xb8] sm:$0xf] %v292_v46  ;;  %v394_v33 = vld [vmem:[%s5289_s28 + $0x308] sm:$0xf]  ;;  %v396_v34 = vld [vmem:[%s5289_s28 + $0x310] sm:$0xf] }
  0x44   : > { %295 = vst [vmem:[%s5294_s29 + $0xbc] sm:$0xf] %v294_v47  ;;  %v398_v35 = vld [vmem:[%s5289_s28 + $0x318] sm:$0xf]  ;;  %v400_v36 = vld [vmem:[%s5289_s28 + $0x320] sm:$0xf] }
  0x45   : > { %297 = vst [vmem:[%s5294_s29 + $0xc0] sm:$0xf] %v296_v48  ;;  %v402_v37 = vld [vmem:[%s5289_s28 + $0x328] sm:$0xf]  ;;  %v404_v38 = vld [vmem:[%s5289_s28 + $0x330] sm:$0xf] }
  0x46   : > { %299 = vst [vmem:[%s5294_s29 + $0xc4] sm:$0xf] %v298_v49  ;;  %v406_v39 = vld [vmem:[%s5289_s28 + $0x338] sm:$0xf]  ;;  %v408_v40 = vld [vmem:[%s5289_s28 + $0x340] sm:$0xf] }
  0x47   : > { %301 = vst [vmem:[%s5294_s29 + $0xc8] sm:$0xf] %v300_v50  ;;  %v410_v41 = vld [vmem:[%s5289_s28 + $0x348] sm:$0xf]  ;;  %v412_v42 = vld [vmem:[%s5289_s28 + $0x350] sm:$0xf] }
  0x48   : > { %303 = vst [vmem:[%s5294_s29 + $0xcc] sm:$0xf] %v302_v51  ;;  %v414_v43 = vld [vmem:[%s5289_s28 + $0x358] sm:$0xf]  ;;  %v416_v44 = vld [vmem:[%s5289_s28 + $0x360] sm:$0xf] }
  0x49   : > { %305 = vst [vmem:[%s5294_s29 + $0xd0] sm:$0xf] %v304_v52  ;;  %v418_v45 = vld [vmem:[%s5289_s28 + $0x368] sm:$0xf]  ;;  %v420_v46 = vld [vmem:[%s5289_s28 + $0x370] sm:$0xf] }
  0x4a   : > { %307 = vst [vmem:[%s5294_s29 + $0xd4] sm:$0xf] %v306_v53  ;;  %v422_v47 = vld [vmem:[%s5289_s28 + $0x378] sm:$0xf]  ;;  %v424_v48 = vld [vmem:[%s5289_s28 + $0x380] sm:$0xf] }
  0x4b   : > { %309 = vst [vmem:[%s5294_s29 + $0xd8] sm:$0xf] %v308_v54  ;;  %v426_v49 = vld [vmem:[%s5289_s28 + $0x388] sm:$0xf]  ;;  %v428_v50 = vld [vmem:[%s5289_s28 + $0x390] sm:$0xf] }
  0x4c   : > { %311 = vst [vmem:[%s5294_s29 + $0xdc] sm:$0xf] %v310_v55  ;;  %v430_v51 = vld [vmem:[%s5289_s28 + $0x398] sm:$0xf]  ;;  %v432_v52 = vld [vmem:[%s5289_s28 + $0x3a0] sm:$0xf] }
  0x4d   : > { %313 = vst [vmem:[%s5294_s29 + $0xe0] sm:$0xf] %v312_v56  ;;  %v434_v53 = vld [vmem:[%s5289_s28 + $0x3a8] sm:$0xf]  ;;  %v436_v54 = vld [vmem:[%s5289_s28 + $0x3b0] sm:$0xf] }
  0x4e   : > { %315 = vst [vmem:[%s5294_s29 + $0xe4] sm:$0xf] %v314_v57  ;;  %v438_v55 = vld [vmem:[%s5289_s28 + $0x3b8] sm:$0xf]  ;;  %v440_v56 = vld [vmem:[%s5289_s28 + $0x3c0] sm:$0xf] }
  0x4f   : > { %317 = vst [vmem:[%s5294_s29 + $0xe8] sm:$0xf] %v316_v58  ;;  %v442_v57 = vld [vmem:[%s5289_s28 + $0x3c8] sm:$0xf]  ;;  %v444_v58 = vld [vmem:[%s5289_s28 + $0x3d0] sm:$0xf] }
  0x50   : > { %319 = vst [vmem:[%s5294_s29 + $0xec] sm:$0xf] %v318_v59  ;;  %v446_v59 = vld [vmem:[%s5289_s28 + $0x3d8] sm:$0xf] }
  0x51   : > { %321 = vst [vmem:[%s5294_s29 + $0xf0] sm:$0xf] %v320_v60  ;;  %v448_v60 = vld [vmem:[%s5289_s28 + $0x3e0] sm:$0xf] }
  0x52   : > { %323 = vst [vmem:[%s5294_s29 + $0xf4] sm:$0xf] %v322_v61  ;;  %v450_v61 = vld [vmem:[%s5289_s28 + $0x3e8] sm:$0xf] }
  0x53   : > { %325 = vst [vmem:[%s5294_s29 + $0xf8] sm:$0xf] %v324_v62  ;;  %v452_v62 = vld [vmem:[%s5289_s28 + $0x3f0] sm:$0xf] }
  0x54   : > { %327 = vst [vmem:[%s5294_s29 + $0xfc] sm:$0xf] %v326_v63  ;;  %v454_v63 = vld [vmem:[%s5289_s28 + $0x3f8] sm:$0xf] }
  0x55   : > { %329 = vst [vmem:[%s5294_s29 + $0x100] sm:$0xf] %v328_v0  ;;  %v456_v0 = vld [vmem:[%s5289_s28 + $0x400] sm:$0xf] }
  0x56   : > { %331 = vst [vmem:[%s5294_s29 + $0x104] sm:$0xf] %v330_v1  ;;  %v458_v1 = vld [vmem:[%s5289_s28 + $0x408] sm:$0xf] }
  0x57   : > { %333 = vst [vmem:[%s5294_s29 + $0x108] sm:$0xf] %v332_v2  ;;  %v460_v2 = vld [vmem:[%s5289_s28 + $0x410] sm:$0xf] }
  0x58   : > { %335 = vst [vmem:[%s5294_s29 + $0x10c] sm:$0xf] %v334_v3  ;;  %v462_v3 = vld [vmem:[%s5289_s28 + $0x418] sm:$0xf] }
  0x59   : > { %337 = vst [vmem:[%s5294_s29 + $0x110] sm:$0xf] %v336_v4  ;;  %v464_v4 = vld [vmem:[%s5289_s28 + $0x420] sm:$0xf] }
  0x5a   : > { %339 = vst [vmem:[%s5294_s29 + $0x114] sm:$0xf] %v338_v5  ;;  %v466_v5 = vld [vmem:[%s5289_s28 + $0x428] sm:$0xf] }
  0x5b   : > { %341 = vst [vmem:[%s5294_s29 + $0x118] sm:$0xf] %v340_v6  ;;  %v468_v6 = vld [vmem:[%s5289_s28 + $0x430] sm:$0xf] }
  0x5c   : > { %343 = vst [vmem:[%s5294_s29 + $0x11c] sm:$0xf] %v342_v7  ;;  %v470_v7 = vld [vmem:[%s5289_s28 + $0x438] sm:$0xf] }
  0x5d   : > { %345 = vst [vmem:[%s5294_s29 + $0x120] sm:$0xf] %v344_v8  ;;  %v472_v8 = vld [vmem:[%s5289_s28 + $0x440] sm:$0xf] }
  0x5e   : > { %347 = vst [vmem:[%s5294_s29 + $0x124] sm:$0xf] %v346_v9  ;;  %v474_v9 = vld [vmem:[%s5289_s28 + $0x448] sm:$0xf] }
  0x5f   : > { %349 = vst [vmem:[%s5294_s29 + $0x128] sm:$0xf] %v348_v10  ;;  %v476_v10 = vld [vmem:[%s5289_s28 + $0x450] sm:$0xf] }
  0x60   : > { %351 = vst [vmem:[%s5294_s29 + $0x12c] sm:$0xf] %v350_v11  ;;  %v478_v11 = vld [vmem:[%s5289_s28 + $0x458] sm:$0xf] }
  0x61   : > { %353 = vst [vmem:[%s5294_s29 + $0x130] sm:$0xf] %v352_v12  ;;  %v480_v12 = vld [vmem:[%s5289_s28 + $0x460] sm:$0xf] }
  0x62   : > { %355 = vst [vmem:[%s5294_s29 + $0x134] sm:$0xf] %v354_v13  ;;  %v482_v13 = vld [vmem:[%s5289_s28 + $0x468] sm:$0xf] }
  0x63   : > { %357 = vst [vmem:[%s5294_s29 + $0x138] sm:$0xf] %v356_v14  ;;  %v484_v14 = vld [vmem:[%s5289_s28 + $0x470] sm:$0xf] }
  0x64   : > { %359 = vst [vmem:[%s5294_s29 + $0x13c] sm:$0xf] %v358_v15  ;;  %v486_v15 = vld [vmem:[%s5289_s28 + $0x478] sm:$0xf] }
  0x65   : > { %361 = vst [vmem:[%s5294_s29 + $0x140] sm:$0xf] %v360_v16  ;;  %v488_v16 = vld [vmem:[%s5289_s28 + $0x480] sm:$0xf] }
  0x66   : > { %363 = vst [vmem:[%s5294_s29 + $0x144] sm:$0xf] %v362_v17  ;;  %v490_v17 = vld [vmem:[%s5289_s28 + $0x488] sm:$0xf] }
  0x67   : > { %365 = vst [vmem:[%s5294_s29 + $0x148] sm:$0xf] %v364_v18  ;;  %v492_v18 = vld [vmem:[%s5289_s28 + $0x490] sm:$0xf] }
  0x68   : > { %367 = vst [vmem:[%s5294_s29 + $0x14c] sm:$0xf] %v366_v19  ;;  %v494_v19 = vld [vmem:[%s5289_s28 + $0x498] sm:$0xf] }
  0x69   : > { %369 = vst [vmem:[%s5294_s29 + $0x150] sm:$0xf] %v368_v20  ;;  %v496_v20 = vld [vmem:[%s5289_s28 + $0x4a0] sm:$0xf] }
  0x6a   : > { %371 = vst [vmem:[%s5294_s29 + $0x154] sm:$0xf] %v370_v21  ;;  %v498_v21 = vld [vmem:[%s5289_s28 + $0x4a8] sm:$0xf] }
  0x6b   : > { %373 = vst [vmem:[%s5294_s29 + $0x158] sm:$0xf] %v372_v22  ;;  %v500_v22 = vld [vmem:[%s5289_s28 + $0x4b0] sm:$0xf] }
  0x6c   : > { %375 = vst [vmem:[%s5294_s29 + $0x15c] sm:$0xf] %v374_v23  ;;  %v502_v23 = vld [vmem:[%s5289_s28 + $0x4b8] sm:$0xf] }
  0x6d   : > { %377 = vst [vmem:[%s5294_s29 + $0x160] sm:$0xf] %v376_v24  ;;  %v504_v24 = vld [vmem:[%s5289_s28 + $0x4c0] sm:$0xf] }
  0x6e   : > { %379 = vst [vmem:[%s5294_s29 + $0x164] sm:$0xf] %v378_v25  ;;  %v506_v25 = vld [vmem:[%s5289_s28 + $0x4c8] sm:$0xf] }
  0x6f   : > { %381 = vst [vmem:[%s5294_s29 + $0x168] sm:$0xf] %v380_v26  ;;  %v508_v26 = vld [vmem:[%s5289_s28 + $0x4d0] sm:$0xf] }
  0x70   : > { %383 = vst [vmem:[%s5294_s29 + $0x16c] sm:$0xf] %v382_v27  ;;  %v510_v27 = vld [vmem:[%s5289_s28 + $0x4d8] sm:$0xf] }
  0x71   : > { %385 = vst [vmem:[%s5294_s29 + $0x170] sm:$0xf] %v384_v28  ;;  %v512_v28 = vld [vmem:[%s5289_s28 + $0x4e0] sm:$0xf] }
  0x72   : > { %387 = vst [vmem:[%s5294_s29 + $0x174] sm:$0xf] %v386_v29  ;;  %v514_v29 = vld [vmem:[%s5289_s28 + $0x4e8] sm:$0xf] }
  0x73   : > { %389 = vst [vmem:[%s5294_s29 + $0x178] sm:$0xf] %v388_v30  ;;  %v516_v30 = vld [vmem:[%s5289_s28 + $0x4f0] sm:$0xf] }
  0x74   : > { %391 = vst [vmem:[%s5294_s29 + $0x17c] sm:$0xf] %v390_v31  ;;  %v518_v31 = vld [vmem:[%s5289_s28 + $0x4f8] sm:$0xf] }
  0x75   : > { %393 = vst [vmem:[%s5294_s29 + $0x180] sm:$0xf] %v392_v32  ;;  %v520_v32 = vld [vmem:[%s5289_s28 + $0x500] sm:$0xf] }
  0x76   : > { %395 = vst [vmem:[%s5294_s29 + $0x184] sm:$0xf] %v394_v33  ;;  %v522_v33 = vld [vmem:[%s5289_s28 + $0x508] sm:$0xf] }
  0x77   : > { %397 = vst [vmem:[%s5294_s29 + $0x188] sm:$0xf] %v396_v34  ;;  %v524_v34 = vld [vmem:[%s5289_s28 + $0x510] sm:$0xf] }
  0x78   : > { %399 = vst [vmem:[%s5294_s29 + $0x18c] sm:$0xf] %v398_v35  ;;  %v526_v35 = vld [vmem:[%s5289_s28 + $0x518] sm:$0xf] }
  0x79   : > { %401 = vst [vmem:[%s5294_s29 + $0x190] sm:$0xf] %v400_v36  ;;  %v528_v36 = vld [vmem:[%s5289_s28 + $0x520] sm:$0xf] }
  0x7a   : > { %403 = vst [vmem:[%s5294_s29 + $0x194] sm:$0xf] %v402_v37  ;;  %v530_v37 = vld [vmem:[%s5289_s28 + $0x528] sm:$0xf] }
  0x7b   : > { %405 = vst [vmem:[%s5294_s29 + $0x198] sm:$0xf] %v404_v38  ;;  %v532_v38 = vld [vmem:[%s5289_s28 + $0x530] sm:$0xf] }
  0x7c   : > { %407 = vst [vmem:[%s5294_s29 + $0x19c] sm:$0xf] %v406_v39  ;;  %v534_v39 = vld [vmem:[%s5289_s28 + $0x538] sm:$0xf] }
  0x7d   : > { %409 = vst [vmem:[%s5294_s29 + $0x1a0] sm:$0xf] %v408_v40  ;;  %v536_v40 = vld [vmem:[%s5289_s28 + $0x540] sm:$0xf] }
  0x7e   : > { %411 = vst [vmem:[%s5294_s29 + $0x1a4] sm:$0xf] %v410_v41  ;;  %v538_v41 = vld [vmem:[%s5289_s28 + $0x548] sm:$0xf] }
  0x7f   : > { %413 = vst [vmem:[%s5294_s29 + $0x1a8] sm:$0xf] %v412_v42  ;;  %v540_v42 = vld [vmem:[%s5289_s28 + $0x550] sm:$0xf] }
  0x80   : > { %415 = vst [vmem:[%s5294_s29 + $0x1ac] sm:$0xf] %v414_v43  ;;  %v542_v43 = vld [vmem:[%s5289_s28 + $0x558] sm:$0xf] }
  0x81   : > { %417 = vst [vmem:[%s5294_s29 + $0x1b0] sm:$0xf] %v416_v44  ;;  %v544_v44 = vld [vmem:[%s5289_s28 + $0x560] sm:$0xf] }
  0x82   : > { %419 = vst [vmem:[%s5294_s29 + $0x1b4] sm:$0xf] %v418_v45  ;;  %v546_v45 = vld [vmem:[%s5289_s28 + $0x568] sm:$0xf] }
  0x83   : > { %421 = vst [vmem:[%s5294_s29 + $0x1b8] sm:$0xf] %v420_v46  ;;  %v548_v46 = vld [vmem:[%s5289_s28 + $0x570] sm:$0xf] }
  0x84   : > { %423 = vst [vmem:[%s5294_s29 + $0x1bc] sm:$0xf] %v422_v47  ;;  %v550_v47 = vld [vmem:[%s5289_s28 + $0x578] sm:$0xf] }
  0x85   : > { %425 = vst [vmem:[%s5294_s29 + $0x1c0] sm:$0xf] %v424_v48  ;;  %v552_v48 = vld [vmem:[%s5289_s28 + $0x580] sm:$0xf] }
  0x86   : > { %427 = vst [vmem:[%s5294_s29 + $0x1c4] sm:$0xf] %v426_v49  ;;  %v554_v49 = vld [vmem:[%s5289_s28 + $0x588] sm:$0xf] }
  0x87   : > { %429 = vst [vmem:[%s5294_s29 + $0x1c8] sm:$0xf] %v428_v50  ;;  %v556_v50 = vld [vmem:[%s5289_s28 + $0x590] sm:$0xf] }
  0x88   : > { %431 = vst [vmem:[%s5294_s29 + $0x1cc] sm:$0xf] %v430_v51  ;;  %v558_v51 = vld [vmem:[%s5289_s28 + $0x598] sm:$0xf] }
  0x89   : > { %433 = vst [vmem:[%s5294_s29 + $0x1d0] sm:$0xf] %v432_v52  ;;  %v560_v52 = vld [vmem:[%s5289_s28 + $0x5a0] sm:$0xf] }
  0x8a   : > { %435 = vst [vmem:[%s5294_s29 + $0x1d4] sm:$0xf] %v434_v53  ;;  %v562_v53 = vld [vmem:[%s5289_s28 + $0x5a8] sm:$0xf] }
  0x8b   : > { %437 = vst [vmem:[%s5294_s29 + $0x1d8] sm:$0xf] %v436_v54  ;;  %v564_v54 = vld [vmem:[%s5289_s28 + $0x5b0] sm:$0xf] }
  0x8c   : > { %439 = vst [vmem:[%s5294_s29 + $0x1dc] sm:$0xf] %v438_v55  ;;  %v566_v55 = vld [vmem:[%s5289_s28 + $0x5b8] sm:$0xf] }
  0x8d   : > { %441 = vst [vmem:[%s5294_s29 + $0x1e0] sm:$0xf] %v440_v56  ;;  %v568_v56 = vld [vmem:[%s5289_s28 + $0x5c0] sm:$0xf] }
  0x8e   : > { %443 = vst [vmem:[%s5294_s29 + $0x1e4] sm:$0xf] %v442_v57  ;;  %v570_v57 = vld [vmem:[%s5289_s28 + $0x5c8] sm:$0xf] }
  0x8f   : > { %445 = vst [vmem:[%s5294_s29 + $0x1e8] sm:$0xf] %v444_v58  ;;  %v572_v58 = vld [vmem:[%s5289_s28 + $0x5d0] sm:$0xf] }
  0x90   : > { %447 = vst [vmem:[%s5294_s29 + $0x1ec] sm:$0xf] %v446_v59  ;;  %v574_v59 = vld [vmem:[%s5289_s28 + $0x5d8] sm:$0xf] }
  0x91   : > { %449 = vst [vmem:[%s5294_s29 + $0x1f0] sm:$0xf] %v448_v60  ;;  %v576_v60 = vld [vmem:[%s5289_s28 + $0x5e0] sm:$0xf] }
  0x92   : > { %451 = vst [vmem:[%s5294_s29 + $0x1f4] sm:$0xf] %v450_v61  ;;  %v578_v61 = vld [vmem:[%s5289_s28 + $0x5e8] sm:$0xf] }
  0x93   : > { %453 = vst [vmem:[%s5294_s29 + $0x1f8] sm:$0xf] %v452_v62  ;;  %v580_v62 = vld [vmem:[%s5289_s28 + $0x5f0] sm:$0xf] }
  0x94   : > { %455 = vst [vmem:[%s5294_s29 + $0x1fc] sm:$0xf] %v454_v63  ;;  %v582_v63 = vld [vmem:[%s5289_s28 + $0x5f8] sm:$0xf] }
  0x95   : > { %457 = vst [vmem:[%s5294_s29 + $0x200] sm:$0xf] %v456_v0  ;;  %v584_v0 = vld [vmem:[%s5289_s28 + $0x600] sm:$0xf] }
  0x96   : > { %459 = vst [vmem:[%s5294_s29 + $0x204] sm:$0xf] %v458_v1  ;;  %v586_v1 = vld [vmem:[%s5289_s28 + $0x608] sm:$0xf] }
  0x97   : > { %461 = vst [vmem:[%s5294_s29 + $0x208] sm:$0xf] %v460_v2  ;;  %v588_v2 = vld [vmem:[%s5289_s28 + $0x610] sm:$0xf] }
  0x98   : > { %463 = vst [vmem:[%s5294_s29 + $0x20c] sm:$0xf] %v462_v3  ;;  %v590_v3 = vld [vmem:[%s5289_s28 + $0x618] sm:$0xf] }
  0x99   : > { %465 = vst [vmem:[%s5294_s29 + $0x210] sm:$0xf] %v464_v4  ;;  %v592_v4 = vld [vmem:[%s5289_s28 + $0x620] sm:$0xf] }
  0x9a   : > { %467 = vst [vmem:[%s5294_s29 + $0x214] sm:$0xf] %v466_v5  ;;  %v594_v5 = vld [vmem:[%s5289_s28 + $0x628] sm:$0xf] }
  0x9b   : > { %469 = vst [vmem:[%s5294_s29 + $0x218] sm:$0xf] %v468_v6  ;;  %v596_v6 = vld [vmem:[%s5289_s28 + $0x630] sm:$0xf] }
  0x9c   : > { %471 = vst [vmem:[%s5294_s29 + $0x21c] sm:$0xf] %v470_v7  ;;  %v598_v7 = vld [vmem:[%s5289_s28 + $0x638] sm:$0xf] }
  0x9d   : > { %473 = vst [vmem:[%s5294_s29 + $0x220] sm:$0xf] %v472_v8  ;;  %v600_v8 = vld [vmem:[%s5289_s28 + $0x640] sm:$0xf] }
  0x9e   : > { %475 = vst [vmem:[%s5294_s29 + $0x224] sm:$0xf] %v474_v9  ;;  %v602_v9 = vld [vmem:[%s5289_s28 + $0x648] sm:$0xf] }
  0x9f   : > { %477 = vst [vmem:[%s5294_s29 + $0x228] sm:$0xf] %v476_v10  ;;  %v604_v10 = vld [vmem:[%s5289_s28 + $0x650] sm:$0xf] }
  0xa0   : > { %479 = vst [vmem:[%s5294_s29 + $0x22c] sm:$0xf] %v478_v11  ;;  %v606_v11 = vld [vmem:[%s5289_s28 + $0x658] sm:$0xf] }
  0xa1   : > { %481 = vst [vmem:[%s5294_s29 + $0x230] sm:$0xf] %v480_v12  ;;  %v608_v12 = vld [vmem:[%s5289_s28 + $0x660] sm:$0xf] }
  0xa2   : > { %483 = vst [vmem:[%s5294_s29 + $0x234] sm:$0xf] %v482_v13  ;;  %v610_v13 = vld [vmem:[%s5289_s28 + $0x668] sm:$0xf] }
  0xa3   : > { %485 = vst [vmem:[%s5294_s29 + $0x238] sm:$0xf] %v484_v14  ;;  %v612_v14 = vld [vmem:[%s5289_s28 + $0x670] sm:$0xf] }
  0xa4   : > { %487 = vst [vmem:[%s5294_s29 + $0x23c] sm:$0xf] %v486_v15  ;;  %v614_v15 = vld [vmem:[%s5289_s28 + $0x678] sm:$0xf] }
  0xa5   : > { %489 = vst [vmem:[%s5294_s29 + $0x240] sm:$0xf] %v488_v16  ;;  %v616_v16 = vld [vmem:[%s5289_s28 + $0x680] sm:$0xf] }
  0xa6   : > { %491 = vst [vmem:[%s5294_s29 + $0x244] sm:$0xf] %v490_v17  ;;  %v618_v17 = vld [vmem:[%s5289_s28 + $0x688] sm:$0xf] }
  0xa7   : > { %493 = vst [vmem:[%s5294_s29 + $0x248] sm:$0xf] %v492_v18  ;;  %v620_v18 = vld [vmem:[%s5289_s28 + $0x690] sm:$0xf] }
  0xa8   : > { %495 = vst [vmem:[%s5294_s29 + $0x24c] sm:$0xf] %v494_v19  ;;  %v622_v19 = vld [vmem:[%s5289_s28 + $0x698] sm:$0xf] }
  0xa9   : > { %497 = vst [vmem:[%s5294_s29 + $0x250] sm:$0xf] %v496_v20  ;;  %v624_v20 = vld [vmem:[%s5289_s28 + $0x6a0] sm:$0xf] }
  0xaa   : > { %499 = vst [vmem:[%s5294_s29 + $0x254] sm:$0xf] %v498_v21  ;;  %v626_v21 = vld [vmem:[%s5289_s28 + $0x6a8] sm:$0xf] }
  0xab   : > { %501 = vst [vmem:[%s5294_s29 + $0x258] sm:$0xf] %v500_v22  ;;  %v628_v22 = vld [vmem:[%s5289_s28 + $0x6b0] sm:$0xf] }
  0xac   : > { %503 = vst [vmem:[%s5294_s29 + $0x25c] sm:$0xf] %v502_v23  ;;  %v630_v23 = vld [vmem:[%s5289_s28 + $0x6b8] sm:$0xf] }
  0xad   : > { %505 = vst [vmem:[%s5294_s29 + $0x260] sm:$0xf] %v504_v24  ;;  %v632_v24 = vld [vmem:[%s5289_s28 + $0x6c0] sm:$0xf] }
  0xae   : > { %507 = vst [vmem:[%s5294_s29 + $0x264] sm:$0xf] %v506_v25  ;;  %v634_v25 = vld [vmem:[%s5289_s28 + $0x6c8] sm:$0xf] }
  0xaf   : > { %509 = vst [vmem:[%s5294_s29 + $0x268] sm:$0xf] %v508_v26  ;;  %v636_v26 = vld [vmem:[%s5289_s28 + $0x6d0] sm:$0xf] }
  0xb0   : > { %511 = vst [vmem:[%s5294_s29 + $0x26c] sm:$0xf] %v510_v27  ;;  %v638_v27 = vld [vmem:[%s5289_s28 + $0x6d8] sm:$0xf] }
  0xb1   : > { %513 = vst [vmem:[%s5294_s29 + $0x270] sm:$0xf] %v512_v28  ;;  %v640_v28 = vld [vmem:[%s5289_s28 + $0x6e0] sm:$0xf] }
  0xb2   : > { %515 = vst [vmem:[%s5294_s29 + $0x274] sm:$0xf] %v514_v29  ;;  %v642_v29 = vld [vmem:[%s5289_s28 + $0x6e8] sm:$0xf] }
  0xb3   : > { %517 = vst [vmem:[%s5294_s29 + $0x278] sm:$0xf] %v516_v30  ;;  %v644_v30 = vld [vmem:[%s5289_s28 + $0x6f0] sm:$0xf] }
  0xb4   : > { %519 = vst [vmem:[%s5294_s29 + $0x27c] sm:$0xf] %v518_v31  ;;  %v646_v31 = vld [vmem:[%s5289_s28 + $0x6f8] sm:$0xf] }
  0xb5   : > { %521 = vst [vmem:[%s5294_s29 + $0x280] sm:$0xf] %v520_v32  ;;  %v648_v32 = vld [vmem:[%s5289_s28 + $0x700] sm:$0xf] }
  0xb6   : > { %523 = vst [vmem:[%s5294_s29 + $0x284] sm:$0xf] %v522_v33  ;;  %v650_v33 = vld [vmem:[%s5289_s28 + $0x708] sm:$0xf] }
  0xb7   : > { %525 = vst [vmem:[%s5294_s29 + $0x288] sm:$0xf] %v524_v34  ;;  %v652_v34 = vld [vmem:[%s5289_s28 + $0x710] sm:$0xf] }
  0xb8   : > { %527 = vst [vmem:[%s5294_s29 + $0x28c] sm:$0xf] %v526_v35  ;;  %v654_v35 = vld [vmem:[%s5289_s28 + $0x718] sm:$0xf] }
  0xb9   : > { %529 = vst [vmem:[%s5294_s29 + $0x290] sm:$0xf] %v528_v36  ;;  %v656_v36 = vld [vmem:[%s5289_s28 + $0x720] sm:$0xf] }
  0xba   : > { %531 = vst [vmem:[%s5294_s29 + $0x294] sm:$0xf] %v530_v37  ;;  %v658_v37 = vld [vmem:[%s5289_s28 + $0x728] sm:$0xf] }
  0xbb   : > { %533 = vst [vmem:[%s5294_s29 + $0x298] sm:$0xf] %v532_v38  ;;  %v660_v38 = vld [vmem:[%s5289_s28 + $0x730] sm:$0xf] }
  0xbc   : > { %535 = vst [vmem:[%s5294_s29 + $0x29c] sm:$0xf] %v534_v39  ;;  %v662_v39 = vld [vmem:[%s5289_s28 + $0x738] sm:$0xf] }
  0xbd   : > { %537 = vst [vmem:[%s5294_s29 + $0x2a0] sm:$0xf] %v536_v40  ;;  %v664_v40 = vld [vmem:[%s5289_s28 + $0x740] sm:$0xf] }
  0xbe   : > { %539 = vst [vmem:[%s5294_s29 + $0x2a4] sm:$0xf] %v538_v41  ;;  %v666_v41 = vld [vmem:[%s5289_s28 + $0x748] sm:$0xf] }
  0xbf   : > { %541 = vst [vmem:[%s5294_s29 + $0x2a8] sm:$0xf] %v540_v42  ;;  %v668_v42 = vld [vmem:[%s5289_s28 + $0x750] sm:$0xf] }
  0xc0   : > { %543 = vst [vmem:[%s5294_s29 + $0x2ac] sm:$0xf] %v542_v43  ;;  %v670_v43 = vld [vmem:[%s5289_s28 + $0x758] sm:$0xf] }
  0xc1   : > { %545 = vst [vmem:[%s5294_s29 + $0x2b0] sm:$0xf] %v544_v44  ;;  %v672_v44 = vld [vmem:[%s5289_s28 + $0x760] sm:$0xf] }
  0xc2   : > { %547 = vst [vmem:[%s5294_s29 + $0x2b4] sm:$0xf] %v546_v45  ;;  %v674_v45 = vld [vmem:[%s5289_s28 + $0x768] sm:$0xf] }
  0xc3   : > { %549 = vst [vmem:[%s5294_s29 + $0x2b8] sm:$0xf] %v548_v46  ;;  %v676_v46 = vld [vmem:[%s5289_s28 + $0x770] sm:$0xf] }
  0xc4   : > { %551 = vst [vmem:[%s5294_s29 + $0x2bc] sm:$0xf] %v550_v47  ;;  %v678_v47 = vld [vmem:[%s5289_s28 + $0x778] sm:$0xf] }
  0xc5   : > { %553 = vst [vmem:[%s5294_s29 + $0x2c0] sm:$0xf] %v552_v48  ;;  %v680_v48 = vld [vmem:[%s5289_s28 + $0x780] sm:$0xf] }
  0xc6   : > { %555 = vst [vmem:[%s5294_s29 + $0x2c4] sm:$0xf] %v554_v49  ;;  %v682_v49 = vld [vmem:[%s5289_s28 + $0x788] sm:$0xf] }
  0xc7   : > { %557 = vst [vmem:[%s5294_s29 + $0x2c8] sm:$0xf] %v556_v50  ;;  %v684_v50 = vld [vmem:[%s5289_s28 + $0x790] sm:$0xf] }
  0xc8   : > { %559 = vst [vmem:[%s5294_s29 + $0x2cc] sm:$0xf] %v558_v51  ;;  %v686_v51 = vld [vmem:[%s5289_s28 + $0x798] sm:$0xf] }
  0xc9   : > { %561 = vst [vmem:[%s5294_s29 + $0x2d0] sm:$0xf] %v560_v52  ;;  %v688_v52 = vld [vmem:[%s5289_s28 + $0x7a0] sm:$0xf] }
  0xca   : > { %563 = vst [vmem:[%s5294_s29 + $0x2d4] sm:$0xf] %v562_v53  ;;  %v690_v53 = vld [vmem:[%s5289_s28 + $0x7a8] sm:$0xf] }
  0xcb   : > { %565 = vst [vmem:[%s5294_s29 + $0x2d8] sm:$0xf] %v564_v54  ;;  %v692_v54 = vld [vmem:[%s5289_s28 + $0x7b0] sm:$0xf] }
  0xcc   : > { %567 = vst [vmem:[%s5294_s29 + $0x2dc] sm:$0xf] %v566_v55  ;;  %v694_v55 = vld [vmem:[%s5289_s28 + $0x7b8] sm:$0xf] }
  0xcd   : > { %569 = vst [vmem:[%s5294_s29 + $0x2e0] sm:$0xf] %v568_v56  ;;  %v696_v56 = vld [vmem:[%s5289_s28 + $0x7c0] sm:$0xf] }
  0xce   : > { %571 = vst [vmem:[%s5294_s29 + $0x2e4] sm:$0xf] %v570_v57  ;;  %v698_v57 = vld [vmem:[%s5289_s28 + $0x7c8] sm:$0xf] }
  0xcf   : > { %573 = vst [vmem:[%s5294_s29 + $0x2e8] sm:$0xf] %v572_v58  ;;  %v700_v58 = vld [vmem:[%s5289_s28 + $0x7d0] sm:$0xf] }
  0xd0   : > { %575 = vst [vmem:[%s5294_s29 + $0x2ec] sm:$0xf] %v574_v59  ;;  %v702_v59 = vld [vmem:[%s5289_s28 + $0x7d8] sm:$0xf] }
  0xd1   : > { %577 = vst [vmem:[%s5294_s29 + $0x2f0] sm:$0xf] %v576_v60  ;;  %v704_v60 = vld [vmem:[%s5289_s28 + $0x7e0] sm:$0xf] }
  0xd2   : > { %579 = vst [vmem:[%s5294_s29 + $0x2f4] sm:$0xf] %v578_v61  ;;  %v706_v61 = vld [vmem:[%s5289_s28 + $0x7e8] sm:$0xf] }
  0xd3   : > { %581 = vst [vmem:[%s5294_s29 + $0x2f8] sm:$0xf] %v580_v62  ;;  %v708_v62 = vld [vmem:[%s5289_s28 + $0x7f0] sm:$0xf] }
  0xd4   : > { %583 = vst [vmem:[%s5294_s29 + $0x2fc] sm:$0xf] %v582_v63  ;;  %v710_v63 = vld [vmem:[%s5289_s28 + $0x7f8] sm:$0xf] }
  0xd5   : > { %585 = vst [vmem:[%s5294_s29 + $0x300] sm:$0xf] %v584_v0  ;;  %v712_v0 = vld [vmem:[%s5289_s28 + $0x800] sm:$0xf] }
  0xd6   : > { %587 = vst [vmem:[%s5294_s29 + $0x304] sm:$0xf] %v586_v1  ;;  %v714_v1 = vld [vmem:[%s5289_s28 + $0x808] sm:$0xf] }
  0xd7   : > { %589 = vst [vmem:[%s5294_s29 + $0x308] sm:$0xf] %v588_v2  ;;  %v716_v2 = vld [vmem:[%s5289_s28 + $0x810] sm:$0xf] }
  0xd8   : > { %591 = vst [vmem:[%s5294_s29 + $0x30c] sm:$0xf] %v590_v3  ;;  %v718_v3 = vld [vmem:[%s5289_s28 + $0x818] sm:$0xf] }
  0xd9   : > { %593 = vst [vmem:[%s5294_s29 + $0x310] sm:$0xf] %v592_v4  ;;  %v720_v4 = vld [vmem:[%s5289_s28 + $0x820] sm:$0xf] }
  0xda   : > { %595 = vst [vmem:[%s5294_s29 + $0x314] sm:$0xf] %v594_v5  ;;  %v722_v5 = vld [vmem:[%s5289_s28 + $0x828] sm:$0xf] }
  0xdb   : > { %597 = vst [vmem:[%s5294_s29 + $0x318] sm:$0xf] %v596_v6  ;;  %v724_v6 = vld [vmem:[%s5289_s28 + $0x830] sm:$0xf] }
  0xdc   : > { %599 = vst [vmem:[%s5294_s29 + $0x31c] sm:$0xf] %v598_v7  ;;  %v726_v7 = vld [vmem:[%s5289_s28 + $0x838] sm:$0xf] }
  0xdd   : > { %601 = vst [vmem:[%s5294_s29 + $0x320] sm:$0xf] %v600_v8  ;;  %v728_v8 = vld [vmem:[%s5289_s28 + $0x840] sm:$0xf] }
  0xde   : > { %603 = vst [vmem:[%s5294_s29 + $0x324] sm:$0xf] %v602_v9  ;;  %v730_v9 = vld [vmem:[%s5289_s28 + $0x848] sm:$0xf] }
  0xdf   : > { %605 = vst [vmem:[%s5294_s29 + $0x328] sm:$0xf] %v604_v10  ;;  %v732_v10 = vld [vmem:[%s5289_s28 + $0x850] sm:$0xf] }
  0xe0   : > { %607 = vst [vmem:[%s5294_s29 + $0x32c] sm:$0xf] %v606_v11  ;;  %v734_v11 = vld [vmem:[%s5289_s28 + $0x858] sm:$0xf] }
  0xe1   : > { %609 = vst [vmem:[%s5294_s29 + $0x330] sm:$0xf] %v608_v12  ;;  %v736_v12 = vld [vmem:[%s5289_s28 + $0x860] sm:$0xf] }
  0xe2   : > { %611 = vst [vmem:[%s5294_s29 + $0x334] sm:$0xf] %v610_v13  ;;  %v738_v13 = vld [vmem:[%s5289_s28 + $0x868] sm:$0xf] }
  0xe3   : > { %613 = vst [vmem:[%s5294_s29 + $0x338] sm:$0xf] %v612_v14  ;;  %v740_v14 = vld [vmem:[%s5289_s28 + $0x870] sm:$0xf] }
  0xe4   : > { %615 = vst [vmem:[%s5294_s29 + $0x33c] sm:$0xf] %v614_v15  ;;  %v742_v15 = vld [vmem:[%s5289_s28 + $0x878] sm:$0xf] }
  0xe5   : > { %617 = vst [vmem:[%s5294_s29 + $0x340] sm:$0xf] %v616_v16  ;;  %v744_v16 = vld [vmem:[%s5289_s28 + $0x880] sm:$0xf] }
  0xe6   : > { %619 = vst [vmem:[%s5294_s29 + $0x344] sm:$0xf] %v618_v17  ;;  %v746_v17 = vld [vmem:[%s5289_s28 + $0x888] sm:$0xf] }
  0xe7   : > { %621 = vst [vmem:[%s5294_s29 + $0x348] sm:$0xf] %v620_v18  ;;  %v748_v18 = vld [vmem:[%s5289_s28 + $0x890] sm:$0xf] }
  0xe8   : > { %623 = vst [vmem:[%s5294_s29 + $0x34c] sm:$0xf] %v622_v19  ;;  %v750_v19 = vld [vmem:[%s5289_s28 + $0x898] sm:$0xf] }
  0xe9   : > { %625 = vst [vmem:[%s5294_s29 + $0x350] sm:$0xf] %v624_v20  ;;  %v752_v20 = vld [vmem:[%s5289_s28 + $0x8a0] sm:$0xf] }
  0xea   : > { %627 = vst [vmem:[%s5294_s29 + $0x354] sm:$0xf] %v626_v21  ;;  %v754_v21 = vld [vmem:[%s5289_s28 + $0x8a8] sm:$0xf] }
  0xeb   : > { %629 = vst [vmem:[%s5294_s29 + $0x358] sm:$0xf] %v628_v22  ;;  %v756_v22 = vld [vmem:[%s5289_s28 + $0x8b0] sm:$0xf] }
  0xec   : > { %631 = vst [vmem:[%s5294_s29 + $0x35c] sm:$0xf] %v630_v23  ;;  %v758_v23 = vld [vmem:[%s5289_s28 + $0x8b8] sm:$0xf] }
  0xed   : > { %633 = vst [vmem:[%s5294_s29 + $0x360] sm:$0xf] %v632_v24  ;;  %v760_v24 = vld [vmem:[%s5289_s28 + $0x8c0] sm:$0xf] }
  0xee   : > { %635 = vst [vmem:[%s5294_s29 + $0x364] sm:$0xf] %v634_v25  ;;  %v762_v25 = vld [vmem:[%s5289_s28 + $0x8c8] sm:$0xf] }
  0xef   : > { %637 = vst [vmem:[%s5294_s29 + $0x368] sm:$0xf] %v636_v26  ;;  %v764_v26 = vld [vmem:[%s5289_s28 + $0x8d0] sm:$0xf] }
  0xf0   : > { %639 = vst [vmem:[%s5294_s29 + $0x36c] sm:$0xf] %v638_v27  ;;  %v766_v27 = vld [vmem:[%s5289_s28 + $0x8d8] sm:$0xf] }
  0xf1   : > { %641 = vst [vmem:[%s5294_s29 + $0x370] sm:$0xf] %v640_v28  ;;  %v768_v28 = vld [vmem:[%s5289_s28 + $0x8e0] sm:$0xf] }
  0xf2   : > { %643 = vst [vmem:[%s5294_s29 + $0x374] sm:$0xf] %v642_v29  ;;  %v770_v29 = vld [vmem:[%s5289_s28 + $0x8e8] sm:$0xf] }
  0xf3   : > { %645 = vst [vmem:[%s5294_s29 + $0x378] sm:$0xf] %v644_v30  ;;  %v772_v30 = vld [vmem:[%s5289_s28 + $0x8f0] sm:$0xf] }
  0xf4   : > { %647 = vst [vmem:[%s5294_s29 + $0x37c] sm:$0xf] %v646_v31  ;;  %v774_v31 = vld [vmem:[%s5289_s28 + $0x8f8] sm:$0xf] }
  0xf5   : > { %649 = vst [vmem:[%s5294_s29 + $0x380] sm:$0xf] %v648_v32 }
  0xf6   : > { %651 = vst [vmem:[%s5294_s29 + $0x384] sm:$0xf] %v650_v33 }
  0xf7   : > { %653 = vst [vmem:[%s5294_s29 + $0x388] sm:$0xf] %v652_v34 }
  0xf8   : > { %655 = vst [vmem:[%s5294_s29 + $0x38c] sm:$0xf] %v654_v35 }
  0xf9   : > { %657 = vst [vmem:[%s5294_s29 + $0x390] sm:$0xf] %v656_v36 }
  0xfa   : > { %659 = vst [vmem:[%s5294_s29 + $0x394] sm:$0xf] %v658_v37 }
  0xfb   : > { %661 = vst [vmem:[%s5294_s29 + $0x398] sm:$0xf] %v660_v38 }
  0xfc   : > { %663 = vst [vmem:[%s5294_s29 + $0x39c] sm:$0xf] %v662_v39 }
  0xfd   : > { %665 = vst [vmem:[%s5294_s29 + $0x3a0] sm:$0xf] %v664_v40 }
  0xfe   : > { %667 = vst [vmem:[%s5294_s29 + $0x3a4] sm:$0xf] %v666_v41 }
  0xff   : > { %669 = vst [vmem:[%s5294_s29 + $0x3a8] sm:$0xf] %v668_v42 }
 0x100   : > { %671 = vst [vmem:[%s5294_s29 + $0x3ac] sm:$0xf] %v670_v43 }
 0x101   : > { %673 = vst [vmem:[%s5294_s29 + $0x3b0] sm:$0xf] %v672_v44 }
 0x102   : > { %675 = vst [vmem:[%s5294_s29 + $0x3b4] sm:$0xf] %v674_v45 }
 0x103   : > { %677 = vst [vmem:[%s5294_s29 + $0x3b8] sm:$0xf] %v676_v46 }
 0x104   : > { %679 = vst [vmem:[%s5294_s29 + $0x3bc] sm:$0xf] %v678_v47 }
 0x105   : > { %681 = vst [vmem:[%s5294_s29 + $0x3c0] sm:$0xf] %v680_v48 }
 0x106   : > { %683 = vst [vmem:[%s5294_s29 + $0x3c4] sm:$0xf] %v682_v49 }
 0x107   : > { %685 = vst [vmem:[%s5294_s29 + $0x3c8] sm:$0xf] %v684_v50 }
 0x108   : > { %687 = vst [vmem:[%s5294_s29 + $0x3cc] sm:$0xf] %v686_v51 }
 0x109   : > { %689 = vst [vmem:[%s5294_s29 + $0x3d0] sm:$0xf] %v688_v52 }
 0x10a   : > { %691 = vst [vmem:[%s5294_s29 + $0x3d4] sm:$0xf] %v690_v53 }
 0x10b   : > { %693 = vst [vmem:[%s5294_s29 + $0x3d8] sm:$0xf] %v692_v54 }
 0x10c   : > { %695 = vst [vmem:[%s5294_s29 + $0x3dc] sm:$0xf] %v694_v55 }
 0x10d   : > { %697 = vst [vmem:[%s5294_s29 + $0x3e0] sm:$0xf] %v696_v56 }
 0x10e   : > { %699 = vst [vmem:[%s5294_s29 + $0x3e4] sm:$0xf] %v698_v57 }
 0x10f   : > { %701 = vst [vmem:[%s5294_s29 + $0x3e8] sm:$0xf] %v700_v58 }
 0x110   : > { %703 = vst [vmem:[%s5294_s29 + $0x3ec] sm:$0xf] %v702_v59 }
 0x111   : > { %705 = vst [vmem:[%s5294_s29 + $0x3f0] sm:$0xf] %v704_v60 }
 0x112   : > { %707 = vst [vmem:[%s5294_s29 + $0x3f4] sm:$0xf] %v706_v61 }
 0x113   : > { %709 = vst [vmem:[%s5294_s29 + $0x3f8] sm:$0xf] %v708_v62 }
 0x114   : > { %711 = vst [vmem:[%s5294_s29 + $0x3fc] sm:$0xf] %v710_v63 }
 0x115   : > { %713 = vst [vmem:[%s5294_s29 + $0x400] sm:$0xf] %v712_v0 }
 0x116   : > { %715 = vst [vmem:[%s5294_s29 + $0x404] sm:$0xf] %v714_v1 }
 0x117   : > { %717 = vst [vmem:[%s5294_s29 + $0x408] sm:$0xf] %v716_v2 }
 0x118   : > { %719 = vst [vmem:[%s5294_s29 + $0x40c] sm:$0xf] %v718_v3 }
 0x119   : > { %721 = vst [vmem:[%s5294_s29 + $0x410] sm:$0xf] %v720_v4 }
 0x11a   : > { %723 = vst [vmem:[%s5294_s29 + $0x414] sm:$0xf] %v722_v5 }
 0x11b   : > { %725 = vst [vmem:[%s5294_s29 + $0x418] sm:$0xf] %v724_v6 }
 0x11c   : > { %727 = vst [vmem:[%s5294_s29 + $0x41c] sm:$0xf] %v726_v7 }
 0x11d   : > { %729 = vst [vmem:[%s5294_s29 + $0x420] sm:$0xf] %v728_v8 }
 0x11e   : > { %731 = vst [vmem:[%s5294_s29 + $0x424] sm:$0xf] %v730_v9 }
 0x11f   : > { %733 = vst [vmem:[%s5294_s29 + $0x428] sm:$0xf] %v732_v10 }
 0x120   : > { %735 = vst [vmem:[%s5294_s29 + $0x42c] sm:$0xf] %v734_v11 }
 0x121   : > { %737 = vst [vmem:[%s5294_s29 + $0x430] sm:$0xf] %v736_v12 }
 0x122   : > { %739 = vst [vmem:[%s5294_s29 + $0x434] sm:$0xf] %v738_v13 }
 0x123   : > { %741 = vst [vmem:[%s5294_s29 + $0x438] sm:$0xf] %v740_v14 }
 0x124   : > { %743 = vst [vmem:[%s5294_s29 + $0x43c] sm:$0xf] %v742_v15 }
 0x125   : > { %745 = vst [vmem:[%s5294_s29 + $0x440] sm:$0xf] %v744_v16 }
 0x126   : > { %747 = vst [vmem:[%s5294_s29 + $0x444] sm:$0xf] %v746_v17 }
 0x127   : > { %749 = vst [vmem:[%s5294_s29 + $0x448] sm:$0xf] %v748_v18 }
 0x128   : > { %751 = vst [vmem:[%s5294_s29 + $0x44c] sm:$0xf] %v750_v19 }
 0x129   : > { %753 = vst [vmem:[%s5294_s29 + $0x450] sm:$0xf] %v752_v20 }
 0x12a   : > { %755 = vst [vmem:[%s5294_s29 + $0x454] sm:$0xf] %v754_v21 }
 0x12b   : > { %757 = vst [vmem:[%s5294_s29 + $0x458] sm:$0xf] %v756_v22 }
 0x12c   : > { %759 = vst [vmem:[%s5294_s29 + $0x45c] sm:$0xf] %v758_v23 }
 0x12d   : > { %761 = vst [vmem:[%s5294_s29 + $0x460] sm:$0xf] %v760_v24 }
 0x12e   : > { %763 = vst [vmem:[%s5294_s29 + $0x464] sm:$0xf] %v762_v25 }
 0x12f   : > { %765 = vst [vmem:[%s5294_s29 + $0x468] sm:$0xf] %v764_v26 }
 0x130   : > { %767 = vst [vmem:[%s5294_s29 + $0x46c] sm:$0xf] %v766_v27 }
 0x131   : > { %769 = vst [vmem:[%s5294_s29 + $0x470] sm:$0xf] %v768_v28 }
 0x132   : > { %771 = vst [vmem:[%s5294_s29 + $0x474] sm:$0xf] %v770_v29 }
 0x133   : > { %773 = vst [vmem:[%s5294_s29 + $0x478] sm:$0xf] %v772_v30 }
 0x134   : > { %775 = vst [vmem:[%s5294_s29 + $0x47c] sm:$0xf] %v774_v31 }
 0x135 PF: > { %p4317_p8 = scmp.ge.s32.totalorder %s5219_s16, 1  ;;  %p2558_p9 = scmp.lt.s32.totalorder %s5219_s16, 3 }
 0x137   : > { %p2559_p10 = pnand %p4317_p8, %p2558_p9 }
 0x138   : > { %s2565_s30 = sand.u32 (!%p2559_p10), 1, %s5203_s12   ;;  %p2611_p11 = scmp.lt.s32.totalorder (!%p2559_p10), %s5211_s14, 1 }
 0x139   : > { %2562 = sbr.rel (%p2559_p10) target bundleno = 630 (0x276), region = 80 }
 0x13a   : > { %s5139_s4 = smul.u32 (!%p2559_p10), 1152, %s2565_s30 }
 0x13c   : > { %s5874_s5 = scalar_lea.vmem (!%p2559_p10), [#allocation2], %s5139_s4 }
 0x13e   : > { %v4996_v32 = vld [vmem:[%s5874_s5 + $0x38] sm:$0xff]  ;;  %v4995_v36 = vld [vmem:[%s5874_s5 + $0x30] sm:$0xff]  ;;  %v4994_v40 = vld [vmem:[%s5874_s5 + $0x28] sm:$0xff]  ;;  %s5932_s26 = scalar_select %p2611_p11, %s5211_s14, 1 }
 0x13f   : > { %v5004_v33 = vld [vmem:[%s5874_s5 + $0x78] sm:$0xff]  ;;  %3879 = vmatpush.bf16.msra.mxu0 %v4996_v32  ;;  %v5003_v37 = vld [vmem:[%s5874_s5 + $0x70] sm:$0xff]  ;;  %v5002_v41 = vld [vmem:[%s5874_s5 + $0x68] sm:$0xff]  ;;  %s4968_s4 = sshll.u32 (%p5276_p6), %s5211_s14, 2 }
 0x140   : > { %v5012_v34 = vld [vmem:[%s5874_s5 + $0xb8] sm:$0xff]  ;;  %3893 = vmatpush.bf16.msra.mxu1 %v5004_v33  ;;  %v5011_v38 = vld [vmem:[%s5874_s5 + $0xb0] sm:$0xff]  ;;  %v5010_v42 = vld [vmem:[%s5874_s5 + $0xa8] sm:$0xff]  ;;  %s2613_s8 = scalar_lea.vmem %s6168_s2, %s5932_s26  ;;  %s4318_s26 = sshll.u32 %s2565_s30, 3 }
 0x141   : > { %v5020_v35 = vld [vmem:[%s5874_s5 + $0xf8] sm:$0xff]  ;;  %3907 = vmatpush.bf16.msra.mxu2 %v5012_v34  ;;  %v5019_v39 = vld [vmem:[%s5874_s5 + $0xf0] sm:$0xff]  ;;  %v5018_v43 = vld [vmem:[%s5874_s5 + $0xe8] sm:$0xff]  ;;  %s4150_s9 = scalar_lea.vmem (%p5276_p6), %s6169_s3, %s4968_s4 }
 0x142   : > { %3921 = vmatpush.bf16.msra.mxu3 %v5020_v35  ;;  %v4993_v44 = vld [vmem:[%s5874_s5 + $0x20] sm:$0xff]  ;;  %v4992_v48 = vld [vmem:[%s5874_s5 + $0x18] sm:$0xff]  ;;  %v4991_v52 = vld [vmem:[%s5874_s5 + $0x10] sm:$0xff] }
 0x143   : > { %3880 = vmatpush.bf16.msra.mxu0 %v4995_v36  ;;  %v5001_v45 = vld [vmem:[%s5874_s5 + $0x60] sm:$0xff]  ;;  %v5000_v49 = vld [vmem:[%s5874_s5 + $0x58] sm:$0xff]  ;;  %v4999_v53 = vld [vmem:[%s5874_s5 + $0x50] sm:$0xff] }
 0x144   : > { %3894 = vmatpush.bf16.msra.mxu1 %v5003_v37  ;;  %v5009_v46 = vld [vmem:[%s5874_s5 + $0xa0] sm:$0xff]  ;;  %v5008_v50 = vld [vmem:[%s5874_s5 + $0x98] sm:$0xff]  ;;  %v5007_v54 = vld [vmem:[%s5874_s5 + $0x90] sm:$0xff] }
 0x145   : > { %3908 = vmatpush.bf16.msra.mxu2 %v5011_v38  ;;  %v5017_v47 = vld [vmem:[%s5874_s5 + $0xe0] sm:$0xff]  ;;  %v5016_v51 = vld [vmem:[%s5874_s5 + $0xd8] sm:$0xff]  ;;  %v5015_v55 = vld [vmem:[%s5874_s5 + $0xd0] sm:$0xff] }
 0x146   : > { %3922 = vmatpush.bf16.msra.mxu3 %v5019_v39  ;;  %v4990_v56 = vld [vmem:[%s5874_s5 + $0x8] sm:$0xff]  ;;  %v4989_v60 = vld [vmem:[%s5874_s5] sm:$0xff]  ;;  %v5028_v63 = vld [vmem:[%s5874_s5 + $0x138] sm:$0xff] }
 0x147   : > { %3881 = vmatpush.bf16.msra.mxu0 %v4994_v40  ;;  %v4998_v57 = vld [vmem:[%s5874_s5 + $0x48] sm:$0xff]  ;;  %v4997_v61 = vld [vmem:[%s5874_s5 + $0x40] sm:$0xff]  ;;  %v5036_v2 = vld [vmem:[%s5874_s5 + $0x178] sm:$0xff] }
 0x148   : > { %3895 = vmatpush.bf16.msra.mxu1 %v5002_v41  ;;  %v5006_v58 = vld [vmem:[%s5874_s5 + $0x88] sm:$0xff]  ;;  %v5005_v62 = vld [vmem:[%s5874_s5 + $0x80] sm:$0xff]  ;;  %v4981_v4 = vld [vmem:[%s6166_s0 + $0x4c] sm:$0xf0] }
 0x149   : > { %3909 = vmatpush.bf16.msra.mxu2 %v5010_v42  ;;  %v5014_v59 = vld [vmem:[%s5874_s5 + $0xc8] sm:$0xff]  ;;  %v4321_v0 = vld [vmem:[%s6166_s0] sm:$0xf]  ;;  %v5044_v5 = vld [vmem:[%s5874_s5 + $0x1b8] sm:$0xff] }
 0x14a   : > { %3923 = vmatpush.bf16.msra.mxu3 %v5018_v43  ;;  %v4980_v1 = vld [vmem:[%s6166_s0 + $0x44] sm:$0xf0]  ;;  %v4971_v6 = vld [vmem:[%s6166_s0 + $0x4] sm:$0xf]  ;;  %v4323_v7 = vld [vmem:[%s6166_s0 + $0x48] sm:$0xf0] }
 0x14b   : > { %3882 = vmatpush.bf16.msra.mxu0 %v4993_v44  ;;  %v4329_v3 = vld [vmem:[%s6166_s0 + $0x8] sm:$0xf]  ;;  %v5013_v8 = vld [vmem:[%s5874_s5 + $0xc0] sm:$0xff]  ;;  %v4322_v9 = vor.u32 %v4980_v1, %v4321_v0  ;;  %v5052_v10 = vld [vmem:[%s5874_s5 + $0x1f8] sm:$0xff]  ;;  %v4326_v15 = vor.u32 %v4971_v6, %v4323_v7 }
 0x14c   : > { %3896 = vmatpush.bf16.msra.mxu1 %v5001_v45  ;;  %v4330_v11 = vor.u32 %v4981_v4, %v4329_v3  ;;  %v4972_v12 = vld [vmem:[%s6166_s0 + $0xc] sm:$0xf]  ;;  %v4331_v13 = vld [vmem:[%s6166_s0 + $0x50] sm:$0xf0]  ;;  %v5025_v24 = vld [vmem:[%s5874_s5 + $0x120] sm:$0xff] }
 0x14d   : > { %3910 = vmatpush.bf16.msra.mxu2 %v5009_v46  ;;  %v5027_v14 = vld [vmem:[%s5874_s5 + $0x130] sm:$0xff]  ;;  %v4334_v18 = vor.u32 %v4972_v12, %v4331_v13  ;;  %v5026_v20 = vld [vmem:[%s5874_s5 + $0x128] sm:$0xff]  ;;  %v5033_v25 = vld [vmem:[%s5874_s5 + $0x160] sm:$0xff] }
 0x14e   : > { %3924 = vmatpush.bf16.msra.mxu3 %v5017_v47  ;;  %v5035_v16 = vld [vmem:[%s5874_s5 + $0x170] sm:$0xff]  ;;  %v5034_v21 = vld [vmem:[%s5874_s5 + $0x168] sm:$0xff]  ;;  %v5041_v26 = vld [vmem:[%s5874_s5 + $0x1a0] sm:$0xff] }
 0x14f   : > { %3883 = vmatpush.bf16.msra.mxu0 %v4992_v48  ;;  %v5043_v17 = vld [vmem:[%s5874_s5 + $0x1b0] sm:$0xff]  ;;  %v5042_v22 = vld [vmem:[%s5874_s5 + $0x1a8] sm:$0xff]  ;;  %v5049_v27 = vld [vmem:[%s5874_s5 + $0x1e0] sm:$0xff] }
 0x150   : > { %3897 = vmatpush.bf16.msra.mxu1 %v5000_v49  ;;  %v5051_v19 = vld [vmem:[%s5874_s5 + $0x1f0] sm:$0xff]  ;;  %v5050_v23 = vld [vmem:[%s5874_s5 + $0x1e8] sm:$0xff]  ;;  %v5024_v28 = vld [vmem:[%s5874_s5 + $0x118] sm:$0xff] }
 0x151   : > { %3911 = vmatpush.bf16.msra.mxu2 %v5008_v50  ;;  %v5032_v29 = vld [vmem:[%s5874_s5 + $0x158] sm:$0xff]  ;;  %v5023_v32 = vld [vmem:[%s5874_s5 + $0x110] sm:$0xff]  ;;  %v5022_v36 = vld [vmem:[%s5874_s5 + $0x108] sm:$0xff] }
 0x152   : > { %3925 = vmatpush.bf16.msra.mxu3 %v5016_v51  ;;  %v5040_v30 = vld [vmem:[%s5874_s5 + $0x198] sm:$0xff]  ;;  %v5031_v33 = vld [vmem:[%s5874_s5 + $0x150] sm:$0xff]  ;;  %v5030_v37 = vld [vmem:[%s5874_s5 + $0x148] sm:$0xff] }
 0x153   : > { %3884 = vmatpush.bf16.msra.mxu0 %v4991_v52  ;;  %v5048_v31 = vld [vmem:[%s5874_s5 + $0x1d8] sm:$0xff]  ;;  %v5039_v34 = vld [vmem:[%s5874_s5 + $0x190] sm:$0xff]  ;;  %v5038_v38 = vld [vmem:[%s5874_s5 + $0x188] sm:$0xff] }
 0x154   : > { %3898 = vmatpush.bf16.msra.mxu1 %v4999_v53  ;;  %v5047_v35 = vld [vmem:[%s5874_s5 + $0x1d0] sm:$0xff]  ;;  %v5046_v39 = vld [vmem:[%s5874_s5 + $0x1c8] sm:$0xff]  ;;  %v5021_v40 = vld [vmem:[%s5874_s5 + $0x100] sm:$0xff] }
 0x155   : > { %3912 = vmatpush.bf16.msra.mxu2 %v5007_v54  ;;  %v5029_v41 = vld [vmem:[%s5874_s5 + $0x140] sm:$0xff]  ;;  %v5060_v43 = vld [vmem:[%s5874_s5 + $0x238] sm:$0xff]  ;;  %v4337_v45 = vld [vmem:[%s6166_s0 + $0x10] sm:$0xf] }
 0x156   : > { %3926 = vmatpush.bf16.msra.mxu3 %v5015_v55  ;;  %v5037_v42 = vld [vmem:[%s5874_s5 + $0x180] sm:$0xff]  ;;  %v5068_v44 = vld [vmem:[%s5874_s5 + $0x278] sm:$0xff]  ;;  %v4973_v50 = vld [vmem:[%s6166_s0 + $0x14] sm:$0xf] }
 0x157   : > { %3885 = vmatpush.bf16.msra.mxu0 %v4990_v56  ;;  %v4982_v46 = vld [vmem:[%s6166_s0 + $0x54] sm:$0xf0]  ;;  %v4983_v48 = vld [vmem:[%s6166_s0 + $0x5c] sm:$0xf0]  ;;  %v4339_v51 = vld [vmem:[%s6166_s0 + $0x58] sm:$0xf0] }
 0x158   : > { %3899 = vmatpush.bf16.msra.mxu1 %v4998_v57  ;;  %v4345_v47 = vld [vmem:[%s6166_s0 + $0x18] sm:$0xf]  ;;  %v5045_v52 = vld [vmem:[%s5874_s5 + $0x1c0] sm:$0xff]  ;;  %v4974_v53 = vld [vmem:[%s6166_s0 + $0x1c] sm:$0xf]  ;;  %v4338_v55 = vor.u32 %v4982_v46, %v4337_v45 }
 0x159   : > { %3913 = vmatpush.bf16.msra.mxu2 %v5006_v58  ;;  %v5076_v49 = vld [vmem:[%s5874_s5 + $0x2b8] sm:$0xff]  ;;  %v4347_v54 = vld [vmem:[%s6166_s0 + $0x60] sm:$0xf0]  ;;  %v4346_v56 = vor.u32 %v4983_v48, %v4345_v47  ;;  %v4342_v58 = vor.u32 %v4973_v50, %v4339_v51  ;;  %v5058_v0 = vld [vmem:[%s5874_s5 + $0x228] sm:$0xff] }
 0x15a   : > { %3927 = vmatpush.bf16.msra.mxu3 %v5014_v59  ;;  %v5084_v57 = vld [vmem:[%s5874_s5 + $0x2f8] sm:$0xff]  ;;  %v4350_v59 = vor.u32 %v4974_v53, %v4347_v54  ;;  %v5066_v1 = vld [vmem:[%s5874_s5 + $0x268] sm:$0xff]  ;;  %v5057_v4 = vld [vmem:[%s5874_s5 + $0x220] sm:$0xff] }
 0x15b   : > { %3886 = vmatpush.bf16.msra.mxu0 %v4989_v60  ;;  %v5059_v60 = vld [vmem:[%s5874_s5 + $0x230] sm:$0xff]  ;;  %v5082_v3 = vld [vmem:[%s5874_s5 + $0x2e8] sm:$0xff]  ;;  %v5073_v6 = vld [vmem:[%s5874_s5 + $0x2a0] sm:$0xff] }
 0x15c   : > { %3900 = vmatpush.bf16.msra.mxu1 %v4997_v61  ;;  %v5067_v61 = vld [vmem:[%s5874_s5 + $0x270] sm:$0xff]  ;;  %v5081_v7 = vld [vmem:[%s5874_s5 + $0x2e0] sm:$0xff]  ;;  %v5098_v45 = vld [vmem:[%s5874_s5 + $0x368] sm:$0xff] }
 0x15d   : > { %3914 = vmatpush.bf16.msra.mxu2 %v5005_v62  ;;  %v5075_v62 = vld [vmem:[%s5874_s5 + $0x2b0] sm:$0xff]  ;;  %v5106_v46 = vld [vmem:[%s5874_s5 + $0x3a8] sm:$0xff]  ;;  %v5089_v48 = vld [vmem:[%s5874_s5 + $0x320] sm:$0xff] }
 0x15e   : > { %3928 = vmatpush.bf16.msra.mxu3 %v5013_v8  ;;  %3887 = vmatmul.bf16.vlgmr.msra.gmra.mxu0 %v4322_v9  ;;  %v5056_v8 = vld [vmem:[%s5874_s5 + $0x218] sm:$0xff]  ;;  %v5055_v12 = vld [vmem:[%s5874_s5 + $0x210] sm:$0xff]  ;;  %v5114_v47 = vld [vmem:[%s5874_s5 + $0x3e8] sm:$0xff] }
 0x15f   : > { %3935 = vmatpush.bf16.msrb.mxu0 %v5028_v63  ;;  %3901 = vmatmul.bf16.vlgmr.msra.gmra.mxu1 %v4326_v15  ;;  %v5083_v63 = vld [vmem:[%s5874_s5 + $0x2f0] sm:$0xff]  ;;  %v5064_v9 = vld [vmem:[%s5874_s5 + $0x258] sm:$0xff]  ;;  %v5105_v50 = vld [vmem:[%s5874_s5 + $0x3a0] sm:$0xff] }
 0x160   : > { %3949 = vmatpush.bf16.msrb.mxu1 %v5036_v2  ;;  %3915 = vmatmul.bf16.vlgmr.msra.gmra.mxu2 %v4330_v11  ;;  %v5074_v2 = vld [vmem:[%s5874_s5 + $0x2a8] sm:$0xff]  ;;  %v5080_v11 = vld [vmem:[%s5874_s5 + $0x2d8] sm:$0xff]  ;;  %v5063_v13 = vld [vmem:[%s5874_s5 + $0x250] sm:$0xff] }
 0x161   : > { %3963 = vmatpush.bf16.msrb.mxu2 %v5044_v5  ;;  %3929 = vmatmul.bf16.vlgmr.msra.gmra.mxu3 %v4334_v18  ;;  %v5065_v5 = vld [vmem:[%s5874_s5 + $0x260] sm:$0xff]  ;;  %v5079_v15 = vld [vmem:[%s5874_s5 + $0x2d0] sm:$0xff]  ;;  %v5070_v18 = vld [vmem:[%s5874_s5 + $0x288] sm:$0xff] }
 0x162   : > { %3977 = vmatpush.bf16.msrb.mxu3 %v5052_v10  ;;  %v5072_v10 = vld [vmem:[%s5874_s5 + $0x298] sm:$0xff]  ;;  %v5113_v51 = vld [vmem:[%s5874_s5 + $0x3e0] sm:$0xff] }
 0x163   : > { %3936 = vmatpush.bf16.msrb.mxu0 %v5027_v14  ;;  %v5071_v14 = vld [vmem:[%s5874_s5 + $0x290] sm:$0xff]  ;;  %v5096_v53 = vld [vmem:[%s5874_s5 + $0x358] sm:$0xff] }
 0x164   : > { %3950 = vmatpush.bf16.msrb.mxu1 %v5035_v16  ;;  %v5054_v16 = vld [vmem:[%s5874_s5 + $0x208] sm:$0xff]  ;;  %v5104_v54 = vld [vmem:[%s5874_s5 + $0x398] sm:$0xff] }
 0x165   : > { %3964 = vmatpush.bf16.msrb.mxu2 %v5043_v17  ;;  %v5062_v17 = vld [vmem:[%s5874_s5 + $0x248] sm:$0xff] }
 0x166   : > { %3978 = vmatpush.bf16.msrb.mxu3 %v5051_v19  ;;  %v5078_v19 = vld [vmem:[%s5874_s5 + $0x2c8] sm:$0xff] }
 0x167   : > { %3937 = vmatpush.bf16.msrb.mxu0 %v5026_v20  ;;  %v5053_v20 = vld [vmem:[%s5874_s5 + $0x200] sm:$0xff] }
 0x168   : > { %3951 = vmatpush.bf16.msrb.mxu1 %v5034_v21  ;;  %v5061_v21 = vld [vmem:[%s5874_s5 + $0x240] sm:$0xff] }
 0x169   : > { %3965 = vmatpush.bf16.msrb.mxu2 %v5042_v22  ;;  %v5069_v22 = vld [vmem:[%s5874_s5 + $0x280] sm:$0xff] }
 0x16a   : > { %3979 = vmatpush.bf16.msrb.mxu3 %v5050_v23  ;;  %v5092_v23 = vld [vmem:[%s5874_s5 + $0x338] sm:$0xff] }
 0x16b   : > { %3938 = vmatpush.bf16.msrb.mxu0 %v5025_v24  ;;  %v5100_v24 = vld [vmem:[%s5874_s5 + $0x378] sm:$0xff] }
 0x16c   : > { %3952 = vmatpush.bf16.msrb.mxu1 %v5033_v25  ;;  %v4353_v25 = vld [vmem:[%s6166_s0 + $0x20] sm:$0xf] }
 0x16d   : > { %3966 = vmatpush.bf16.msrb.mxu2 %v5041_v26  ;;  %v4984_v26 = vld [vmem:[%s6166_s0 + $0x64] sm:$0xf0] }
 0x16e   : > { %3980 = vmatpush.bf16.msrb.mxu3 %v5049_v27  ;;  %v4361_v27 = vld [vmem:[%s6166_s0 + $0x28] sm:$0xf] }
 0x16f   : > { %3939 = vmatpush.bf16.msrb.mxu0 %v5024_v28  ;;  %v4985_v28 = vld [vmem:[%s6166_s0 + $0x6c] sm:$0xf0] }
 0x170   : > { %3953 = vmatpush.bf16.msrb.mxu1 %v5032_v29  ;;  %v5108_v29 = vld [vmem:[%s5874_s5 + $0x3b8] sm:$0xff] }
 0x171   : > { %3967 = vmatpush.bf16.msrb.mxu2 %v5040_v30  ;;  %v4975_v30 = vld [vmem:[%s6166_s0 + $0x24] sm:$0xf] }
 0x172   : > { %3981 = vmatpush.bf16.msrb.mxu3 %v5048_v31  ;;  %v4355_v31 = vld [vmem:[%s6166_s0 + $0x68] sm:$0xf0] }
 0x173   : > { %3940 = vmatpush.bf16.msrb.mxu0 %v5023_v32  ;;  %v5077_v32 = vld [vmem:[%s5874_s5 + $0x2c0] sm:$0xff] }
 0x174   : > { %3954 = vmatpush.bf16.msrb.mxu1 %v5031_v33  ;;  %v4976_v33 = vld [vmem:[%s6166_s0 + $0x2c] sm:$0xf] }
 0x175   : > { %3968 = vmatpush.bf16.msrb.mxu2 %v5039_v34  ;;  %v4363_v34 = vld [vmem:[%s6166_s0 + $0x70] sm:$0xf0] }
 0x176   : > { %3982 = vmatpush.bf16.msrb.mxu3 %v5047_v35  ;;  %v4354_v35 = vor.u32 %v4984_v26, %v4353_v25  ;;  %v5128_v25 = vld [vmem:[%s5874_s5 + $0x458] sm:$0xff]  ;;  %v5119_v26 = vld [vmem:[%s5874_s5 + $0x410] sm:$0xff] }
 0x177   : > { %3941 = vmatpush.bf16.msrb.mxu0 %v5022_v36  ;;  %v4362_v36 = vor.u32 %v4985_v28, %v4361_v27  ;;  %v5127_v27 = vld [vmem:[%s5874_s5 + $0x450] sm:$0xff]  ;;  %v5118_v28 = vld [vmem:[%s5874_s5 + $0x408] sm:$0xff] }
 0x178   : > { %3955 = vmatpush.bf16.msrb.mxu1 %v5030_v37  ;;  %v5116_v37 = vld [vmem:[%s5874_s5 + $0x3f8] sm:$0xff] }
 0x179   : > { %3969 = vmatpush.bf16.msrb.mxu2 %v5038_v38  ;;  %v4358_v38 = vor.u32 %v4975_v30, %v4355_v31  ;;  %v5117_v30 = vld [vmem:[%s5874_s5 + $0x400] sm:$0xff] }
 0x17a   : > { %3983 = vmatpush.bf16.msrb.mxu3 %v5046_v39  ;;  %v4366_v39 = vor.u32 %v4976_v33, %v4363_v34  ;;  %v4385_v31 = vld [vmem:[%s6166_s0 + $0x40] sm:$0xf]  ;;  %v4979_v34 = vld [vmem:[%s6166_s0 + $0x44] sm:$0xf] }
 0x17b   : > { %3942 = vmatpush.bf16.msrb.mxu0 %v5021_v40  ;;  %v5091_v40 = vld [vmem:[%s5874_s5 + $0x330] sm:$0xff]  ;;  %v5125_v33 = vld [vmem:[%s5874_s5 + $0x440] sm:$0xff] }
 0x17c   : > { %3956 = vmatpush.bf16.msrb.mxu1 %v5029_v41  ;;  %v5099_v41 = vld [vmem:[%s5874_s5 + $0x370] sm:$0xff] }
 0x17d   : > { %3970 = vmatpush.bf16.msrb.mxu2 %v5037_v42  ;;  %v5107_v42 = vld [vmem:[%s5874_s5 + $0x3b0] sm:$0xff] }
 0x17e   : > { %3984 = vmatpush.bf16.msrb.mxu3 %v5045_v52  ;;  %3943 = vmatmul.bf16.vlgmr.msrb.gmra.mxu0 %v4338_v55  ;;  %v5088_v52 = vld [vmem:[%s5874_s5 + $0x318] sm:$0xff] }
 0x17f   : > { %3991 = vmatpush.bf16.msra.mxu0 %v5060_v43  ;;  %3957 = vmatmul.bf16.vlgmr.msrb.gmra.mxu1 %v4342_v58  ;;  %v5115_v43 = vld [vmem:[%s5874_s5 + $0x3f0] sm:$0xff]  ;;  %v5112_v55 = vld [vmem:[%s5874_s5 + $0x3d8] sm:$0xff] }
 0x180   : > { %4005 = vmatpush.bf16.msra.mxu1 %v5068_v44  ;;  %3971 = vmatmul.bf16.vlgmr.msrb.gmra.mxu2 %v4346_v56  ;;  %v5090_v44 = vld [vmem:[%s5874_s5 + $0x328] sm:$0xff]  ;;  %v5087_v56 = vld [vmem:[%s5874_s5 + $0x310] sm:$0xff] }
 0x181   : > { %4019 = vmatpush.bf16.msra.mxu2 %v5076_v49  ;;  %3985 = vmatmul.bf16.vlgmr.msrb.gmra.mxu3 %v4350_v59  ;;  %v5097_v49 = vld [vmem:[%s5874_s5 + $0x360] sm:$0xff]  ;;  %v5103_v58 = vld [vmem:[%s5874_s5 + $0x390] sm:$0xff] }
 0x182   : > { %4033 = vmatpush.bf16.msra.mxu3 %v5084_v57  ;;  %v5095_v57 = vld [vmem:[%s5874_s5 + $0x350] sm:$0xff] }
 0x183   : > { %3992 = vmatpush.bf16.msra.mxu0 %v5059_v60  ;;  %v5111_v59 = vld [vmem:[%s5874_s5 + $0x3d0] sm:$0xff]  ;;  %v5086_v60 = vld [vmem:[%s5874_s5 + $0x308] sm:$0xff] }
 0x184   : > { %4006 = vmatpush.bf16.msra.mxu1 %v5067_v61  ;;  %v5094_v61 = vld [vmem:[%s5874_s5 + $0x348] sm:$0xff] }
 0x185   : > { %4020 = vmatpush.bf16.msra.mxu2 %v5075_v62  ;;  %v5102_v62 = vld [vmem:[%s5874_s5 + $0x388] sm:$0xff] }
 0x186   : > { %4034 = vmatpush.bf16.msra.mxu3 %v5083_v63  ;;  %v5110_v63 = vld [vmem:[%s5874_s5 + $0x3c8] sm:$0xff] }
 0x187   : > { %3993 = vmatpush.bf16.msra.mxu0 %v5058_v0  ;;  %v5085_v0 = vld [vmem:[%s5874_s5 + $0x300] sm:$0xff] }
 0x188   : > { %4007 = vmatpush.bf16.msra.mxu1 %v5066_v1  ;;  %v5093_v1 = vld [vmem:[%s5874_s5 + $0x340] sm:$0xff] }
 0x189   : > { %4021 = vmatpush.bf16.msra.mxu2 %v5074_v2  ;;  %v5101_v2 = vld [vmem:[%s5874_s5 + $0x380] sm:$0xff] }
 0x18a   : > { %4035 = vmatpush.bf16.msra.mxu3 %v5082_v3  ;;  %v4369_v3 = vld [vmem:[%s6166_s0 + $0x30] sm:$0xf] }
 0x18b   : > { %3994 = vmatpush.bf16.msra.mxu0 %v5057_v4  ;;  %v4986_v4 = vld [vmem:[%s6166_s0 + $0x74] sm:$0xf0] }
 0x18c   : > { %4008 = vmatpush.bf16.msra.mxu1 %v5065_v5  ;;  %v4377_v5 = vld [vmem:[%s6166_s0 + $0x38] sm:$0xf] }
 0x18d   : > { %4022 = vmatpush.bf16.msra.mxu2 %v5073_v6  ;;  %v4987_v6 = vld [vmem:[%s6166_s0 + $0x7c] sm:$0xf0] }
 0x18e   : > { %4036 = vmatpush.bf16.msra.mxu3 %v5081_v7  ;;  %v4977_v7 = vld [vmem:[%s6166_s0 + $0x34] sm:$0xf] }
 0x18f   : > { %3995 = vmatpush.bf16.msra.mxu0 %v5056_v8  ;;  %v4371_v8 = vld [vmem:[%s6166_s0 + $0x78] sm:$0xf0] }
 0x190   : > { %4009 = vmatpush.bf16.msra.mxu1 %v5064_v9  ;;  %v5124_v9 = vld [vmem:[%s5874_s5 + $0x438] sm:$0xff] }
 0x191   : > { %4023 = vmatpush.bf16.msra.mxu2 %v5072_v10  ;;  %v5132_v10 = vld [vmem:[%s5874_s5 + $0x478] sm:$0xff] }
 0x192   : > { %4037 = vmatpush.bf16.msra.mxu3 %v5080_v11  ;;  %v5109_v11 = vld [vmem:[%s5874_s5 + $0x3c0] sm:$0xff] }
 0x193   : > { %3996 = vmatpush.bf16.msra.mxu0 %v5055_v12  ;;  %v4370_v12 = vor.u32 %v4986_v4, %v4369_v3 }
 0x194   : > { %4010 = vmatpush.bf16.msra.mxu1 %v5063_v13  ;;  %v4978_v13 = vld [vmem:[%s6166_s0 + $0x3c] sm:$0xf] }
 0x195   : > { %4024 = vmatpush.bf16.msra.mxu2 %v5071_v14  ;;  %v4379_v14 = vld [vmem:[%s6166_s0 + $0x80] sm:$0xf0] }
 0x196   : > { %4038 = vmatpush.bf16.msra.mxu3 %v5079_v15  ;;  %v4378_v15 = vor.u32 %v4987_v6, %v4377_v5 }
 0x197   : > { %3997 = vmatpush.bf16.msra.mxu0 %v5054_v16  ;;  %v4374_v16 = vor.u32 %v4977_v7, %v4371_v8 }
 0x198   : > { %4011 = vmatpush.bf16.msra.mxu1 %v5062_v17  ;;  %v4382_v17 = vor.u32 %v4978_v13, %v4379_v14 }
 0x199   : > { %4025 = vmatpush.bf16.msra.mxu2 %v5070_v18  ;;  %v5123_v18 = vld [vmem:[%s5874_s5 + $0x430] sm:$0xff] }
 0x19a   : > { %4039 = vmatpush.bf16.msra.mxu3 %v5078_v19  ;;  %v5131_v19 = vld [vmem:[%s5874_s5 + $0x470] sm:$0xff] }
 0x19b   : > { %3998 = vmatpush.bf16.msra.mxu0 %v5053_v20  ;;  %v5122_v20 = vld [vmem:[%s5874_s5 + $0x428] sm:$0xff] }
 0x19c   : > { %4012 = vmatpush.bf16.msra.mxu1 %v5061_v21  ;;  %v5130_v21 = vld [vmem:[%s5874_s5 + $0x468] sm:$0xff] }
 0x19d   : > { %4026 = vmatpush.bf16.msra.mxu2 %v5069_v22  ;;  %v5121_v22 = vld [vmem:[%s5874_s5 + $0x420] sm:$0xff] }
 0x19e   : > { %4040 = vmatpush.bf16.msra.mxu3 %v5077_v32  ;;  %3999 = vmatmul.bf16.vlgmr.msra.gmra.mxu0 %v4354_v35  ;;  %v4988_v32 = vld [vmem:[%s6166_s0 + $0x84] sm:$0xf0]  ;;  %v4387_v35 = vld [vmem:[%s6166_s0 + $0x88] sm:$0xf0] }
 0x19f   : > { %4047 = vmatpush.bf16.msrb.mxu0 %v5092_v23  ;;  %4013 = vmatmul.bf16.vlgmr.msra.gmra.mxu1 %v4358_v38  ;;  %v5129_v23 = vld [vmem:[%s5874_s5 + $0x460] sm:$0xff] }
 0x1a0   : > { %4061 = vmatpush.bf16.msrb.mxu1 %v5100_v24  ;;  %4027 = vmatmul.bf16.vlgmr.msra.gmra.mxu2 %v4362_v36  ;;  %v5120_v24 = vld [vmem:[%s5874_s5 + $0x418] sm:$0xff]  ;;  %v4386_v36 = vor.u32 %v4988_v32, %v4385_v31 }
 0x1a1   : > { %4075 = vmatpush.bf16.msrb.mxu2 %v5108_v29  ;;  %4041 = vmatmul.bf16.vlgmr.msra.gmra.mxu3 %v4366_v39  ;;  %v5126_v29 = vld [vmem:[%s5874_s5 + $0x448] sm:$0xff] }
 0x1a2   : > { %4089 = vmatpush.bf16.msrb.mxu3 %v5116_v37  ;;  %v4390_v37 = vor.u32 %v4979_v34, %v4387_v35 }
 0x1a3   : > { %4048 = vmatpush.bf16.msrb.mxu0 %v5091_v40 }
 0x1a4   : > { %4062 = vmatpush.bf16.msrb.mxu1 %v5099_v41 }
 0x1a5   : > { %4076 = vmatpush.bf16.msrb.mxu2 %v5107_v42 }
 0x1a6   : > { %4090 = vmatpush.bf16.msrb.mxu3 %v5115_v43 }
 0x1a7   : > { %4049 = vmatpush.bf16.msrb.mxu0 %v5090_v44 }
 0x1a8   : > { %4063 = vmatpush.bf16.msrb.mxu1 %v5098_v45 }
 0x1a9   : > { %4077 = vmatpush.bf16.msrb.mxu2 %v5106_v46  ;;  %v5180_v46 = vld [vmem:[%s2613_s8] ss:$0 sm:$0xff]  ;;  %s2599_s8 = scalar_lea.vmem [#allocation3], %s4318_s26 }
 0x1aa   : > { %4091 = vmatpush.bf16.msrb.mxu3 %v5114_v47 }
 0x1ab   : > { %4050 = vmatpush.bf16.msrb.mxu0 %v5089_v48 }
 0x1ac   : > { %4064 = vmatpush.bf16.msrb.mxu1 %v5097_v49 }
 0x1ad   : > { %4078 = vmatpush.bf16.msrb.mxu2 %v5105_v50 }
 0x1ae   : > { %4092 = vmatpush.bf16.msrb.mxu3 %v5113_v51 }
 0x1af   : > { %4051 = vmatpush.bf16.msrb.mxu0 %v5088_v52 }
 0x1b0   : > { %4065 = vmatpush.bf16.msrb.mxu1 %v5096_v53 }
 0x1b1   : > { %4079 = vmatpush.bf16.msrb.mxu2 %v5104_v54 }
 0x1b2   : > { %4093 = vmatpush.bf16.msrb.mxu3 %v5112_v55 }
 0x1b3   : > { %4052 = vmatpush.bf16.msrb.mxu0 %v5087_v56 }
 0x1b4   : > { %4066 = vmatpush.bf16.msrb.mxu1 %v5095_v57 }
 0x1b5   : > { %4080 = vmatpush.bf16.msrb.mxu2 %v5103_v58 }
 0x1b6   : > { %4094 = vmatpush.bf16.msrb.mxu3 %v5111_v59 }
 0x1b7   : > { %4053 = vmatpush.bf16.msrb.mxu0 %v5086_v60 }
 0x1b8   : > { %4067 = vmatpush.bf16.msrb.mxu1 %v5094_v61 }
 0x1b9   : > { %4081 = vmatpush.bf16.msrb.mxu2 %v5102_v62 }
 0x1ba   : > { %4095 = vmatpush.bf16.msrb.mxu3 %v5110_v63 }
 0x1bb   : > { %4054 = vmatpush.bf16.msrb.mxu0 %v5085_v0 }
 0x1bc   : > { %4068 = vmatpush.bf16.msrb.mxu1 %v5093_v1 }
 0x1bd   : > { %4082 = vmatpush.bf16.msrb.mxu2 %v5101_v2 }
 0x1be   : > { %4096 = vmatpush.bf16.msrb.mxu3 %v5109_v11  ;;  %4055 = vmatmul.bf16.vlgmr.msrb.gmra.mxu0 %v4370_v12 }
 0x1bf   : > { %4103 = vmatpush.bf16.msra.mxu0 %v5124_v9  ;;  %4069 = vmatmul.bf16.vlgmr.msrb.gmra.mxu1 %v4374_v16 }
 0x1c0   : > { %4117 = vmatpush.bf16.msra.mxu1 %v5132_v10  ;;  %4083 = vmatmul.bf16.vlgmr.msrb.gmra.mxu2 %v4378_v15 }
 0x1c1   : > { %4097 = vmatmul.bf16.vlgmr.msrb.gmra.mxu3 %v4382_v17 }
 0x1c3   : > { %4104 = vmatpush.bf16.msra.mxu0 %v5123_v18 }
 0x1c4   : > { %4118 = vmatpush.bf16.msra.mxu1 %v5131_v19 }
 0x1c7   : > { %4105 = vmatpush.bf16.msra.mxu0 %v5122_v20 }
 0x1c8   : > { %4119 = vmatpush.bf16.msra.mxu1 %v5130_v21 }
 0x1cb   : > { %4106 = vmatpush.bf16.msra.mxu0 %v5121_v22 }
 0x1cc   : > { %4120 = vmatpush.bf16.msra.mxu1 %v5129_v23 }
 0x1cf   : > { %4107 = vmatpush.bf16.msra.mxu0 %v5120_v24 }
 0x1d0   : > { %4121 = vmatpush.bf16.msra.mxu1 %v5128_v25 }
 0x1d3   : > { %4108 = vmatpush.bf16.msra.mxu0 %v5119_v26 }
 0x1d4   : > { %4122 = vmatpush.bf16.msra.mxu1 %v5127_v27 }
 0x1d7   : > { %4109 = vmatpush.bf16.msra.mxu0 %v5118_v28 }
 0x1d8   : > { %4123 = vmatpush.bf16.msra.mxu1 %v5126_v29 }
 0x1db   : > { %4110 = vmatpush.bf16.msra.mxu0 %v5117_v30  ;;  %v3888_v38 = vpop.f32.mrf.mxu0 }
 0x1dc   : > { %4124 = vmatpush.bf16.msra.mxu1 %v5125_v33  ;;  %v3902_v39 = vpop.f32.mrf.mxu1  ;;  %v3889_v49 = vadd.f32 %v5180_v46, %v3888_v38 }
 0x1de   : > { %4111 = vmatmul.bf16.vlgmr.msra.gmra.mxu0 %v4386_v36  ;;  %v3903_v51 = vadd.f32 %v3902_v39, %v3889_v49 }
 0x1df   : > { %4125 = vmatmul.bf16.vlgmr.msra.gmra.mxu1 %v4390_v37 }
 0x1e3   : > { %v3916_v40 = vpop.f32.mrf.mxu2  ;;  %v3890_v41 = vpop.f32.mrf.mxu0 }
 0x1e4   : > { %v3904_v42 = vpop.f32.mrf.mxu1  ;;  %v3930_v43 = vpop.f32.mrf.mxu3  ;;  %v3917_v55 = vadd.f32 %v3916_v40, %v3903_v51  ;;  %v3891_v56 = vadd.f32 %v5180_v46, %v3890_v41 }
 0x1e6   : > { %v3931_v57 = vadd.f32 %v3930_v43, %v3917_v55  ;;  %v3905_v58 = vadd.f32 %v3904_v42, %v3891_v56 }
 0x1eb   : > { %v3918_v44 = vpop.f32.mrf.mxu2 }
 0x1ec   : > { %v3932_v48 = vpop.f32.mrf.mxu3  ;;  %v3919_v62 = vadd.f32 %v3918_v44, %v3905_v58 }
 0x1ee   : > { %v3933_v1 = vadd.f32 %v3932_v48, %v3919_v62 }
 0x1fb   : > { %v3944_v45 = vpop.f32.mrf.mxu0 }
 0x1fc   : > { %v3958_v47 = vpop.f32.mrf.mxu1  ;;  %v3945_v63 = vadd.f32 %v3944_v45, %v3931_v57 }
 0x1fe   : > { %v3959_v2 = vadd.f32 %v3958_v47, %v3945_v63 }
 0x203   : > { %v3972_v50 = vpop.f32.mrf.mxu2  ;;  %v3946_v52 = vpop.f32.mrf.mxu0 }
 0x204   : > { %v3960_v53 = vpop.f32.mrf.mxu1  ;;  %v3986_v54 = vpop.f32.mrf.mxu3  ;;  %v3947_v4 = vadd.f32 %v3946_v52, %v3933_v1  ;;  %v3973_v6 = vadd.f32 %v3972_v50, %v3959_v2 }
 0x206   : > { %v3961_v9 = vadd.f32 %v3960_v53, %v3947_v4  ;;  %v3987_v10 = vadd.f32 %v3986_v54, %v3973_v6 }
 0x20b   : > { %v3974_v59 = vpop.f32.mrf.mxu2 }
 0x20c   : > { %v3988_v0 = vpop.f32.mrf.mxu3  ;;  %v3975_v11 = vadd.f32 %v3974_v59, %v3961_v9 }
 0x20e   : > { %v3989_v15 = vadd.f32 %v3988_v0, %v3975_v11 }
 0x21b   : > { %v4000_v60 = vpop.f32.mrf.mxu0 }
 0x21c   : > { %v4014_v61 = vpop.f32.mrf.mxu1  ;;  %v4001_v12 = vadd.f32 %v4000_v60, %v3987_v10 }
 0x21e   : > { %v4015_v17 = vadd.f32 %v4014_v61, %v4001_v12 }
 0x223   : > { %v4028_v3 = vpop.f32.mrf.mxu2  ;;  %v4002_v5 = vpop.f32.mrf.mxu0 }
 0x224   : > { %v4016_v7 = vpop.f32.mrf.mxu1  ;;  %v4042_v8 = vpop.f32.mrf.mxu3  ;;  %v4003_v18 = vadd.f32 %v4002_v5, %v3989_v15  ;;  %v4029_v20 = vadd.f32 %v4028_v3, %v4015_v17 }
 0x226   : > { %v4017_v21 = vadd.f32 %v4016_v7, %v4003_v18  ;;  %v4043_v23 = vadd.f32 %v4042_v8, %v4029_v20 }
 0x22b   : > { %v4030_v13 = vpop.f32.mrf.mxu2 }
 0x22c   : > { %v4044_v19 = vpop.f32.mrf.mxu3  ;;  %v4031_v24 = vadd.f32 %v4030_v13, %v4017_v21 }
 0x22e   : > { %v4045_v29 = vadd.f32 %v4044_v19, %v4031_v24 }
 0x23b   : > { %v4056_v14 = vpop.f32.mrf.mxu0 }
 0x23c   : > { %v4070_v16 = vpop.f32.mrf.mxu1  ;;  %v4057_v26 = vadd.f32 %v4056_v14, %v4043_v23 }
 0x23e   : > { %v4071_v30 = vadd.f32 %v4070_v16, %v4057_v26 }
 0x243   : > { %v4084_v22 = vpop.f32.mrf.mxu2  ;;  %v4058_v25 = vpop.f32.mrf.mxu0 }
 0x244   : > { %v4072_v27 = vpop.f32.mrf.mxu1  ;;  %v4098_v28 = vpop.f32.mrf.mxu3  ;;  %v4059_v31 = vadd.f32 %v4058_v25, %v4045_v29  ;;  %v4085_v32 = vadd.f32 %v4084_v22, %v4071_v30 }
 0x246   : > { %v4073_v35 = vadd.f32 %v4072_v27, %v4059_v31  ;;  %v4099_v37 = vadd.f32 %v4098_v28, %v4085_v32 }
 0x24b   : > { %v4086_v33 = vpop.f32.mrf.mxu2 }
 0x24c   : > { %v4087_v38 = vadd.f32 %v4086_v33, %v4073_v35  ;;  %v4100_v39 = vpop.f32.mrf.mxu3 }
 0x24e   : > { %v4101_v41 = vadd.f32 %v4100_v39, %v4087_v38 }
 0x25b   : > { %v4112_v34 = vpop.f32.mrf.mxu0 }
 0x25c   : > { %v4126_v36 = vpop.f32.mrf.mxu1  ;;  %v4113_v40 = vadd.f32 %v4112_v34, %v4099_v37 }
 0x25e   : > { %v4127_v43 = vadd.f32 %v4126_v36, %v4113_v40 }
 0x260   : > { %v4131_v47 = vmax.f32 %v4127_v43, 0.0 }
 0x263   : > { %v4114_v42 = vpop.f32.mrf.mxu0 }
 0x264   : > { %v4115_v44 = vadd.f32 %v4114_v42, %v4101_v41  ;;  %v4128_v45 = vpop.f32.mrf.mxu1 }
 0x266   : > { %v4129_v46 = vadd.f32 %v4128_v45, %v4115_v44 }
 0x268   : > { %v4132_v48 = vmax.f32 %v4129_v46, 0.0  ;;  %4143 = sbr.rel (!%p5276_p6) target bundleno = 630 (0x276), region = 88 }
 0x26a   : > { %v5136_v49 = vpack.c.bf16 %v4132_v48, %v4131_v47 }
 0x26c   : > { %5137 = vst [vmem:[%s2599_s8] sm:$0xff] %v5136_v49  }
 0x273   : > { %v4167_v50 = vld [vmem:[%s2599_s8] sm:$0xf]  ;;  %v4169_v51 = vld [vmem:[%s2599_s8 + $0x4] sm:$0xf] }
 0x274   : > { %4168 = vst [vmem:[%s4150_s9] sm:$0xf] %v4167_v50 }
 0x275   : > { %4170 = vst [vmem:[%s4150_s9 + $0x8] sm:$0xf] %v4169_v51 }
 0x276 PF: > { %s13_s16 = sadd.s32 1, %s5219_s16   ;;  %s6171_s12 = smov %s5207_s13 }
 0x277   : > { %p10_p12 = scmp.ge.s32.totalorder %s13_s16, 4   ;;  %s6172_s13 = smov %s5281_s22 }
 0x278   : > { %s6173_s14 = smov %s5215_s15  ;;  %s6174_s15 = smov %s6176_s17 }
 0x279   :  { %12 = sbr.rel (!%p10_p12) target bundleno = 3 (0x3), region = 170 }

// kernel: colorization_forward.18
= control target key start
LH: loop header
LB: loop body
LE: loop exit
PB: predicated region body
PF: predicated region fallthrough
CT: control target
= control target key end

     0   :  { %s1539_s12 = smov 0   ;;  %s1541_s13 = smov 0   ;;  %s1667_s0 = inlined_call_operand.vmem [shape: bf16[4,16,1024], index: 0, kind: input, shape index: {}]   ;;  %s1668_s1 = inlined_call_operand.vmem [shape: bf16[4,1024,128], index: 1, kind: input, shape index: {}]   ;;  %s1669_s2 = inlined_call_operand.vmem [shape: f32[1,128], index: 2, kind: input, shape index: {}]   ;;  %s1670_s3 = inlined_call_operand.vmem [shape: bf16[4,16,128], index: 3, kind: output, shape index: {}]  }
   0x1   :  { %s1543_s14 = smov 0  }
   0x2 LB: > { %s32_s15 = sadd.s32 1, %s1513_s13  ;;  %p1093_p0 = scmp.ge.s32.totalorder %s1517_s14, 1  ;;  %s1517_s14 = sphi %s1543_s14, %s13_s14   ;;  %s1513_s13 = sphi %s1541_s13, %s1672_s13   ;;  %s1509_s12 = sphi %s1539_s12, %s1671_s12  }
   0x3   : > { %p34_p1 = scmp.ge.s32.totalorder %s32_s15, 4  ;;  %p191_p2 = scmp.lt.s32.totalorder %s1517_s14, 5 }
   0x5   : > { %s1674_s15 = smov (%p34_p1, %s32_s15), 0  ;;  %p192_p3 = pnand %p1093_p0, %p191_p2 }
   0x6   : > { %p239_p4 = scmp.lt.s32.totalorder (!%p192_p3), %s1509_s12, 3 }
   0x7   : > { %195 = sbr.rel (%p192_p3) target bundleno = 230 (0xe6), region = 32 }
   0xc   : > { %s1676_s12 = smov (!%p239_p4, %s1509_s12), 3 }
   0xd   : > { %s1391_s16 = sshll.u32 %s1676_s12, 9  ;;  %s1390_s20 = sshll.u32 %s1676_s12, 6 }
   0xe   : > { %s1563_s19 = scalar_lea.vmem %s1668_s1, %s1391_s16  ;;  %s1597_s23 = scalar_lea.vmem %s1667_s0, %s1390_s20 }
   0xf   : > { %v1408_v0 = vld [vmem:[%s1563_s19 + $0x38] sm:$0xff]  ;;  %v1407_v4 = vld [vmem:[%s1563_s19 + $0x30] sm:$0xff]  ;;  %v1406_v8 = vld [vmem:[%s1563_s19 + $0x28] sm:$0xff]  ;;  %s1392_s26 = sshll.u32 %s1676_s12, 3 }
  0x10   : > { %v1416_v1 = vld [vmem:[%s1563_s19 + $0x78] sm:$0xff]  ;;  %837 = vmatpush.bf16.msra.mxu0 %v1408_v0  ;;  %v1415_v5 = vld [vmem:[%s1563_s19 + $0x70] sm:$0xff]  ;;  %v1414_v9 = vld [vmem:[%s1563_s19 + $0x68] sm:$0xff]  ;;  %s271_s29 = scalar_lea.vmem %s1670_s3, %s1392_s26 }
  0x11   : > { %v1424_v2 = vld [vmem:[%s1563_s19 + $0xb8] sm:$0xff]  ;;  %851 = vmatpush.bf16.msra.mxu1 %v1416_v1  ;;  %v1423_v6 = vld [vmem:[%s1563_s19 + $0xb0] sm:$0xff]  ;;  %v1422_v10 = vld [vmem:[%s1563_s19 + $0xa8] sm:$0xff] }
  0x12   : > { %v1432_v3 = vld [vmem:[%s1563_s19 + $0xf8] sm:$0xff]  ;;  %865 = vmatpush.bf16.msra.mxu2 %v1424_v2  ;;  %v1431_v7 = vld [vmem:[%s1563_s19 + $0xf0] sm:$0xff]  ;;  %v1430_v11 = vld [vmem:[%s1563_s19 + $0xe8] sm:$0xff] }
  0x13   : > { %879 = vmatpush.bf16.msra.mxu3 %v1432_v3  ;;  %v1405_v12 = vld [vmem:[%s1563_s19 + $0x20] sm:$0xff]  ;;  %v1404_v16 = vld [vmem:[%s1563_s19 + $0x18] sm:$0xff]  ;;  %v1403_v20 = vld [vmem:[%s1563_s19 + $0x10] sm:$0xff] }
  0x14   : > { %838 = vmatpush.bf16.msra.mxu0 %v1407_v4  ;;  %v1413_v13 = vld [vmem:[%s1563_s19 + $0x60] sm:$0xff]  ;;  %v1412_v17 = vld [vmem:[%s1563_s19 + $0x58] sm:$0xff]  ;;  %v1411_v21 = vld [vmem:[%s1563_s19 + $0x50] sm:$0xff] }
  0x15   : > { %852 = vmatpush.bf16.msra.mxu1 %v1415_v5  ;;  %v1421_v14 = vld [vmem:[%s1563_s19 + $0xa0] sm:$0xff]  ;;  %v1420_v18 = vld [vmem:[%s1563_s19 + $0x98] sm:$0xff]  ;;  %v1419_v22 = vld [vmem:[%s1563_s19 + $0x90] sm:$0xff] }
  0x16   : > { %866 = vmatpush.bf16.msra.mxu2 %v1423_v6  ;;  %v1429_v15 = vld [vmem:[%s1563_s19 + $0xe0] sm:$0xff]  ;;  %v1428_v19 = vld [vmem:[%s1563_s19 + $0xd8] sm:$0xff]  ;;  %v1427_v23 = vld [vmem:[%s1563_s19 + $0xd0] sm:$0xff] }
  0x17   : > { %880 = vmatpush.bf16.msra.mxu3 %v1431_v7  ;;  %v1402_v24 = vld [vmem:[%s1563_s19 + $0x8] sm:$0xff]  ;;  %v1401_v28 = vld [vmem:[%s1563_s19] sm:$0xff]  ;;  %v1440_v32 = vld [vmem:[%s1563_s19 + $0x138] sm:$0xff] }
  0x18   : > { %839 = vmatpush.bf16.msra.mxu0 %v1406_v8  ;;  %v1410_v25 = vld [vmem:[%s1563_s19 + $0x48] sm:$0xff]  ;;  %v1409_v29 = vld [vmem:[%s1563_s19 + $0x40] sm:$0xff]  ;;  %v1448_v33 = vld [vmem:[%s1563_s19 + $0x178] sm:$0xff] }
  0x19   : > { %853 = vmatpush.bf16.msra.mxu1 %v1414_v9  ;;  %v1418_v26 = vld [vmem:[%s1563_s19 + $0x88] sm:$0xff]  ;;  %v1417_v30 = vld [vmem:[%s1563_s19 + $0x80] sm:$0xff]  ;;  %v1456_v42 = vld [vmem:[%s1563_s19 + $0x1b8] sm:$0xff] }
  0x1a   : > { %867 = vmatpush.bf16.msra.mxu2 %v1422_v10  ;;  %v1426_v27 = vld [vmem:[%s1563_s19 + $0xc8] sm:$0xff]  ;;  %v1425_v31 = vld [vmem:[%s1563_s19 + $0xc0] sm:$0xff]  ;;  %v1464_v43 = vld [vmem:[%s1563_s19 + $0x1f8] sm:$0xff] }
  0x1b   : > { %881 = vmatpush.bf16.msra.mxu3 %v1430_v11  ;;  %v1110_v34 = vld [vmem:[%s1597_s23 + $0x8] sm:$0xf]  ;;  %v1102_v36 = vld [vmem:[%s1597_s23] sm:$0xf]  ;;  %v1394_v38 = vld [vmem:[%s1597_s23 + $0xc] sm:$0xf] }
  0x1c   : > { %840 = vmatpush.bf16.msra.mxu0 %v1405_v12  ;;  %v1398_v35 = vld [vmem:[%s1597_s23 + $0x24] sm:$0xf0]  ;;  %v1397_v37 = vld [vmem:[%s1597_s23 + $0x1c] sm:$0xf0]  ;;  %v1112_v39 = vld [vmem:[%s1597_s23 + $0x28] sm:$0xf0] }
  0x1d   : > { %854 = vmatpush.bf16.msra.mxu1 %v1413_v13  ;;  %v1393_v40 = vld [vmem:[%s1597_s23 + $0x4] sm:$0xf]  ;;  %v1111_v44 = vor.u32 %v1398_v35, %v1110_v34  ;;  %v1103_v45 = vor.u32 %v1397_v37, %v1102_v36  ;;  %v1115_v46 = vor.u32 %v1394_v38, %v1112_v39  ;;  %v1439_v48 = vld [vmem:[%s1563_s19 + $0x130] sm:$0xff]  ;;  %v1438_v52 = vld [vmem:[%s1563_s19 + $0x128] sm:$0xff] }
  0x1e   : > { %868 = vmatpush.bf16.msra.mxu2 %v1421_v14  ;;  %v1104_v41 = vld [vmem:[%s1597_s23 + $0x20] sm:$0xf0]  ;;  %v1447_v49 = vld [vmem:[%s1563_s19 + $0x170] sm:$0xff]  ;;  %v1446_v53 = vld [vmem:[%s1563_s19 + $0x168] sm:$0xff] }
  0x1f   : > { %882 = vmatpush.bf16.msra.mxu3 %v1429_v15  ;;  %v1107_v47 = vor.u32 %v1393_v40, %v1104_v41  ;;  %v1455_v50 = vld [vmem:[%s1563_s19 + $0x1b0] sm:$0xff]  ;;  %v1454_v54 = vld [vmem:[%s1563_s19 + $0x1a8] sm:$0xff]  ;;  %v1437_v56 = vld [vmem:[%s1563_s19 + $0x120] sm:$0xff] }
  0x20   : > { %841 = vmatpush.bf16.msra.mxu0 %v1404_v16  ;;  %v1463_v51 = vld [vmem:[%s1563_s19 + $0x1f0] sm:$0xff]  ;;  %v1462_v55 = vld [vmem:[%s1563_s19 + $0x1e8] sm:$0xff]  ;;  %v1445_v57 = vld [vmem:[%s1563_s19 + $0x160] sm:$0xff] }
  0x21   : > { %855 = vmatpush.bf16.msra.mxu1 %v1412_v17  ;;  %v1453_v58 = vld [vmem:[%s1563_s19 + $0x1a0] sm:$0xff]  ;;  %v1436_v60 = vld [vmem:[%s1563_s19 + $0x118] sm:$0xff]  ;;  %v1435_v0 = vld [vmem:[%s1563_s19 + $0x110] sm:$0xff] }
  0x22   : > { %869 = vmatpush.bf16.msra.mxu2 %v1420_v18  ;;  %v1461_v59 = vld [vmem:[%s1563_s19 + $0x1e0] sm:$0xff]  ;;  %v1444_v61 = vld [vmem:[%s1563_s19 + $0x158] sm:$0xff]  ;;  %v1443_v1 = vld [vmem:[%s1563_s19 + $0x150] sm:$0xff] }
  0x23   : > { %883 = vmatpush.bf16.msra.mxu3 %v1428_v19  ;;  %v1452_v62 = vld [vmem:[%s1563_s19 + $0x198] sm:$0xff]  ;;  %v1451_v2 = vld [vmem:[%s1563_s19 + $0x190] sm:$0xff]  ;;  %v1434_v4 = vld [vmem:[%s1563_s19 + $0x108] sm:$0xff] }
  0x24   : > { %842 = vmatpush.bf16.msra.mxu0 %v1403_v20  ;;  %v1460_v63 = vld [vmem:[%s1563_s19 + $0x1d8] sm:$0xff]  ;;  %v1459_v3 = vld [vmem:[%s1563_s19 + $0x1d0] sm:$0xff]  ;;  %v1442_v5 = vld [vmem:[%s1563_s19 + $0x148] sm:$0xff] }
  0x25   : > { %856 = vmatpush.bf16.msra.mxu1 %v1411_v21  ;;  %v1450_v6 = vld [vmem:[%s1563_s19 + $0x188] sm:$0xff]  ;;  %v1433_v8 = vld [vmem:[%s1563_s19 + $0x100] sm:$0xff]  ;;  %v1118_v12 = vld [vmem:[%s1597_s23 + $0x10] sm:$0xf] }
  0x26   : > { %870 = vmatpush.bf16.msra.mxu2 %v1419_v22  ;;  %v1458_v7 = vld [vmem:[%s1563_s19 + $0x1c8] sm:$0xff]  ;;  %v1441_v9 = vld [vmem:[%s1563_s19 + $0x140] sm:$0xff]  ;;  %v1399_v13 = vld [vmem:[%s1597_s23 + $0x2c] sm:$0xf0] }
  0x27   : > { %884 = vmatpush.bf16.msra.mxu3 %v1427_v23  ;;  %v1449_v10 = vld [vmem:[%s1563_s19 + $0x180] sm:$0xff]  ;;  %v1395_v14 = vld [vmem:[%s1597_s23 + $0x14] sm:$0xf]  ;;  %v1126_v16 = vld [vmem:[%s1597_s23 + $0x18] sm:$0xf]  ;;  %v1119_v20 = vor.u32 %v1399_v13, %v1118_v12 }
  0x28   : > { %843 = vmatpush.bf16.msra.mxu0 %v1402_v24  ;;  %v1457_v11 = vld [vmem:[%s1563_s19 + $0x1c0] sm:$0xff]  ;;  %v1120_v15 = vld [vmem:[%s1597_s23 + $0x30] sm:$0xf0]  ;;  %v1400_v17 = vld [vmem:[%s1597_s23 + $0x34] sm:$0xf0] }
  0x29   : > { %857 = vmatpush.bf16.msra.mxu1 %v1410_v25  ;;  %v1396_v18 = vld [vmem:[%s1597_s23 + $0x1c] sm:$0xf]  ;;  %v1123_v21 = vor.u32 %v1395_v14, %v1120_v15  ;;  %v1127_v22 = vor.u32 %v1400_v17, %v1126_v16 }
  0x2a   : > { %871 = vmatpush.bf16.msra.mxu2 %v1418_v26  ;;  %v1128_v19 = vld [vmem:[%s1597_s23 + $0x38] sm:$0xf0]  ;;  %v1494_v26 = vld [vmem:[%s1669_s2] ss:$0 sm:$0xff] }
  0x2b   : > { %885 = vmatpush.bf16.msra.mxu3 %v1426_v27  ;;  %v1131_v23 = vor.u32 %v1396_v18, %v1128_v19 }
  0x2c   : > { %844 = vmatpush.bf16.msra.mxu0 %v1401_v28 }
  0x2d   : > { %858 = vmatpush.bf16.msra.mxu1 %v1409_v29 }
  0x2e   : > { %872 = vmatpush.bf16.msra.mxu2 %v1417_v30 }
  0x2f   : > { %886 = vmatpush.bf16.msra.mxu3 %v1425_v31  ;;  %845 = vmatmul.bf16.vlgmr.msra.gmra.mxu0 %v1103_v45 }
  0x30   : > { %893 = vmatpush.bf16.msrb.mxu0 %v1440_v32  ;;  %859 = vmatmul.bf16.vlgmr.msra.gmra.mxu1 %v1107_v47 }
  0x31   : > { %907 = vmatpush.bf16.msrb.mxu1 %v1448_v33  ;;  %873 = vmatmul.bf16.vlgmr.msra.gmra.mxu2 %v1111_v44 }
  0x32   : > { %921 = vmatpush.bf16.msrb.mxu2 %v1456_v42  ;;  %887 = vmatmul.bf16.vlgmr.msra.gmra.mxu3 %v1115_v46 }
  0x33   : > { %935 = vmatpush.bf16.msrb.mxu3 %v1464_v43 }
  0x34   : > { %894 = vmatpush.bf16.msrb.mxu0 %v1439_v48 }
  0x35   : > { %908 = vmatpush.bf16.msrb.mxu1 %v1447_v49 }
  0x36   : > { %922 = vmatpush.bf16.msrb.mxu2 %v1455_v50 }
  0x37   : > { %936 = vmatpush.bf16.msrb.mxu3 %v1463_v51 }
  0x38   : > { %895 = vmatpush.bf16.msrb.mxu0 %v1438_v52 }
  0x39   : > { %909 = vmatpush.bf16.msrb.mxu1 %v1446_v53 }
  0x3a   : > { %923 = vmatpush.bf16.msrb.mxu2 %v1454_v54 }
  0x3b   : > { %937 = vmatpush.bf16.msrb.mxu3 %v1462_v55 }
  0x3c   : > { %896 = vmatpush.bf16.msrb.mxu0 %v1437_v56 }
  0x3d   : > { %910 = vmatpush.bf16.msrb.mxu1 %v1445_v57 }
  0x3e   : > { %924 = vmatpush.bf16.msrb.mxu2 %v1453_v58 }
  0x3f   : > { %938 = vmatpush.bf16.msrb.mxu3 %v1461_v59 }
  0x40   : > { %897 = vmatpush.bf16.msrb.mxu0 %v1436_v60 }
  0x41   : > { %911 = vmatpush.bf16.msrb.mxu1 %v1444_v61 }
  0x42   : > { %925 = vmatpush.bf16.msrb.mxu2 %v1452_v62 }
  0x43   : > { %939 = vmatpush.bf16.msrb.mxu3 %v1460_v63 }
  0x44   : > { %898 = vmatpush.bf16.msrb.mxu0 %v1435_v0 }
  0x45   : > { %912 = vmatpush.bf16.msrb.mxu1 %v1443_v1 }
  0x46   : > { %926 = vmatpush.bf16.msrb.mxu2 %v1451_v2 }
  0x47   : > { %940 = vmatpush.bf16.msrb.mxu3 %v1459_v3 }
  0x48   : > { %899 = vmatpush.bf16.msrb.mxu0 %v1434_v4 }
  0x49   : > { %913 = vmatpush.bf16.msrb.mxu1 %v1442_v5 }
  0x4a   : > { %927 = vmatpush.bf16.msrb.mxu2 %v1450_v6 }
  0x4b   : > { %941 = vmatpush.bf16.msrb.mxu3 %v1458_v7 }
  0x4c   : > { %900 = vmatpush.bf16.msrb.mxu0 %v1433_v8 }
  0x4d   : > { %914 = vmatpush.bf16.msrb.mxu1 %v1441_v9 }
  0x4e   : > { %928 = vmatpush.bf16.msrb.mxu2 %v1449_v10 }
  0x4f   : > { %942 = vmatpush.bf16.msrb.mxu3 %v1457_v11  ;;  %901 = vmatmul.bf16.vlgmr.msrb.gmra.mxu0 %v1119_v20 }
  0x50   : > { %915 = vmatmul.bf16.vlgmr.msrb.gmra.mxu1 %v1123_v21 }
  0x51   : > { %929 = vmatmul.bf16.vlgmr.msrb.gmra.mxu2 %v1127_v22 }
  0x52   : > { %943 = vmatmul.bf16.vlgmr.msrb.gmra.mxu3 %v1131_v23 }
  0xac   : > { %v846_v24 = vpop.f32.mrf.mxu0 }
  0xad   : > { %v860_v25 = vpop.f32.mrf.mxu1  ;;  %v847_v29 = vadd.f32 %v1494_v26, %v846_v24 }
  0xaf   : > { %v861_v32 = vadd.f32 %v860_v25, %v847_v29 }
  0xb4   : > { %v874_v27 = vpop.f32.mrf.mxu2  ;;  %v848_v30 = vpop.f32.mrf.mxu0 }
  0xb5   : > { %v888_v28 = vpop.f32.mrf.mxu3  ;;  %v862_v31 = vpop.f32.mrf.mxu1  ;;  %v849_v33 = vadd.f32 %v1494_v26, %v848_v30  ;;  %v875_v36 = vadd.f32 %v874_v27, %v861_v32 }
  0xb7   : > { %v863_v37 = vadd.f32 %v862_v31, %v849_v33  ;;  %v889_v40 = vadd.f32 %v888_v28, %v875_v36 }
  0xbc   : > { %v876_v34 = vpop.f32.mrf.mxu2 }
  0xbd   : > { %v890_v35 = vpop.f32.mrf.mxu3  ;;  %v877_v41 = vadd.f32 %v876_v34, %v863_v37 }
  0xbf   : > { %v891_v45 = vadd.f32 %v890_v35, %v877_v41 }
  0xcc   : > { %v902_v38 = vpop.f32.mrf.mxu0 }
  0xcd   : > { %v916_v39 = vpop.f32.mrf.mxu1  ;;  %v903_v42 = vadd.f32 %v902_v38, %v889_v40 }
  0xcf   : > { %v917_v47 = vadd.f32 %v916_v39, %v903_v42 }
  0xd4   : > { %v930_v43 = vpop.f32.mrf.mxu2  ;;  %v904_v46 = vpop.f32.mrf.mxu0 }
  0xd5   : > { %v944_v44 = vpop.f32.mrf.mxu3  ;;  %v905_v48 = vadd.f32 %v904_v46, %v891_v45  ;;  %v931_v49 = vadd.f32 %v930_v43, %v917_v47  ;;  %v918_v50 = vpop.f32.mrf.mxu1 }
  0xd7   : > { %v919_v51 = vadd.f32 %v918_v50, %v905_v48  ;;  %v945_v53 = vadd.f32 %v944_v44, %v931_v49 }
  0xd9   : > { %v949_v57 = vmax.f32 %v945_v53, 0.0 }
  0xdc   : > { %v932_v52 = vpop.f32.mrf.mxu2 }
  0xdd   : > { %v933_v54 = vadd.f32 %v932_v52, %v919_v51  ;;  %v946_v55 = vpop.f32.mrf.mxu3 }
  0xdf   : > { %v947_v56 = vadd.f32 %v946_v55, %v933_v54 }
  0xe1   : > { %v950_v58 = vmax.f32 %v947_v56, 0.0 }
  0xe3   : > { %v1468_v59 = vpack.c.bf16 %v950_v58, %v949_v57 }
  0xe5   : > { %1469 = vst [vmem:[%s271_s29] sm:$0xff] %v1468_v59  }
  0xe6 PF: > { %s13_s14 = sadd.s32 1, %s1517_s14   ;;  %s1671_s12 = smov %s1513_s13 }
  0xe7   : > { %p10_p5 = scmp.ge.s32.totalorder %s13_s14, 6   ;;  %s1672_s13 = smov %s1674_s15 }
  0xe9   :  { %12 = sbr.rel (!%p10_p5) target bundleno = 2 (0x2), region = 68 }

// kernel: colorization_forward.19
= control target key start
LH: loop header
LB: loop body
LE: loop exit
PB: predicated region body
PF: predicated region fallthrough
CT: control target
= control target key end

     0   :  { %s1099_s12 = smov 0   ;;  %s1101_s13 = smov 0   ;;  %s1195_s0 = inlined_call_operand.vmem [shape: bf16[4,32,512], index: 0, kind: input, shape index: {}]   ;;  %s1196_s1 = inlined_call_operand.vmem [shape: bf16[4,512,128], index: 1, kind: input, shape index: {}]   ;;  %s1197_s2 = inlined_call_operand.vmem [shape: f32[1,128], index: 2, kind: input, shape index: {}]   ;;  %s1198_s3 = inlined_call_operand.vmem [shape: bf16[4,32,128], index: 3, kind: output, shape index: {}]  }
   0x1   :  { %s1103_s14 = smov 0  }
   0x2 LB: > { %s32_s15 = sadd.s32 1, %s1073_s13  ;;  %p807_p0 = scmp.ge.s32.totalorder %s1077_s14, 1  ;;  %s1077_s14 = sphi %s1103_s14, %s13_s14   ;;  %s1073_s13 = sphi %s1101_s13, %s1200_s13   ;;  %s1069_s12 = sphi %s1099_s12, %s1199_s12  }
   0x3   : > { %p34_p1 = scmp.ge.s32.totalorder %s32_s15, 4  ;;  %p191_p2 = scmp.lt.s32.totalorder %s1077_s14, 5 }
   0x5   : > { %s1202_s15 = smov (%p34_p1, %s32_s15), 0  ;;  %p192_p3 = pnand %p807_p0, %p191_p2 }
   0x6   : > { %p239_p4 = scmp.lt.s32.totalorder (!%p192_p3), %s1069_s12, 3 }
   0x7   : > { %195 = sbr.rel (%p192_p3) target bundleno = 214 (0xd6), region = 32 }
   0xc   : > { %s1204_s12 = smov (!%p239_p4, %s1069_s12), 3  ;;  %v1054_v56 = vld [vmem:[%s1197_s2] ss:$0 sm:$0xff] }
   0xd   : > { %s977_s16 = sshll.u32 %s1204_s12, 8  ;;  %s976_s20 = sshll.u32 %s1204_s12, 6 }
   0xe   : > { %s1123_s19 = scalar_lea.vmem %s1196_s1, %s977_s16  ;;  %s1155_s23 = scalar_lea.vmem %s1195_s0, %s976_s20 }
   0xf   : > { %v994_v0 = vld [vmem:[%s1123_s19 + $0x38] sm:$0xff]  ;;  %v993_v4 = vld [vmem:[%s1123_s19 + $0x30] sm:$0xff]  ;;  %v992_v8 = vld [vmem:[%s1123_s19 + $0x28] sm:$0xff]  ;;  %s978_s26 = sshll.u32 %s1204_s12, 4 }
  0x10   : > { %v1002_v1 = vld [vmem:[%s1123_s19 + $0x78] sm:$0xff]  ;;  %581 = vmatpush.bf16.msra.mxu0 %v994_v0  ;;  %v1001_v5 = vld [vmem:[%s1123_s19 + $0x70] sm:$0xff]  ;;  %v1000_v9 = vld [vmem:[%s1123_s19 + $0x68] sm:$0xff]  ;;  %s271_s29 = scalar_lea.vmem %s1198_s3, %s978_s26 }
  0x11   : > { %v1010_v2 = vld [vmem:[%s1123_s19 + $0xb8] sm:$0xff]  ;;  %600 = vmatpush.bf16.msra.mxu1 %v1002_v1  ;;  %v1009_v6 = vld [vmem:[%s1123_s19 + $0xb0] sm:$0xff]  ;;  %v1008_v10 = vld [vmem:[%s1123_s19 + $0xa8] sm:$0xff] }
  0x12   : > { %v1018_v3 = vld [vmem:[%s1123_s19 + $0xf8] sm:$0xff]  ;;  %619 = vmatpush.bf16.msra.mxu2 %v1010_v2  ;;  %v1017_v7 = vld [vmem:[%s1123_s19 + $0xf0] sm:$0xff]  ;;  %v1016_v11 = vld [vmem:[%s1123_s19 + $0xe8] sm:$0xff] }
  0x13   : > { %638 = vmatpush.bf16.msra.mxu3 %v1018_v3  ;;  %v991_v12 = vld [vmem:[%s1123_s19 + $0x20] sm:$0xff]  ;;  %v990_v16 = vld [vmem:[%s1123_s19 + $0x18] sm:$0xff]  ;;  %v989_v20 = vld [vmem:[%s1123_s19 + $0x10] sm:$0xff] }
  0x14   : > { %582 = vmatpush.bf16.msra.mxu0 %v993_v4  ;;  %v999_v13 = vld [vmem:[%s1123_s19 + $0x60] sm:$0xff]  ;;  %v998_v17 = vld [vmem:[%s1123_s19 + $0x58] sm:$0xff]  ;;  %v997_v21 = vld [vmem:[%s1123_s19 + $0x50] sm:$0xff] }
  0x15   : > { %601 = vmatpush.bf16.msra.mxu1 %v1001_v5  ;;  %v1007_v14 = vld [vmem:[%s1123_s19 + $0xa0] sm:$0xff]  ;;  %v1006_v18 = vld [vmem:[%s1123_s19 + $0x98] sm:$0xff]  ;;  %v1005_v22 = vld [vmem:[%s1123_s19 + $0x90] sm:$0xff] }
  0x16   : > { %620 = vmatpush.bf16.msra.mxu2 %v1009_v6  ;;  %v1015_v15 = vld [vmem:[%s1123_s19 + $0xe0] sm:$0xff]  ;;  %v1014_v19 = vld [vmem:[%s1123_s19 + $0xd8] sm:$0xff]  ;;  %v1013_v23 = vld [vmem:[%s1123_s19 + $0xd0] sm:$0xff] }
  0x17   : > { %639 = vmatpush.bf16.msra.mxu3 %v1017_v7  ;;  %v988_v24 = vld [vmem:[%s1123_s19 + $0x8] sm:$0xff]  ;;  %v987_v28 = vld [vmem:[%s1123_s19] sm:$0xff]  ;;  %v981_v33 = vld [vmem:[%s1155_s23 + $0xc] sm:$0xf0] }
  0x18   : > { %583 = vmatpush.bf16.msra.mxu0 %v992_v8  ;;  %v996_v25 = vld [vmem:[%s1123_s19 + $0x48] sm:$0xff]  ;;  %v995_v29 = vld [vmem:[%s1123_s19 + $0x40] sm:$0xff]  ;;  %v818_v35 = vld [vmem:[%s1155_s23 + $0x10] sm:$0xf0] }
  0x19   : > { %602 = vmatpush.bf16.msra.mxu1 %v1000_v9  ;;  %v1004_v26 = vld [vmem:[%s1123_s19 + $0x88] sm:$0xff]  ;;  %v1003_v30 = vld [vmem:[%s1123_s19 + $0x80] sm:$0xff]  ;;  %v982_v37 = vld [vmem:[%s1155_s23 + $0x14] sm:$0xf0] }
  0x1a   : > { %621 = vmatpush.bf16.msra.mxu2 %v1008_v10  ;;  %v1012_v27 = vld [vmem:[%s1123_s19 + $0xc8] sm:$0xff]  ;;  %v1011_v31 = vld [vmem:[%s1123_s19 + $0xc0] sm:$0xff]  ;;  %v826_v39 = vld [vmem:[%s1155_s23 + $0x18] sm:$0xf0] }
  0x1b   : > { %640 = vmatpush.bf16.msra.mxu3 %v1016_v11  ;;  %v816_v32 = vld [vmem:[%s1155_s23] sm:$0xf]  ;;  %v979_v34 = vld [vmem:[%s1155_s23 + $0x4] sm:$0xf]  ;;  %v824_v36 = vld [vmem:[%s1155_s23 + $0x8] sm:$0xf] }
  0x1c   : > { %584 = vmatpush.bf16.msra.mxu0 %v991_v12  ;;  %v980_v38 = vld [vmem:[%s1155_s23 + $0xc] sm:$0xf]  ;;  %v817_v40 = vor.u32 %v981_v33, %v816_v32  ;;  %v821_v41 = vor.u32 %v979_v34, %v818_v35  ;;  %v825_v42 = vor.u32 %v982_v37, %v824_v36  ;;  %v832_v44 = vld [vmem:[%s1155_s23 + $0x20] sm:$0xf]  ;;  %v985_v45 = vld [vmem:[%s1155_s23 + $0x2c] sm:$0xf0] }
  0x1d   : > { %603 = vmatpush.bf16.msra.mxu1 %v999_v13  ;;  %v829_v43 = vor.u32 %v980_v38, %v826_v39  ;;  %v983_v46 = vld [vmem:[%s1155_s23 + $0x24] sm:$0xf]  ;;  %v834_v47 = vld [vmem:[%s1155_s23 + $0x30] sm:$0xf0]  ;;  %v840_v48 = vld [vmem:[%s1155_s23 + $0x28] sm:$0xf]  ;;  %v833_v52 = vor.u32 %v985_v45, %v832_v44 }
  0x1e   : > { %622 = vmatpush.bf16.msra.mxu2 %v1007_v14  ;;  %v986_v49 = vld [vmem:[%s1155_s23 + $0x34] sm:$0xf0]  ;;  %v984_v50 = vld [vmem:[%s1155_s23 + $0x2c] sm:$0xf]  ;;  %v842_v51 = vld [vmem:[%s1155_s23 + $0x38] sm:$0xf0]  ;;  %v837_v53 = vor.u32 %v983_v46, %v834_v47 }
  0x1f   : > { %641 = vmatpush.bf16.msra.mxu3 %v1015_v15  ;;  %v841_v54 = vor.u32 %v986_v49, %v840_v48  ;;  %v845_v55 = vor.u32 %v984_v50, %v842_v51 }
  0x20   : > { %585 = vmatpush.bf16.msra.mxu0 %v990_v16 }
  0x21   : > { %604 = vmatpush.bf16.msra.mxu1 %v998_v17 }
  0x22   : > { %623 = vmatpush.bf16.msra.mxu2 %v1006_v18 }
  0x23   : > { %642 = vmatpush.bf16.msra.mxu3 %v1014_v19 }
  0x24   : > { %586 = vmatpush.bf16.msra.mxu0 %v989_v20 }
  0x25   : > { %605 = vmatpush.bf16.msra.mxu1 %v997_v21 }
  0x26   : > { %624 = vmatpush.bf16.msra.mxu2 %v1005_v22 }
  0x27   : > { %643 = vmatpush.bf16.msra.mxu3 %v1013_v23 }
  0x28   : > { %587 = vmatpush.bf16.msra.mxu0 %v988_v24 }
  0x29   : > { %606 = vmatpush.bf16.msra.mxu1 %v996_v25 }
  0x2a   : > { %625 = vmatpush.bf16.msra.mxu2 %v1004_v26 }
  0x2b   : > { %644 = vmatpush.bf16.msra.mxu3 %v1012_v27 }
  0x2c   : > { %588 = vmatpush.bf16.msra.mxu0 %v987_v28 }
  0x2d   : > { %607 = vmatpush.bf16.msra.mxu1 %v995_v29 }
  0x2e   : > { %626 = vmatpush.bf16.msra.mxu2 %v1003_v30 }
  0x2f   : > { %645 = vmatpush.bf16.msra.mxu3 %v1011_v31  ;;  %589 = vmatmul.bf16.vlgmr.msra.gmra.mxu0 %v817_v40 }
  0x30   : > { %608 = vmatmul.bf16.vlgmr.msra.gmra.mxu1 %v821_v41 }
  0x31   : > { %627 = vmatmul.bf16.vlgmr.msra.gmra.mxu2 %v825_v42 }
  0x32   : > { %646 = vmatmul.bf16.vlgmr.msra.gmra.mxu3 %v829_v43 }
  0x3f   : > { %594 = vmatmul.bf16.gmra.mxu0 %v833_v52 }
  0x40   : > { %613 = vmatmul.bf16.gmra.mxu1 %v837_v53 }
  0x41   : > { %632 = vmatmul.bf16.gmra.mxu2 %v841_v54 }
  0x42   : > { %651 = vmatmul.bf16.gmra.mxu3 %v845_v55 }
  0xac   : > { %v590_v57 = vpop.f32.mrf.mxu0 }
  0xad   : > { %v609_v58 = vpop.f32.mrf.mxu1  ;;  %v591_v59 = vadd.f32 %v1054_v56, %v590_v57 }
  0xaf   : > { %v610_v62 = vadd.f32 %v609_v58, %v591_v59 }
  0xb4   : > { %v628_v60 = vpop.f32.mrf.mxu2  ;;  %v592_v63 = vpop.f32.mrf.mxu0 }
  0xb5   : > { %v647_v61 = vpop.f32.mrf.mxu3  ;;  %v611_v0 = vpop.f32.mrf.mxu1  ;;  %v593_v1 = vadd.f32 %v1054_v56, %v592_v63  ;;  %v629_v2 = vadd.f32 %v628_v60, %v610_v62 }
  0xb7   : > { %v612_v3 = vadd.f32 %v611_v0, %v593_v1  ;;  %v648_v6 = vadd.f32 %v647_v61, %v629_v2 }
  0xb9   : > { %v657_v11 = vmax.f32 %v648_v6, 0.0 }
  0xbc   : > { %v630_v4 = vpop.f32.mrf.mxu2  ;;  %v595_v8 = vpop.f32.mrf.mxu0 }
  0xbd   : > { %v649_v5 = vpop.f32.mrf.mxu3  ;;  %v631_v7 = vadd.f32 %v630_v4, %v612_v3  ;;  %v614_v10 = vpop.f32.mrf.mxu1  ;;  %v596_v13 = vadd.f32 %v1054_v56, %v595_v8 }
  0xbf   : > { %v650_v9 = vadd.f32 %v649_v5, %v631_v7  ;;  %v615_v17 = vadd.f32 %v614_v10, %v596_v13 }
  0xc1   : > { %v658_v12 = vmax.f32 %v650_v9, 0.0 }
  0xc3   : > { %v1022_v14 = vpack.c.bf16 %v658_v12, %v657_v11 }
  0xc4   : > { %v633_v15 = vpop.f32.mrf.mxu2  ;;  %v597_v18 = vpop.f32.mrf.mxu0 }
  0xc5   : > { %v652_v16 = vpop.f32.mrf.mxu3  ;;  %1023 = vst [vmem:[%s271_s29] sm:$0xff] %v1022_v14   ;;  %v598_v19 = vadd.f32 %v1054_v56, %v597_v18  ;;  %v634_v20 = vadd.f32 %v633_v15, %v615_v17  ;;  %v616_v21 = vpop.f32.mrf.mxu1 }
  0xc7   : > { %v617_v22 = vadd.f32 %v616_v21, %v598_v19  ;;  %v653_v24 = vadd.f32 %v652_v16, %v634_v20 }
  0xc9   : > { %v659_v28 = vmax.f32 %v653_v24, 0.0 }
  0xcc   : > { %v635_v23 = vpop.f32.mrf.mxu2 }
  0xcd   : > { %v636_v25 = vadd.f32 %v635_v23, %v617_v22  ;;  %v654_v26 = vpop.f32.mrf.mxu3 }
  0xcf   : > { %v655_v27 = vadd.f32 %v654_v26, %v636_v25 }
  0xd1   : > { %v660_v29 = vmax.f32 %v655_v27, 0.0 }
  0xd3   : > { %v1027_v30 = vpack.c.bf16 %v660_v29, %v659_v28 }
  0xd5   : > { %1029 = vst [vmem:[%s271_s29 + $0x8] sm:$0xff] %v1027_v30  }
  0xd6 PF: > { %s13_s14 = sadd.s32 1, %s1077_s14   ;;  %s1199_s12 = smov %s1073_s13 }
  0xd7   : > { %p10_p5 = scmp.ge.s32.totalorder %s13_s14, 6   ;;  %s1200_s13 = smov %s1202_s15 }
  0xd9   :  { %12 = sbr.rel (!%p10_p5) target bundleno = 2 (0x2), region = 68 }

// kernel: colorization_forward.20
= control target key start
LH: loop header
LB: loop body
LE: loop exit
PB: predicated region body
PF: predicated region fallthrough
CT: control target
= control target key end

     0   :  { %s1089_s12 = smov 0   ;;  %s1091_s13 = smov 0   ;;  %s1216_s0 = inlined_call_operand.vmem [shape: bf16[4,128,256], index: 0, kind: input, shape index: {}]   ;;  %s1217_s1 = inlined_call_operand.vmem [shape: bf16[4,256,128], index: 1, kind: input, shape index: {}]   ;;  %s1218_s2 = inlined_call_operand.vmem [shape: f32[1,128], index: 2, kind: input, shape index: {}]   ;;  %s1219_s3 = inlined_call_operand.vmem [shape: bf16[4,128,128], index: 3, kind: output, shape index: {}]  }
   0x1   :  { %s1093_s14 = smov 0  }
   0x2 LB: > { %s32_s15 = sadd.s32 1, %s1063_s13  ;;  %p785_p0 = scmp.ge.s32.totalorder %s1067_s14, 1  ;;  %s1067_s14 = sphi %s1093_s14, %s13_s14   ;;  %s1063_s13 = sphi %s1091_s13, %s1221_s13   ;;  %s1059_s12 = sphi %s1089_s12, %s1220_s12  }
   0x3   : > { %p34_p1 = scmp.ge.s32.totalorder %s32_s15, 4  ;;  %p191_p2 = scmp.lt.s32.totalorder %s1067_s14, 5 }
   0x5   : > { %s1223_s15 = smov (%p34_p1, %s32_s15), 0  ;;  %p192_p3 = pnand %p785_p0, %p191_p2 }
   0x6   : > { %p239_p4 = scmp.lt.s32.totalorder (!%p192_p3), %s1059_s12, 3 }
   0x7   : > { %195 = sbr.rel (%p192_p3) target bundleno = 244 (0xf4), region = 32 }
   0xc   : > { %s1225_s12 = smov (!%p239_p4, %s1059_s12), 3 }
   0xd   : > { %s922_s16 = sshll.u32 %s1225_s12, 7  ;;  %s924_s25 = sshll.u32 %s1225_s12, 6 }
   0xe   : > { %s1115_s19 = scalar_lea.vmem %s1217_s1, %s922_s16  ;;  %s1135_s22 = scalar_lea.vmem %s1216_s0, %s922_s16 }
   0xf   : > { %v948_v0 = vld [vmem:[%s1115_s19 + $0x38] sm:$0xff]  ;;  %v947_v2 = vld [vmem:[%s1115_s19 + $0x30] sm:$0xff]  ;;  %v946_v4 = vld [vmem:[%s1115_s19 + $0x28] sm:$0xff]  ;;  %s1184_s28 = scalar_lea.vmem %s1219_s3, %s924_s25 }
  0x10   : > { %v956_v1 = vld [vmem:[%s1115_s19 + $0x78] sm:$0xff]  ;;  %501 = vmatpush.bf16.msra.mxu0 %v948_v0  ;;  %1004 = vmatpush.bf16.msra.mxu2 %v948_v0  ;;  %v955_v3 = vld [vmem:[%s1115_s19 + $0x70] sm:$0xff]  ;;  %v954_v5 = vld [vmem:[%s1115_s19 + $0x68] sm:$0xff] }
  0x11   : > { %550 = vmatpush.bf16.msra.mxu1 %v956_v1  ;;  %1012 = vmatpush.bf16.msra.mxu3 %v956_v1  ;;  %v945_v6 = vld [vmem:[%s1115_s19 + $0x20] sm:$0xff]  ;;  %v944_v8 = vld [vmem:[%s1115_s19 + $0x18] sm:$0xff]  ;;  %v943_v10 = vld [vmem:[%s1115_s19 + $0x10] sm:$0xff] }
  0x12   : > { %v953_v7 = vld [vmem:[%s1115_s19 + $0x60] sm:$0xff]  ;;  %v952_v9 = vld [vmem:[%s1115_s19 + $0x58] sm:$0xff]  ;;  %v951_v11 = vld [vmem:[%s1115_s19 + $0x50] sm:$0xff] }
  0x13   : > { %v942_v12 = vld [vmem:[%s1115_s19 + $0x8] sm:$0xff]  ;;  %v941_v14 = vld [vmem:[%s1115_s19] sm:$0xff]  ;;  %v802_v28 = vld [vmem:[%s1135_s22 + $0x10] sm:$0xf] }
  0x14   : > { %502 = vmatpush.bf16.msra.mxu0 %v947_v2  ;;  %1005 = vmatpush.bf16.msra.mxu2 %v947_v2  ;;  %v950_v13 = vld [vmem:[%s1115_s19 + $0x48] sm:$0xff]  ;;  %v949_v15 = vld [vmem:[%s1115_s19 + $0x40] sm:$0xff]  ;;  %v928_v29 = vld [vmem:[%s1135_s22 + $0x14] sm:$0xf0] }
  0x15   : > { %551 = vmatpush.bf16.msra.mxu1 %v955_v3  ;;  %1013 = vmatpush.bf16.msra.mxu3 %v955_v3  ;;  %v794_v16 = vld [vmem:[%s1135_s22] sm:$0xf]  ;;  %v926_v17 = vld [vmem:[%s1135_s22 + $0x4] sm:$0xf0]  ;;  %v925_v20 = vld [vmem:[%s1135_s22 + $0x4] sm:$0xf]  ;;  %v803_v36 = vor.u32 %v928_v29, %v802_v28 }
  0x16   : > { %v826_v18 = vld [vmem:[%s1135_s22 + $0x40] sm:$0xf]  ;;  %v934_v19 = vld [vmem:[%s1135_s22 + $0x44] sm:$0xf0]  ;;  %v796_v21 = vld [vmem:[%s1135_s22 + $0x8] sm:$0xf0]  ;;  %v795_v24 = vor.u32 %v926_v17, %v794_v16 }
  0x17   : > { %v933_v22 = vld [vmem:[%s1135_s22 + $0x44] sm:$0xf]  ;;  %v828_v23 = vld [vmem:[%s1135_s22 + $0x48] sm:$0xf0]  ;;  %v827_v25 = vor.u32 %v934_v19, %v826_v18  ;;  %v799_v26 = vor.u32 %v925_v20, %v796_v21  ;;  %v834_v30 = vld [vmem:[%s1135_s22 + $0x50] sm:$0xf] }
  0x18   : > { %503 = vmatpush.bf16.msra.mxu0 %v946_v4  ;;  %1006 = vmatpush.bf16.msra.mxu2 %v946_v4  ;;  %v831_v27 = vor.u32 %v933_v22, %v828_v23  ;;  %v936_v31 = vld [vmem:[%s1135_s22 + $0x54] sm:$0xf0]  ;;  %v927_v32 = vld [vmem:[%s1135_s22 + $0x14] sm:$0xf]  ;;  %v804_v33 = vld [vmem:[%s1135_s22 + $0x18] sm:$0xf0] }
  0x19   : > { %552 = vmatpush.bf16.msra.mxu1 %v954_v5  ;;  %1014 = vmatpush.bf16.msra.mxu3 %v954_v5  ;;  %v935_v34 = vld [vmem:[%s1135_s22 + $0x54] sm:$0xf]  ;;  %v836_v35 = vld [vmem:[%s1135_s22 + $0x58] sm:$0xf0]  ;;  %v835_v37 = vor.u32 %v936_v31, %v834_v30  ;;  %v807_v38 = vor.u32 %v927_v32, %v804_v33  ;;  %v810_v40 = vld [vmem:[%s1135_s22 + $0x20] sm:$0xf] }
  0x1a   : > { %v839_v39 = vor.u32 %v935_v34, %v836_v35  ;;  %v930_v41 = vld [vmem:[%s1135_s22 + $0x24] sm:$0xf0]  ;;  %v842_v42 = vld [vmem:[%s1135_s22 + $0x60] sm:$0xf]  ;;  %v929_v44 = vld [vmem:[%s1135_s22 + $0x24] sm:$0xf] }
  0x1b   : > { %v938_v43 = vld [vmem:[%s1135_s22 + $0x64] sm:$0xf0]  ;;  %v812_v45 = vld [vmem:[%s1135_s22 + $0x28] sm:$0xf0]  ;;  %v937_v46 = vld [vmem:[%s1135_s22 + $0x64] sm:$0xf]  ;;  %v811_v48 = vor.u32 %v930_v41, %v810_v40 }
  0x1c   : > { %504 = vmatpush.bf16.msra.mxu0 %v945_v6  ;;  %1007 = vmatpush.bf16.msra.mxu2 %v945_v6  ;;  %v844_v47 = vld [vmem:[%s1135_s22 + $0x68] sm:$0xf0]  ;;  %v843_v49 = vor.u32 %v938_v43, %v842_v42  ;;  %v815_v50 = vor.u32 %v929_v44, %v812_v45  ;;  %v818_v52 = vld [vmem:[%s1135_s22 + $0x30] sm:$0xf]  ;;  %v932_v53 = vld [vmem:[%s1135_s22 + $0x34] sm:$0xf0] }
  0x1d   : > { %553 = vmatpush.bf16.msra.mxu1 %v953_v7  ;;  %1015 = vmatpush.bf16.msra.mxu3 %v953_v7  ;;  %v847_v51 = vor.u32 %v937_v46, %v844_v47  ;;  %v850_v54 = vld [vmem:[%s1135_s22 + $0x70] sm:$0xf]  ;;  %v940_v55 = vld [vmem:[%s1135_s22 + $0x74] sm:$0xf0]  ;;  %v931_v56 = vld [vmem:[%s1135_s22 + $0x34] sm:$0xf]  ;;  %v819_v60 = vor.u32 %v932_v53, %v818_v52 }
  0x1e   : > { %v820_v57 = vld [vmem:[%s1135_s22 + $0x38] sm:$0xf0]  ;;  %v939_v58 = vld [vmem:[%s1135_s22 + $0x74] sm:$0xf]  ;;  %v851_v61 = vor.u32 %v940_v55, %v850_v54  ;;  %v1175_v1 = vld [vmem:[%s1218_s2] ss:$0 sm:$0xff] }
  0x1f   : > { %v852_v59 = vld [vmem:[%s1135_s22 + $0x78] sm:$0xf0]  ;;  %v823_v62 = vor.u32 %v931_v56, %v820_v57 }
  0x20   : > { %505 = vmatpush.bf16.msra.mxu0 %v944_v8  ;;  %1008 = vmatpush.bf16.msra.mxu2 %v944_v8  ;;  %v855_v63 = vor.u32 %v939_v58, %v852_v59 }
  0x21   : > { %554 = vmatpush.bf16.msra.mxu1 %v952_v9  ;;  %1016 = vmatpush.bf16.msra.mxu3 %v952_v9 }
  0x24   : > { %506 = vmatpush.bf16.msra.mxu0 %v943_v10  ;;  %1009 = vmatpush.bf16.msra.mxu2 %v943_v10 }
  0x25   : > { %555 = vmatpush.bf16.msra.mxu1 %v951_v11  ;;  %1017 = vmatpush.bf16.msra.mxu3 %v951_v11 }
  0x28   : > { %507 = vmatpush.bf16.msra.mxu0 %v942_v12  ;;  %1010 = vmatpush.bf16.msra.mxu2 %v942_v12 }
  0x29   : > { %556 = vmatpush.bf16.msra.mxu1 %v950_v13  ;;  %1018 = vmatpush.bf16.msra.mxu3 %v950_v13 }
  0x2c   : > { %508 = vmatpush.bf16.msra.mxu0 %v941_v14  ;;  %1011 = vmatpush.bf16.msra.mxu2 %v941_v14 }
  0x2d   : > { %557 = vmatpush.bf16.msra.mxu1 %v949_v15  ;;  %1019 = vmatpush.bf16.msra.mxu3 %v949_v15 }
  0x2f   : > { %509 = vmatmul.bf16.vlgmr.msra.gmra.mxu0 %v795_v24  ;;  %529 = vmatmul.bf16.vlgmr.msra.gmra.mxu2 %v827_v25 }
  0x30   : > { %558 = vmatmul.bf16.vlgmr.msra.gmra.mxu1 %v799_v26  ;;  %578 = vmatmul.bf16.vlgmr.msra.gmra.mxu3 %v831_v27 }
  0x3f   : > { %514 = vmatmul.bf16.gmra.mxu0 %v803_v36  ;;  %534 = vmatmul.bf16.gmra.mxu2 %v835_v37 }
  0x40   : > { %563 = vmatmul.bf16.gmra.mxu1 %v807_v38  ;;  %583 = vmatmul.bf16.gmra.mxu3 %v839_v39 }
  0x4f   : > { %519 = vmatmul.bf16.gmra.mxu0 %v811_v48  ;;  %539 = vmatmul.bf16.gmra.mxu2 %v843_v49 }
  0x50   : > { %568 = vmatmul.bf16.gmra.mxu1 %v815_v50  ;;  %588 = vmatmul.bf16.gmra.mxu3 %v847_v51 }
  0x5f   : > { %524 = vmatmul.bf16.gmra.mxu0 %v819_v60  ;;  %544 = vmatmul.bf16.gmra.mxu2 %v851_v61 }
  0x60   : > { %573 = vmatmul.bf16.gmra.mxu1 %v823_v62  ;;  %593 = vmatmul.bf16.gmra.mxu3 %v855_v63 }
  0xac   : > { %v510_v0 = vpop.f32.mrf.mxu0 }
  0xad   : > { %v559_v2 = vpop.f32.mrf.mxu1  ;;  %v511_v3 = vadd.f32 %v1175_v1, %v510_v0 }
  0xaf   : > { %v560_v7 = vadd.f32 %v559_v2, %v511_v3 }
  0xb1   : > { %v599_v12 = vmax.f32 %v560_v7, 0.0 }
  0xb2   : > { %v530_v4 = vpop.f32.mrf.mxu2 }
  0xb3   : > { %v579_v5 = vpop.f32.mrf.mxu3  ;;  %v531_v10 = vadd.f32 %v1175_v1, %v530_v4 }
  0xb4   : > { %v512_v6 = vpop.f32.mrf.mxu0 }
  0xb5   : > { %v513_v8 = vadd.f32 %v1175_v1, %v512_v6  ;;  %v561_v9 = vpop.f32.mrf.mxu1  ;;  %v580_v15 = vadd.f32 %v579_v5, %v531_v10 }
  0xb7   : > { %v562_v11 = vadd.f32 %v561_v9, %v513_v8  ;;  %v607_v22 = vmax.f32 %v580_v15, 0.0 }
  0xb9   : > { %v600_v13 = vmax.f32 %v562_v11, 0.0 }
  0xba   : > { %v532_v14 = vpop.f32.mrf.mxu2 }
  0xbb   : > { %v960_v16 = vpack.c.bf16 %v600_v13, %v599_v12  ;;  %v533_v17 = vadd.f32 %v1175_v1, %v532_v14  ;;  %v581_v18 = vpop.f32.mrf.mxu3 }
  0xbc   : > { %v515_v19 = vpop.f32.mrf.mxu0 }
  0xbd   : > { %961 = vst [vmem:[%s1184_s28] sm:$0xff] %v960_v16   ;;  %v582_v20 = vadd.f32 %v581_v18, %v533_v17  ;;  %v564_v21 = vpop.f32.mrf.mxu1  ;;  %v516_v25 = vadd.f32 %v1175_v1, %v515_v19 }
  0xbf   : > { %v608_v23 = vmax.f32 %v582_v20, 0.0  ;;  %v565_v29 = vadd.f32 %v564_v21, %v516_v25 }
  0xc1   : > { %v980_v24 = vpack.c.bf16 %v608_v23, %v607_v22  ;;  %v601_v34 = vmax.f32 %v565_v29, 0.0 }
  0xc2   : > { %v535_v26 = vpop.f32.mrf.mxu2 }
  0xc3   : > { %1000 = vst [vmem:[%s1184_s28 + $0x20] sm:$0xff] %v980_v24   ;;  %v584_v27 = vpop.f32.mrf.mxu3  ;;  %v536_v32 = vadd.f32 %v1175_v1, %v535_v26 }
  0xc4   : > { %v517_v28 = vpop.f32.mrf.mxu0 }
  0xc5   : > { %v518_v30 = vadd.f32 %v1175_v1, %v517_v28  ;;  %v566_v31 = vpop.f32.mrf.mxu1  ;;  %v585_v37 = vadd.f32 %v584_v27, %v536_v32 }
  0xc7   : > { %v567_v33 = vadd.f32 %v566_v31, %v518_v30  ;;  %v609_v44 = vmax.f32 %v585_v37, 0.0 }
  0xc9   : > { %v602_v35 = vmax.f32 %v567_v33, 0.0 }
  0xca   : > { %v537_v36 = vpop.f32.mrf.mxu2 }
  0xcb   : > { %v965_v38 = vpack.c.bf16 %v602_v35, %v601_v34  ;;  %v538_v39 = vadd.f32 %v1175_v1, %v537_v36  ;;  %v586_v40 = vpop.f32.mrf.mxu3 }
  0xcc   : > { %v520_v41 = vpop.f32.mrf.mxu0 }
  0xcd   : > { %997 = vst [vmem:[%s1184_s28 + $0x8] sm:$0xff] %v965_v38   ;;  %v587_v42 = vadd.f32 %v586_v40, %v538_v39  ;;  %v569_v43 = vpop.f32.mrf.mxu1  ;;  %v521_v47 = vadd.f32 %v1175_v1, %v520_v41 }
  0xcf   : > { %v610_v45 = vmax.f32 %v587_v42, 0.0  ;;  %v570_v51 = vadd.f32 %v569_v43, %v521_v47 }
  0xd1   : > { %v985_v46 = vpack.c.bf16 %v610_v45, %v609_v44  ;;  %v603_v56 = vmax.f32 %v570_v51, 0.0 }
  0xd2   : > { %v540_v48 = vpop.f32.mrf.mxu2 }
  0xd3   : > { %1001 = vst [vmem:[%s1184_s28 + $0x28] sm:$0xff] %v985_v46   ;;  %v589_v49 = vpop.f32.mrf.mxu3  ;;  %v541_v54 = vadd.f32 %v1175_v1, %v540_v48 }
  0xd4   : > { %v522_v50 = vpop.f32.mrf.mxu0 }
  0xd5   : > { %v523_v52 = vadd.f32 %v1175_v1, %v522_v50  ;;  %v571_v53 = vpop.f32.mrf.mxu1  ;;  %v590_v59 = vadd.f32 %v589_v49, %v541_v54 }
  0xd7   : > { %v572_v55 = vadd.f32 %v571_v53, %v523_v52  ;;  %v611_v3 = vmax.f32 %v590_v59, 0.0 }
  0xd9   : > { %v604_v57 = vmax.f32 %v572_v55, 0.0 }
  0xda   : > { %v542_v58 = vpop.f32.mrf.mxu2 }
  0xdb   : > { %v970_v60 = vpack.c.bf16 %v604_v57, %v603_v56  ;;  %v543_v61 = vadd.f32 %v1175_v1, %v542_v58  ;;  %v591_v62 = vpop.f32.mrf.mxu3 }
  0xdc   : > { %v525_v63 = vpop.f32.mrf.mxu0 }
  0xdd   : > { %998 = vst [vmem:[%s1184_s28 + $0x10] sm:$0xff] %v970_v60   ;;  %v592_v0 = vadd.f32 %v591_v62, %v543_v61  ;;  %v574_v2 = vpop.f32.mrf.mxu1  ;;  %v526_v6 = vadd.f32 %v1175_v1, %v525_v63 }
  0xdf   : > { %v612_v4 = vmax.f32 %v592_v0, 0.0  ;;  %v575_v10 = vadd.f32 %v574_v2, %v526_v6 }
  0xe1   : > { %v990_v5 = vpack.c.bf16 %v612_v4, %v611_v3  ;;  %v605_v15 = vmax.f32 %v575_v10, 0.0 }
  0xe2   : > { %v545_v7 = vpop.f32.mrf.mxu2 }
  0xe3   : > { %1002 = vst [vmem:[%s1184_s28 + $0x30] sm:$0xff] %v990_v5   ;;  %v594_v8 = vpop.f32.mrf.mxu3  ;;  %v546_v13 = vadd.f32 %v1175_v1, %v545_v7 }
  0xe4   : > { %v527_v9 = vpop.f32.mrf.mxu0 }
  0xe5   : > { %v528_v11 = vadd.f32 %v1175_v1, %v527_v9  ;;  %v576_v12 = vpop.f32.mrf.mxu1  ;;  %v595_v18 = vadd.f32 %v594_v8, %v546_v13 }
  0xe7   : > { %v577_v14 = vadd.f32 %v576_v12, %v528_v11  ;;  %v613_v23 = vmax.f32 %v595_v18, 0.0 }
  0xe9   : > { %v606_v16 = vmax.f32 %v577_v14, 0.0 }
  0xea   : > { %v547_v17 = vpop.f32.mrf.mxu2 }
  0xeb   : > { %v975_v19 = vpack.c.bf16 %v606_v16, %v605_v15  ;;  %v548_v20 = vadd.f32 %v1175_v1, %v547_v17  ;;  %v596_v21 = vpop.f32.mrf.mxu3 }
  0xed   : > { %999 = vst [vmem:[%s1184_s28 + $0x18] sm:$0xff] %v975_v19   ;;  %v597_v22 = vadd.f32 %v596_v21, %v548_v20 }
  0xef   : > { %v614_v24 = vmax.f32 %v597_v22, 0.0 }
  0xf1   : > { %v995_v25 = vpack.c.bf16 %v614_v24, %v613_v23 }
  0xf3   : > { %1003 = vst [vmem:[%s1184_s28 + $0x38] sm:$0xff] %v995_v25  }
  0xf4 PF: > { %s13_s14 = sadd.s32 1, %s1067_s14   ;;  %s1220_s12 = smov %s1063_s13 }
  0xf5   : > { %p10_p5 = scmp.ge.s32.totalorder %s13_s14, 6   ;;  %s1221_s13 = smov %s1223_s15 }
  0xf7   :  { %12 = sbr.rel (!%p10_p5) target bundleno = 2 (0x2), region = 68 }

// kernel: colorization_forward.21
= control target key start
LH: loop header
LB: loop body
LE: loop exit
PB: predicated region body
PF: predicated region fallthrough
CT: control target
= control target key end

     0   :  { %s1914_s12 = smov 0   ;;  %s1916_s13 = smov 0   ;;  %s2275_s0 = inlined_call_operand.vmem [shape: bf16[1,512,384], index: 0, kind: input, shape index: {}]   ;;  %s2276_s1 = inlined_call_operand.vmem [shape: bf16[1,384,128], index: 1, kind: input, shape index: {}]   ;;  %s2277_s2 = inlined_call_operand.vmem [shape: f32[1,128], index: 2, kind: input, shape index: {}]   ;;  %s2278_s3 = inlined_call_operand.vmem [shape: bf16[1,512,128], index: 3, kind: output, shape index: {}]  }
   0x1   :  { %s1918_s14 = smov 0  }
   0x2 LB: > { %s28_s15 = sadd.s32 1, %s1888_s13  ;;  %p1294_p0 = scmp.ge.s32.totalorder %s1892_s14, 1  ;;  %s1892_s14 = sphi %s1918_s14, %s13_s14   ;;  %s1888_s13 = sphi %s1916_s13, %s2280_s13   ;;  %s1884_s12 = sphi %s1914_s12, %s2279_s12  }
   0x3   : > { %p30_p1 = scmp.ge.s32.totalorder %s28_s15, 2  ;;  %p191_p2 = scmp.lt.s32.totalorder %s1892_s14, 3 }
   0x5   : > { %s2282_s15 = smov (%p30_p1, %s28_s15), 0  ;;  %p192_p3 = pnand %p1294_p0, %p191_p2 }
   0x6   : > { %s1295_s7 = sshll.u32 (!%p192_p3), %s1884_s12, 5 }
   0x7   : > { %195 = sbr.rel (%p192_p3) target bundleno = 374 (0x176), region = 32  ;;  %p241_p4 = scmp.lt.s32.totalorder (!%p192_p3), %s1295_s7, 63 }
   0xc   : > { %v1644_v0 = vld [vmem:[%s2276_s1 + $0x38] sm:$0xff]  ;;  %v1643_v3 = vld [vmem:[%s2276_s1 + $0x30] sm:$0xff]  ;;  %v1642_v6 = vld [vmem:[%s2276_s1 + $0x28] sm:$0xff]  ;;  %s2284_s7 = smov (!%p241_p4, %s1295_s7), 63 }
   0xd   : > { %v1940_v1 = vld [vmem:[%s2276_s1 + $0x78] sm:$0xff]  ;;  %789 = vmatpush.bf16.msra.mxu0 %v1644_v0  ;;  %1756 = vmatpush.bf16.msra.mxu3 %v1644_v0  ;;  %v1955_v4 = vld [vmem:[%s2276_s1 + $0x70] sm:$0xff]  ;;  %v1970_v7 = vld [vmem:[%s2276_s1 + $0x68] sm:$0xff]  ;;  %s1780_s25 = smul.u32 12, %s2284_s7  ;;  %s1298_s24 = sshll.u32 %s2284_s7, 2 }
   0xe   : > { %v1945_v2 = vld [vmem:[%s2276_s1 + $0xb8] sm:$0xff]  ;;  %878 = vmatpush.bf16.msra.mxu1 %v1940_v1  ;;  %v1960_v5 = vld [vmem:[%s2276_s1 + $0xb0] sm:$0xff]  ;;  %v1975_v8 = vld [vmem:[%s2276_s1 + $0xa8] sm:$0xff]  ;;  %s2161_s27 = scalar_lea.vmem %s2278_s3, %s1298_s24 }
   0xf   : > { %967 = vmatpush.bf16.msra.mxu2 %v1945_v2  ;;  %v1641_v9 = vld [vmem:[%s2276_s1 + $0x20] sm:$0xff]  ;;  %v1640_v12 = vld [vmem:[%s2276_s1 + $0x18] sm:$0xff]  ;;  %v1639_v15 = vld [vmem:[%s2276_s1 + $0x10] sm:$0xff]  ;;  %s2027_s8 = scalar_lea.vmem %s2275_s0, %s1780_s25 }
  0x10   : > { %v1986_v10 = vld [vmem:[%s2276_s1 + $0x60] sm:$0xff]  ;;  %v1648_v13 = vld [vmem:[%s2276_s1 + $0x58] sm:$0xff]  ;;  %v1647_v16 = vld [vmem:[%s2276_s1 + $0x50] sm:$0xff] }
  0x11   : > { %790 = vmatpush.bf16.msra.mxu0 %v1643_v3  ;;  %1757 = vmatpush.bf16.msra.mxu3 %v1643_v3  ;;  %v1991_v11 = vld [vmem:[%s2276_s1 + $0xa0] sm:$0xff]  ;;  %v2006_v14 = vld [vmem:[%s2276_s1 + $0x98] sm:$0xff]  ;;  %v2019_v17 = vld [vmem:[%s2276_s1 + $0x90] sm:$0xff] }
  0x12   : > { %879 = vmatpush.bf16.msra.mxu1 %v1955_v4  ;;  %v1638_v18 = vld [vmem:[%s2276_s1 + $0x8] sm:$0xff]  ;;  %v1637_v21 = vld [vmem:[%s2276_s1] sm:$0xff]  ;;  %v1303_v29 = vld [vmem:[%s2027_s8 + $0xc] sm:$0xf0] }
  0x13   : > { %968 = vmatpush.bf16.msra.mxu2 %v1960_v5  ;;  %v1646_v19 = vld [vmem:[%s2276_s1 + $0x48] sm:$0xff]  ;;  %v1645_v22 = vld [vmem:[%s2276_s1 + $0x40] sm:$0xff]  ;;  %v1591_v31 = vld [vmem:[%s2027_s8 + $0x10] sm:$0xf0] }
  0x14   : > { %v2036_v20 = vld [vmem:[%s2276_s1 + $0x88] sm:$0xff]  ;;  %v2047_v23 = vld [vmem:[%s2276_s1 + $0x80] sm:$0xff]  ;;  %v1313_v36 = vld [vmem:[%s2027_s8 + $0x18] sm:$0xf] }
  0x15   : > { %791 = vmatpush.bf16.msra.mxu0 %v1642_v6  ;;  %1758 = vmatpush.bf16.msra.mxu3 %v1642_v6  ;;  %v1301_v24 = vld [vmem:[%s2027_s8] sm:$0xf]  ;;  %v1590_v25 = vld [vmem:[%s2027_s8 + $0x8] sm:$0xf0]  ;;  %v1589_v28 = vld [vmem:[%s2027_s8 + $0x4] sm:$0xf] }
  0x16   : > { %880 = vmatpush.bf16.msra.mxu1 %v1970_v7  ;;  %v1445_v26 = vld [vmem:[%s2027_s8 + $0x120] sm:$0xf]  ;;  %v1626_v27 = vld [vmem:[%s2027_s8 + $0x128] sm:$0xf0]  ;;  %v1309_v30 = vld [vmem:[%s2027_s8 + $0x8] sm:$0xf]  ;;  %v1302_v32 = vor.u32 %v1590_v25, %v1301_v24  ;;  %v1306_v34 = vor.u32 %v1589_v28, %v1303_v29 }
  0x17   : > { %969 = vmatpush.bf16.msra.mxu2 %v1975_v8  ;;  %v1446_v33 = vor.u32 %v1626_v27, %v1445_v26  ;;  %v1310_v35 = vor.u32 %v1591_v31, %v1309_v30  ;;  %v1593_v37 = vld [vmem:[%s2027_s8 + $0x20] sm:$0xf0]  ;;  %v1457_v38 = vld [vmem:[%s2027_s8 + $0x138] sm:$0xf]  ;;  %v1592_v40 = vld [vmem:[%s2027_s8 + $0x1c] sm:$0xf] }
  0x18   : > { %v1629_v39 = vld [vmem:[%s2027_s8 + $0x140] sm:$0xf0]  ;;  %v1315_v41 = vld [vmem:[%s2027_s8 + $0x24] sm:$0xf0]  ;;  %v1321_v42 = vld [vmem:[%s2027_s8 + $0x20] sm:$0xf]  ;;  %v1314_v44 = vor.u32 %v1593_v37, %v1313_v36 }
  0x19   : > { %792 = vmatpush.bf16.msra.mxu0 %v1641_v9  ;;  %1759 = vmatpush.bf16.msra.mxu3 %v1641_v9  ;;  %v1594_v43 = vld [vmem:[%s2027_s8 + $0x28] sm:$0xf0]  ;;  %v1458_v45 = vor.u32 %v1629_v39, %v1457_v38  ;;  %v1318_v46 = vor.u32 %v1592_v40, %v1315_v41  ;;  %v1325_v48 = vld [vmem:[%s2027_s8 + $0x30] sm:$0xf]  ;;  %v1596_v49 = vld [vmem:[%s2027_s8 + $0x38] sm:$0xf0] }
  0x1a   : > { %881 = vmatpush.bf16.msra.mxu1 %v1986_v10  ;;  %v1322_v47 = vor.u32 %v1594_v43, %v1321_v42  ;;  %v1469_v50 = vld [vmem:[%s2027_s8 + $0x150] sm:$0xf]  ;;  %v1632_v51 = vld [vmem:[%s2027_s8 + $0x158] sm:$0xf0]  ;;  %v1595_v52 = vld [vmem:[%s2027_s8 + $0x34] sm:$0xf]  ;;  %v1326_v56 = vor.u32 %v1596_v49, %v1325_v48 }
  0x1b   : > { %970 = vmatpush.bf16.msra.mxu2 %v1991_v11  ;;  %v1327_v53 = vld [vmem:[%s2027_s8 + $0x3c] sm:$0xf0]  ;;  %v1333_v54 = vld [vmem:[%s2027_s8 + $0x38] sm:$0xf]  ;;  %v1597_v55 = vld [vmem:[%s2027_s8 + $0x40] sm:$0xf0]  ;;  %v1470_v57 = vor.u32 %v1632_v51, %v1469_v50 }
  0x1c   : > { %v1330_v58 = vor.u32 %v1595_v52, %v1327_v53  ;;  %v1334_v59 = vor.u32 %v1597_v55, %v1333_v54  ;;  %v1337_v60 = vld [vmem:[%s2027_s8 + $0x48] sm:$0xf]  ;;  %v1599_v61 = vld [vmem:[%s2027_s8 + $0x50] sm:$0xf0]  ;;  %v1598_v0 = vld [vmem:[%s2027_s8 + $0x4c] sm:$0xf] }
  0x1d   : > { %793 = vmatpush.bf16.msra.mxu0 %v1640_v12  ;;  %1760 = vmatpush.bf16.msra.mxu3 %v1640_v12  ;;  %v1481_v62 = vld [vmem:[%s2027_s8 + $0x168] sm:$0xf]  ;;  %v1635_v63 = vld [vmem:[%s2027_s8 + $0x170] sm:$0xf0]  ;;  %v1600_v3 = vld [vmem:[%s2027_s8 + $0x58] sm:$0xf0] }
  0x1e   : > { %882 = vmatpush.bf16.msra.mxu1 %v1648_v13  ;;  %v1602_v9 = vld [vmem:[%s2027_s8 + $0x68] sm:$0xf0]  ;;  %v1447_v12 = vld [vmem:[%s2027_s8 + $0x12c] sm:$0xf0]  ;;  %v1628_v24 = vld [vmem:[%s2027_s8 + $0x13c] sm:$0xf] }
  0x1f   : > { %971 = vmatpush.bf16.msra.mxu2 %v2006_v14  ;;  %v1459_v25 = vld [vmem:[%s2027_s8 + $0x144] sm:$0xf0]  ;;  %v1369_v26 = vld [vmem:[%s2027_s8 + $0x80] sm:$0xf]  ;;  %v1606_v27 = vld [vmem:[%s2027_s8 + $0x88] sm:$0xf0] }
  0x20   : > { %v1462_v29 = vor.u32 %v1628_v24, %v1459_v25  ;;  %v1370_v31 = vor.u32 %v1606_v27, %v1369_v26  ;;  %v1471_v36 = vld [vmem:[%s2027_s8 + $0x15c] sm:$0xf0]  ;;  %v1381_v38 = vld [vmem:[%s2027_s8 + $0x98] sm:$0xf]  ;;  %v1609_v39 = vld [vmem:[%s2027_s8 + $0xa0] sm:$0xf0] }
  0x21   : > { %794 = vmatpush.bf16.msra.mxu0 %v1639_v15  ;;  %1761 = vmatpush.bf16.msra.mxu3 %v1639_v15  ;;  %v1603_v15 = vld [vmem:[%s2027_s8 + $0x70] sm:$0xf0]  ;;  %v1375_v37 = vld [vmem:[%s2027_s8 + $0x9c] sm:$0xf0]  ;;  %v1382_v43 = vor.u32 %v1609_v39, %v1381_v38  ;;  %v1483_v48 = vld [vmem:[%s2027_s8 + $0x174] sm:$0xf0] }
  0x22   : > { %883 = vmatpush.bf16.msra.mxu1 %v1647_v16  ;;  %v1387_v49 = vld [vmem:[%s2027_s8 + $0xb4] sm:$0xf0]  ;;  %v1393_v50 = vld [vmem:[%s2027_s8 + $0xb0] sm:$0xf]  ;;  %v1612_v51 = vld [vmem:[%s2027_s8 + $0xb8] sm:$0xf0] }
  0x23   : > { %972 = vmatpush.bf16.msra.mxu2 %v2019_v17  ;;  %v1394_v55 = vor.u32 %v1612_v51, %v1393_v50  ;;  %v1429_v50 = vld [vmem:[%s2027_s8 + $0xf8] sm:$0xf]  ;;  %v1621_v51 = vld [vmem:[%s2027_s8 + $0x100] sm:$0xf0] }
  0x25   : > { %795 = vmatpush.bf16.msra.mxu0 %v1638_v18  ;;  %1762 = vmatpush.bf16.msra.mxu3 %v1638_v18 }
  0x26   : > { %884 = vmatpush.bf16.msra.mxu1 %v1646_v19 }
  0x27   : > { %973 = vmatpush.bf16.msra.mxu2 %v2036_v20 }
  0x29   : > { %796 = vmatpush.bf16.msra.mxu0 %v1637_v21  ;;  %1763 = vmatpush.bf16.msra.mxu3 %v1637_v21  ;;  %v1605_v21 = vld [vmem:[%s2027_s8 + $0x80] sm:$0xf0] }
  0x2a   : > { %885 = vmatpush.bf16.msra.mxu1 %v1645_v22 }
  0x2b   : > { %974 = vmatpush.bf16.msra.mxu2 %v2047_v23 }
  0x2c   : > { %797 = vmatmul.bf16.vlgmr.msra.gmra.mxu0 %v1302_v32  ;;  %857 = vmatmul.bf16.vlgmr.msra.gmra.mxu3 %v1446_v33  ;;  %v1373_v32 = vld [vmem:[%s2027_s8 + $0x90] sm:$0xf]  ;;  %v1608_v33 = vld [vmem:[%s2027_s8 + $0x98] sm:$0xf0] }
  0x2d   : > { %1764 = vmatpush.bf16.msrb.mxu3 %v1940_v1  ;;  %886 = vmatmul.bf16.vlgmr.msra.gmra.mxu1 %v1306_v34  ;;  %v1339_v1 = vld [vmem:[%s2027_s8 + $0x54] sm:$0xf0]  ;;  %v1607_v34 = vld [vmem:[%s2027_s8 + $0x94] sm:$0xf]  ;;  %v1374_v40 = vor.u32 %v1608_v33, %v1373_v32 }
  0x2e   : > { %975 = vmatmul.bf16.vlgmr.msra.gmra.mxu2 %v1310_v35  ;;  %v1342_v6 = vor.u32 %v1598_v0, %v1339_v1  ;;  %v1631_v35 = vld [vmem:[%s2027_s8 + $0x154] sm:$0xf]  ;;  %v1378_v42 = vor.u32 %v1607_v34, %v1375_v37 }
  0x2f   : > { %v1474_v41 = vor.u32 %v1631_v35, %v1471_v36 }
  0x31   : > { %1765 = vmatpush.bf16.msrb.mxu3 %v1955_v4  ;;  %v1338_v4 = vor.u32 %v1599_v61, %v1337_v60  ;;  %v1627_v60 = vld [vmem:[%s2027_s8 + $0x130] sm:$0xf0]  ;;  %v1399_v61 = vld [vmem:[%s2027_s8 + $0xcc] sm:$0xf0] }
  0x35   : > { %1766 = vmatpush.bf16.msrb.mxu3 %v1970_v7 }
  0x39   : > { %1767 = vmatpush.bf16.msrb.mxu3 %v1986_v10  ;;  %v1601_v10 = vld [vmem:[%s2027_s8 + $0x64] sm:$0xf] }
  0x3c   : > { %802 = vmatmul.bf16.gmra.mxu0 %v1314_v44  ;;  %862 = vmatmul.bf16.gmra.mxu3 %v1458_v45  ;;  %v1385_v44 = vld [vmem:[%s2027_s8 + $0xa8] sm:$0xf]  ;;  %v1611_v45 = vld [vmem:[%s2027_s8 + $0xb0] sm:$0xf0] }
  0x3d   : > { %1768 = vmatpush.bf16.msrb.mxu3 %v1648_v13  ;;  %891 = vmatmul.bf16.gmra.mxu1 %v1318_v46  ;;  %v1351_v13 = vld [vmem:[%s2027_s8 + $0x6c] sm:$0xf0]  ;;  %v1610_v46 = vld [vmem:[%s2027_s8 + $0xac] sm:$0xf]  ;;  %v1386_v52 = vor.u32 %v1611_v45, %v1385_v44  ;;  %v1620_v44 = vld [vmem:[%s2027_s8 + $0xf8] sm:$0xf0] }
  0x3e   : > { %980 = vmatmul.bf16.gmra.mxu2 %v1322_v47  ;;  %v1354_v18 = vor.u32 %v1601_v10, %v1351_v13  ;;  %v1634_v47 = vld [vmem:[%s2027_s8 + $0x16c] sm:$0xf]  ;;  %v1390_v54 = vor.u32 %v1610_v46, %v1387_v49  ;;  %v1619_v45 = vld [vmem:[%s2027_s8 + $0xf4] sm:$0xf]  ;;  %v1477_v46 = vld [vmem:[%s2027_s8 + $0x158] sm:$0xf] }
  0x3f   : > { %v1486_v53 = vor.u32 %v1634_v47, %v1483_v48  ;;  %v1633_v47 = vld [vmem:[%s2027_s8 + $0x160] sm:$0xf0]  ;;  %v1423_v49 = vld [vmem:[%s2027_s8 + $0xfc] sm:$0xf0] }
  0x41   : > { %1769 = vmatpush.bf16.msrb.mxu3 %v1647_v16 }
  0x45   : > { %1770 = vmatpush.bf16.msrb.mxu3 %v1646_v19 }
  0x49   : > { %1771 = vmatpush.bf16.msrb.mxu3 %v1645_v22  ;;  %v1604_v22 = vld [vmem:[%s2027_s8 + $0x7c] sm:$0xf] }
  0x4c   : > { %807 = vmatmul.bf16.gmra.mxu0 %v1326_v56  ;;  %867 = vmatmul.bf16.gmra.mxu3 %v1470_v57  ;;  %v1397_v56 = vld [vmem:[%s2027_s8 + $0xc0] sm:$0xf]  ;;  %v1614_v57 = vld [vmem:[%s2027_s8 + $0xc8] sm:$0xf0] }
  0x4d   : > { %1772 = vmatpush.bf16.msra.mxu3 %v1945_v2  ;;  %896 = vmatmul.bf16.gmra.mxu1 %v1330_v58  ;;  %v1345_v2 = vld [vmem:[%s2027_s8 + $0x50] sm:$0xf]  ;;  %v1613_v58 = vld [vmem:[%s2027_s8 + $0xc4] sm:$0xf]  ;;  %v1398_v0 = vor.u32 %v1614_v57, %v1397_v56  ;;  %v1478_v56 = vor.u32 %v1633_v47, %v1477_v46 }
  0x4e   : > { %985 = vmatmul.bf16.gmra.mxu2 %v1334_v59  ;;  %v1346_v7 = vor.u32 %v1600_v3, %v1345_v2  ;;  %v1453_v59 = vld [vmem:[%s2027_s8 + $0x128] sm:$0xf]  ;;  %v1402_v3 = vor.u32 %v1613_v58, %v1399_v61 }
  0x4f   : > { %v1454_v1 = vor.u32 %v1627_v60, %v1453_v59  ;;  %v1426_v59 = vor.u32 %v1619_v45, %v1423_v49  ;;  %v1430_v60 = vor.u32 %v1621_v51, %v1429_v50 }
  0x51   : > { %1773 = vmatpush.bf16.msra.mxu3 %v1960_v5  ;;  %v1482_v5 = vor.u32 %v1635_v63, %v1481_v62  ;;  %v1405_v62 = vld [vmem:[%s2027_s8 + $0xc8] sm:$0xf]  ;;  %v1615_v63 = vld [vmem:[%s2027_s8 + $0xd0] sm:$0xf0] }
  0x55   : > { %1774 = vmatpush.bf16.msra.mxu3 %v1975_v8  ;;  %v1349_v8 = vld [vmem:[%s2027_s8 + $0x60] sm:$0xf] }
  0x56   : > { %v1350_v16 = vor.u32 %v1602_v9, %v1349_v8 }
  0x59   : > { %1775 = vmatpush.bf16.msra.mxu3 %v1991_v11  ;;  %v1625_v11 = vld [vmem:[%s2027_s8 + $0x124] sm:$0xf] }
  0x5c   : > { %812 = vmatmul.bf16.gmra.mxu0 %v1338_v4  ;;  %872 = vmatmul.bf16.gmra.mxu3 %v1482_v5  ;;  %v1406_v4 = vor.u32 %v1615_v63, %v1405_v62  ;;  %v2138_v5 = vld [vmem:[%s2277_s2] ss:$0 sm:$0xff] }
  0x5d   : > { %1776 = vmatpush.bf16.msra.mxu3 %v2006_v14  ;;  %901 = vmatmul.bf16.gmra.mxu1 %v1342_v6  ;;  %v1357_v14 = vld [vmem:[%s2027_s8 + $0x68] sm:$0xf] }
  0x5e   : > { %990 = vmatmul.bf16.gmra.mxu2 %v1346_v7  ;;  %v1358_v19 = vor.u32 %v1603_v15, %v1357_v14  ;;  %v1409_v14 = vld [vmem:[%s2027_s8 + $0xd8] sm:$0xf]  ;;  %v1617_v15 = vld [vmem:[%s2027_s8 + $0xe0] sm:$0xf0] }
  0x5f   : > { %v1410_v26 = vor.u32 %v1617_v15, %v1409_v14  ;;  %v1636_v14 = vld [vmem:[%s2027_s8 + $0x178] sm:$0xf0] }
  0x61   : > { %1777 = vmatpush.bf16.msra.mxu3 %v2019_v17  ;;  %v1450_v17 = vor.u32 %v1625_v11, %v1447_v12 }
  0x65   : > { %1778 = vmatpush.bf16.msra.mxu3 %v2036_v20  ;;  %v1361_v20 = vld [vmem:[%s2027_s8 + $0x78] sm:$0xf] }
  0x66   : > { %v1362_v28 = vor.u32 %v1605_v21, %v1361_v20  ;;  %v1411_v20 = vld [vmem:[%s2027_s8 + $0xe4] sm:$0xf0]  ;;  %v1417_v21 = vld [vmem:[%s2027_s8 + $0xe0] sm:$0xf] }
  0x69   : > { %1779 = vmatpush.bf16.msra.mxu3 %v2047_v23  ;;  %v1363_v23 = vld [vmem:[%s2027_s8 + $0x84] sm:$0xf0] }
  0x6a   : > { %v1366_v30 = vor.u32 %v1604_v22, %v1363_v23  ;;  %v1618_v22 = vld [vmem:[%s2027_s8 + $0xe8] sm:$0xf0] }
  0x6c   : > { %817 = vmatmul.bf16.gmra.mxu0 %v1350_v16  ;;  %946 = vmatmul.bf16.vlgmr.msrb.gmra.mxu3 %v1450_v17  ;;  %v1616_v16 = vld [vmem:[%s2027_s8 + $0xdc] sm:$0xf]  ;;  %v1465_v17 = vld [vmem:[%s2027_s8 + $0x140] sm:$0xf] }
  0x6d   : > { %906 = vmatmul.bf16.gmra.mxu1 %v1354_v18  ;;  %v1630_v18 = vld [vmem:[%s2027_s8 + $0x148] sm:$0xf0] }
  0x6e   : > { %995 = vmatmul.bf16.gmra.mxu2 %v1358_v19  ;;  %v1466_v27 = vor.u32 %v1630_v18, %v1465_v17  ;;  %v1441_v17 = vld [vmem:[%s2027_s8 + $0x110] sm:$0xf]  ;;  %v1624_v18 = vld [vmem:[%s2027_s8 + $0x118] sm:$0xf0] }
  0x7c   : > { %822 = vmatmul.bf16.gmra.mxu0 %v1362_v28  ;;  %951 = vmatmul.bf16.gmra.mxu3 %v1462_v29 }
  0x7d   : > { %911 = vmatmul.bf16.gmra.mxu1 %v1366_v30  ;;  %v1414_v30 = vor.u32 %v1616_v16, %v1411_v20  ;;  %v1435_v16 = vld [vmem:[%s2027_s8 + $0x114] sm:$0xf0] }
  0x7e   : > { %1000 = vmatmul.bf16.gmra.mxu2 %v1370_v31  ;;  %v1418_v31 = vor.u32 %v1618_v22, %v1417_v21 }
  0x8c   : > { %827 = vmatmul.bf16.gmra.mxu0 %v1374_v40  ;;  %956 = vmatmul.bf16.gmra.mxu3 %v1474_v41 }
  0x8d   : > { %916 = vmatmul.bf16.gmra.mxu1 %v1378_v42 }
  0x8e   : > { %1005 = vmatmul.bf16.gmra.mxu2 %v1382_v43  ;;  %v1421_v43 = vld [vmem:[%s2027_s8 + $0xf0] sm:$0xf] }
  0x9c   : > { %832 = vmatmul.bf16.gmra.mxu0 %v1386_v52  ;;  %961 = vmatmul.bf16.gmra.mxu3 %v1486_v53 }
  0x9d   : > { %921 = vmatmul.bf16.gmra.mxu1 %v1390_v54 }
  0x9e   : > { %1010 = vmatmul.bf16.gmra.mxu2 %v1394_v55  ;;  %v1422_v55 = vor.u32 %v1620_v44, %v1421_v43 }
  0xa9   : > { %v798_v2 = vpop.f32.mrf.mxu0 }
  0xaa   : > { %v887_v6 = vpop.f32.mrf.mxu1  ;;  %v799_v7 = vadd.f32 %v2138_v5, %v798_v2 }
  0xac   : > { %837 = vmatmul.bf16.gmra.mxu0 %v1398_v0  ;;  %1035 = vmatmul.bf16.vlgmr.msra.gmra.mxu3 %v1454_v1  ;;  %v888_v11 = vadd.f32 %v887_v6, %v799_v7 }
  0xad   : > { %926 = vmatmul.bf16.gmra.mxu1 %v1402_v3 }
  0xae   : > { %1015 = vmatmul.bf16.gmra.mxu2 %v1406_v4 }
  0xaf   : > { %v2141_v8 = vpop.f32.mrf.mxu3 }
  0xb1   : > { %v976_v9 = vpop.f32.mrf.mxu2  ;;  %v800_v10 = vpop.f32.mrf.mxu0 }
  0xb2   : > { %v889_v12 = vpop.f32.mrf.mxu1  ;;  %v801_v13 = vadd.f32 %v2138_v5, %v800_v10  ;;  %v977_v19 = vadd.f32 %v976_v9, %v888_v11  ;;  %v1433_v10 = vld [vmem:[%s2027_s8 + $0x108] sm:$0xf]  ;;  %v1623_v11 = vld [vmem:[%s2027_s8 + $0x110] sm:$0xf0] }
  0xb3   : > { %v1434_v22 = vor.u32 %v1623_v11, %v1433_v10 }
  0xb4   : > { %v890_v24 = vadd.f32 %v889_v12, %v801_v13  ;;  %1806 = vtanh.f32 %v977_v19  ;;  %v1622_v12 = vld [vmem:[%s2027_s8 + $0x10c] sm:$0xf]  ;;  %v1489_v13 = vld [vmem:[%s2027_s8 + $0x170] sm:$0xf] }
  0xb7   : > { %v2152_v25 = vpop.f32.mrf.mxu3 }
  0xb9   : > { %v978_v23 = vpop.f32.mrf.mxu2  ;;  %v803_v29 = vpop.f32.mrf.mxu0 }
  0xba   : > { %v979_v28 = vadd.f32 %v978_v23, %v890_v24  ;;  %v892_v32 = vpop.f32.mrf.mxu1  ;;  %v804_v33 = vadd.f32 %v2138_v5, %v803_v29  ;;  %v1807_v35 = vpop.eup %1806  ;;  %v1490_v24 = vor.u32 %v1636_v14, %v1489_v13 }
  0xbc   : > { %1808 = vtanh.f32 %v979_v28  ;;  %842 = vmatmul.bf16.gmra.mxu0 %v1410_v26  ;;  %1040 = vmatmul.bf16.gmra.mxu3 %v1466_v27  ;;  %v893_v40 = vadd.f32 %v892_v32, %v804_v33  ;;  %v1438_v27 = vor.u32 %v1622_v12, %v1435_v16  ;;  %v1442_v28 = vor.u32 %v1624_v18, %v1441_v17 }
  0xbd   : > { %931 = vmatmul.bf16.gmra.mxu1 %v1414_v30 }
  0xbe   : > { %1020 = vmatmul.bf16.gmra.mxu2 %v1418_v31 }
  0xbf   : > { %v2156_v34 = vpop.f32.mrf.mxu3 }
  0xc1   : > { %v981_v36 = vpop.f32.mrf.mxu2  ;;  %v805_v38 = vpop.f32.mrf.mxu0 }
  0xc2   : > { %v1809_v37 = vpop.eup %1808  ;;  %v894_v41 = vpop.f32.mrf.mxu1  ;;  %v806_v42 = vadd.f32 %v2138_v5, %v805_v38  ;;  %v982_v48 = vadd.f32 %v981_v36, %v893_v40 }
  0xc3   : > { %v1664_v39 = vpack.c.bf16 %v1809_v37, %v1807_v35 }
  0xc4   : > { %v895_v52 = vadd.f32 %v894_v41, %v806_v42  ;;  %1810 = vtanh.f32 %v982_v48  ;;  %v859_v48 = vadd.f32 %v2138_v5, %v2141_v8 }
  0xc5   : > { %1665 = vst [vmem:[%s2161_s27] sm:$0xff] %v1664_v39  }
  0xc7   : > { %v2173_v53 = vpop.f32.mrf.mxu3 }
  0xc9   : > { %v983_v54 = vpop.f32.mrf.mxu2  ;;  %v808_v58 = vpop.f32.mrf.mxu0 }
  0xca   : > { %v984_v57 = vadd.f32 %v983_v54, %v895_v52  ;;  %v897_v61 = vpop.f32.mrf.mxu1  ;;  %v809_v62 = vadd.f32 %v2138_v5, %v808_v58  ;;  %v1811_v0 = vpop.eup %1810 }
  0xcc   : > { %1812 = vtanh.f32 %v984_v57  ;;  %847 = vmatmul.bf16.gmra.mxu0 %v1422_v55  ;;  %1045 = vmatmul.bf16.gmra.mxu3 %v1478_v56  ;;  %v898_v6 = vadd.f32 %v897_v61, %v809_v62 }
  0xcd   : > { %936 = vmatmul.bf16.gmra.mxu1 %v1426_v59 }
  0xce   : > { %1025 = vmatmul.bf16.gmra.mxu2 %v1430_v60 }
  0xcf   : > { %v2176_v63 = vpop.f32.mrf.mxu3 }
  0xd1   : > { %v986_v1 = vpop.f32.mrf.mxu2  ;;  %v810_v3 = vpop.f32.mrf.mxu0 }
  0xd2   : > { %v1813_v2 = vpop.eup %1812  ;;  %v899_v7 = vpop.f32.mrf.mxu1  ;;  %v811_v9 = vadd.f32 %v2138_v5, %v810_v3  ;;  %v987_v15 = vadd.f32 %v986_v1, %v898_v6 }
  0xd3   : > { %v1669_v4 = vpack.c.bf16 %v1813_v2, %v1811_v0 }
  0xd4   : > { %v900_v19 = vadd.f32 %v899_v7, %v811_v9  ;;  %1814 = vtanh.f32 %v987_v15 }
  0xd5   : > { %1741 = vst [vmem:[%s2161_s27 + $0x8] sm:$0xff] %v1669_v4   ;;  %v864_v4 = vadd.f32 %v2138_v5, %v2156_v34 }
  0xd7   : > { %v2188_v20 = vpop.f32.mrf.mxu3 }
  0xd9   : > { %v988_v21 = vpop.f32.mrf.mxu2  ;;  %v813_v26 = vpop.f32.mrf.mxu0 }
  0xda   : > { %v989_v23 = vadd.f32 %v988_v21, %v900_v19  ;;  %v902_v29 = vpop.f32.mrf.mxu1  ;;  %v814_v30 = vadd.f32 %v2138_v5, %v813_v26  ;;  %v1815_v32 = vpop.eup %1814  ;;  %v869_v26 = vadd.f32 %v2138_v5, %v2176_v63 }
  0xdc   : > { %1816 = vtanh.f32 %v989_v23  ;;  %852 = vmatmul.bf16.gmra.mxu0 %v1434_v22  ;;  %1050 = vmatmul.bf16.gmra.mxu3 %v1490_v24  ;;  %v903_v38 = vadd.f32 %v902_v29, %v814_v30 }
  0xdd   : > { %941 = vmatmul.bf16.gmra.mxu1 %v1438_v27 }
  0xde   : > { %1030 = vmatmul.bf16.gmra.mxu2 %v1442_v28 }
  0xdf   : > { %v2191_v31 = vpop.f32.mrf.mxu3 }
  0xe1   : > { %v991_v33 = vpop.f32.mrf.mxu2  ;;  %v815_v36 = vpop.f32.mrf.mxu0 }
  0xe2   : > { %v1817_v35 = vpop.eup %1816  ;;  %v904_v39 = vpop.f32.mrf.mxu1  ;;  %v816_v40 = vadd.f32 %v2138_v5, %v815_v36  ;;  %v992_v41 = vadd.f32 %v991_v33, %v903_v38 }
  0xe3   : > { %v1674_v37 = vpack.c.bf16 %v1817_v35, %v1815_v32 }
  0xe4   : > { %v905_v42 = vadd.f32 %v904_v39, %v816_v40  ;;  %1818 = vtanh.f32 %v992_v41 }
  0xe5   : > { %1742 = vst [vmem:[%s2161_s27 + $0x10] sm:$0xff] %v1674_v37  }
  0xe7   : > { %v2195_v43 = vpop.f32.mrf.mxu3 }
  0xe9   : > { %v993_v44 = vpop.f32.mrf.mxu2  ;;  %v818_v46 = vpop.f32.mrf.mxu0 }
  0xea   : > { %v994_v45 = vadd.f32 %v993_v44, %v905_v42  ;;  %v907_v47 = vpop.f32.mrf.mxu1  ;;  %v819_v49 = vadd.f32 %v2138_v5, %v818_v46  ;;  %v1819_v51 = vpop.eup %1818 }
  0xec   : > { %1820 = vtanh.f32 %v994_v45  ;;  %v908_v58 = vadd.f32 %v907_v47, %v819_v49  ;;  %v874_v47 = vadd.f32 %v2138_v5, %v2191_v31 }
  0xef   : > { %v947_v50 = vpop.f32.mrf.mxu3 }
  0xf0   : > { %v2200_v52 = vadd.f32 %v947_v50, %v859_v48 }
  0xf1   : > { %v996_v54 = vpop.f32.mrf.mxu2  ;;  %v820_v56 = vpop.f32.mrf.mxu0 }
  0xf2   : > { %v1821_v55 = vpop.eup %1820  ;;  %v909_v59 = vpop.f32.mrf.mxu1  ;;  %v821_v60 = vadd.f32 %v2138_v5, %v820_v56  ;;  %v997_v61 = vadd.f32 %v996_v54, %v908_v58 }
  0xf3   : > { %v1679_v57 = vpack.c.bf16 %v1821_v55, %v1819_v51 }
  0xf4   : > { %v910_v62 = vadd.f32 %v909_v59, %v821_v60  ;;  %1822 = vtanh.f32 %v997_v61 }
  0xf5   : > { %1743 = vst [vmem:[%s2161_s27 + $0x18] sm:$0xff] %v1679_v57  }
  0xf7   : > { %v2204_v0 = vpop.f32.mrf.mxu3 }
  0xf9   : > { %v998_v8 = vpop.f32.mrf.mxu2  ;;  %v823_v2 = vpop.f32.mrf.mxu0 }
  0xfa   : > { %v999_v1 = vadd.f32 %v998_v8, %v910_v62  ;;  %v912_v3 = vpop.f32.mrf.mxu1  ;;  %v824_v6 = vadd.f32 %v2138_v5, %v823_v2  ;;  %v1823_v9 = vpop.eup %1822 }
  0xfc   : > { %1824 = vtanh.f32 %v999_v1  ;;  %v913_v15 = vadd.f32 %v912_v3, %v824_v6 }
  0xff   : > { %v952_v7 = vpop.f32.mrf.mxu3 }
 0x100   : > { %v2209_v10 = vadd.f32 %v952_v7, %v864_v4 }
 0x101   : > { %v1001_v11 = vpop.f32.mrf.mxu2  ;;  %v825_v13 = vpop.f32.mrf.mxu0 }
 0x102   : > { %v1825_v12 = vpop.eup %1824  ;;  %v914_v16 = vpop.f32.mrf.mxu1  ;;  %v826_v17 = vadd.f32 %v2138_v5, %v825_v13  ;;  %v1002_v18 = vadd.f32 %v1001_v11, %v913_v15 }
 0x103   : > { %v1684_v14 = vpack.c.bf16 %v1825_v12, %v1823_v9 }
 0x104   : > { %v915_v19 = vadd.f32 %v914_v16, %v826_v17  ;;  %1826 = vtanh.f32 %v1002_v18  ;;  %v861_v17 = vadd.f32 %v2138_v5, %v2152_v25 }
 0x105   : > { %1744 = vst [vmem:[%s2161_s27 + $0x20] sm:$0xff] %v1684_v14  }
 0x107   : > { %v2213_v21 = vpop.f32.mrf.mxu3 }
 0x109   : > { %v1003_v34 = vpop.f32.mrf.mxu2  ;;  %v828_v24 = vpop.f32.mrf.mxu0 }
 0x10a   : > { %v1004_v22 = vadd.f32 %v1003_v34, %v915_v19  ;;  %v917_v23 = vpop.f32.mrf.mxu1  ;;  %v829_v27 = vadd.f32 %v2138_v5, %v828_v24  ;;  %v1827_v29 = vpop.eup %1826  ;;  %v950_v34 = vadd.f32 %v2204_v0, %v861_v17 }
 0x10c   : > { %1828 = vtanh.f32 %v1004_v22  ;;  %v918_v37 = vadd.f32 %v917_v23, %v829_v27 }
 0x10f   : > { %v957_v28 = vpop.f32.mrf.mxu3 }
 0x110   : > { %v2218_v30 = vadd.f32 %v957_v28, %v869_v26 }
 0x111   : > { %v1006_v32 = vpop.f32.mrf.mxu2  ;;  %v830_v35 = vpop.f32.mrf.mxu0 }
 0x112   : > { %v1829_v33 = vpop.eup %1828  ;;  %v919_v38 = vpop.f32.mrf.mxu1  ;;  %v831_v39 = vadd.f32 %v2138_v5, %v830_v35  ;;  %v1007_v40 = vadd.f32 %v1006_v32, %v918_v37 }
 0x113   : > { %v1689_v36 = vpack.c.bf16 %v1829_v33, %v1827_v29 }
 0x114   : > { %v920_v41 = vadd.f32 %v919_v38, %v831_v39  ;;  %1830 = vtanh.f32 %v1007_v40 }
 0x115   : > { %1745 = vst [vmem:[%s2161_s27 + $0x28] sm:$0xff] %v1689_v36  }
 0x117   : > { %v2222_v42 = vpop.f32.mrf.mxu3 }
 0x119   : > { %v1008_v63 = vpop.f32.mrf.mxu2  ;;  %v833_v45 = vpop.f32.mrf.mxu0 }
 0x11a   : > { %v1009_v44 = vadd.f32 %v1008_v63, %v920_v41  ;;  %v922_v46 = vpop.f32.mrf.mxu1  ;;  %v834_v48 = vadd.f32 %v2138_v5, %v833_v45  ;;  %v1831_v50 = vpop.eup %1830 }
 0x11c   : > { %1832 = vtanh.f32 %v1009_v44  ;;  %v923_v58 = vadd.f32 %v922_v46, %v834_v48  ;;  %v866_v44 = vadd.f32 %v2138_v5, %v2173_v53 }
 0x11f   : > { %v962_v49 = vpop.f32.mrf.mxu3 }
 0x120   : > { %v2227_v51 = vadd.f32 %v962_v49, %v874_v47  ;;  %v955_v47 = vadd.f32 %v2213_v21, %v866_v44 }
 0x121   : > { %v1011_v54 = vpop.f32.mrf.mxu2  ;;  %v835_v56 = vpop.f32.mrf.mxu0 }
 0x122   : > { %v1833_v55 = vpop.eup %1832  ;;  %v924_v59 = vpop.f32.mrf.mxu1  ;;  %v836_v60 = vadd.f32 %v2138_v5, %v835_v56  ;;  %v1012_v61 = vadd.f32 %v1011_v54, %v923_v58 }
 0x123   : > { %v1694_v57 = vpack.c.bf16 %v1833_v55, %v1831_v50 }
 0x124   : > { %v925_v62 = vadd.f32 %v924_v59, %v836_v60  ;;  %1834 = vtanh.f32 %v1012_v61 }
 0x125   : > { %1746 = vst [vmem:[%s2161_s27 + $0x30] sm:$0xff] %v1694_v57  }
 0x127   : > { %v2231_v8 = vpop.f32.mrf.mxu3 }
 0x129   : > { %v1013_v31 = vpop.f32.mrf.mxu2  ;;  %v838_v2 = vpop.f32.mrf.mxu0 }
 0x12a   : > { %v1014_v1 = vadd.f32 %v1013_v31, %v925_v62  ;;  %v927_v3 = vpop.f32.mrf.mxu1  ;;  %v839_v4 = vadd.f32 %v2138_v5, %v838_v2  ;;  %v1835_v7 = vpop.eup %1834 }
 0x12c   : > { %1836 = vtanh.f32 %v1014_v1  ;;  %v928_v12 = vadd.f32 %v927_v3, %v839_v4 }
 0x12f   : > { %v1036_v6 = vpop.f32.mrf.mxu3 }
 0x130   : > { %v1037_v18 = vadd.f32 %v1036_v6, %v2200_v52  ;;  %v871_v6 = vadd.f32 %v2138_v5, %v2188_v20 }
 0x131   : > { %v1016_v9 = vpop.f32.mrf.mxu2  ;;  %v840_v13 = vpop.f32.mrf.mxu0 }
 0x132   : > { %v1837_v11 = vpop.eup %1836  ;;  %v929_v15 = vpop.f32.mrf.mxu1  ;;  %v841_v16 = vadd.f32 %v2138_v5, %v840_v13  ;;  %v1017_v19 = vadd.f32 %v1016_v9, %v928_v12  ;;  %1838 = vtanh.f32 %v1037_v18 }
 0x133   : > { %v1699_v14 = vpack.c.bf16 %v1837_v11, %v1835_v7  ;;  %v960_v11 = vadd.f32 %v2222_v42, %v871_v6 }
 0x134   : > { %v930_v22 = vadd.f32 %v929_v15, %v841_v16  ;;  %1840 = vtanh.f32 %v1017_v19 }
 0x135   : > { %1747 = vst [vmem:[%s2161_s27 + $0x38] sm:$0xff] %v1699_v14  }
 0x137   : > { %v1038_v24 = vpop.f32.mrf.mxu3 }
 0x138   : > { %v1039_v26 = vadd.f32 %v1038_v24, %v950_v34  ;;  %v1839_v32 = vpop.eup %1838 }
 0x139   : > { %v1018_v23 = vpop.f32.mrf.mxu2  ;;  %v843_v28 = vpop.f32.mrf.mxu0 }
 0x13a   : > { %v1019_v27 = vadd.f32 %v1018_v23, %v930_v22  ;;  %1842 = vtanh.f32 %v1039_v26  ;;  %v932_v29 = vpop.f32.mrf.mxu1  ;;  %v844_v25 = vadd.f32 %v2138_v5, %v843_v28  ;;  %v1841_v52 = vpop.eup %1840 }
 0x13c   : > { %1844 = vtanh.f32 %v1019_v27  ;;  %v933_v38 = vadd.f32 %v932_v29, %v844_v25  ;;  %v876_v25 = vadd.f32 %v2138_v5, %v2195_v43 }
 0x13f   : > { %v1041_v33 = vpop.f32.mrf.mxu3 }
 0x140   : > { %v1843_v35 = vpop.eup %1842  ;;  %v1042_v45 = vadd.f32 %v1041_v33, %v2209_v10  ;;  %v965_v33 = vadd.f32 %v2231_v8, %v876_v25 }
 0x141   : > { %v1021_v0 = vpop.f32.mrf.mxu2  ;;  %v1724_v37 = vpack.c.bf16 %v1843_v35, %v1839_v32  ;;  %v845_v39 = vpop.f32.mrf.mxu0 }
 0x142   : > { %v1845_v36 = vpop.eup %1844  ;;  %v934_v41 = vpop.f32.mrf.mxu1  ;;  %v846_v63 = vadd.f32 %v2138_v5, %v845_v39  ;;  %v1022_v46 = vadd.f32 %v1021_v0, %v933_v38  ;;  %1846 = vtanh.f32 %v1042_v45 }
 0x143   : > { %v1704_v40 = vpack.c.bf16 %v1845_v36, %v1841_v52  ;;  %1752 = vst [vmem:[%s2161_s27 + $0x60] sm:$0xff] %v1724_v37  }
 0x144   : > { %v935_v48 = vadd.f32 %v934_v41, %v846_v63  ;;  %1848 = vtanh.f32 %v1022_v46 }
 0x145   : > { %1748 = vst [vmem:[%s2161_s27 + $0x40] sm:$0xff] %v1704_v40  }
 0x147   : > { %v1043_v49 = vpop.f32.mrf.mxu3 }
 0x148   : > { %v1044_v54 = vadd.f32 %v1043_v49, %v955_v47  ;;  %v1847_v58 = vpop.eup %1846 }
 0x149   : > { %v1023_v50 = vpop.f32.mrf.mxu2  ;;  %v848_v56 = vpop.f32.mrf.mxu0 }
 0x14a   : > { %v1024_v55 = vadd.f32 %v1023_v50, %v935_v48  ;;  %1850 = vtanh.f32 %v1044_v54  ;;  %v937_v57 = vpop.f32.mrf.mxu1  ;;  %v849_v53 = vadd.f32 %v2138_v5, %v848_v56  ;;  %v1849_v10 = vpop.eup %1848 }
 0x14c   : > { %1852 = vtanh.f32 %v1024_v55  ;;  %v938_v31 = vadd.f32 %v937_v57, %v849_v53 }
 0x14f   : > { %v1046_v59 = vpop.f32.mrf.mxu3 }
 0x150   : > { %v1851_v60 = vpop.eup %1850  ;;  %v1047_v7 = vadd.f32 %v1046_v59, %v2218_v30 }
 0x151   : > { %v1026_v21 = vpop.f32.mrf.mxu2  ;;  %v1729_v62 = vpack.c.bf16 %v1851_v60, %v1847_v58  ;;  %v850_v1 = vpop.f32.mrf.mxu0 }
 0x152   : > { %v1853_v61 = vpop.eup %1852  ;;  %v939_v3 = vpop.f32.mrf.mxu1  ;;  %v851_v4 = vadd.f32 %v2138_v5, %v850_v1  ;;  %v1027_v9 = vadd.f32 %v1026_v21, %v938_v31  ;;  %1854 = vtanh.f32 %v1047_v7 }
 0x153   : > { %v1709_v2 = vpack.c.bf16 %v1853_v61, %v1849_v10  ;;  %1753 = vst [vmem:[%s2161_s27 + $0x68] sm:$0xff] %v1729_v62  }
 0x154   : > { %v940_v12 = vadd.f32 %v939_v3, %v851_v4  ;;  %1856 = vtanh.f32 %v1027_v9 }
 0x155   : > { %1749 = vst [vmem:[%s2161_s27 + $0x48] sm:$0xff] %v1709_v2  }
 0x157   : > { %v1048_v13 = vpop.f32.mrf.mxu3 }
 0x158   : > { %v1049_v15 = vadd.f32 %v1048_v13, %v960_v11  ;;  %v1855_v19 = vpop.eup %1854 }
 0x159   : > { %v1028_v14 = vpop.f32.mrf.mxu2  ;;  %v853_v17 = vpop.f32.mrf.mxu0 }
 0x15a   : > { %v1029_v16 = vadd.f32 %v1028_v14, %v940_v12  ;;  %1858 = vtanh.f32 %v1049_v15  ;;  %v942_v18 = vpop.f32.mrf.mxu1  ;;  %v854_v20 = vadd.f32 %v2138_v5, %v853_v17  ;;  %v1857_v30 = vpop.eup %1856 }
 0x15c   : > { %1860 = vtanh.f32 %v1029_v16  ;;  %v943_v26 = vadd.f32 %v942_v18, %v854_v20 }
 0x15f   : > { %v1051_v34 = vpop.f32.mrf.mxu3 }
 0x160   : > { %v1859_v22 = vpop.eup %1858  ;;  %v1052_v32 = vadd.f32 %v1051_v34, %v2227_v51 }
 0x161   : > { %v1031_v42 = vpop.f32.mrf.mxu2  ;;  %v1734_v23 = vpack.c.bf16 %v1859_v22, %v1855_v19  ;;  %v855_v27 = vpop.f32.mrf.mxu0 }
 0x162   : > { %v1861_v24 = vpop.eup %1860  ;;  %v856_v29 = vadd.f32 %v2138_v5, %v855_v27  ;;  %v1032_v52 = vadd.f32 %v1031_v42, %v943_v26  ;;  %v944_v35 = vpop.f32.mrf.mxu1  ;;  %1862 = vtanh.f32 %v1052_v32 }
 0x163   : > { %v1714_v28 = vpack.c.bf16 %v1861_v24, %v1857_v30  ;;  %1754 = vst [vmem:[%s2161_s27 + $0x70] sm:$0xff] %v1734_v23  }
 0x164   : > { %v945_v0 = vadd.f32 %v944_v35, %v856_v29  ;;  %1864 = vtanh.f32 %v1032_v52 }
 0x165   : > { %1750 = vst [vmem:[%s2161_s27 + $0x50] sm:$0xff] %v1714_v28  }
 0x167   : > { %v1053_v36 = vpop.f32.mrf.mxu3 }
 0x168   : > { %v1054_v38 = vadd.f32 %v1053_v36, %v965_v33  ;;  %v1863_v40 = vpop.eup %1862 }
 0x169   : > { %v1033_v37 = vpop.f32.mrf.mxu2 }
 0x16a   : > { %v1034_v39 = vadd.f32 %v1033_v37, %v945_v0  ;;  %1866 = vtanh.f32 %v1054_v38  ;;  %v1865_v5 = vpop.eup %1864 }
 0x16c   : > { %1868 = vtanh.f32 %v1034_v39 }
 0x170   : > { %v1867_v43 = vpop.eup %1866 }
 0x171   : > { %v1739_v51 = vpack.c.bf16 %v1867_v43, %v1863_v40 }
 0x172   : > { %v1869_v41 = vpop.eup %1868 }
 0x173   : > { %v1719_v63 = vpack.c.bf16 %v1869_v41, %v1865_v5  ;;  %1755 = vst [vmem:[%s2161_s27 + $0x78] sm:$0xff] %v1739_v51  }
 0x175   : > { %1751 = vst [vmem:[%s2161_s27 + $0x58] sm:$0xff] %v1719_v63  }
 0x176 PF: > { %s13_s14 = sadd.s32 1, %s1892_s14   ;;  %s2279_s12 = smov %s1888_s13 }
 0x177   : > { %p10_p5 = scmp.ge.s32.totalorder %s13_s14, 4   ;;  %s2280_s13 = smov %s2282_s15 }
 0x179   :  { %12 = sbr.rel (!%p10_p5) target bundleno = 2 (0x2), region = 68 }

</bundles_post_ra>
